<compile_context>
chip_gen: v5e
topology: v5e:2x2
jax: 0.10.0
libtpu: 0.0.40
codegen_flags: <defaults>
</compile_context>

<pallas_src>
import functools
import math

import jax
import jax.numpy as jnp
from jax.experimental import pallas as pl
from jax.experimental.pallas import tpu as pltpu

HIDDEN = 256  # fixed by the module: self.hidden_neurons = 256


def _round_up(x, m):
    return (x + m - 1) // m * m


def _cdiv(a, b):
    return -(-a // b)


# ---------------------------------------------------------------------------
# Pallas kernel: whole MLP hot path for one batch tile
# (7 dense layers, ReLUs, concat-free fc5a, exact softmax, VPU critic head)
# ---------------------------------------------------------------------------
def _actor_critic_kernel(states_ref,
                         w1_ref, w2_ref, w3a_ref, w3b_ref, w4a_ref, w5a_ref,
                         smalls_ref,
                         actor_ref, value_ref, *, action_dim):
    A = action_dim
    sm = smalls_ref[...]  # (8, 256) f32: rows 0-5 biases, 6 = fc4b weight col, 7 = fc4b bias

    def dense(x_bf16, w_ref, bias_row):
        # bf16 MXU inputs, f32 accumulation, bias add in f32.
        return jnp.dot(x_bf16, w_ref[...], preferred_element_type=jnp.float32) + bias_row

    # fc1 over the raw padded state tile: play_options rows and column-padding rows of
    # w1 are zero, so this equals fc1(concat([on_table, on_hand, played, add_states])).
    x = jnp.maximum(dense(states_ref[...], w1_ref, sm[0:1, :]), 0.0)           # fc1 + relu
    x = jnp.maximum(dense(x.astype(jnp.bfloat16), w2_ref, sm[1:2, :]), 0.0)    # fc2 + relu
    ax = jnp.maximum(dense(x.astype(jnp.bfloat16), w3a_ref, sm[2:3, :]), 0.0)  # fc3a + relu
    bx = jnp.maximum(dense(x.astype(jnp.bfloat16), w3b_ref, sm[3:4, :]), 0.0)  # fc3b + relu
    ax = dense(ax.astype(jnp.bfloat16), w4a_ref, sm[4:5, :])                   # fc4a -> (TM, A)

    # Critic head (fc4b, single output column): VPU multiply + cross-lane reduce instead
    # of an N=1 MXU matmul; exact (TM, 1) lane column written straight to the output.
    value_ref[...] = (jnp.sum(bx * sm[6:7, :], axis=-1, keepdims=True)
                      + sm[7:8, 0:1])

    # play_options is a lane-aligned static window of the resident state tile.
    opts = states_ref[:, 3 * A:4 * A]                                          # (TM, A) bf16

    # fc5a on concat([fc4a_out, play_options]) without materializing the concat:
    # static row slices of the VMEM-resident weight ref are free.
    logits = (jnp.dot(ax.astype(jnp.bfloat16), w5a_ref[:HIDDEN, :],
                      preferred_element_type=jnp.float32)
              + jnp.dot(opts, w5a_ref[HIDDEN:, :],
                        preferred_element_type=jnp.float32)
              + sm[5:6, :])

    # exact softmax over the action axis (exp on EUP; exact division avoids the
    # systematic normalization bias of approx reciprocal for PPO log-prob consumers)
    m = jnp.max(logits, axis=-1, keepdims=True)
    e = jnp.exp(logits - m)
    actor_ref[...] = e / jnp.sum(e, axis=-1, keepdims=True)


def _resident(shape):
    # whole array, same block every grid step -> stays VMEM-resident (no re-DMA)
    return pl.BlockSpec(shape, lambda i: (0,) * len(shape))


# ---------------------------------------------------------------------------
# Wrapper: tile-size selection, pad/cast glue + pallas_call
# ---------------------------------------------------------------------------
@functools.partial(jax.jit, static_argnames=("action_dim", "block_rows"))
def actor_critic_forward(states, packed, action_dim, block_rows=512):
    """states: (B, state_dim) f32 batch of raw state vectors (vmap of the module's 1-D path).

    Returns (actor_probs (B, A) f32, state_value (B, 1) f32)."""
    assert block_rows % 128 == 0, "block_rows must be a multiple of 128"
    A = action_dim
    B, state_dim = states.shape
    k_pad = packed["w1"].shape[0]
    assert k_pad == _round_up(state_dim, 128), "packed params built for a different state_dim"

    # Tile picker: largest tile up to block_rows, but keep >= 2 grid steps whenever the
    # 128-rounded batch allows it so v7x's two TensorCores both get work; tiles stay
    # multiples of 128 rows (sublane-friendly, avoids excessive padding of odd batches).
    b128 = _round_up(B, 128)
    n_tiles = max(2, _cdiv(b128, block_rows)) if b128 >= 256 else 1
    tm = _round_up(_cdiv(b128, n_tiles), 128)
    n_tiles = _cdiv(b128, tm)
    b_pad = n_tiles * tm

    # Single fused cast+pad of the raw batch (bf16 halves the dominant HBM input stream).
    s = jnp.pad(states.astype(jnp.bfloat16),
                ((0, b_pad - B), (0, k_pad - state_dim)))

    weight_names = ("w1", "w2", "w3a", "w3b", "w4a", "w5a", "smalls")
    flat_inputs = (s,) + tuple(packed[n] for n in weight_names)

    in_specs = [
        pl.BlockSpec((tm, k_pad), lambda i: (i, 0)),            # per-step raw-state tile
    ] + [_resident(packed[n].shape) for n in weight_names]      # weights stay resident

    out_specs = (pl.BlockSpec((tm, A), lambda i: (i, 0)),       # actor probs tile
                 pl.BlockSpec((tm, 1), lambda i: (i, 0)))       # exact value column
    out_shape = (jax.ShapeDtypeStruct((b_pad, A), jnp.float32),
                 jax.ShapeDtypeStruct((b_pad, 1), jnp.float32))

    actor_pad, value_pad = pl.pallas_call(
        functools.partial(_actor_critic_kernel, action_dim=A),
        grid=(n_tiles,),
        in_specs=in_specs,
        out_specs=out_specs,
        out_shape=out_shape,
        compiler_params=pltpu.CompilerParams(
            dimension_semantics=("parallel",)),   # megacore split on v7x
    )(*flat_inputs)

    return actor_pad[:B], value_pad[:B]


# ---------------------------------------------------------------------------
# Parameter init (PyTorch-style uniform) + packing into kernel format
# ---------------------------------------------------------------------------
def init_params(key, state_dim, action_dim):
    """f32 params; weights (in_features, out_features), biases (out_features,)."""
    info_dim = state_dim - 4 * action_dim + 3 * action_dim      # == state_dim - action_dim
    layer_dims = [
        ("fc1", info_dim, HIDDEN),
        ("fc2", HIDDEN, HIDDEN),
        ("fc3a", HIDDEN, HIDDEN),
        ("fc3b", HIDDEN, HIDDEN),
        ("fc4a", HIDDEN, action_dim),
        ("fc4b", HIDDEN, 1),
        ("fc5a", HIDDEN + action_dim, action_dim),              # as declared in __init__
    ]
    params = {}
    for name, fan_in, fan_out in layer_dims:
        key, kw, kb = jax.random.split(key, 3)
        bound = 1.0 / math.sqrt(fan_in)
        params[name + "_w"] = jax.random.uniform(kw, (fan_in, fan_out), jnp.float32,
                                                 -bound, bound)
        params[name + "_b"] = jax.random.uniform(kb, (fan_out,), jnp.float32,
                                                 -bound, bound)
    return params


def pack_params(params, state_dim, action_dim):
    """bf16 weights; w1 expanded to the full padded raw-state width (play_options rows
    and column-padding rows are zero); biases/fc4b packed into one (8, 256) f32 buffer."""
    assert action_dim == HIDDEN, "module's fc5a shape requires action_dim == 256"
    A = action_dim
    add_dim = state_dim - 4 * A                 # additional-state features
    k_pad = _round_up(state_dim, 128)

    def bf(x):
        return x.astype(jnp.bfloat16)

    fc1_w = bf(params["fc1_w"])                 # (3A + add_dim, 256)
    w1 = jnp.zeros((k_pad, HIDDEN), jnp.bfloat16)
    w1 = w1.at[0:3 * A, :].set(fc1_w[0:3 * A, :])                   # on_table/on_hand/played
    w1 = w1.at[4 * A:4 * A + add_dim, :].set(fc1_w[3 * A:, :])      # add_states
    # rows [3A:4A) (play_options) and [4A+add_dim:k_pad) (column padding) stay zero.

    smalls = jnp.zeros((8, HIDDEN), jnp.float32)
    smalls = smalls.at[0].set(params["fc1_b"])
    smalls = smalls.at[1].set(params["fc2_b"])
    smalls = smalls.at[2].set(params["fc3a_b"])
    smalls = smalls.at[3].set(params["fc3b_b"])
    smalls = smalls.at[4].set(params["fc4a_b"])
    smalls = smalls.at[5].set(params["fc5a_b"])
    smalls = smalls.at[6].set(params["fc4b_w"][:, 0])      # fc4b weight column as a row
    smalls = smalls.at[7, 0].set(params["fc4b_b"][0])      # fc4b bias

    return {
        "w1": w1,
        "w2": bf(params["fc2_w"]),
        "w3a": bf(params["fc3a_w"]),
        "w3b": bf(params["fc3b_w"]),
        "w4a": bf(params["fc4a_w"]),
        "w5a": bf(params["fc5a_w"]),     # (HIDDEN + A, A); rows [:H]=fc4a_out, [H:]=play_options
        "smalls": smalls,
    }


# ---------------------------------------------------------------------------
# Pure-JAX reference mirroring the kernel math (bf16 matmul inputs, f32 accumulation).
# This validates the Pallas kernel; absolute accuracy vs. the f32 PyTorch module is
# within bf16-weight tolerance (a deliberate performance choice).
# ---------------------------------------------------------------------------
def reference_forward(states, packed, action_dim):
    A = action_dim
    k_pad = packed["w1"].shape[0]
    s = jnp.pad(states, ((0, 0), (0, k_pad - states.shape[1]))).astype(jnp.bfloat16)
    sm = packed["smalls"]

    def dense(x, w):
        return jnp.dot(x, w, preferred_element_type=jnp.float32)

    x = jax.nn.relu(dense(s, packed["w1"]) + sm[0:1, :])
    x = jax.nn.relu(dense(x.astype(jnp.bfloat16), packed["w2"]) + sm[1:2, :])
    ax = jax.nn.relu(dense(x.astype(jnp.bfloat16), packed["w3a"]) + sm[2:3, :])
    bx = jax.nn.relu(dense(x.astype(jnp.bfloat16), packed["w3b"]) + sm[3:4, :])
    ax = dense(ax.astype(jnp.bfloat16), packed["w4a"]) + sm[4:5, :]
    val = jnp.sum(bx * sm[6:7, :], axis=-1, keepdims=True) + sm[7:8, 0:1]
    opts = s[:, 3 * A:4 * A]
    logits = (dense(ax.astype(jnp.bfloat16), packed["w5a"][:HIDDEN, :])
              + dense(opts, packed["w5a"][HIDDEN:, :])
              + sm[5:6, :])
    return jax.nn.softmax(logits, axis=-1), val


if __name__ == "__main__":
    # action_dim must equal HIDDEN (=256) for fc5a's declared in_features
    # (hidden_neurons + action_dim) to match the forward's concat of 2*action_dim.
    action_dim = 256
    assert action_dim == HIDDEN
    state_dim = 4 * action_dim + 40       # 4 card blocks + 40 additional state features
    batch = 256                           # demo batch; tile picker gives 2 x 128-row tiles

    key = jax.random.PRNGKey(0)
    key, k_states = jax.random.split(key)
    states = jax.random.uniform(k_states, (batch, state_dim), jnp.float32)

    params = init_params(key, state_dim, action_dim)
    packed = pack_params(params, state_dim, action_dim)

    actor, value = actor_critic_forward(states, packed, action_dim)
    jax.block_until_ready((actor, value))

    ref_actor, ref_value = reference_forward(states, packed, action_dim)

    assert actor.shape == (batch, action_dim)
    assert value.shape == (batch, 1)
    assert jnp.allclose(actor, ref_actor, rtol=1e-2, atol=1e-5)
    assert jnp.allclose(value, ref_value, rtol=1e-3, atol=1e-4)
    assert jnp.allclose(jnp.sum(actor, axis=-1), 1.0, atol=1e-3)

    # TODO(synk): preprocess() (numpy one-hot game-state encoding) and evaluate()'s
    # Categorical log-prob/entropy are host-side / distribution ops outside this kernel.
    print("KERNEL_OK")
</pallas_src>

<mosaic_0001>
module attributes {stable_mosaic.version = 11 : i64} {
  func.func @_actor_critic_kernel(%arg0: i32, %arg1: memref<128x1152xbf16, #tpu.memory_space<vmem>>, %arg2: memref<1152x256xbf16, #tpu.memory_space<vmem>>, %arg3: memref<256x256xbf16, #tpu.memory_space<vmem>>, %arg4: memref<256x256xbf16, #tpu.memory_space<vmem>>, %arg5: memref<256x256xbf16, #tpu.memory_space<vmem>>, %arg6: memref<256x256xbf16, #tpu.memory_space<vmem>>, %arg7: memref<512x256xbf16, #tpu.memory_space<vmem>>, %arg8: memref<8x256xf32, #tpu.memory_space<vmem>>, %arg9: memref<128x256xf32, #tpu.memory_space<vmem>>, %arg10: memref<128x1xf32, #tpu.memory_space<vmem>>) attributes {dimension_semantics = [#tpu.dimension_semantics<parallel>], iteration_bounds = array<i64: 2>, scalar_prefetch = 0 : i64, scratch_operands = 0 : i64, tpu.core_type = #tpu.core_type<tc>, window_params = [{transform_indices = @transform_0, window_bounds = array<i64: 128, 1152>}, {pipeline_mode = #tpu.pipeline_mode<synchronous>, transform_indices = @transform_1, window_bounds = array<i64: 1152, 256>}, {pipeline_mode = #tpu.pipeline_mode<synchronous>, transform_indices = @transform_2, window_bounds = array<i64: 256, 256>}, {pipeline_mode = #tpu.pipeline_mode<synchronous>, transform_indices = @transform_3, window_bounds = array<i64: 256, 256>}, {pipeline_mode = #tpu.pipeline_mode<synchronous>, transform_indices = @transform_4, window_bounds = array<i64: 256, 256>}, {pipeline_mode = #tpu.pipeline_mode<synchronous>, transform_indices = @transform_5, window_bounds = array<i64: 256, 256>}, {pipeline_mode = #tpu.pipeline_mode<synchronous>, transform_indices = @transform_6, window_bounds = array<i64: 512, 256>}, {pipeline_mode = #tpu.pipeline_mode<synchronous>, transform_indices = @transform_7, window_bounds = array<i64: 8, 256>}, {transform_indices = @transform_8, window_bounds = array<i64: 128, 256>}, {transform_indices = @transform_9, window_bounds = array<i64: 128, 1>}]} {
    %c0 = arith.constant 0 : index
    %c0_0 = arith.constant 0 : index
    %0 = vector.load %arg8[%c0, %c0_0] : memref<8x256xf32, #tpu.memory_space<vmem>>, vector<8x256xf32>
    %c0_1 = arith.constant 0 : index
    %c0_2 = arith.constant 0 : index
    %1 = vector.load %arg1[%c0_1, %c0_2] : memref<128x1152xbf16, #tpu.memory_space<vmem>>, vector<128x1152xbf16>
    %2 = vector.extract_strided_slice %0 {offsets = [0, 0], sizes = [1, 256], strides = [1, 1]} : vector<8x256xf32> to vector<1x256xf32>
    %c0_3 = arith.constant 0 : index
    %c0_4 = arith.constant 0 : index
    %3 = vector.load %arg2[%c0_3, %c0_4] : memref<1152x256xbf16, #tpu.memory_space<vmem>>, vector<1152x256xbf16>
    %cst = arith.constant dense<0.000000e+00> : vector<128x256xf32>
    %4 = tpu.matmul %1, %3, %cst {dimension_numbers = #tpu.dot_dimension_numbers<[1], [0], [0], [1], [0, 0, 1, 1], [], []>} : vector<128x1152xbf16>, vector<1152x256xbf16>, vector<128x256xf32> -> vector<128x256xf32>
    %5 = vector.broadcast %2 : vector<1x256xf32> to vector<128x256xf32>
    %6 = arith.addf %4, %5 : vector<128x256xf32>
    %cst_5 = arith.constant 0.000000e+00 : f32
    %7 = vector.broadcast %cst_5 : f32 to vector<128x256xf32>
    %8 = arith.maximumf %6, %7 : vector<128x256xf32>
    %9 = arith.truncf %8 : vector<128x256xf32> to vector<128x256xbf16>
    %10 = vector.extract_strided_slice %0 {offsets = [1, 0], sizes = [1, 256], strides = [1, 1]} : vector<8x256xf32> to vector<1x256xf32>
    %c0_6 = arith.constant 0 : index
    %c0_7 = arith.constant 0 : index
    %11 = vector.load %arg3[%c0_6, %c0_7] : memref<256x256xbf16, #tpu.memory_space<vmem>>, vector<256x256xbf16>
    %cst_8 = arith.constant dense<0.000000e+00> : vector<128x256xf32>
    %12 = tpu.matmul %9, %11, %cst_8 {dimension_numbers = #tpu.dot_dimension_numbers<[1], [0], [0], [1], [0, 0, 1, 1], [], []>} : vector<128x256xbf16>, vector<256x256xbf16>, vector<128x256xf32> -> vector<128x256xf32>
    %13 = vector.broadcast %10 : vector<1x256xf32> to vector<128x256xf32>
    %14 = arith.addf %12, %13 : vector<128x256xf32>
    %cst_9 = arith.constant 0.000000e+00 : f32
    %15 = vector.broadcast %cst_9 : f32 to vector<128x256xf32>
    %16 = arith.maximumf %14, %15 : vector<128x256xf32>
    %17 = arith.truncf %16 : vector<128x256xf32> to vector<128x256xbf16>
    %18 = vector.extract_strided_slice %0 {offsets = [2, 0], sizes = [1, 256], strides = [1, 1]} : vector<8x256xf32> to vector<1x256xf32>
    %c0_10 = arith.constant 0 : index
    %c0_11 = arith.constant 0 : index
    %19 = vector.load %arg4[%c0_10, %c0_11] : memref<256x256xbf16, #tpu.memory_space<vmem>>, vector<256x256xbf16>
    %cst_12 = arith.constant dense<0.000000e+00> : vector<128x256xf32>
    %20 = tpu.matmul %17, %19, %cst_12 {dimension_numbers = #tpu.dot_dimension_numbers<[1], [0], [0], [1], [0, 0, 1, 1], [], []>} : vector<128x256xbf16>, vector<256x256xbf16>, vector<128x256xf32> -> vector<128x256xf32>
    %21 = vector.broadcast %18 : vector<1x256xf32> to vector<128x256xf32>
    %22 = arith.addf %20, %21 : vector<128x256xf32>
    %cst_13 = arith.constant 0.000000e+00 : f32
    %23 = vector.broadcast %cst_13 : f32 to vector<128x256xf32>
    %24 = arith.maximumf %22, %23 : vector<128x256xf32>
    %25 = arith.truncf %16 : vector<128x256xf32> to vector<128x256xbf16>
    %26 = vector.extract_strided_slice %0 {offsets = [3, 0], sizes = [1, 256], strides = [1, 1]} : vector<8x256xf32> to vector<1x256xf32>
    %c0_14 = arith.constant 0 : index
    %c0_15 = arith.constant 0 : index
    %27 = vector.load %arg5[%c0_14, %c0_15] : memref<256x256xbf16, #tpu.memory_space<vmem>>, vector<256x256xbf16>
    %cst_16 = arith.constant dense<0.000000e+00> : vector<128x256xf32>
    %28 = tpu.matmul %25, %27, %cst_16 {dimension_numbers = #tpu.dot_dimension_numbers<[1], [0], [0], [1], [0, 0, 1, 1], [], []>} : vector<128x256xbf16>, vector<256x256xbf16>, vector<128x256xf32> -> vector<128x256xf32>
    %29 = vector.broadcast %26 : vector<1x256xf32> to vector<128x256xf32>
    %30 = arith.addf %28, %29 : vector<128x256xf32>
    %cst_17 = arith.constant 0.000000e+00 : f32
    %31 = vector.broadcast %cst_17 : f32 to vector<128x256xf32>
    %32 = arith.maximumf %30, %31 : vector<128x256xf32>
    %33 = arith.truncf %24 : vector<128x256xf32> to vector<128x256xbf16>
    %34 = vector.extract_strided_slice %0 {offsets = [4, 0], sizes = [1, 256], strides = [1, 1]} : vector<8x256xf32> to vector<1x256xf32>
    %c0_18 = arith.constant 0 : index
    %c0_19 = arith.constant 0 : index
    %35 = vector.load %arg6[%c0_18, %c0_19] : memref<256x256xbf16, #tpu.memory_space<vmem>>, vector<256x256xbf16>
    %cst_20 = arith.constant dense<0.000000e+00> : vector<128x256xf32>
    %36 = tpu.matmul %33, %35, %cst_20 {dimension_numbers = #tpu.dot_dimension_numbers<[1], [0], [0], [1], [0, 0, 1, 1], [], []>} : vector<128x256xbf16>, vector<256x256xbf16>, vector<128x256xf32> -> vector<128x256xf32>
    %37 = vector.broadcast %34 : vector<1x256xf32> to vector<128x256xf32>
    %38 = arith.addf %36, %37 : vector<128x256xf32>
    %39 = vector.extract_strided_slice %0 {offsets = [6, 0], sizes = [1, 256], strides = [1, 1]} : vector<8x256xf32> to vector<1x256xf32>
    %40 = vector.broadcast %39 : vector<1x256xf32> to vector<128x256xf32>
    %41 = arith.mulf %32, %40 : vector<128x256xf32>
    %cst_21 = arith.constant dense<0.000000e+00> : vector<128xf32>
    %42 = vector.multi_reduction <add>, %41, %cst_21 [1] : vector<128x256xf32> to vector<128xf32>
    %43 = vector.shape_cast %42 : vector<128xf32> to vector<128x1xf32>
    %44 = vector.extract_strided_slice %0 {offsets = [7, 0], sizes = [1, 1], strides = [1, 1]} : vector<8x256xf32> to vector<1x1xf32>
    %45 = vector.broadcast %44 : vector<1x1xf32> to vector<128x1xf32>
    %46 = arith.addf %43, %45 : vector<128x1xf32>
    %c0_22 = arith.constant 0 : index
    %c0_23 = arith.constant 0 : index
    %47 = vector.load %arg10[%c0_22, %c0_23] : memref<128x1xf32, #tpu.memory_space<vmem>>, vector<128x1xf32>
    tpu.vector_store %arg10[%c0_22, %c0_23], %46 {strides = array<i32>} : memref<128x1xf32, #tpu.memory_space<vmem>>, vector<128x1xf32>,
    %c0_24 = arith.constant 0 : index
    %c768 = arith.constant 768 : index
    %48 = vector.load %arg1[%c0_24, %c768] : memref<128x1152xbf16, #tpu.memory_space<vmem>>, vector<128x256xbf16>
    %49 = arith.truncf %38 : vector<128x256xf32> to vector<128x256xbf16>
    %c0_25 = arith.constant 0 : index
    %c0_26 = arith.constant 0 : index
    %50 = vector.load %arg7[%c0_25, %c0_26] : memref<512x256xbf16, #tpu.memory_space<vmem>>, vector<256x256xbf16>
    %cst_27 = arith.constant dense<0.000000e+00> : vector<128x256xf32>
    %51 = tpu.matmul %49, %50, %cst_27 {dimension_numbers = #tpu.dot_dimension_numbers<[1], [0], [0], [1], [0, 0, 1, 1], [], []>} : vector<128x256xbf16>, vector<256x256xbf16>, vector<128x256xf32> -> vector<128x256xf32>
    %c256 = arith.constant 256 : index
    %c0_28 = arith.constant 0 : index
    %52 = vector.load %arg7[%c256, %c0_28] : memref<512x256xbf16, #tpu.memory_space<vmem>>, vector<256x256xbf16>
    %cst_29 = arith.constant dense<0.000000e+00> : vector<128x256xf32>
    %53 = tpu.matmul %48, %52, %cst_29 {dimension_numbers = #tpu.dot_dimension_numbers<[1], [0], [0], [1], [0, 0, 1, 1], [], []>} : vector<128x256xbf16>, vector<256x256xbf16>, vector<128x256xf32> -> vector<128x256xf32>
    %54 = arith.addf %51, %53 : vector<128x256xf32>
    %55 = vector.extract_strided_slice %0 {offsets = [5, 0], sizes = [1, 256], strides = [1, 1]} : vector<8x256xf32> to vector<1x256xf32>
    %56 = vector.broadcast %55 : vector<1x256xf32> to vector<128x256xf32>
    %57 = arith.addf %54, %56 : vector<128x256xf32>
    %cst_30 = arith.constant dense<0xFF800000> : vector<128xf32>
    %58 = vector.multi_reduction <maximumf>, %57, %cst_30 [1] : vector<128x256xf32> to vector<128xf32>
    %59 = vector.shape_cast %58 : vector<128xf32> to vector<128x1xf32>
    %60 = vector.broadcast %59 : vector<128x1xf32> to vector<128x256xf32>
    %61 = arith.subf %57, %60 : vector<128x256xf32>
    %62 = math.exp %61 : vector<128x256xf32>
    %cst_31 = arith.constant dense<0.000000e+00> : vector<128xf32>
    %63 = vector.multi_reduction <add>, %62, %cst_31 [1] : vector<128x256xf32> to vector<128xf32>
    %64 = vector.shape_cast %63 : vector<128xf32> to vector<128x1xf32>
    %65 = vector.broadcast %64 : vector<128x1xf32> to vector<128x256xf32>
    %66 = arith.divf %62, %65 : vector<128x256xf32>
    %c0_32 = arith.constant 0 : index
    %c0_33 = arith.constant 0 : index
    %67 = vector.load %arg9[%c0_32, %c0_33] : memref<128x256xf32, #tpu.memory_space<vmem>>, vector<128x256xf32>
    tpu.vector_store %arg9[%c0_32, %c0_33], %66 {strides = array<i32>} : memref<128x256xf32, #tpu.memory_space<vmem>>, vector<128x256xf32>,
    return
  }
  func.func @transform_0(%arg0: i32) -> (i32, i32) {
    %c0_i32 = arith.constant 0 : i32
    %c0_i32_0 = arith.constant 0 : i32
    return %arg0, %c0_i32 : i32, i32
  }
  func.func @transform_1(%arg0: i32) -> (i32, i32) {
    %c0_i32 = arith.constant 0 : i32
    %c0_i32_0 = arith.constant 0 : i32
    %c0_i32_1 = arith.constant 0 : i32
    return %c0_i32, %c0_i32_0 : i32, i32
  }
  func.func @transform_2(%arg0: i32) -> (i32, i32) {
    %c0_i32 = arith.constant 0 : i32
    %c0_i32_0 = arith.constant 0 : i32
    %c0_i32_1 = arith.constant 0 : i32
    return %c0_i32, %c0_i32_0 : i32, i32
  }
  func.func @transform_3(%arg0: i32) -> (i32, i32) {
    %c0_i32 = arith.constant 0 : i32
    %c0_i32_0 = arith.constant 0 : i32
    %c0_i32_1 = arith.constant 0 : i32
    return %c0_i32, %c0_i32_0 : i32, i32
  }
  func.func @transform_4(%arg0: i32) -> (i32, i32) {
    %c0_i32 = arith.constant 0 : i32
    %c0_i32_0 = arith.constant 0 : i32
    %c0_i32_1 = arith.constant 0 : i32
    return %c0_i32, %c0_i32_0 : i32, i32
  }
  func.func @transform_5(%arg0: i32) -> (i32, i32) {
    %c0_i32 = arith.constant 0 : i32
    %c0_i32_0 = arith.constant 0 : i32
    %c0_i32_1 = arith.constant 0 : i32
    return %c0_i32, %c0_i32_0 : i32, i32
  }
  func.func @transform_6(%arg0: i32) -> (i32, i32) {
    %c0_i32 = arith.constant 0 : i32
    %c0_i32_0 = arith.constant 0 : i32
    %c0_i32_1 = arith.constant 0 : i32
    return %c0_i32, %c0_i32_0 : i32, i32
  }
  func.func @transform_7(%arg0: i32) -> (i32, i32) {
    %c0_i32 = arith.constant 0 : i32
    %c0_i32_0 = arith.constant 0 : i32
    %c0_i32_1 = arith.constant 0 : i32
    return %c0_i32, %c0_i32_0 : i32, i32
  }
  func.func @transform_8(%arg0: i32) -> (i32, i32) {
    %c0_i32 = arith.constant 0 : i32
    %c0_i32_0 = arith.constant 0 : i32
    return %arg0, %c0_i32 : i32, i32
  }
  func.func @transform_9(%arg0: i32) -> (i32, i32) {
    %c0_i32 = arith.constant 0 : i32
    %c0_i32_0 = arith.constant 0 : i32
    return %arg0, %c0_i32 : i32, i32
  }
}

</mosaic_0001>

<bundles_post_ra>
// kernel: actor_critic_forward.1
= control target key start
LH: loop header
LB: loop body
LE: loop exit
PB: predicated region body
PF: predicated region fallthrough
CT: control target
= control target key end

     0   :  { %s12130_s0 = inlined_call_operand.vmem [shape: bf16[256,1152], index: 0, kind: input, shape index: {}]   ;;  %s12131_s1 = inlined_call_operand.vmem [shape: bf16[1152,256], index: 1, kind: input, shape index: {}]   ;;  %s12132_s2 = inlined_call_operand.vmem [shape: bf16[256,256], index: 2, kind: input, shape index: {}]   ;;  %s12133_s3 = inlined_call_operand.vmem [shape: bf16[256,256], index: 3, kind: input, shape index: {}]   ;;  %s12134_s4 = inlined_call_operand.vmem [shape: bf16[256,256], index: 4, kind: input, shape index: {}]   ;;  %s12135_s5 = inlined_call_operand.vmem [shape: bf16[256,256], index: 5, kind: input, shape index: {}]   ;;  %s12136_s6 = inlined_call_operand.vmem [shape: bf16[512,256], index: 6, kind: input, shape index: {}]   ;;  %s12137_s7 = inlined_call_operand.vmem [shape: f32[8,256], index: 7, kind: input, shape index: {}]   ;;  %s12138_s8 = inlined_call_operand.hbm [shape: f32[256,256], index: 8, kind: output, shape index: {0}]   ;;  %s12139_s9 = inlined_call_operand.vmem [shape: f32[256,1], index: 9, kind: output, shape index: {1}]  }
   0x1   :  { %12177 = sst [smem:[#allocation43_spill]] %s12130_s0 }
   0x2   :  { %15 = vsyncpa [#allocation3], 0 }
   0x3   :  { %17 = vsyncpa [#allocation3 + $0x1], 0  ;;  %s8329_s30 = smov 0   ;;  %s8331_s10 = smov 0  }
   0x4   :  { %s8333_s11 = smov 0   ;;  %s8335_s12 = smov 0  }
   0x5 LB: > { %s8350_s13 = sadd.s32 4294967295, %s8275_s12   ;;  %s5916_s14 = sadd.s32 4294967294, %s8275_s12   ;;  %s8275_s12 = sphi %s8335_s12, %s12260_s12   ;;  %s8271_s11 = sphi %s8333_s11, %s12259_s11   ;;  %s8267_s10 = sphi %s8331_s10, %s12258_s10   ;;  %s8263_s30 = sphi %s8329_s30, %s12257_s30  }
   0x6   : > { %s8354_s15 = sadd.s32 1, %s8275_s12   ;;  %s203_s16 = sadd.s32 1, %s8271_s11 }
   0x7   : > { %s200_s17 = ssub.s32 %s8275_s12, %s8354_s15  ;;  %p213_p0 = scmp.ne.s32.totalorder %s8271_s11, %s8267_s10 }
   0x8   : > { %p201_p1 = scmp.eq.s32.totalorder %s200_s17, 0  ;;  %p214_p2 = scmp.eq.s32.totalorder %s8350_s13, 1 }
   0x9   : > { %p219_p3 = scmp.ne.s32.totalorder %s8267_s10, %s8263_s30  ;;  %p220_p4 = scmp.eq.s32.totalorder %s5916_s14, 1 }
   0xa   : > { %s8365_s18 = scalar_select %p201_p1, %s8271_s11, %s203_s16  }
   0xb   : > { %p8367_p5 = por %p214_p2, %p213_p0  ;;  %p8371_p6 = por %p220_p4, %p219_p3 }
   0xc   : > { %12178 = sst [smem:[#allocation5_spill]] %s8365_s18  ;;  %p5919_p7 = scmp.ge.s32.totalorder %s8275_s12, 1 }
   0xd   : > { %p295_p8 = scmp.lt.s32.totalorder %s8275_s12, 3 }
   0xf   : > { %p296_p9 = pnand %p5919_p7, %p295_p8 }
  0x11   : > { %299 = sbr.rel (%p296_p9) target bundleno = 1847 (0x737), region = 52 }
  0x16   : > { %v6271_v0 = vld [vmem:[%s12131_s1 + $0x70] sm:$0xf]  ;;  %v7714_v1 = vld [vmem:[%s12131_s1 + $0x74] sm:$0xf0]  ;;  %v6263_v5 = vld [vmem:[%s12131_s1 + $0x60] sm:$0xf] }
  0x17   : > { %v6335_v2 = vld [vmem:[%s12131_s1 + $0xf0] sm:$0xf]  ;;  %v6272_v3 = vor.u32 %v7714_v1, %v6271_v0  ;;  %v7730_v4 = vld [vmem:[%s12131_s1 + $0xf4] sm:$0xf0]  ;;  %v7712_v6 = vld [vmem:[%s12131_s1 + $0x64] sm:$0xf0] }
  0x18   : > { %v6336_v7 = vor.u32 %v7730_v4, %v6335_v2  ;;  %v6327_v8 = vld [vmem:[%s12131_s1 + $0xe0] sm:$0xf]  ;;  %v7728_v9 = vld [vmem:[%s12131_s1 + $0xe4] sm:$0xf0]  ;;  %v6264_v10 = vor.u32 %v7712_v6, %v6263_v5  ;;  %v6255_v12 = vld [vmem:[%s12131_s1 + $0x50] sm:$0xf] }
  0x19   : > { %1667 = vmatpush.bf16.msra.mxu0 %v6272_v3  ;;  %8053 = vmatpush.bf16.msra.mxu2 %v6272_v3  ;;  %v6328_v11 = vor.u32 %v7728_v9, %v6327_v8  ;;  %v7710_v13 = vld [vmem:[%s12131_s1 + $0x54] sm:$0xf0]  ;;  %v6319_v14 = vld [vmem:[%s12131_s1 + $0xd0] sm:$0xf]  ;;  %v6247_v18 = vld [vmem:[%s12131_s1 + $0x40] sm:$0xf] }
  0x1a   : > { %8061 = vmatpush.bf16.msra.mxu3 %v6336_v7  ;;  %1716 = vmatpush.bf16.msra.mxu1 %v6336_v7  ;;  %v7726_v15 = vld [vmem:[%s12131_s1 + $0xd4] sm:$0xf0]  ;;  %v6256_v16 = vor.u32 %v7710_v13, %v6255_v12  ;;  %v7708_v19 = vld [vmem:[%s12131_s1 + $0x44] sm:$0xf0]  ;;  %v6311_v20 = vld [vmem:[%s12131_s1 + $0xc0] sm:$0xf] }
  0x1b   : > { %v6320_v17 = vor.u32 %v7726_v15, %v6319_v14  ;;  %v7724_v21 = vld [vmem:[%s12131_s1 + $0xc4] sm:$0xf0]  ;;  %s5921_s29 = sshll.u32 %s8350_s13, 4  ;;  %v6248_v22 = vor.u32 %v7708_v19, %v6247_v18  ;;  %v6239_v24 = vld [vmem:[%s12131_s1 + $0x30] sm:$0xf]  ;;  %s12181_s0 = sld [smem:[#allocation43_spill]] }
  0x1c   : > { %p338_p10 = scmp.lt.s32.totalorder %s5921_s29, 31  ;;  %v6312_v23 = vor.u32 %v7724_v21, %v6311_v20  ;;  %v7706_v25 = vld [vmem:[%s12131_s1 + $0x34] sm:$0xf0]  ;;  %v6303_v26 = vld [vmem:[%s12131_s1 + $0xb0] sm:$0xf]  ;;  %vm4384_vm0 = vcmask 7168  }
  0x1d   : > { %1668 = vmatpush.bf16.msra.mxu0 %v6264_v10  ;;  %8054 = vmatpush.bf16.msra.mxu2 %v6264_v10  ;;  %v7722_v27 = vld [vmem:[%s12131_s1 + $0xb4] sm:$0xf0]  ;;  %v6240_v28 = vor.u32 %v7706_v25, %v6239_v24  ;;  %v6231_v30 = vld [vmem:[%s12131_s1 + $0x20] sm:$0xf]  ;;  %v7704_v31 = vld [vmem:[%s12131_s1 + $0x24] sm:$0xf0] }
  0x1e   : > { %8062 = vmatpush.bf16.msra.mxu3 %v6328_v11  ;;  %1717 = vmatpush.bf16.msra.mxu1 %v6328_v11  ;;  %s12262_s29 = smov (!%p338_p10, %s5921_s29), 31  ;;  %v6304_v29 = vor.u32 %v7722_v27, %v6303_v26  ;;  %v6295_v32 = vld [vmem:[%s12131_s1 + $0xa0] sm:$0xf]  ;;  %v7720_v33 = vld [vmem:[%s12131_s1 + $0xa4] sm:$0xf0]  ;;  %v6232_v34 = vor.u32 %v7704_v31, %v6231_v30  ;;  %s327_s21 = sand.u32 1, %s8267_s10  }
  0x1f   : > { %s8069_s23 = smul.u32 36, %s12262_s29  ;;  %v6296_v35 = vor.u32 %v7720_v33, %v6295_v32  ;;  %v6223_v36 = vld [vmem:[%s12131_s1 + $0x10] sm:$0xf]  ;;  %v7702_v37 = vld [vmem:[%s12131_s1 + $0x14] sm:$0xf0]  ;;  %s5924_s14 = sshll.u32 %s12262_s29, 3 }
  0x20   : > { %v6287_v38 = vld [vmem:[%s12131_s1 + $0x90] sm:$0xf]  ;;  %v7718_v39 = vld [vmem:[%s12131_s1 + $0x94] sm:$0xf0]  ;;  %v6224_v40 = vor.u32 %v7702_v37, %v6223_v36  ;;  %v6215_v41 = vld [vmem:[%s12131_s1] sm:$0xf] }
  0x21   : > { %1669 = vmatpush.bf16.msra.mxu0 %v6256_v16  ;;  %8055 = vmatpush.bf16.msra.mxu2 %v6256_v16  ;;  %s8471_s26 = scalar_lea.vmem %s12181_s0, %s8069_s23  ;;  %v6288_v42 = vor.u32 %v7718_v39, %v6287_v38  ;;  %v7700_v43 = vld [vmem:[%s12131_s1 + $0x4] sm:$0xf0]  ;;  %v6279_v44 = vld [vmem:[%s12131_s1 + $0x80] sm:$0xf]  ;;  %v6399_v46 = vld [vmem:[%s12131_s1 + $0x170] sm:$0xf]  ;;  %s11345_s23 = scalar_lea.vmem %s12139_s9, %s5924_s14 }
  0x22   : > { %8063 = vmatpush.bf16.msra.mxu3 %v6320_v17  ;;  %1718 = vmatpush.bf16.msra.mxu1 %v6320_v17  ;;  %v7716_v45 = vld [vmem:[%s12131_s1 + $0x84] sm:$0xf0]  ;;  %v7746_v47 = vld [vmem:[%s12131_s1 + $0x174] sm:$0xf0]  ;;  %v6463_v48 = vld [vmem:[%s12131_s1 + $0x1f0] sm:$0xf]  ;;  %v6216_v52 = vor.u32 %v7700_v43, %v6215_v41 }
  0x23   : > { %v5927_v49 = vld [vmem:[%s8471_s26] sm:$0xf]  ;;  %v7762_v50 = vld [vmem:[%s12131_s1 + $0x1f4] sm:$0xf0]  ;;  %v6527_v51 = vld [vmem:[%s12131_s1 + $0x270] sm:$0xf]  ;;  %v6280_v58 = vor.u32 %v7716_v45, %v6279_v44  ;;  %v6400_v61 = vor.u32 %v7746_v47, %v6399_v46 }
  0x24   : > { %v7631_v53 = vld [vmem:[%s8471_s26 + $0x20] sm:$0xf0]  ;;  %v6071_v54 = vld [vmem:[%s8471_s26 + $0x120] sm:$0xf]  ;;  %v7744_v57 = vld [vmem:[%s12131_s1 + $0x164] sm:$0xf0]  ;;  %v6464_v63 = vor.u32 %v7762_v50, %v6463_v48 }
  0x25   : > { %1670 = vmatpush.bf16.msra.mxu0 %v6248_v22  ;;  %8056 = vmatpush.bf16.msra.mxu2 %v6248_v22  ;;  %v7667_v55 = vld [vmem:[%s8471_s26 + $0x140] sm:$0xf0]  ;;  %v6391_v56 = vld [vmem:[%s12131_s1 + $0x160] sm:$0xf]  ;;  %v6073_v60 = vld [vmem:[%s8471_s26 + $0x144] sm:$0xf0]  ;;  %v8517_v3 = vor.u32 %v7631_v53, %v5927_v49 }
  0x26   : > { %8064 = vmatpush.bf16.msra.mxu3 %v6312_v23  ;;  %1719 = vmatpush.bf16.msra.mxu1 %v6312_v23  ;;  %v7663_v59 = vld [vmem:[%s8471_s26 + $0x124] sm:$0xf]  ;;  %v7778_v62 = vld [vmem:[%s12131_s1 + $0x274] sm:$0xf0]  ;;  %v5929_v1 = vld [vmem:[%s8471_s26 + $0x24] sm:$0xf0]  ;;  %v8519_v4 = vor.u32 %v7667_v55, %v6071_v54  ;;  %v6392_v11 = vor.u32 %v7744_v57, %v6391_v56 }
  0x27   : > { %v7627_v0 = vld [vmem:[%s8471_s26 + $0x4] sm:$0xf]  ;;  %v6455_v2 = vld [vmem:[%s12131_s1 + $0x1e0] sm:$0xf]  ;;  %v7760_v5 = vld [vmem:[%s12131_s1 + $0x1e4] sm:$0xf0]  ;;  %v8530_v8 = vor.u32 %v7663_v59, %v6073_v60  ;;  %v6528_v9 = vor.u32 %v7778_v62, %v6527_v51 }
  0x28   : > { %v6591_v6 = vld [vmem:[%s12131_s1 + $0x2f0] sm:$0xf]  ;;  %v7794_v7 = vld [vmem:[%s12131_s1 + $0x2f4] sm:$0xf0]  ;;  %v8532_v10 = vor.u32 %v7627_v0, %v5929_v1  ;;  %v6519_v12 = vld [vmem:[%s12131_s1 + $0x260] sm:$0xf]  ;;  %v6456_v14 = vor.u32 %v7760_v5, %v6455_v2 }
  0x29   : > { %1671 = vmatpush.bf16.msra.mxu0 %v6240_v28  ;;  %8057 = vmatpush.bf16.msra.mxu2 %v6240_v28  ;;  %v7776_v13 = vld [vmem:[%s12131_s1 + $0x264] sm:$0xf0]  ;;  %v6592_v15 = vor.u32 %v7794_v7, %v6591_v6  ;;  %v6383_v16 = vld [vmem:[%s12131_s1 + $0x150] sm:$0xf]  ;;  %v7742_v17 = vld [vmem:[%s12131_s1 + $0x154] sm:$0xf0] }
  0x2a   : > { %8065 = vmatpush.bf16.msra.mxu3 %v6304_v29  ;;  %1720 = vmatpush.bf16.msra.mxu1 %v6304_v29  ;;  %v6447_v18 = vld [vmem:[%s12131_s1 + $0x1d0] sm:$0xf]  ;;  %v7758_v19 = vld [vmem:[%s12131_s1 + $0x1d4] sm:$0xf0]  ;;  %v6583_v20 = vld [vmem:[%s12131_s1 + $0x2e0] sm:$0xf]  ;;  %v6520_v22 = vor.u32 %v7776_v13, %v6519_v12  ;;  %v6384_v23 = vor.u32 %v7742_v17, %v6383_v16 }
  0x2b   : > { %v7792_v21 = vld [vmem:[%s12131_s1 + $0x2e4] sm:$0xf0]  ;;  %v6511_v24 = vld [vmem:[%s12131_s1 + $0x250] sm:$0xf]  ;;  %v7774_v25 = vld [vmem:[%s12131_s1 + $0x254] sm:$0xf0]  ;;  %v6448_v26 = vor.u32 %v7758_v19, %v6447_v18 }
  0x2c   : > { %v6584_v27 = vor.u32 %v7792_v21, %v6583_v20  ;;  %v6375_v28 = vld [vmem:[%s12131_s1 + $0x140] sm:$0xf]  ;;  %v7740_v29 = vld [vmem:[%s12131_s1 + $0x144] sm:$0xf0]  ;;  %v6575_v32 = vld [vmem:[%s12131_s1 + $0x2d0] sm:$0xf] }
  0x2d   : > { %1672 = vmatpush.bf16.msra.mxu0 %v6232_v34  ;;  %8058 = vmatpush.bf16.msra.mxu2 %v6232_v34  ;;  %v6439_v30 = vld [vmem:[%s12131_s1 + $0x1c0] sm:$0xf]  ;;  %v7756_v31 = vld [vmem:[%s12131_s1 + $0x1c4] sm:$0xf0]  ;;  %v7790_v33 = vld [vmem:[%s12131_s1 + $0x2d4] sm:$0xf0]  ;;  %v6512_v34 = vor.u32 %v7774_v25, %v6511_v24 }
  0x2e   : > { %8066 = vmatpush.bf16.msra.mxu3 %v6296_v35  ;;  %1721 = vmatpush.bf16.msra.mxu1 %v6296_v35  ;;  %v6376_v35 = vor.u32 %v7740_v29, %v6375_v28  ;;  %v6503_v36 = vld [vmem:[%s12131_s1 + $0x240] sm:$0xf]  ;;  %v7772_v37 = vld [vmem:[%s12131_s1 + $0x244] sm:$0xf0]  ;;  %v7640_v39 = vld [vmem:[%s8471_s26 + $0x68] sm:$0xf0]  ;;  %v6576_v43 = vor.u32 %v7790_v33, %v6575_v32 }
  0x2f   : > { %v5963_v38 = vld [vmem:[%s8471_s26 + $0x48] sm:$0xf]  ;;  %v7676_v41 = vld [vmem:[%s8471_s26 + $0x188] sm:$0xf0]  ;;  %v6367_v44 = vld [vmem:[%s12131_s1 + $0x130] sm:$0xf]  ;;  %v6504_v53 = vor.u32 %v7772_v37, %v6503_v36 }
  0x30   : > { %v7738_v45 = vld [vmem:[%s12131_s1 + $0x134] sm:$0xf0]  ;;  %v6431_v46 = vld [vmem:[%s12131_s1 + $0x1b0] sm:$0xf]  ;;  %v6567_v48 = vld [vmem:[%s12131_s1 + $0x2c0] sm:$0xf] }
  0x31   : > { %1673 = vmatpush.bf16.msra.mxu0 %v6224_v40  ;;  %8059 = vmatpush.bf16.msra.mxu2 %v6224_v40  ;;  %v6107_v40 = vld [vmem:[%s8471_s26 + $0x168] sm:$0xf]  ;;  %v7754_v47 = vld [vmem:[%s12131_s1 + $0x1b4] sm:$0xf0]  ;;  %v7672_v50 = vld [vmem:[%s8471_s26 + $0x16c] sm:$0xf]  ;;  %v6368_v55 = vor.u32 %v7738_v45, %v6367_v44 }
  0x32   : > { %8067 = vmatpush.bf16.msra.mxu3 %v6288_v42  ;;  %1722 = vmatpush.bf16.msra.mxu1 %v6288_v42  ;;  %v6440_v42 = vor.u32 %v7756_v31, %v6439_v30  ;;  %v7788_v49 = vld [vmem:[%s12131_s1 + $0x2c4] sm:$0xf0]  ;;  %v6109_v51 = vld [vmem:[%s8471_s26 + $0x18c] sm:$0xf0]  ;;  %v7770_v57 = vld [vmem:[%s12131_s1 + $0x234] sm:$0xf0]  ;;  %v8635_v0 = vor.u32 %v7676_v41, %v6107_v40 }
  0x33   : > { %v5965_v54 = vld [vmem:[%s8471_s26 + $0x6c] sm:$0xf0]  ;;  %v6568_v59 = vor.u32 %v7788_v49, %v6567_v48  ;;  %v6359_v60 = vld [vmem:[%s12131_s1 + $0x120] sm:$0xf]  ;;  %v7752_v1 = vld [vmem:[%s12131_s1 + $0x1a4] sm:$0xf0]  ;;  %v8646_v6 = vor.u32 %v7672_v50, %v6109_v51 }
  0x34   : > { %v6495_v56 = vld [vmem:[%s12131_s1 + $0x230] sm:$0xf]  ;;  %v6423_v62 = vld [vmem:[%s12131_s1 + $0x1a0] sm:$0xf]  ;;  %v7786_v5 = vld [vmem:[%s12131_s1 + $0x2b4] sm:$0xf0] }
  0x35   : > { %1674 = vmatpush.bf16.msra.mxu0 %v6216_v52  ;;  %8060 = vmatpush.bf16.msra.mxu2 %v6216_v52  ;;  %v7636_v52 = vld [vmem:[%s8471_s26 + $0x4c] sm:$0xf]  ;;  %v6559_v2 = vld [vmem:[%s12131_s1 + $0x2b0] sm:$0xf]  ;;  %12182 = vst [vmem:[#allocation6_spill] sm:$0xff] %v8646_v6  ;;  %v6496_v7 = vor.u32 %v7770_v57, %v6495_v56  ;;  %v6424_v12 = vor.u32 %v7752_v1, %v6423_v62  ;;  %s5920_s22 = sshll.u32 %s327_s21, 8 }
  0x36   : > { %8068 = vmatpush.bf16.msra.mxu3 %v6280_v58  ;;  %1723 = vmatpush.bf16.msra.mxu1 %v6280_v58  ;;  %v6432_v58 = vor.u32 %v7754_v47, %v6431_v46  ;;  %v6560_v13 = vor.u32 %v7786_v5, %v6559_v2  ;;  %v6415_v16 = vld [vmem:[%s12131_s1 + $0x190] sm:$0xf]  ;;  %v7750_v18 = vld [vmem:[%s12131_s1 + $0x194] sm:$0xf0]  ;;  %v6487_v19 = vld [vmem:[%s12131_s1 + $0x220] sm:$0xf] }
  0x37   : > { %v7768_v20 = vld [vmem:[%s12131_s1 + $0x224] sm:$0xf0]  ;;  %v6416_v21 = vor.u32 %v7750_v18, %v6415_v16  ;;  %v6343_v25 = vld [vmem:[%s12131_s1 + $0x100] sm:$0xf]  ;;  %v6479_v28 = vld [vmem:[%s12131_s1 + $0x210] sm:$0xf] }
  0x38   : > { %1675 = vmatmul.bf16.vlgmr.msra.gmra.mxu0 %v8517_v3  ;;  %1695 = vmatmul.bf16.vlgmr.msra.gmra.mxu2 %v8519_v4  ;;  %v7784_v24 = vld [vmem:[%s12131_s1 + $0x2a4] sm:$0xf0]  ;;  %v7766_v29 = vld [vmem:[%s12131_s1 + $0x214] sm:$0xf0]  ;;  %v6407_v30 = vld [vmem:[%s12131_s1 + $0x180] sm:$0xf] }
  0x39   : > { %1765 = vmatpush.bf16.msrb.mxu2 %v6400_v61  ;;  %1744 = vmatmul.bf16.vlgmr.msra.gmra.mxu3 %v8530_v8  ;;  %v7736_v61 = vld [vmem:[%s12131_s1 + $0x124] sm:$0xf0]  ;;  %v6480_v32 = vor.u32 %v7766_v29, %v6479_v28  ;;  %v5999_v40 = vld [vmem:[%s8471_s26 + $0x90] sm:$0xf]  ;;  %v7649_v41 = vld [vmem:[%s8471_s26 + $0xb0] sm:$0xf0] }
  0x3a   : > { %1814 = vmatpush.bf16.msrb.mxu3 %v6464_v63  ;;  %1863 = vmatpush.bf16.msrb.mxu0 %v6528_v9  ;;  %v8633_v63 = vor.u32 %v7640_v39, %v5963_v38  ;;  %v8648_v9 = vor.u32 %v7636_v52, %v5965_v54  ;;  %v7748_v33 = vld [vmem:[%s12131_s1 + $0x184] sm:$0xf0]  ;;  %v6471_v38 = vld [vmem:[%s12131_s1 + $0x200] sm:$0xf]  ;;  %v7681_v45 = vld [vmem:[%s8471_s26 + $0x1b4] sm:$0xf]  ;;  %v8716_v49 = vor.u32 %v7649_v41, %v5999_v40 }
  0x3b   : > { %1724 = vmatmul.bf16.vlgmr.msra.gmra.mxu1 %v8532_v10  ;;  %v6408_v36 = vor.u32 %v7748_v33, %v6407_v30  ;;  %v7764_v39 = vld [vmem:[%s12131_s1 + $0x204] sm:$0xf0]  ;;  %v6145_v46 = vld [vmem:[%s8471_s26 + $0x1d4] sm:$0xf0]  ;;  %v7645_v47 = vld [vmem:[%s8471_s26 + $0x94] sm:$0xf] }
  0x3c   : > { %1912 = vmatpush.bf16.msrb.mxu1 %v6592_v15  ;;  %v7734_v15 = vld [vmem:[%s12131_s1 + $0x114] sm:$0xf0]  ;;  %v6472_v44 = vor.u32 %v7764_v39, %v6471_v38  ;;  %v8720_v51 = vor.u32 %v7681_v45, %v6145_v46  ;;  %v7780_v54 = vld [vmem:[%s12131_s1 + $0x284] sm:$0xf0]  ;;  %v6655_v56 = vld [vmem:[%s12131_s1 + $0x370] sm:$0xf] }
  0x3d   : > { %1766 = vmatpush.bf16.msrb.mxu2 %v6392_v11  ;;  %v6360_v11 = vor.u32 %v7736_v61, %v6359_v60  ;;  %v6001_v48 = vld [vmem:[%s8471_s26 + $0xb4] sm:$0xf0]  ;;  %v6783_v62 = vld [vmem:[%s12131_s1 + $0x470] sm:$0xf]  ;;  %v7713_v2 = vld [vmem:[%s12131_s1 + $0x74] sm:$0xf] }
  0x3e   : > { %1815 = vmatpush.bf16.msrb.mxu3 %v6456_v14  ;;  %1864 = vmatpush.bf16.msrb.mxu0 %v6520_v22  ;;  %v6351_v14 = vld [vmem:[%s12131_s1 + $0x110] sm:$0xf]  ;;  %v6488_v22 = vor.u32 %v7768_v20, %v6487_v19  ;;  %12183 = vst [vmem:[#allocation7_spill] sm:$0xff] %v8720_v51  ;;  %v8722_v52 = vor.u32 %v7645_v47, %v6001_v48  ;;  %v7810_v57 = vld [vmem:[%s12131_s1 + $0x374] sm:$0xf0]  ;;  %s12020_s24 = scalar_lea.vmem [#allocation2], %s5920_s22 }
  0x3f   : > { %v6352_v17 = vor.u32 %v7734_v15, %v6351_v14  ;;  %v7826_v60 = vld [vmem:[%s12131_s1 + $0x3f4] sm:$0xf0]  ;;  %v7694_v15 = vld [vmem:[%s8471_s26 + $0x218] sm:$0xf0]  ;;  %v6037_v19 = vld [vmem:[%s8471_s26 + $0xfc] sm:$0xf0] }
  0x40   : > { %1913 = vmatpush.bf16.msrb.mxu1 %v6584_v27  ;;  %v7842_v1 = vld [vmem:[%s12131_s1 + $0x474] sm:$0xf0]  ;;  %v7690_v16 = vld [vmem:[%s8471_s26 + $0x1fc] sm:$0xf]  ;;  %v7824_v28 = vld [vmem:[%s12131_s1 + $0x3e4] sm:$0xf0] }
  0x41   : > { %1767 = vmatpush.bf16.msrb.mxu2 %v6384_v23  ;;  %v6551_v23 = vld [vmem:[%s12131_s1 + $0x2a0] sm:$0xf]  ;;  %v6784_v5 = vor.u32 %v7842_v1, %v6783_v62  ;;  %v6179_v14 = vld [vmem:[%s8471_s26 + $0x1f8] sm:$0xf]  ;;  %v7654_v18 = vld [vmem:[%s8471_s26 + $0xdc] sm:$0xf] }
  0x42   : > { %1816 = vmatpush.bf16.msrb.mxu3 %v6448_v26  ;;  %1865 = vmatpush.bf16.msrb.mxu0 %v6512_v34  ;;  %v7732_v26 = vld [vmem:[%s12131_s1 + $0x104] sm:$0xf0]  ;;  %v6552_v27 = vor.u32 %v7784_v24, %v6551_v23  ;;  %v6543_v34 = vld [vmem:[%s12131_s1 + $0x290] sm:$0xf]  ;;  %v8772_v23 = vor.u32 %v7654_v18, %v6037_v19  ;;  %v6647_v24 = vld [vmem:[%s12131_s1 + $0x360] sm:$0xf] }
  0x43   : > { %v6344_v31 = vor.u32 %v7732_v26, %v6343_v25  ;;  %v7808_v25 = vld [vmem:[%s12131_s1 + $0x364] sm:$0xf0]  ;;  %v6711_v26 = vld [vmem:[%s12131_s1 + $0x3e0] sm:$0xf]  ;;  %v5943_v38 = vld [vmem:[%s8471_s26 + $0x10] sm:$0xf] }
  0x44   : > { %1914 = vmatpush.bf16.msrb.mxu1 %v6576_v43  ;;  %v7685_v43 = vld [vmem:[%s8471_s26 + $0x1d0] sm:$0xf0]  ;;  %v6712_v29 = vor.u32 %v7824_v28, %v6711_v26  ;;  %v6775_v30 = vld [vmem:[%s12131_s1 + $0x460] sm:$0xf]  ;;  %v7628_v40 = vld [vmem:[%s8471_s26 + $0xc] sm:$0xf] }
  0x45   : > { %1768 = vmatpush.bf16.msrb.mxu2 %v6376_v35  ;;  %v7782_v35 = vld [vmem:[%s12131_s1 + $0x294] sm:$0xf0]  ;;  %v7633_v39 = vld [vmem:[%s8471_s26 + $0x30] sm:$0xf0]  ;;  %v5937_v41 = vld [vmem:[%s8471_s26 + $0x2c] sm:$0xf0] }
  0x46   : > { %1817 = vmatpush.bf16.msrb.mxu3 %v6440_v42  ;;  %1866 = vmatpush.bf16.msrb.mxu0 %v6504_v53  ;;  %v6544_v37 = vor.u32 %v7782_v35, %v6543_v34  ;;  %v6143_v42 = vld [vmem:[%s8471_s26 + $0x1b0] sm:$0xf]  ;;  %v6535_v53 = vld [vmem:[%s12131_s1 + $0x280] sm:$0xf]  ;;  %v6265_v34 = vld [vmem:[%s12131_s1 + $0x68] sm:$0xf0]  ;;  %v8812_v45 = vor.u32 %v7633_v39, %v5943_v38  ;;  %v8814_v46 = vor.u32 %v7628_v40, %v5937_v41 }
  0x47   : > { %v8718_v50 = vor.u32 %v7685_v43, %v6143_v42  ;;  %v7629_v42 = vld [vmem:[%s8471_s26 + $0x14] sm:$0xf]  ;;  %v5945_v43 = vld [vmem:[%s8471_s26 + $0x34] sm:$0xf0]  ;;  %v6639_v48 = vld [vmem:[%s12131_s1 + $0x350] sm:$0xf] }
  0x48   : > { %1915 = vmatpush.bf16.msrb.mxu1 %v6568_v59  ;;  %1680 = vmatmul.bf16.gmra.mxu0 %v8633_v63  ;;  %v6656_v59 = vor.u32 %v7810_v57, %v6655_v56  ;;  %v8816_v47 = vor.u32 %v7629_v42, %v5945_v43  ;;  %v7822_v56 = vld [vmem:[%s12131_s1 + $0x3d4] sm:$0xf0]  ;;  %v6257_v62 = vld [vmem:[%s12131_s1 + $0x58] sm:$0xf0]  ;;  %v6695_v26 = vld [vmem:[%s12131_s1 + $0x3c0] sm:$0xf] }
  0x49   : > { %1769 = vmatpush.bf16.msrb.mxu2 %v6368_v55  ;;  %1749 = vmatmul.bf16.gmra.mxu3 %v8646_v6  ;;  %v6536_v55 = vor.u32 %v7780_v54, %v6535_v53  ;;  %v7806_v53 = vld [vmem:[%s12131_s1 + $0x354] sm:$0xf0]  ;;  %v6703_v54 = vld [vmem:[%s12131_s1 + $0x3d0] sm:$0xf]  ;;  %v7820_v28 = vld [vmem:[%s12131_s1 + $0x3c4] sm:$0xf0] }
  0x4a   : > { %1818 = vmatpush.bf16.msrb.mxu3 %v6432_v58  ;;  %1700 = vmatmul.bf16.gmra.mxu2 %v8635_v0  ;;  %v6719_v58 = vld [vmem:[%s12131_s1 + $0x3f0] sm:$0xf]  ;;  %12185 = vst [vmem:[#allocation9_spill] sm:$0xff] %v8816_v47  ;;  %v6704_v57 = vor.u32 %v7822_v56, %v6703_v54  ;;  %v6015_v38 = vld [vmem:[%s8471_s26 + $0xa0] sm:$0xf]  ;;  %s8052_s25 = sshll.u32 %s8350_s13, 8 }
  0x4b   : > { %1867 = vmatpush.bf16.msrb.mxu0 %v6496_v7  ;;  %1729 = vmatmul.bf16.gmra.mxu1 %v8648_v9  ;;  %v6720_v61 = vor.u32 %v7826_v60, %v6719_v58  ;;  %v6273_v7 = vld [vmem:[%s12131_s1 + $0x78] sm:$0xf0]  ;;  %v6767_v58 = vld [vmem:[%s12131_s1 + $0x450] sm:$0xf]  ;;  %v7709_v60 = vld [vmem:[%s12131_s1 + $0x54] sm:$0xf]  ;;  %s5821_s14 = scalar_lea.hbm %s12138_s8, %s8052_s25 }
  0x4c   : > { %1916 = vmatpush.bf16.msrb.mxu1 %v6560_v13  ;;  %v7658_v13 = vld [vmem:[%s8471_s26 + $0xf8] sm:$0xf0]  ;;  %v6260_v1 = vor.u32 %v7709_v60, %v6257_v62  ;;  %v7651_v39 = vld [vmem:[%s8471_s26 + $0xc0] sm:$0xf0]  ;;  %v6009_v41 = vld [vmem:[%s8471_s26 + $0xbc] sm:$0xf0] }
  0x4d   : > { %1770 = vmatpush.bf16.msrb.mxu2 %v6360_v11  ;;  %v6276_v11 = vor.u32 %v7713_v2, %v6273_v7  ;;  %v5971_v2 = vld [vmem:[%s8471_s26 + $0x50] sm:$0xf]  ;;  %v5979_v7 = vld [vmem:[%s8471_s26 + $0x58] sm:$0xf]  ;;  %v7646_v40 = vld [vmem:[%s8471_s26 + $0x9c] sm:$0xf] }
  0x4e   : > { %1819 = vmatpush.bf16.msrb.mxu3 %v6424_v12  ;;  %v6035_v12 = vld [vmem:[%s8471_s26 + $0xd8] sm:$0xf]  ;;  %v7647_v42 = vld [vmem:[%s8471_s26 + $0xa4] sm:$0xf]  ;;  %v6017_v43 = vld [vmem:[%s8471_s26 + $0xc4] sm:$0xf0]  ;;  %v8902_v54 = vor.u32 %v7646_v40, %v6009_v41 }
  0x4f   : > { %1868 = vmatpush.bf16.msrb.mxu0 %v6488_v22  ;;  %v8766_v20 = vor.u32 %v7658_v13, %v6035_v12  ;;  %v7637_v12 = vld [vmem:[%s8471_s26 + $0x54] sm:$0xf]  ;;  %v5973_v13 = vld [vmem:[%s8471_s26 + $0x74] sm:$0xf0]  ;;  %v6623_v56 = vld [vmem:[%s12131_s1 + $0x330] sm:$0xf] }
  0x50   : > { %1917 = vmatpush.bf16.msrb.mxu1 %v6552_v27  ;;  %v6648_v27 = vor.u32 %v7808_v25, %v6647_v24  ;;  %v8858_v18 = vor.u32 %v7637_v12, %v5973_v13  ;;  %v6631_v24 = vld [vmem:[%s12131_s1 + $0x340] sm:$0xf]  ;;  %v7804_v25 = vld [vmem:[%s12131_s1 + $0x344] sm:$0xf0]  ;;  %v7818_v60 = vld [vmem:[%s12131_s1 + $0x3b4] sm:$0xf0] }
  0x51   : > { %1771 = vmatpush.bf16.msrb.mxu2 %v6352_v17  ;;  %v6181_v17 = vld [vmem:[%s8471_s26 + $0x21c] sm:$0xf0]  ;;  %v7655_v13 = vld [vmem:[%s8471_s26 + $0xe4] sm:$0xf]  ;;  %v7832_v41 = vld [vmem:[%s12131_s1 + $0x424] sm:$0xf0] }
  0x52   : > { %1820 = vmatpush.bf16.msrb.mxu3 %v6416_v21  ;;  %v8768_v21 = vor.u32 %v7694_v15, %v6179_v14  ;;  %v8770_v22 = vor.u32 %v7690_v16, %v6181_v17  ;;  %v7638_v14 = vld [vmem:[%s8471_s26 + $0x5c] sm:$0xf]  ;;  %v5981_v15 = vld [vmem:[%s8471_s26 + $0x7c] sm:$0xf0]  ;;  %s5822_s13 = sshll.u32 %s12020_s24, 4  ;;  %s5824_s16 = sshll.u32 %s5821_s14, 4  ;;  %s5823_s13 = int_to_ptr.vmem [resolvable:$true] %s5822_s13  ;;  %s5825_s16 = int_to_ptr.hbm [resolvable:$true] %s5824_s16 }
  0x53   : > { %1869 = vmatpush.bf16.msrb.mxu0 %v6480_v32  ;;  %v7711_v32 = vld [vmem:[%s12131_s1 + $0x64] sm:$0xf]  ;;  %v8860_v19 = vor.u32 %v7638_v14, %v5981_v15  ;;  %v6043_v62 = vld [vmem:[%s8471_s26 + $0xe0] sm:$0xf]  ;;  %v6045_v14 = vld [vmem:[%s8471_s26 + $0x104] sm:$0xf0] }
  0x54   : > { %1918 = vmatpush.bf16.msrb.mxu1 %v6544_v37  ;;  %12184 = vst [vmem:[#allocation8_spill] sm:$0xff] %v8770_v22  ;;  %v6268_v35 = vor.u32 %v7711_v32, %v6265_v34  ;;  %v7632_v37 = vld [vmem:[%s8471_s26 + $0x28] sm:$0xf0]  ;;  %v7707_v32 = vld [vmem:[%s12131_s1 + $0x44] sm:$0xf]  ;;  %s8227_s0 = sshra.s32 %s5825_s16, 4  ;;  %s8228_s0 = int_to_ptr.hbm [resolvable:$true] %s8227_s0 }
  0x55   : > { %1772 = vmatpush.bf16.msrb.mxu2 %v6344_v31  ;;  %v7840_v31 = vld [vmem:[%s12131_s1 + $0x464] sm:$0xf0]  ;;  %12186 = vst [vmem:[#allocation10_spill] sm:$0xff] %v8860_v19  ;;  %v6249_v34 = vld [vmem:[%s12131_s1 + $0x48] sm:$0xf0]  ;;  %s8233_s29 = scalar_lea.hbm %s12138_s8, 512  ;;  %p8234_p0 = scmp.lt.s32.totalorder %s8228_s0, %s12138_s8 }
  0x56   : > { %1821 = vmatpush.bf16.msrb.mxu3 %v6408_v36  ;;  %v6776_v33 = vor.u32 %v7840_v31, %v6775_v30  ;;  %v5935_v36 = vld [vmem:[%s8471_s26 + $0x8] sm:$0xf]  ;;  %v6759_v30 = vld [vmem:[%s12131_s1 + $0x440] sm:$0xf]  ;;  %v7656_v15 = vld [vmem:[%s8471_s26 + $0xec] sm:$0xf] }
  0x57   : > { %1870 = vmatpush.bf16.msrb.mxu0 %v6472_v44  ;;  %v8810_v44 = vor.u32 %v7632_v37, %v5935_v36  ;;  %v7836_v31 = vld [vmem:[%s12131_s1 + $0x444] sm:$0xf0]  ;;  %v6007_v36 = vld [vmem:[%s8471_s26 + $0x98] sm:$0xf]  ;;  %v7650_v37 = vld [vmem:[%s8471_s26 + $0xb8] sm:$0xf0] }
  0x58   : > { %1685 = vmatmul.bf16.gmra.mxu0 %v8716_v49  ;;  %1919 = vmatpush.bf16.msrb.mxu1 %v6536_v55  ;;  %v6640_v55 = vor.u32 %v7806_v53, %v6639_v48  ;;  %v8898_v48 = vor.u32 %v7650_v37, %v6007_v36  ;;  %v8900_v53 = vor.u32 %v7651_v39, %v6015_v38  ;;  %v7816_v36 = vld [vmem:[%s12131_s1 + $0x3a4] sm:$0xf0]  ;;  %v351_v38 = vld [vmem:[%s12137_s7] sm:$0xff] }
  0x59   : > { %1754 = vmatmul.bf16.gmra.mxu3 %v8720_v51  ;;  %1961 = vmatpush.bf16.msra.mxu2 %v6656_v59  ;;  %v7838_v59 = vld [vmem:[%s12131_s1 + $0x454] sm:$0xf0]  ;;  %v6079_v39 = vld [vmem:[%s8471_s26 + $0x128] sm:$0xf]  ;;  %v6743_v40 = vld [vmem:[%s12131_s1 + $0x420] sm:$0xf] }
  0x5a   : > { %1705 = vmatmul.bf16.gmra.mxu2 %v8718_v50  ;;  %2010 = vmatpush.bf16.msra.mxu3 %v6720_v61  ;;  %v6768_v61 = vor.u32 %v7838_v59, %v6767_v58  ;;  %v6687_v58 = vld [vmem:[%s12131_s1 + $0x3b0] sm:$0xf] }
  0x5b   : > { %1734 = vmatmul.bf16.gmra.mxu1 %v8722_v52  ;;  %2059 = vmatpush.bf16.msra.mxu0 %v6784_v5  ;;  %v7641_v5 = vld [vmem:[%s8471_s26 + $0x70] sm:$0xf0] }
  0x5c   : > { %2108 = vmatpush.bf16.msra.mxu1 %v6276_v11  ;;  %v7642_v11 = vld [vmem:[%s8471_s26 + $0x78] sm:$0xf0]  ;;  %v8854_v16 = vor.u32 %v7641_v5, %v5971_v2  ;;  %v7834_v2 = vld [vmem:[%s12131_s1 + $0x434] sm:$0xf0]  ;;  %v7659_v5 = vld [vmem:[%s8471_s26 + $0x100] sm:$0xf0] }
  0x5d   : > { %1962 = vmatpush.bf16.msra.mxu2 %v6648_v27  ;;  %v8856_v17 = vor.u32 %v7642_v11, %v5979_v7  ;;  %v6632_v27 = vor.u32 %v7804_v25, %v6631_v24  ;;  %v6051_v7 = vld [vmem:[%s8471_s26 + $0xe8] sm:$0xf]  ;;  %v7660_v11 = vld [vmem:[%s8471_s26 + $0x108] sm:$0xf0]  ;;  %v6053_v24 = vld [vmem:[%s8471_s26 + $0x10c] sm:$0xf0]  ;;  %v8936_v25 = vor.u32 %v7659_v5, %v6043_v62 }
  0x5e   : > { %2011 = vmatpush.bf16.msra.mxu3 %v6712_v29  ;;  %v6696_v29 = vor.u32 %v7820_v28, %v6695_v26  ;;  %v8938_v26 = vor.u32 %v7660_v11, %v6051_v7  ;;  %v8942_v28 = vor.u32 %v7656_v15, %v6053_v24  ;;  %v8983_v62 = vperm.slane %v351_v38, 0 }
  0x5f   : > { %2060 = vmatpush.bf16.msra.mxu0 %v6776_v33  ;;  %v6760_v33 = vor.u32 %v7836_v31, %v6759_v30  ;;  %v6241_v30 = vld [vmem:[%s12131_s1 + $0x38] sm:$0xf0] }
  0x60   : > { %2109 = vmatpush.bf16.msra.mxu1 %v6268_v35  ;;  %v6252_v35 = vor.u32 %v7707_v32, %v6249_v34  ;;  %12188 = vst [vmem:[#allocation12_spill] sm:$0xff] %v8942_v28  ;;  %v6615_v32 = vld [vmem:[%s12131_s1 + $0x320] sm:$0xf] }
  0x61   : > { %1963 = vmatpush.bf16.msra.mxu2 %v6640_v55  ;;  %v8904_v55 = vor.u32 %v7647_v42, %v6017_v43  ;;  %v6679_v34 = vld [vmem:[%s12131_s1 + $0x3a0] sm:$0xf]  ;;  %v7668_v42 = vld [vmem:[%s8471_s26 + $0x148] sm:$0xf0]  ;;  %v6087_v43 = vld [vmem:[%s8471_s26 + $0x130] sm:$0xf] }
  0x62   : > { %2012 = vmatpush.bf16.msra.mxu3 %v6704_v57  ;;  %v7802_v57 = vld [vmem:[%s12131_s1 + $0x334] sm:$0xf0]  ;;  %v6680_v37 = vor.u32 %v7816_v36, %v6679_v34 }
  0x63   : > { %2061 = vmatpush.bf16.msra.mxu0 %v6768_v61  ;;  %12187 = vst [vmem:[#allocation11_spill] sm:$0xff] %v8904_v55  ;;  %v6624_v59 = vor.u32 %v7802_v57, %v6623_v56  ;;  %v6688_v61 = vor.u32 %v7818_v60, %v6687_v58  ;;  %v7669_v56 = vld [vmem:[%s8471_s26 + $0x150] sm:$0xf0]  ;;  %v6744_v57 = vor.u32 %v7832_v41, %v6743_v40  ;;  %v7664_v58 = vld [vmem:[%s8471_s26 + $0x12c] sm:$0xf] }
  0x64   : > { %2110 = vmatpush.bf16.msra.mxu1 %v6260_v1  ;;  %v6751_v1 = vld [vmem:[%s12131_s1 + $0x430] sm:$0xf]  ;;  %v7665_v60 = vld [vmem:[%s8471_s26 + $0x134] sm:$0xf]  ;;  %v7814_v34 = vld [vmem:[%s12131_s1 + $0x394] sm:$0xf0] }
  0x65   : > { %1964 = vmatpush.bf16.msra.mxu2 %v6632_v27  ;;  %v6752_v12 = vor.u32 %v7834_v2, %v6751_v1  ;;  %v8940_v27 = vor.u32 %v7655_v13, %v6045_v14  ;;  %v8985_v1 = vor.u32 %v7668_v42, %v6079_v39  ;;  %v8987_v2 = vor.u32 %v7669_v56, %v6087_v43  ;;  %v7703_v13 = vld [vmem:[%s12131_s1 + $0x24] sm:$0xf]  ;;  %v6233_v14 = vld [vmem:[%s12131_s1 + $0x28] sm:$0xf0]  ;;  %v6115_v56 = vld [vmem:[%s8471_s26 + $0x170] sm:$0xf] }
  0x66   : > { %2013 = vmatpush.bf16.msra.mxu3 %v6696_v29  ;;  %v7705_v29 = vld [vmem:[%s12131_s1 + $0x34] sm:$0xf]  ;;  %v6236_v24 = vor.u32 %v7703_v13, %v6233_v14  ;;  %v6117_v13 = vld [vmem:[%s8471_s26 + $0x194] sm:$0xf0] }
  0x67   : > { %2062 = vmatpush.bf16.msra.mxu0 %v6760_v33  ;;  %v6244_v31 = vor.u32 %v7705_v29, %v6241_v30  ;;  %v7800_v33 = vld [vmem:[%s12131_s1 + $0x324] sm:$0xf0]  ;;  %12189 = vst [vmem:[#allocation13_spill] sm:$0xff] %v8985_v1  ;;  %v6607_v30 = vld [vmem:[%s12131_s1 + $0x310] sm:$0xf] }
  0x68   : > { %1690 = vmatmul.bf16.gmra.mxu0 %v8766_v20  ;;  %2111 = vmatpush.bf16.msra.mxu1 %v6252_v35  ;;  %v6616_v35 = vor.u32 %v7800_v33, %v6615_v32  ;;  %12190 = vst [vmem:[#allocation14_spill] sm:$0xff] %v8987_v2  ;;  %v6671_v32 = vld [vmem:[%s12131_s1 + $0x390] sm:$0xf] }
  0x69   : > { %1759 = vmatmul.bf16.gmra.mxu3 %v8770_v22  ;;  %1965 = vmatpush.bf16.msra.mxu2 %v6624_v59  ;;  %v6081_v59 = vld [vmem:[%s8471_s26 + $0x14c] sm:$0xf0]  ;;  %v6672_v36 = vor.u32 %v7814_v34, %v6671_v32 }
  0x6a   : > { %1710 = vmatmul.bf16.gmra.mxu2 %v8768_v21  ;;  %2014 = vmatpush.bf16.msra.mxu3 %v6688_v61  ;;  %v6089_v61 = vld [vmem:[%s8471_s26 + $0x154] sm:$0xf0]  ;;  %v8989_v7 = vor.u32 %v7664_v58, %v6081_v59  ;;  %v7677_v59 = vld [vmem:[%s8471_s26 + $0x190] sm:$0xf0] }
  0x6b   : > { %1739 = vmatmul.bf16.gmra.mxu1 %v8772_v23  ;;  %2063 = vmatpush.bf16.msra.mxu0 %v6752_v12  ;;  %v8992_v12 = vor.u32 %v7665_v60, %v6089_v61  ;;  %v7830_v58 = vld [vmem:[%s12131_s1 + $0x414] sm:$0xf0]  ;;  %v7678_v61 = vld [vmem:[%s8471_s26 + $0x198] sm:$0xf0]  ;;  %v9039_v32 = vor.u32 %v7677_v59, %v6115_v56  ;;  %v7796_v59 = vld [vmem:[%s12131_s1 + $0x304] sm:$0xf0] }
  0x6c   : > { %2112 = vmatpush.bf16.msra.mxu1 %v6244_v31  ;;  %v7798_v31 = vld [vmem:[%s12131_s1 + $0x314] sm:$0xf0] }
  0x6d   : > { %1966 = vmatpush.bf16.msra.mxu2 %v6616_v35  ;;  %12191 = vst [vmem:[#allocation15_spill] sm:$0xff] %v8992_v12  ;;  %v6608_v33 = vor.u32 %v7798_v31, %v6607_v30  ;;  %v6123_v60 = vld [vmem:[%s8471_s26 + $0x178] sm:$0xf] }
  0x6e   : > { %2015 = vmatpush.bf16.msra.mxu3 %v6680_v37  ;;  %12192 = vst [vmem:[#allocation16_spill] sm:$0xff] %v9039_v32 }
  0x6f   : > { %2064 = vmatpush.bf16.msra.mxu0 %v6744_v57  ;;  %v6735_v57 = vld [vmem:[%s12131_s1 + $0x410] sm:$0xf] }
  0x70   : > { %2113 = vmatpush.bf16.msra.mxu1 %v6236_v24  ;;  %v6125_v24 = vld [vmem:[%s8471_s26 + $0x19c] sm:$0xf0] }
  0x71   : > { %1967 = vmatpush.bf16.msra.mxu2 %v6608_v33  ;;  %v9041_v33 = vor.u32 %v7678_v61, %v6123_v60  ;;  %v6663_v60 = vld [vmem:[%s12131_s1 + $0x380] sm:$0xf] }
  0x72   : > { %2016 = vmatpush.bf16.msra.mxu3 %v6672_v36 }
  0x73   : > { %12193 = vst [vmem:[#allocation17_spill] sm:$0xff] %v9041_v33 }
  0x78   : > { %1871 = vmatmul.bf16.vlgmr.msrb.gmra.mxu0 %v8812_v45 }
  0x79   : > { %1822 = vmatmul.bf16.vlgmr.msrb.gmra.mxu3 %v8814_v46 }
  0x7a   : > { %1773 = vmatmul.bf16.vlgmr.msrb.gmra.mxu2 %v8810_v44 }
  0x7b   : > { %1920 = vmatmul.bf16.vlgmr.msrb.gmra.mxu1 %v8816_v47 }
  0x88   : > { %1876 = vmatmul.bf16.gmra.mxu0 %v8856_v17 }
  0x89   : > { %1827 = vmatmul.bf16.gmra.mxu3 %v8858_v18 }
  0x8a   : > { %1778 = vmatmul.bf16.gmra.mxu2 %v8854_v16 }
  0x8b   : > { %1925 = vmatmul.bf16.gmra.mxu1 %v8860_v19  ;;  %v6197_v19 = vld [vmem:[%s8471_s26 + $0x22c] sm:$0xf0] }
  0x98   : > { %1881 = vmatmul.bf16.gmra.mxu0 %v8900_v53 }
  0x99   : > { %1832 = vmatmul.bf16.gmra.mxu3 %v8902_v54 }
  0x9a   : > { %1783 = vmatmul.bf16.gmra.mxu2 %v8898_v48 }
  0x9b   : > { %1930 = vmatmul.bf16.gmra.mxu1 %v8904_v55 }
  0xa8   : > { %1886 = vmatmul.bf16.gmra.mxu0 %v8938_v26 }
  0xa9   : > { %1837 = vmatmul.bf16.gmra.mxu3 %v8940_v27 }
  0xaa   : > { %1788 = vmatmul.bf16.gmra.mxu2 %v8936_v25 }
  0xab   : > { %1935 = vmatmul.bf16.gmra.mxu1 %v8942_v28 }
  0xb5   : > { %v1676_v5 = vpop.f32.mrf.mxu0 }
  0xb6   : > { %v1677_v11 = vadd.f32 %v1676_v5, %v8983_v62  ;;  %v6736_v5 = vor.u32 %v7830_v58, %v6735_v57  ;;  %v6599_v58 = vld [vmem:[%s12131_s1 + $0x300] sm:$0xf] }
  0xb7   : > { %v6600_v61 = vor.u32 %v7796_v59, %v6599_v58  ;;  %v6159_v58 = vld [vmem:[%s8471_s26 + $0x1c0] sm:$0xf]  ;;  %v7687_v59 = vld [vmem:[%s8471_s26 + $0x1e0] sm:$0xf0] }
  0xb8   : > { %v1725_v15 = vpop.f32.mrf.mxu1  ;;  %1891 = vmatmul.bf16.gmra.mxu0 %v8987_v2 }
  0xb9   : > { %v9002_v29 = vadd.f32 %v1725_v15, %v1677_v11  ;;  %1842 = vmatmul.bf16.gmra.mxu3 %v8989_v7  ;;  %v7673_v11 = vld [vmem:[%s8471_s26 + $0x174] sm:$0xf]  ;;  %v7674_v15 = vld [vmem:[%s8471_s26 + $0x17c] sm:$0xf]  ;;  %2065 = vmatpush.bf16.msra.mxu0 %v6736_v5  ;;  %v7812_v5 = vld [vmem:[%s12131_s1 + $0x384] sm:$0xf0] }
  0xba   : > { %1793 = vmatmul.bf16.gmra.mxu2 %v8985_v1 }
  0xbb   : > { %1940 = vmatmul.bf16.gmra.mxu1 %v8992_v12  ;;  %v1696_v35 = vpop.f32.mrf.mxu2  ;;  %1968 = vmatpush.bf16.msra.mxu2 %v6600_v61  ;;  %v7682_v61 = vld [vmem:[%s8471_s26 + $0x1bc] sm:$0xf] }
  0xbc   : > { %v1697_v37 = vadd.f32 %v1696_v35, %v8983_v62  ;;  %v1745_v38 = vpop.f32.mrf.mxu3  ;;  %v9043_v35 = vor.u32 %v7673_v11, %v6117_v13  ;;  %v6664_v13 = vor.u32 %v7812_v5, %v6663_v60  ;;  %v6153_v5 = vld [vmem:[%s8471_s26 + $0x1dc] sm:$0xf0] }
  0xbd   : > { %v1678_v39 = vpop.f32.mrf.mxu0  ;;  %v9099_v12 = vor.u32 %v7682_v61, %v6153_v5  ;;  %v6337_v61 = vld [vmem:[%s12131_s1 + $0xf8] sm:$0xf0]  ;;  %v7745_v5 = vld [vmem:[%s12131_s1 + $0x174] sm:$0xf] }
  0xbe   : > { %v9019_v40 = vadd.f32 %v1745_v38, %v1697_v37  ;;  %v1679_v41 = vadd.f32 %v1678_v39, %v8983_v62  ;;  %12194 = vst [vmem:[#allocation18_spill] sm:$0xff] %v9043_v35  ;;  %v9048_v38 = vor.u32 %v7674_v15, %v6125_v24  ;;  %v7701_v39 = vld [vmem:[%s12131_s1 + $0x14] sm:$0xf]  ;;  %2017 = vmatpush.bf16.msra.mxu3 %v6664_v13  ;;  %v7683_v13 = vld [vmem:[%s8471_s26 + $0x1c4] sm:$0xf] }
  0xbf   : > { %12198 = vst [vmem:[#allocation22_spill] sm:$0xff] %v9099_v12 }
  0xc0   : > { %v1727_v42 = vpop.f32.mrf.mxu1  ;;  %12195 = vst [vmem:[#allocation19_spill] sm:$0xff] %v9048_v38 }
  0xc1   : > { %v9022_v43 = vadd.f32 %v1727_v42, %v1679_v41  ;;  %v6225_v41 = vld [vmem:[%s12131_s1 + $0x18] sm:$0xf0] }
  0xc2   : > { %v6228_v56 = vor.u32 %v7701_v39, %v6225_v41  ;;  %v6151_v39 = vld [vmem:[%s8471_s26 + $0x1b8] sm:$0xf]  ;;  %v6727_v41 = vld [vmem:[%s12131_s1 + $0x400] sm:$0xf] }
  0xc3   : > { %v1698_v14 = vpop.f32.mrf.mxu2 }
  0xc4   : > { %v1699_v30 = vadd.f32 %v1698_v14, %v8983_v62  ;;  %v1747_v31 = vpop.f32.mrf.mxu3  ;;  %2114 = vmatpush.bf16.msra.mxu1 %v6228_v56  ;;  %v7686_v56 = vld [vmem:[%s8471_s26 + $0x1d8] sm:$0xf0] }
  0xc5   : > { %v1681_v34 = vpop.f32.mrf.mxu0 }
  0xc6   : > { %v9045_v36 = vadd.f32 %v1747_v31, %v1699_v30  ;;  %v1682_v37 = vadd.f32 %v1681_v34, %v8983_v62 }
  0xc8   : > { %v1730_v42 = vpop.f32.mrf.mxu1  ;;  %1896 = vmatmul.bf16.gmra.mxu0 %v9041_v33 }
  0xc9   : > { %v9058_v57 = vadd.f32 %v1730_v42, %v1682_v37  ;;  %1847 = vmatmul.bf16.gmra.mxu3 %v9043_v35  ;;  %v7828_v42 = vld [vmem:[%s12131_s1 + $0x404] sm:$0xf0] }
  0xca   : > { %1798 = vmatmul.bf16.gmra.mxu2 %v9039_v32  ;;  %v6728_v60 = vor.u32 %v7828_v42, %v6727_v41 }
  0xcb   : > { %1945 = vmatmul.bf16.gmra.mxu1 %v9048_v38 }
  0xcc   : > { %v1750_v15 = vpop.f32.mrf.mxu3  ;;  %2066 = vmatpush.bf16.msra.mxu0 %v6728_v60  ;;  %v7699_v60 = vld [vmem:[%s12131_s1 + $0x4] sm:$0xf] }
  0xcd   : > { %v1701_v11 = vpop.f32.mrf.mxu2  ;;  %v1683_v24 = vpop.f32.mrf.mxu0 }
  0xce   : > { %v1702_v14 = vadd.f32 %v1701_v11, %v8983_v62  ;;  %v1684_v31 = vadd.f32 %v1683_v24, %v8983_v62 }
  0xd0   : > { %v9075_v30 = vadd.f32 %v1750_v15, %v1702_v14  ;;  %v1732_v34 = vpop.f32.mrf.mxu1  ;;  %v6161_v14 = vld [vmem:[%s8471_s26 + $0x1e4] sm:$0xf0] }
  0xd1   : > { %v9078_v37 = vadd.f32 %v1732_v34, %v1684_v31  ;;  %v9095_v31 = vor.u32 %v7686_v56, %v6151_v39  ;;  %v9097_v34 = vor.u32 %v7687_v59, %v6159_v58  ;;  %v9104_v42 = vor.u32 %v7683_v13, %v6161_v14  ;;  %v6217_v39 = vld [vmem:[%s12131_s1 + $0x8] sm:$0xf0]  ;;  %v6401_v13 = vld [vmem:[%s12131_s1 + $0x178] sm:$0xf0] }
  0xd2   : > { %v6220_v58 = vor.u32 %v7699_v60, %v6217_v39 }
  0xd3   : > { %12196 = vst [vmem:[#allocation20_spill] sm:$0xff] %v9095_v31 }
  0xd4   : > { %v1752_v24 = vpop.f32.mrf.mxu3  ;;  %12197 = vst [vmem:[#allocation21_spill] sm:$0xff] %v9097_v34  ;;  %2115 = vmatpush.bf16.msra.mxu1 %v6220_v58 }
  0xd5   : > { %v1703_v11 = vpop.f32.mrf.mxu2  ;;  %v1686_v38 = vpop.f32.mrf.mxu0  ;;  %12199 = vst [vmem:[#allocation23_spill] sm:$0xff] %v9104_v42 }
  0xd6   : > { %v1704_v15 = vadd.f32 %v1703_v11, %v8983_v62  ;;  %v1687_v41 = vadd.f32 %v1686_v38, %v8983_v62  ;;  %v7729_v38 = vld [vmem:[%s12131_s1 + $0xf4] sm:$0xf] }
  0xd7   : > { %v6340_v11 = vor.u32 %v7729_v38, %v6337_v61  ;;  %v6187_v61 = vld [vmem:[%s8471_s26 + $0x200] sm:$0xf] }
  0xd8   : > { %v9101_v28 = vadd.f32 %v1752_v24, %v1704_v15  ;;  %v1735_v56 = vpop.f32.mrf.mxu1  ;;  %1901 = vmatmul.bf16.gmra.mxu0 %v9097_v34  ;;  %v6404_v15 = vor.u32 %v7745_v5, %v6401_v13  ;;  %v7761_v5 = vld [vmem:[%s12131_s1 + $0x1f4] sm:$0xf]  ;;  %v7695_v13 = vld [vmem:[%s8471_s26 + $0x220] sm:$0xf0] }
  0xd9   : > { %v9114_v59 = vadd.f32 %v1735_v56, %v1687_v41  ;;  %1852 = vmatmul.bf16.gmra.mxu3 %v9099_v12  ;;  %2157 = vmatpush.bf16.msrb.mxu2 %v6340_v11  ;;  %v6465_v11 = vld [vmem:[%s12131_s1 + $0x1f8] sm:$0xf0]  ;;  %v9151_v47 = vor.u32 %v7695_v13, %v6187_v61  ;;  %v7743_v13 = vld [vmem:[%s12131_s1 + $0x164] sm:$0xf] }
  0xda   : > { %1803 = vmatmul.bf16.gmra.mxu2 %v9095_v31  ;;  %2206 = vmatpush.bf16.msrb.mxu3 %v6404_v15  ;;  %v7696_v15 = vld [vmem:[%s8471_s26 + $0x228] sm:$0xf0]  ;;  %v6529_v61 = vld [vmem:[%s12131_s1 + $0x278] sm:$0xf0] }
  0xdb   : > { %1950 = vmatmul.bf16.gmra.mxu1 %v9104_v42  ;;  %v6468_v42 = vor.u32 %v7761_v5, %v6465_v11  ;;  %12200 = vst [vmem:[#allocation24_spill] sm:$0xff] %v9151_v47 }
  0xdc   : > { %v1755_v41 = vpop.f32.mrf.mxu3 }
  0xdd   : > { %v1706_v14 = vpop.f32.mrf.mxu2  ;;  %v1688_v60 = vpop.f32.mrf.mxu0  ;;  %2255 = vmatpush.bf16.msrb.mxu0 %v6468_v42  ;;  %v7777_v42 = vld [vmem:[%s12131_s1 + $0x274] sm:$0xf] }
  0xde   : > { %v1707_v24 = vadd.f32 %v1706_v14, %v8983_v62  ;;  %v1689_v56 = vadd.f32 %v1688_v60, %v8983_v62  ;;  %v6195_v14 = vld [vmem:[%s8471_s26 + $0x208] sm:$0xf]  ;;  %v7692_v60 = vld [vmem:[%s8471_s26 + $0x20c] sm:$0xf] }
  0xdf   : > { %v9153_v22 = vor.u32 %v7696_v15, %v6195_v14  ;;  %v9160_v11 = vor.u32 %v7692_v60, %v6197_v19  ;;  %v7727_v19 = vld [vmem:[%s12131_s1 + $0xe4] sm:$0xf]  ;;  %v6393_v15 = vld [vmem:[%s12131_s1 + $0x168] sm:$0xf0] }
  0xe0   : > { %v9131_v39 = vadd.f32 %v1755_v41, %v1707_v24  ;;  %v1737_v58 = vpop.f32.mrf.mxu1  ;;  %v7691_v24 = vld [vmem:[%s8471_s26 + $0x204] sm:$0xf]  ;;  %v6189_v41 = vld [vmem:[%s8471_s26 + $0x224] sm:$0xf0] }
  0xe1   : > { %v9134_v38 = vadd.f32 %v1737_v58, %v1689_v56  ;;  %12201 = vst [vmem:[#allocation25_spill] sm:$0xff] %v9153_v22  ;;  %v9155_v31 = vor.u32 %v7691_v24, %v6189_v41  ;;  %v6396_v41 = vor.u32 %v7743_v13, %v6393_v15  ;;  %v6457_v13 = vld [vmem:[%s12131_s1 + $0x1e8] sm:$0xf0]  ;;  %v7634_v15 = vld [vmem:[%s8471_s26 + $0x38] sm:$0xf0] }
  0xe2   : > { %12203 = vst [vmem:[#allocation27_spill] sm:$0xff] %v9160_v11 }
  0xe3   : > { %12202 = vst [vmem:[#allocation26_spill] sm:$0xff] %v9155_v31  ;;  %2207 = vmatpush.bf16.msrb.mxu3 %v6396_v41 }
  0xe4   : > { %v1757_v58 = vpop.f32.mrf.mxu3 }
  0xe5   : > { %v1708_v55 = vpop.f32.mrf.mxu2  ;;  %v1691_v34 = vpop.f32.mrf.mxu0 }
  0xe6   : > { %v1709_v56 = vadd.f32 %v1708_v55, %v8983_v62  ;;  %v1692_v5 = vadd.f32 %v1691_v34, %v8983_v62  ;;  %v6532_v34 = vor.u32 %v7777_v42, %v6529_v61 }
  0xe8   : > { %v9157_v12 = vadd.f32 %v1757_v58, %v1709_v56  ;;  %v1740_v51 = vpop.f32.mrf.mxu1  ;;  %1906 = vmatmul.bf16.gmra.mxu0 %v9153_v22  ;;  %2304 = vmatpush.bf16.msrb.mxu1 %v6532_v34  ;;  %v7759_v34 = vld [vmem:[%s12131_s1 + $0x1e4] sm:$0xf] }
  0xe9   : > { %v9164_v55 = vadd.f32 %v1740_v51, %v1692_v5  ;;  %1857 = vmatmul.bf16.gmra.mxu3 %v9155_v31  ;;  %v6329_v51 = vld [vmem:[%s12131_s1 + $0xe8] sm:$0xf0]  ;;  %v6460_v41 = vor.u32 %v7759_v34, %v6457_v13  ;;  %v7775_v34 = vld [vmem:[%s12131_s1 + $0x264] sm:$0xf]  ;;  %v6321_v13 = vld [vmem:[%s12131_s1 + $0xd8] sm:$0xf0] }
  0xea   : > { %1808 = vmatmul.bf16.gmra.mxu2 %v9151_v47  ;;  %v6332_v14 = vor.u32 %v7727_v19, %v6329_v51  ;;  %v5951_v51 = vld [vmem:[%s8471_s26 + $0x18] sm:$0xf] }
  0xeb   : > { %1955 = vmatmul.bf16.gmra.mxu1 %v9160_v11  ;;  %2256 = vmatpush.bf16.msrb.mxu0 %v6460_v41 }
  0xec   : > { %v1760_v56 = vpop.f32.mrf.mxu3  ;;  %2158 = vmatpush.bf16.msrb.mxu2 %v6332_v14  ;;  %v5959_v14 = vld [vmem:[%s8471_s26 + $0x20] sm:$0xf] }
  0xed   : > { %v1711_v24 = vpop.f32.mrf.mxu2  ;;  %v1693_v58 = vpop.f32.mrf.mxu0 }
  0xee   : > { %v1712_v60 = vadd.f32 %v1711_v24, %v8983_v62  ;;  %v1694_v42 = vadd.f32 %v1693_v58, %v8983_v62  ;;  %v7635_v24 = vld [vmem:[%s8471_s26 + $0x40] sm:$0xf0] }
  0xef   : > { %v9207_v22 = vor.u32 %v7635_v24, %v5959_v14  ;;  %v6385_v24 = vld [vmem:[%s12131_s1 + $0x158] sm:$0xf0] }
  0xf0   : > { %v9187_v5 = vadd.f32 %v1760_v56, %v1712_v60  ;;  %v1742_v61 = vpop.f32.mrf.mxu1  ;;  %v7630_v60 = vld [vmem:[%s8471_s26 + $0x1c] sm:$0xf]  ;;  %v5953_v56 = vld [vmem:[%s8471_s26 + $0x3c] sm:$0xf0] }
  0xf1   : > { %v9190_v19 = vadd.f32 %v1742_v61, %v1694_v42  ;;  %v9205_v61 = vor.u32 %v7634_v15, %v5951_v51  ;;  %12205 = vst [vmem:[#allocation29_spill] sm:$0xff] %v9207_v22  ;;  %v9209_v31 = vor.u32 %v7630_v60, %v5953_v56  ;;  %v7725_v51 = vld [vmem:[%s12131_s1 + $0xd4] sm:$0xf] }
  0xf2   : > { %v7741_v15 = vld [vmem:[%s12131_s1 + $0x154] sm:$0xf]  ;;  %v6324_v14 = vor.u32 %v7725_v51, %v6321_v13  ;;  %v5987_v51 = vld [vmem:[%s8471_s26 + $0x60] sm:$0xf] }
  0xf3   : > { %12204 = vst [vmem:[#allocation28_spill] sm:$0xff] %v9205_v61  ;;  %v6388_v60 = vor.u32 %v7741_v15, %v6385_v24  ;;  %v7757_v13 = vld [vmem:[%s12131_s1 + $0x1d4] sm:$0xf]  ;;  %v7643_v15 = vld [vmem:[%s8471_s26 + $0x80] sm:$0xf0] }
  0xf4   : > { %v1762_v42 = vpop.f32.mrf.mxu3  ;;  %12206 = vst [vmem:[#allocation30_spill] sm:$0xff] %v9209_v31  ;;  %2159 = vmatpush.bf16.msrb.mxu2 %v6324_v14  ;;  %v5995_v24 = vld [vmem:[%s8471_s26 + $0x68] sm:$0xf] }
  0xf5   : > { %v1713_v11 = vpop.f32.mrf.mxu2  ;;  %v1872_v47 = vpop.f32.mrf.mxu0  ;;  %2208 = vmatpush.bf16.msrb.mxu3 %v6388_v60  ;;  %v5989_v14 = vld [vmem:[%s8471_s26 + $0x84] sm:$0xf0] }
  0xf6   : > { %v1714_v58 = vadd.f32 %v1713_v11, %v8983_v62  ;;  %v6521_v62 = vld [vmem:[%s12131_s1 + $0x268] sm:$0xf0] }
  0xf7   : > { %v6524_v11 = vor.u32 %v7775_v34, %v6521_v62 }
  0xf8   : > { %v9211_v33 = vadd.f32 %v1762_v42, %v1714_v58  ;;  %v1921_v32 = vpop.f32.mrf.mxu1  ;;  %2067 = vmatmul.bf16.vlgmr.msra.gmra.mxu0 %v9207_v22  ;;  %v7639_v22 = vld [vmem:[%s8471_s26 + $0x64] sm:$0xf] }
  0xf9   : > { %2018 = vmatmul.bf16.vlgmr.msra.gmra.mxu3 %v9209_v31  ;;  %2305 = vmatpush.bf16.msrb.mxu1 %v6524_v11  ;;  %v6449_v11 = vld [vmem:[%s12131_s1 + $0x1d8] sm:$0xf0]  ;;  %v9255_v35 = vor.u32 %v7639_v22, %v5989_v14  ;;  %v7723_v22 = vld [vmem:[%s12131_s1 + $0xc4] sm:$0xf] }
  0xfa   : > { %1969 = vmatmul.bf16.vlgmr.msra.gmra.mxu2 %v9205_v61 }
  0xfb   : > { %2116 = vmatmul.bf16.vlgmr.msra.gmra.mxu1 %v8517_v3 }
  0xfc   : > { %v1823_v58 = vpop.f32.mrf.mxu3 }
  0xfd   : > { %v1774_v41 = vpop.f32.mrf.mxu2  ;;  %v1874_v42 = vpop.f32.mrf.mxu0 }
  0xfe   : > { %v1775_v56 = vadd.f32 %v1774_v41, %v9002_v29  ;;  %v7644_v29 = vld [vmem:[%s8471_s26 + $0x88] sm:$0xf0]  ;;  %v6452_v41 = vor.u32 %v7757_v13, %v6449_v11 }
  0xff   : > { %v6377_v13 = vld [vmem:[%s12131_s1 + $0x148] sm:$0xf0] }
 0x100   : > { %v1824_v3 = vadd.f32 %v1823_v58, %v1775_v56  ;;  %v1923_v34 = vpop.f32.mrf.mxu1  ;;  %2257 = vmatpush.bf16.msrb.mxu0 %v6452_v41  ;;  %v9251_v58 = vor.u32 %v7643_v15, %v5987_v51 }
 0x102   : > { %v1873_v62 = vadd.f32 %v1872_v47, %v1824_v3  ;;  %12207 = vst [vmem:[#allocation31_spill] sm:$0xff] %v9251_v58  ;;  %v9253_v3 = vor.u32 %v7644_v29, %v5995_v24 }
 0x104   : > { %v9248_v61 = vadd.f32 %v1921_v32, %v1873_v62  ;;  %v1825_v56 = vpop.f32.mrf.mxu3  ;;  %12208 = vst [vmem:[#allocation32_spill] sm:$0xff] %v9253_v3  ;;  %v7773_v32 = vld [vmem:[%s12131_s1 + $0x254] sm:$0xf] }
 0x105   : > { %v1776_v60 = vpop.f32.mrf.mxu2  ;;  %v1877_v31 = vpop.f32.mrf.mxu0 }
 0x106   : > { %v1777_v47 = vadd.f32 %v1776_v60, %v9022_v43  ;;  %v6513_v43 = vld [vmem:[%s12131_s1 + $0x258] sm:$0xf0] }
 0x107   : > { %v6516_v62 = vor.u32 %v7773_v32, %v6513_v43  ;;  %v7652_v32 = vld [vmem:[%s8471_s26 + $0xc8] sm:$0xf0]  ;;  %v6031_v43 = vld [vmem:[%s8471_s26 + $0xb0] sm:$0xf] }
 0x108   : > { %v1826_v6 = vadd.f32 %v1825_v56, %v1777_v47  ;;  %v1926_v2 = vpop.f32.mrf.mxu1  ;;  %2072 = vmatmul.bf16.gmra.mxu0 %v9253_v3  ;;  %v6023_v56 = vld [vmem:[%s8471_s26 + $0xa8] sm:$0xf] }
 0x109   : > { %2023 = vmatmul.bf16.gmra.mxu3 %v9255_v35  ;;  %2306 = vmatpush.bf16.msrb.mxu1 %v6516_v62 }
 0x10a   : > { %v1875_v1 = vadd.f32 %v1874_v42, %v1826_v6  ;;  %1974 = vmatmul.bf16.gmra.mxu2 %v9251_v58  ;;  %v6313_v6 = vld [vmem:[%s12131_s1 + $0xc8] sm:$0xf0]  ;;  %v7739_v42 = vld [vmem:[%s12131_s1 + $0x144] sm:$0xf] }
 0x10b   : > { %2121 = vmatmul.bf16.gmra.mxu1 %v8633_v63  ;;  %v6316_v51 = vor.u32 %v7723_v22, %v6313_v6  ;;  %v6380_v24 = vor.u32 %v7739_v42, %v6377_v13  ;;  %v7648_v22 = vld [vmem:[%s8471_s26 + $0xac] sm:$0xf]  ;;  %v6025_v6 = vld [vmem:[%s8471_s26 + $0xcc] sm:$0xf0] }
 0x10c   : > { %v9279_v11 = vadd.f32 %v1923_v34, %v1875_v1  ;;  %v1828_v41 = vpop.f32.mrf.mxu3  ;;  %v7755_v1 = vld [vmem:[%s12131_s1 + $0x1c4] sm:$0xf]  ;;  %v6441_v34 = vld [vmem:[%s12131_s1 + $0x1c8] sm:$0xf0] }
 0x10d   : > { %v1779_v15 = vpop.f32.mrf.mxu2  ;;  %2160 = vmatpush.bf16.msrb.mxu2 %v6316_v51  ;;  %v1879_v63 = vpop.f32.mrf.mxu0  ;;  %2209 = vmatpush.bf16.msrb.mxu3 %v6380_v24  ;;  %v6444_v62 = vor.u32 %v7755_v1, %v6441_v34  ;;  %v7737_v1 = vld [vmem:[%s12131_s1 + $0x134] sm:$0xf] }
 0x10e   : > { %v1780_v29 = vadd.f32 %v1779_v15, %v9058_v57  ;;  %v7653_v57 = vld [vmem:[%s8471_s26 + $0xd0] sm:$0xf0]  ;;  %v9297_v15 = vor.u32 %v7652_v32, %v6023_v56  ;;  %v6369_v32 = vld [vmem:[%s12131_s1 + $0x138] sm:$0xf0] }
 0x10f   : > { %2258 = vmatpush.bf16.msrb.mxu0 %v6444_v62  ;;  %v9299_v24 = vor.u32 %v7653_v57, %v6031_v43  ;;  %v7721_v56 = vld [vmem:[%s12131_s1 + $0xb4] sm:$0xf]  ;;  %v6372_v62 = vor.u32 %v7737_v1, %v6369_v32 }
 0x110   : > { %v1829_v14 = vadd.f32 %v1828_v41, %v1780_v29  ;;  %v1928_v60 = vpop.f32.mrf.mxu1  ;;  %12209 = vst [vmem:[#allocation33_spill] sm:$0xff] %v9297_v15  ;;  %v9301_v41 = vor.u32 %v7648_v22, %v6025_v6 }
 0x111   : > { %12210 = vst [vmem:[#allocation34_spill] sm:$0xff] %v9299_v24  ;;  %2210 = vmatpush.bf16.msrb.mxu3 %v6372_v62 }
 0x112   : > { %v1878_v47 = vadd.f32 %v1877_v31, %v1829_v14 }
 0x114   : > { %v9294_v42 = vadd.f32 %v1926_v2, %v1878_v47  ;;  %v1830_v13 = vpop.f32.mrf.mxu3  ;;  %v7771_v2 = vld [vmem:[%s12131_s1 + $0x244] sm:$0xf] }
 0x115   : > { %v1781_v51 = vpop.f32.mrf.mxu2  ;;  %v1882_v29 = vpop.f32.mrf.mxu0 }
 0x116   : > { %v1782_v31 = vadd.f32 %v1781_v51, %v9078_v37  ;;  %v6505_v37 = vld [vmem:[%s12131_s1 + $0x248] sm:$0xf0] }
 0x117   : > { %v6508_v47 = vor.u32 %v7771_v2, %v6505_v37  ;;  %v7661_v2 = vld [vmem:[%s8471_s26 + $0x110] sm:$0xf0]  ;;  %v6067_v37 = vld [vmem:[%s8471_s26 + $0xf8] sm:$0xf] }
 0x118   : > { %v1831_v14 = vadd.f32 %v1830_v13, %v1782_v31  ;;  %v1931_v3 = vpop.f32.mrf.mxu1  ;;  %2077 = vmatmul.bf16.gmra.mxu0 %v9299_v24 }
 0x119   : > { %2028 = vmatmul.bf16.gmra.mxu3 %v9301_v41  ;;  %2307 = vmatpush.bf16.msrb.mxu1 %v6508_v47 }
 0x11a   : > { %v1880_v58 = vadd.f32 %v1879_v63, %v1831_v14  ;;  %1979 = vmatmul.bf16.gmra.mxu2 %v9297_v15  ;;  %v6305_v63 = vld [vmem:[%s12131_s1 + $0xb8] sm:$0xf0]  ;;  %v6059_v14 = vld [vmem:[%s8471_s26 + $0xf0] sm:$0xf] }
 0x11b   : > { %2126 = vmatmul.bf16.gmra.mxu1 %v8716_v49  ;;  %v6308_v34 = vor.u32 %v7721_v56, %v6305_v63  ;;  %v7657_v56 = vld [vmem:[%s8471_s26 + $0xf4] sm:$0xf]  ;;  %v6061_v63 = vld [vmem:[%s8471_s26 + $0x114] sm:$0xf0] }
 0x11c   : > { %v9325_v43 = vadd.f32 %v1928_v60, %v1880_v58  ;;  %v1833_v6 = vpop.f32.mrf.mxu3  ;;  %v7753_v58 = vld [vmem:[%s12131_s1 + $0x1b4] sm:$0xf]  ;;  %v6433_v60 = vld [vmem:[%s12131_s1 + $0x1b8] sm:$0xf0] }
 0x11d   : > { %v1784_v57 = vpop.f32.mrf.mxu2  ;;  %2161 = vmatpush.bf16.msrb.mxu2 %v6308_v34  ;;  %v1884_v49 = vpop.f32.mrf.mxu0  ;;  %v6436_v47 = vor.u32 %v7753_v58, %v6433_v60  ;;  %v7735_v58 = vld [vmem:[%s12131_s1 + $0x124] sm:$0xf] }
 0x11e   : > { %v1785_v22 = vadd.f32 %v1784_v57, %v9114_v59  ;;  %v7662_v59 = vld [vmem:[%s8471_s26 + $0x118] sm:$0xf0]  ;;  %v9343_v57 = vor.u32 %v7661_v2, %v6059_v14  ;;  %v7719_v14 = vld [vmem:[%s12131_s1 + $0xa4] sm:$0xf]  ;;  %v6361_v2 = vld [vmem:[%s12131_s1 + $0x128] sm:$0xf0] }
 0x11f   : > { %2259 = vmatpush.bf16.msrb.mxu0 %v6436_v47  ;;  %v9345_v62 = vor.u32 %v7662_v59, %v6067_v37  ;;  %v6364_v47 = vor.u32 %v7735_v58, %v6361_v2 }
 0x120   : > { %v1834_v51 = vadd.f32 %v1833_v6, %v1785_v22  ;;  %v1933_v31 = vpop.f32.mrf.mxu1  ;;  %12211 = vst [vmem:[#allocation35_spill] sm:$0xff] %v9343_v57  ;;  %v9347_v6 = vor.u32 %v7657_v56, %v6061_v63 }
 0x121   : > { %12212 = vst [vmem:[#allocation36_spill] sm:$0xff] %v9345_v62  ;;  %2211 = vmatpush.bf16.msrb.mxu3 %v6364_v47 }
 0x122   : > { %v1883_v13 = vadd.f32 %v1882_v29, %v1834_v51 }
 0x124   : > { %v9340_v1 = vadd.f32 %v1931_v3, %v1883_v13  ;;  %v1835_v32 = vpop.f32.mrf.mxu3  ;;  %v7769_v3 = vld [vmem:[%s12131_s1 + $0x234] sm:$0xf] }
 0x125   : > { %v1786_v34 = vpop.f32.mrf.mxu2  ;;  %v1887_v22 = vpop.f32.mrf.mxu0 }
 0x126   : > { %v1787_v29 = vadd.f32 %v1786_v34, %v9134_v38  ;;  %v6497_v38 = vld [vmem:[%s12131_s1 + $0x238] sm:$0xf0] }
 0x127   : > { %v6500_v13 = vor.u32 %v7769_v3, %v6497_v38  ;;  %v7670_v3 = vld [vmem:[%s8471_s26 + $0x158] sm:$0xf0]  ;;  %v6103_v38 = vld [vmem:[%s8471_s26 + $0x140] sm:$0xf] }
 0x128   : > { %v1836_v51 = vadd.f32 %v1835_v32, %v1787_v29  ;;  %v1936_v24 = vpop.f32.mrf.mxu1  ;;  %2082 = vmatmul.bf16.gmra.mxu0 %v9345_v62 }
 0x129   : > { %2033 = vmatmul.bf16.gmra.mxu3 %v9347_v6  ;;  %2308 = vmatpush.bf16.msrb.mxu1 %v6500_v13 }
 0x12a   : > { %v1885_v15 = vadd.f32 %v1884_v49, %v1836_v51  ;;  %1984 = vmatmul.bf16.gmra.mxu2 %v9343_v57  ;;  %v6297_v49 = vld [vmem:[%s12131_s1 + $0xa8] sm:$0xf0]  ;;  %v6095_v51 = vld [vmem:[%s8471_s26 + $0x138] sm:$0xf] }
 0x12b   : > { %2131 = vmatmul.bf16.gmra.mxu1 %v8766_v20  ;;  %v6300_v60 = vor.u32 %v7719_v14, %v6297_v49  ;;  %v7666_v14 = vld [vmem:[%s8471_s26 + $0x13c] sm:$0xf]  ;;  %v6097_v49 = vld [vmem:[%s8471_s26 + $0x15c] sm:$0xf0] }
 0x12c   : > { %v9371_v37 = vadd.f32 %v1933_v31, %v1885_v15  ;;  %v1838_v63 = vpop.f32.mrf.mxu3  ;;  %v7751_v15 = vld [vmem:[%s12131_s1 + $0x1a4] sm:$0xf]  ;;  %v6425_v31 = vld [vmem:[%s12131_s1 + $0x1a8] sm:$0xf0] }
 0x12d   : > { %v1789_v59 = vpop.f32.mrf.mxu2  ;;  %2162 = vmatpush.bf16.msrb.mxu2 %v6300_v60  ;;  %v1889_v20 = vpop.f32.mrf.mxu0  ;;  %v6428_v13 = vor.u32 %v7751_v15, %v6425_v31  ;;  %v7733_v15 = vld [vmem:[%s12131_s1 + $0x114] sm:$0xf] }
 0x12e   : > { %v1790_v56 = vadd.f32 %v1789_v59, %v9164_v55  ;;  %v7671_v55 = vld [vmem:[%s8471_s26 + $0x160] sm:$0xf0]  ;;  %v9389_v59 = vor.u32 %v7670_v3, %v6095_v51  ;;  %v7717_v51 = vld [vmem:[%s12131_s1 + $0x94] sm:$0xf]  ;;  %v6353_v3 = vld [vmem:[%s12131_s1 + $0x118] sm:$0xf0] }
 0x12f   : > { %2260 = vmatpush.bf16.msrb.mxu0 %v6428_v13  ;;  %v9391_v47 = vor.u32 %v7671_v55, %v6103_v38  ;;  %v6356_v13 = vor.u32 %v7733_v15, %v6353_v3 }
 0x130   : > { %v1839_v34 = vadd.f32 %v1838_v63, %v1790_v56  ;;  %v1938_v29 = vpop.f32.mrf.mxu1  ;;  %12213 = vst [vmem:[#allocation37_spill] sm:$0xff] %v9389_v59  ;;  %v9393_v63 = vor.u32 %v7666_v14, %v6097_v49 }
 0x131   : > { %12214 = vst [vmem:[#allocation38_spill] sm:$0xff] %v9391_v47  ;;  %2212 = vmatpush.bf16.msrb.mxu3 %v6356_v13 }
 0x132   : > { %v1888_v32 = vadd.f32 %v1887_v22, %v1839_v34 }
 0x134   : > { %v9386_v58 = vadd.f32 %v1936_v24, %v1888_v32  ;;  %v1840_v2 = vpop.f32.mrf.mxu3  ;;  %v7767_v24 = vld [vmem:[%s12131_s1 + $0x224] sm:$0xf] }
 0x135   : > { %v1791_v60 = vpop.f32.mrf.mxu2  ;;  %v1892_v56 = vpop.f32.mrf.mxu0 }
 0x136   : > { %v1792_v22 = vadd.f32 %v1791_v60, %v9190_v19  ;;  %v6489_v19 = vld [vmem:[%s12131_s1 + $0x228] sm:$0xf0] }
 0x137   : > { %v6492_v32 = vor.u32 %v7767_v24, %v6489_v19  ;;  %v7679_v24 = vld [vmem:[%s8471_s26 + $0x1a0] sm:$0xf0]  ;;  %v6139_v19 = vld [vmem:[%s8471_s26 + $0x188] sm:$0xf] }
 0x138   : > { %v1841_v34 = vadd.f32 %v1840_v2, %v1792_v22  ;;  %v1941_v62 = vpop.f32.mrf.mxu1  ;;  %2087 = vmatmul.bf16.gmra.mxu0 %v9391_v47 }
 0x139   : > { %2038 = vmatmul.bf16.gmra.mxu3 %v9393_v63  ;;  %2309 = vmatpush.bf16.msrb.mxu1 %v6492_v32 }
 0x13a   : > { %v1890_v57 = vadd.f32 %v1889_v20, %v1841_v34  ;;  %1989 = vmatmul.bf16.gmra.mxu2 %v9389_v59  ;;  %v6289_v20 = vld [vmem:[%s12131_s1 + $0x98] sm:$0xf0]  ;;  %v6131_v34 = vld [vmem:[%s8471_s26 + $0x180] sm:$0xf] }
 0x13b   : > { %2136 = vmatmul.bf16.gmra.mxu1 %v8519_v4  ;;  %v6292_v31 = vor.u32 %v7717_v51, %v6289_v20  ;;  %v7675_v51 = vld [vmem:[%s8471_s26 + $0x184] sm:$0xf]  ;;  %v6133_v20 = vld [vmem:[%s8471_s26 + $0x1a4] sm:$0xf0] }
 0x13c   : > { %v9417_v38 = vadd.f32 %v1938_v29, %v1890_v57  ;;  %v1843_v49 = vpop.f32.mrf.mxu3  ;;  %v7749_v57 = vld [vmem:[%s12131_s1 + $0x194] sm:$0xf]  ;;  %v6417_v29 = vld [vmem:[%s12131_s1 + $0x198] sm:$0xf0] }
 0x13d   : > { %v1794_v55 = vpop.f32.mrf.mxu2  ;;  %2163 = vmatpush.bf16.msrb.mxu2 %v6292_v31  ;;  %v1894_v4 = vpop.f32.mrf.mxu0  ;;  %v6420_v32 = vor.u32 %v7749_v57, %v6417_v29  ;;  %v7731_v57 = vld [vmem:[%s12131_s1 + $0x104] sm:$0xf] }
 0x13e   : > { %v1795_v14 = vadd.f32 %v1794_v55, %v9019_v40  ;;  %v7680_v40 = vld [vmem:[%s8471_s26 + $0x1a8] sm:$0xf0]  ;;  %v9435_v55 = vor.u32 %v7679_v24, %v6131_v34  ;;  %v7715_v34 = vld [vmem:[%s12131_s1 + $0x84] sm:$0xf] }
 0x13f   : > { %2261 = vmatpush.bf16.msrb.mxu0 %v6420_v32  ;;  %v9437_v13 = vor.u32 %v7680_v40, %v6139_v19  ;;  %v6345_v24 = vld [vmem:[%s12131_s1 + $0x108] sm:$0xf0] }
 0x140   : > { %v1844_v60 = vadd.f32 %v1843_v49, %v1795_v14  ;;  %v1943_v22 = vpop.f32.mrf.mxu1  ;;  %v9439_v49 = vor.u32 %v7675_v51, %v6133_v20  ;;  %v6348_v32 = vor.u32 %v7731_v57, %v6345_v24 }
 0x141   : > { %12215 = vst [vmem:[#allocation39_spill] sm:$0xff] %v9437_v13 }
 0x142   : > { %v1893_v2 = vadd.f32 %v1892_v56, %v1844_v60  ;;  %2213 = vmatpush.bf16.msrb.mxu3 %v6348_v32 }
 0x144   : > { %v9432_v15 = vadd.f32 %v1941_v62, %v1893_v2  ;;  %v1845_v3 = vpop.f32.mrf.mxu3  ;;  %v7765_v62 = vld [vmem:[%s12131_s1 + $0x214] sm:$0xf] }
 0x145   : > { %v1796_v31 = vpop.f32.mrf.mxu2  ;;  %v1897_v14 = vpop.f32.mrf.mxu0 }
 0x146   : > { %v1797_v56 = vadd.f32 %v1796_v31, %v9045_v36  ;;  %v6481_v36 = vld [vmem:[%s12131_s1 + $0x218] sm:$0xf0] }
 0x147   : > { %v6484_v2 = vor.u32 %v7765_v62, %v6481_v36  ;;  %v7688_v62 = vld [vmem:[%s8471_s26 + $0x1e8] sm:$0xf0]  ;;  %v6175_v36 = vld [vmem:[%s8471_s26 + $0x1d0] sm:$0xf] }
 0x148   : > { %v1846_v60 = vadd.f32 %v1845_v3, %v1797_v56  ;;  %v1946_v47 = vpop.f32.mrf.mxu1  ;;  %2092 = vmatmul.bf16.gmra.mxu0 %v9437_v13 }
 0x149   : > { %2043 = vmatmul.bf16.gmra.mxu3 %v9439_v49  ;;  %2310 = vmatpush.bf16.msrb.mxu1 %v6484_v2 }
 0x14a   : > { %v1895_v59 = vadd.f32 %v1894_v4, %v1846_v60  ;;  %1994 = vmatmul.bf16.gmra.mxu2 %v9435_v55  ;;  %v6281_v4 = vld [vmem:[%s12131_s1 + $0x88] sm:$0xf0]  ;;  %v6167_v60 = vld [vmem:[%s8471_s26 + $0x1c8] sm:$0xf] }
 0x14b   : > { %2141 = vmatmul.bf16.gmra.mxu1 %v8635_v0  ;;  %v6284_v29 = vor.u32 %v7715_v34, %v6281_v4  ;;  %v7684_v34 = vld [vmem:[%s8471_s26 + $0x1cc] sm:$0xf]  ;;  %v6169_v4 = vld [vmem:[%s8471_s26 + $0x1ec] sm:$0xf0] }
 0x14c   : > { %v9463_v19 = vadd.f32 %v1943_v22, %v1895_v59  ;;  %v1848_v20 = vpop.f32.mrf.mxu3  ;;  %v7747_v59 = vld [vmem:[%s12131_s1 + $0x184] sm:$0xf]  ;;  %v6409_v22 = vld [vmem:[%s12131_s1 + $0x188] sm:$0xf0] }
 0x14d   : > { %v1799_v40 = vpop.f32.mrf.mxu2  ;;  %2164 = vmatpush.bf16.msrb.mxu2 %v6284_v29  ;;  %v1899_v0 = vpop.f32.mrf.mxu0  ;;  %v6412_v2 = vor.u32 %v7747_v59, %v6409_v22  ;;  %v7763_v59 = vld [vmem:[%s12131_s1 + $0x204] sm:$0xf]  ;;  %v6593_v22 = vld [vmem:[%s12131_s1 + $0x2f8] sm:$0xf0] }
 0x14e   : > { %v1800_v51 = vadd.f32 %v1799_v40, %v9075_v30  ;;  %v7689_v30 = vld [vmem:[%s8471_s26 + $0x1f0] sm:$0xf0]  ;;  %v9481_v40 = vor.u32 %v7688_v62, %v6167_v60 }
 0x14f   : > { %2262 = vmatpush.bf16.msrb.mxu0 %v6412_v2  ;;  %v9483_v32 = vor.u32 %v7689_v30, %v6175_v36  ;;  %v7793_v60 = vld [vmem:[%s12131_s1 + $0x2f4] sm:$0xf]  ;;  %v6657_v36 = vld [vmem:[%s12131_s1 + $0x378] sm:$0xf0] }
 0x150   : > { %v1849_v31 = vadd.f32 %v1848_v20, %v1800_v51  ;;  %v1948_v56 = vpop.f32.mrf.mxu1  ;;  %12216 = vst [vmem:[#allocation40_spill] sm:$0xff] %v9481_v40  ;;  %v9485_v20 = vor.u32 %v7684_v34, %v6169_v4  ;;  %v6596_v62 = vor.u32 %v7793_v60, %v6593_v22  ;;  %v7693_v60 = vld [vmem:[%s8471_s26 + $0x214] sm:$0xf]  ;;  %v6211_v22 = vld [vmem:[%s8471_s26 + $0x218] sm:$0xf] }
 0x151   : > { %12217 = vst [vmem:[#allocation41_spill] sm:$0xff] %v9483_v32 }
 0x152   : > { %v1898_v3 = vadd.f32 %v1897_v14, %v1849_v31  ;;  %12218 = vst [vmem:[#allocation42_spill] sm:$0xff] %v9485_v20  ;;  %2353 = vmatpush.bf16.msra.mxu2 %v6596_v62 }
 0x154   : > { %v9478_v57 = vadd.f32 %v1946_v47, %v1898_v3  ;;  %v1850_v24 = vpop.f32.mrf.mxu3  ;;  %v6473_v47 = vld [vmem:[%s12131_s1 + $0x208] sm:$0xf0] }
 0x155   : > { %v1801_v29 = vpop.f32.mrf.mxu2  ;;  %v1902_v51 = vpop.f32.mrf.mxu0 }
 0x156   : > { %v1802_v14 = vadd.f32 %v1801_v29, %v9101_v28  ;;  %v6476_v28 = vor.u32 %v7763_v59, %v6473_v47  ;;  %v6203_v59 = vld [vmem:[%s8471_s26 + $0x210] sm:$0xf]  ;;  %v7697_v47 = vld [vmem:[%s8471_s26 + $0x230] sm:$0xf0] }
 0x158   : > { %v1851_v31 = vadd.f32 %v1850_v24, %v1802_v14  ;;  %v1951_v13 = vpop.f32.mrf.mxu1  ;;  %2097 = vmatmul.bf16.gmra.mxu0 %v9483_v32  ;;  %2311 = vmatpush.bf16.msrb.mxu1 %v6476_v28  ;;  %v7825_v28 = vld [vmem:[%s12131_s1 + $0x3f4] sm:$0xf] }
 0x159   : > { %2048 = vmatmul.bf16.gmra.mxu3 %v9485_v20 }
 0x15a   : > { %v1900_v3 = vadd.f32 %v1899_v0, %v1851_v31  ;;  %1999 = vmatmul.bf16.gmra.mxu2 %v9481_v40  ;;  %v7809_v0 = vld [vmem:[%s12131_s1 + $0x374] sm:$0xf] }
 0x15b   : > { %2146 = vmatmul.bf16.gmra.mxu1 %v8718_v50  ;;  %v6660_v50 = vor.u32 %v7809_v0, %v6657_v36 }
 0x15c   : > { %v9509_v30 = vadd.f32 %v1948_v56, %v1900_v3  ;;  %v1853_v4 = vpop.f32.mrf.mxu3  ;;  %v7698_v56 = vld [vmem:[%s8471_s26 + $0x238] sm:$0xf0]  ;;  %v6205_v3 = vld [vmem:[%s8471_s26 + $0x234] sm:$0xf0] }
 0x15d   : > { %v1804_v2 = vpop.f32.mrf.mxu2  ;;  %v1904_v29 = vpop.f32.mrf.mxu0  ;;  %2402 = vmatpush.bf16.msra.mxu3 %v6660_v50  ;;  %v9527_v50 = vor.u32 %v7697_v47, %v6203_v59  ;;  %v7841_v47 = vld [vmem:[%s12131_s1 + $0x474] sm:$0xf] }
 0x15e   : > { %v1805_v34 = vadd.f32 %v1804_v2, %v9131_v39  ;;  %v6721_v39 = vld [vmem:[%s12131_s1 + $0x3f8] sm:$0xf0] }
 0x15f   : > { %v6724_v36 = vor.u32 %v7825_v28, %v6721_v39 }
 0x160   : > { %v1854_v14 = vadd.f32 %v1853_v4, %v1805_v34  ;;  %v1953_v24 = vpop.f32.mrf.mxu1  ;;  %v9529_v34 = vor.u32 %v7698_v56, %v6211_v22 }
 0x161   : > { %2451 = vmatpush.bf16.msra.mxu0 %v6724_v36  ;;  %v6713_v36 = vld [vmem:[%s12131_s1 + $0x3e8] sm:$0xf0] }
 0x162   : > { %v1903_v31 = vadd.f32 %v1902_v51, %v1854_v14  ;;  %v9531_v14 = vor.u32 %v7693_v60, %v6205_v3 }
 0x164   : > { %v9524_v62 = vadd.f32 %v1951_v13, %v1903_v31  ;;  %v1855_v2 = vpop.f32.mrf.mxu3 }
 0x165   : > { %v1806_v0 = vpop.f32.mrf.mxu2  ;;  %v1907_v4 = vpop.f32.mrf.mxu0 }
 0x166   : > { %v1807_v51 = vadd.f32 %v1806_v0, %v9157_v12  ;;  %v7823_v0 = vld [vmem:[%s12131_s1 + $0x3e4] sm:$0xf] }
 0x168   : > { %v1856_v32 = vadd.f32 %v1855_v2, %v1807_v51  ;;  %v1956_v40 = vpop.f32.mrf.mxu1  ;;  %2102 = vmatmul.bf16.gmra.mxu0 %v9529_v34 }
 0x169   : > { %2053 = vmatmul.bf16.gmra.mxu3 %v9531_v14 }
 0x16a   : > { %v1905_v20 = vadd.f32 %v1904_v29, %v1856_v32  ;;  %2004 = vmatmul.bf16.gmra.mxu2 %v9527_v50  ;;  %v6785_v32 = vld [vmem:[%s12131_s1 + $0x478] sm:$0xf0]  ;;  %v7791_v29 = vld [vmem:[%s12131_s1 + $0x2e4] sm:$0xf] }
 0x16b   : > { %2151 = vmatmul.bf16.gmra.mxu1 %v8768_v21  ;;  %v6788_v21 = vor.u32 %v7841_v47, %v6785_v32 }
 0x16c   : > { %v9537_v12 = vadd.f32 %v1953_v24, %v1905_v20  ;;  %v1858_v59 = vpop.f32.mrf.mxu3  ;;  %v6585_v20 = vld [vmem:[%s12131_s1 + $0x2e8] sm:$0xf0] }
 0x16d   : > { %v1809_v13 = vpop.f32.mrf.mxu2  ;;  %v1909_v60 = vpop.f32.mrf.mxu0  ;;  %v6649_v24 = vld [vmem:[%s12131_s1 + $0x368] sm:$0xf0]  ;;  %v6588_v56 = vor.u32 %v7791_v29, %v6585_v20  ;;  %2500 = vmatpush.bf16.msra.mxu1 %v6788_v21  ;;  %v6641_v20 = vld [vmem:[%s12131_s1 + $0x358] sm:$0xf0] }
 0x16e   : > { %v1810_v31 = vadd.f32 %v1809_v13, %v9187_v5  ;;  %v7807_v5 = vld [vmem:[%s12131_s1 + $0x364] sm:$0xf]  ;;  %v6716_v13 = vor.u32 %v7823_v0, %v6713_v36  ;;  %v7821_v36 = vld [vmem:[%s12131_s1 + $0x3d4] sm:$0xf] }
 0x16f   : > { %v6652_v3 = vor.u32 %v7807_v5, %v6649_v24  ;;  %2354 = vmatpush.bf16.msra.mxu2 %v6588_v56 }
 0x170   : > { %v1859_v22 = vadd.f32 %v1858_v59, %v1810_v31  ;;  %v1958_v28 = vpop.f32.mrf.mxu1  ;;  %2452 = vmatpush.bf16.msra.mxu0 %v6716_v13 }
 0x171   : > { %2403 = vmatpush.bf16.msra.mxu3 %v6652_v3 }
 0x172   : > { %v1908_v39 = vadd.f32 %v1907_v4, %v1859_v22 }
 0x174   : > { %v9564_v51 = vadd.f32 %v1956_v40, %v1908_v39  ;;  %v1860_v59 = vpop.f32.mrf.mxu3  ;;  %v7839_v40 = vld [vmem:[%s12131_s1 + $0x464] sm:$0xf] }
 0x175   : > { %v1811_v2 = vpop.f32.mrf.mxu2  ;;  %v2068_v47 = vpop.f32.mrf.mxu0 }
 0x176   : > { %v1812_v31 = vadd.f32 %v1811_v2, %v9211_v33  ;;  %v6777_v33 = vld [vmem:[%s12131_s1 + $0x468] sm:$0xf0]  ;;  %v6705_v2 = vld [vmem:[%s12131_s1 + $0x3d8] sm:$0xf0] }
 0x177   : > { %v6708_v13 = vor.u32 %v7821_v36, %v6705_v2  ;;  %v7819_v36 = vld [vmem:[%s12131_s1 + $0x3c4] sm:$0xf] }
 0x178   : > { %v1861_v4 = vadd.f32 %v1860_v59, %v1812_v31  ;;  %v9567_v32 = vpop.f32.mrf.mxu1  ;;  %2263 = vmatmul.bf16.vlgmr.msrb.gmra.mxu0 %v8814_v46  ;;  %v6780_v46 = vor.u32 %v7839_v40, %v6777_v33 }
 0x179   : > { %2214 = vmatmul.bf16.vlgmr.msrb.gmra.mxu3 %v8810_v44  ;;  %v6577_v44 = vld [vmem:[%s12131_s1 + $0x2d8] sm:$0xf0]  ;;  %2453 = vmatpush.bf16.msra.mxu0 %v6708_v13 }
 0x17a   : > { %v1910_v29 = vadd.f32 %v1909_v60, %v1861_v4  ;;  %2165 = vmatmul.bf16.vlgmr.msrb.gmra.mxu2 %v8532_v10  ;;  %v7789_v60 = vld [vmem:[%s12131_s1 + $0x2d4] sm:$0xf]  ;;  %2501 = vmatpush.bf16.msra.mxu1 %v6780_v46 }
 0x17b   : > { %2312 = vmatmul.bf16.vlgmr.msrb.gmra.mxu1 %v8812_v45  ;;  %v7805_v45 = vld [vmem:[%s12131_s1 + $0x354] sm:$0xf]  ;;  %v6580_v22 = vor.u32 %v7789_v60, %v6577_v44 }
 0x17c   : > { %v9582_v21 = vadd.f32 %v1958_v28, %v1910_v29  ;;  %v2019_v24 = vpop.f32.mrf.mxu3  ;;  %v6644_v56 = vor.u32 %v7805_v45, %v6641_v20 }
 0x17d   : > { %v1970_v10 = vpop.f32.mrf.mxu2  ;;  %v2070_v3 = vpop.f32.mrf.mxu0  ;;  %2355 = vmatpush.bf16.msra.mxu2 %v6580_v22 }
 0x17e   : > { %v1971_v5 = vadd.f32 %v1970_v10, %v9248_v61  ;;  %2404 = vmatpush.bf16.msra.mxu3 %v6644_v56  ;;  %v6769_v10 = vld [vmem:[%s12131_s1 + $0x458] sm:$0xf0] }
 0x180   : > { %v2020_v28 = vadd.f32 %v2019_v24, %v1971_v5  ;;  %v9594_v39 = vpop.f32.mrf.mxu1  ;;  %v6633_v24 = vld [vmem:[%s12131_s1 + $0x348] sm:$0xf0] }
 0x182   : > { %v2069_v0 = vadd.f32 %v2068_v47, %v2020_v28 }
 0x184   : > { %v2021_v59 = vpop.f32.mrf.mxu3  ;;  %v2549_v47 = vmax.f32 %v2069_v0, 0.0 }
 0x185   : > { %v1972_v61 = vpop.f32.mrf.mxu2  ;;  %v2073_v4 = vpop.f32.mrf.mxu0 }
 0x186   : > { %v1973_v31 = vadd.f32 %v1972_v61, %v9279_v11  ;;  %v7837_v11 = vld [vmem:[%s12131_s1 + $0x454] sm:$0xf] }
 0x187   : > { %v6772_v44 = vor.u32 %v7837_v11, %v6769_v10  ;;  %v6761_v11 = vld [vmem:[%s12131_s1 + $0x448] sm:$0xf0] }
 0x188   : > { %v2022_v29 = vadd.f32 %v2021_v59, %v1973_v31  ;;  %v9603_v40 = vpop.f32.mrf.mxu1  ;;  %2268 = vmatmul.bf16.gmra.mxu0 %v8858_v18 }
 0x189   : > { %2219 = vmatmul.bf16.gmra.mxu3 %v8854_v16  ;;  %v6569_v16 = vld [vmem:[%s12131_s1 + $0x2c8] sm:$0xf0]  ;;  %2502 = vmatpush.bf16.msra.mxu1 %v6772_v44 }
 0x18a   : > { %v2071_v33 = vadd.f32 %v2070_v3, %v2022_v29  ;;  %2170 = vmatmul.bf16.gmra.mxu2 %v8648_v9  ;;  %v7787_v9 = vld [vmem:[%s12131_s1 + $0x2c4] sm:$0xf] }
 0x18b   : > { %2317 = vmatmul.bf16.gmra.mxu1 %v8856_v17  ;;  %v7803_v17 = vld [vmem:[%s12131_s1 + $0x344] sm:$0xf]  ;;  %v6572_v5 = vor.u32 %v7787_v9, %v6569_v16  ;;  %v6625_v16 = vld [vmem:[%s12131_s1 + $0x338] sm:$0xf0] }
 0x18c   : > { %v2551_v60 = vmax.f32 %v2071_v33, 0.0  ;;  %v2024_v20 = vpop.f32.mrf.mxu3  ;;  %v6636_v56 = vor.u32 %v7803_v17, %v6633_v24 }
 0x18d   : > { %v1975_v46 = vpop.f32.mrf.mxu2  ;;  %v2075_v22 = vpop.f32.mrf.mxu0  ;;  %2356 = vmatpush.bf16.msra.mxu2 %v6572_v5 }
 0x18e   : > { %v9624_v18 = vpack.c.bf16 %v2551_v60, %v2549_v47  ;;  %v1976_v45 = vadd.f32 %v1975_v46, %v9294_v42  ;;  %2405 = vmatpush.bf16.msra.mxu3 %v6636_v56  ;;  %v6697_v42 = vld [vmem:[%s12131_s1 + $0x3c8] sm:$0xf0]  ;;  %v6689_v56 = vld [vmem:[%s12131_s1 + $0x3b8] sm:$0xf0] }
 0x18f   : > { %v6700_v61 = vor.u32 %v7819_v36, %v6697_v42 }
 0x190   : > { %v2025_v3 = vadd.f32 %v2024_v20, %v1976_v45  ;;  %v9630_v28 = vpop.f32.mrf.mxu1 }
 0x191   : > { %2454 = vmatpush.bf16.msra.mxu0 %v6700_v61 }
 0x192   : > { %v2074_v0 = vadd.f32 %v2073_v4, %v2025_v3 }
 0x194   : > { %v2026_v31 = vpop.f32.mrf.mxu3  ;;  %v2553_v4 = vmax.f32 %v2074_v0, 0.0 }
 0x195   : > { %v1977_v2 = vpop.f32.mrf.mxu2  ;;  %v2078_v59 = vpop.f32.mrf.mxu0 }
 0x196   : > { %v1978_v13 = vadd.f32 %v1977_v2, %v9325_v43  ;;  %v7835_v43 = vld [vmem:[%s12131_s1 + $0x444] sm:$0xf] }
 0x197   : > { %v6764_v46 = vor.u32 %v7835_v43, %v6761_v11 }
 0x198   : > { %v2027_v29 = vadd.f32 %v2026_v31, %v1978_v13  ;;  %v9639_v33 = vpop.f32.mrf.mxu1  ;;  %2273 = vmatmul.bf16.gmra.mxu0 %v8902_v54 }
 0x199   : > { %2224 = vmatmul.bf16.gmra.mxu3 %v8898_v48  ;;  %v6561_v48 = vld [vmem:[%s12131_s1 + $0x2b8] sm:$0xf0]  ;;  %2503 = vmatpush.bf16.msra.mxu1 %v6764_v46 }
 0x19a   : > { %v2076_v47 = vadd.f32 %v2075_v22, %v2027_v29  ;;  %2175 = vmatmul.bf16.gmra.mxu2 %v8722_v52  ;;  %v7785_v52 = vld [vmem:[%s12131_s1 + $0x2b4] sm:$0xf] }
 0x19b   : > { %2322 = vmatmul.bf16.gmra.mxu1 %v8900_v53  ;;  %v7801_v53 = vld [vmem:[%s12131_s1 + $0x334] sm:$0xf]  ;;  %v6564_v9 = vor.u32 %v7785_v52, %v6561_v48 }
 0x19c   : > { %v2555_v60 = vmax.f32 %v2076_v47, 0.0  ;;  %v2029_v44 = vpop.f32.mrf.mxu3  ;;  %v6628_v20 = vor.u32 %v7801_v53, %v6625_v16  ;;  %v6753_v47 = vld [vmem:[%s12131_s1 + $0x438] sm:$0xf0] }
 0x19d   : > { %v1980_v10 = vpop.f32.mrf.mxu2  ;;  %v2080_v45 = vpop.f32.mrf.mxu0  ;;  %2357 = vmatpush.bf16.msra.mxu2 %v6564_v9  ;;  %v6681_v9 = vld [vmem:[%s12131_s1 + $0x3a8] sm:$0xf0] }
 0x19e   : > { %v1981_v54 = vadd.f32 %v1980_v10, %v9340_v1  ;;  %v9664_v17 = vpack.c.bf16 %v2555_v60, %v2553_v4  ;;  %2406 = vmatpush.bf16.msra.mxu3 %v6628_v20  ;;  %v7817_v1 = vld [vmem:[%s12131_s1 + $0x3b4] sm:$0xf]  ;;  %v6617_v10 = vld [vmem:[%s12131_s1 + $0x328] sm:$0xf0] }
 0x19f   : > { %v6692_v0 = vor.u32 %v7817_v1, %v6689_v56 }
 0x1a0   : > { %v2030_v5 = vadd.f32 %v2029_v44, %v1981_v54  ;;  %v9666_v24 = vpop.f32.mrf.mxu1 }
 0x1a1   : > { %2455 = vmatpush.bf16.msra.mxu0 %v6692_v0  ;;  %v12219_v0 = vld [vmem:[#allocation13_spill] sm:$0xff] }
 0x1a2   : > { %v2079_v22 = vadd.f32 %v2078_v59, %v2030_v5 }
 0x1a4   : > { %v2031_v42 = vpop.f32.mrf.mxu3  ;;  %v2557_v59 = vmax.f32 %v2079_v22, 0.0 }
 0x1a5   : > { %v1982_v3 = vpop.f32.mrf.mxu2  ;;  %v2083_v2 = vpop.f32.mrf.mxu0 }
 0x1a6   : > { %v1983_v36 = vadd.f32 %v1982_v3, %v9371_v37  ;;  %v7833_v37 = vld [vmem:[%s12131_s1 + $0x434] sm:$0xf] }
 0x1a7   : > { %v6756_v60 = vor.u32 %v7833_v37, %v6753_v47 }
 0x1a8   : > { %v2032_v61 = vadd.f32 %v2031_v42, %v1983_v36  ;;  %v9675_v13 = vpop.f32.mrf.mxu1  ;;  %2278 = vmatmul.bf16.gmra.mxu0 %v8940_v27 }
 0x1a9   : > { %2229 = vmatmul.bf16.gmra.mxu3 %v8936_v25  ;;  %v6553_v25 = vld [vmem:[%s12131_s1 + $0x2a8] sm:$0xf0]  ;;  %2504 = vmatpush.bf16.msra.mxu1 %v6756_v60  ;;  %v6609_v60 = vld [vmem:[%s12131_s1 + $0x318] sm:$0xf0] }
 0x1aa   : > { %v2081_v31 = vadd.f32 %v2080_v45, %v2032_v61  ;;  %2180 = vmatmul.bf16.gmra.mxu2 %v8772_v23  ;;  %v7783_v23 = vld [vmem:[%s12131_s1 + $0x2a4] sm:$0xf]  ;;  %v6745_v61 = vld [vmem:[%s12131_s1 + $0x428] sm:$0xf0] }
 0x1ab   : > { %2327 = vmatmul.bf16.gmra.mxu1 %v8938_v26  ;;  %v7799_v26 = vld [vmem:[%s12131_s1 + $0x324] sm:$0xf]  ;;  %v6556_v11 = vor.u32 %v7783_v23, %v6553_v25 }
 0x1ac   : > { %v2559_v29 = vmax.f32 %v2081_v31, 0.0  ;;  %v2034_v43 = vpop.f32.mrf.mxu3  ;;  %v6620_v48 = vor.u32 %v7799_v26, %v6617_v10  ;;  %v6673_v10 = vld [vmem:[%s12131_s1 + $0x398] sm:$0xf0] }
 0x1ad   : > { %v1985_v4 = vpop.f32.mrf.mxu2  ;;  %v2085_v52 = vpop.f32.mrf.mxu0  ;;  %2358 = vmatpush.bf16.msra.mxu2 %v6556_v11 }
 0x1ae   : > { %v1986_v27 = vadd.f32 %v1985_v4, %v9386_v58  ;;  %v9700_v46 = vpack.c.bf16 %v2559_v29, %v2557_v59  ;;  %2407 = vmatpush.bf16.msra.mxu3 %v6620_v48  ;;  %v7815_v58 = vld [vmem:[%s12131_s1 + $0x3a4] sm:$0xf]  ;;  %v7797_v29 = vld [vmem:[%s12131_s1 + $0x314] sm:$0xf] }
 0x1af   : > { %v6684_v45 = vor.u32 %v7815_v58, %v6681_v9  ;;  %v6612_v26 = vor.u32 %v7797_v29, %v6609_v60  ;;  %v6601_v29 = vld [vmem:[%s12131_s1 + $0x308] sm:$0xf0] }
 0x1b0   : > { %v2035_v53 = vadd.f32 %v2034_v43, %v1986_v27  ;;  %v9702_v54 = vpop.f32.mrf.mxu1 }
 0x1b1   : > { %2456 = vmatpush.bf16.msra.mxu0 %v6684_v45 }
 0x1b2   : > { %v2084_v44 = vadd.f32 %v2083_v2, %v2035_v53  ;;  %v12220_v2 = vld [vmem:[#allocation14_spill] sm:$0xff]  ;;  %2408 = vmatpush.bf16.msra.mxu3 %v6612_v26 }
 0x1b4   : > { %v2036_v5 = vpop.f32.mrf.mxu3  ;;  %v2561_v36 = vmax.f32 %v2084_v44, 0.0 }
 0x1b5   : > { %v1987_v16 = vpop.f32.mrf.mxu2  ;;  %v2088_v22 = vpop.f32.mrf.mxu0 }
 0x1b6   : > { %v1988_v20 = vadd.f32 %v1987_v16, %v9417_v38  ;;  %v7831_v38 = vld [vmem:[%s12131_s1 + $0x424] sm:$0xf] }
 0x1b7   : > { %v6748_v59 = vor.u32 %v7831_v38, %v6745_v61  ;;  %v7779_v38 = vld [vmem:[%s12131_s1 + $0x284] sm:$0xf]  ;;  %v6537_v61 = vld [vmem:[%s12131_s1 + $0x288] sm:$0xf0] }
 0x1b8   : > { %v2037_v1 = vadd.f32 %v2036_v5, %v1988_v20  ;;  %v9711_v56 = vpop.f32.mrf.mxu1  ;;  %2283 = vmatmul.bf16.gmra.mxu0 %v8989_v7  ;;  %v6545_v7 = vld [vmem:[%s12131_s1 + $0x298] sm:$0xf0]  ;;  %v12221_v20 = vld [vmem:[#allocation6_spill] sm:$0xff] }
 0x1b9   : > { %2234 = vmatmul.bf16.gmra.mxu3 %v12219_v0  ;;  %2505 = vmatpush.bf16.msra.mxu1 %v6748_v59  ;;  %v12222_v5 = vld [vmem:[#allocation18_spill] sm:$0xff]  ;;  %v12224_v0 = vld [vmem:[#allocation17_spill] sm:$0xff] }
 0x1ba   : > { %v2086_v3 = vadd.f32 %v2085_v52, %v2037_v1  ;;  %2185 = vmatmul.bf16.gmra.mxu2 %v8530_v8  ;;  %v7781_v8 = vld [vmem:[%s12131_s1 + $0x294] sm:$0xf] }
 0x1bb   : > { %2332 = vmatmul.bf16.gmra.mxu1 %v12220_v2  ;;  %v6548_v4 = vor.u32 %v7781_v8, %v6545_v7  ;;  %v6540_v7 = vor.u32 %v7779_v38, %v6537_v61 }
 0x1bc   : > { %v2563_v42 = vmax.f32 %v2086_v3, 0.0  ;;  %v2039_v47 = vpop.f32.mrf.mxu3 }
 0x1bd   : > { %v1990_v31 = vpop.f32.mrf.mxu2  ;;  %v2090_v25 = vpop.f32.mrf.mxu0  ;;  %2359 = vmatpush.bf16.msra.mxu2 %v6548_v4 }
 0x1be   : > { %v1991_v37 = vadd.f32 %v1990_v31, %v9432_v15  ;;  %v9736_v23 = vpack.c.bf16 %v2563_v42, %v2561_v36  ;;  %v7813_v15 = vld [vmem:[%s12131_s1 + $0x394] sm:$0xf]  ;;  %v6737_v36 = vld [vmem:[%s12131_s1 + $0x418] sm:$0xf0]  ;;  %v7795_v31 = vld [vmem:[%s12131_s1 + $0x304] sm:$0xf] }
 0x1bf   : > { %v6676_v48 = vor.u32 %v7813_v15, %v6673_v10  ;;  %v6604_v4 = vor.u32 %v7795_v31, %v6601_v29 }
 0x1c0   : > { %v2040_v27 = vadd.f32 %v2039_v47, %v1991_v37  ;;  %v9738_v43 = vpop.f32.mrf.mxu1 }
 0x1c1   : > { %2457 = vmatpush.bf16.msra.mxu0 %v6676_v48  ;;  %2360 = vmatpush.bf16.msra.mxu2 %v6540_v7 }
 0x1c2   : > { %v2089_v11 = vadd.f32 %v2088_v22, %v2040_v27  ;;  %v12223_v22 = vld [vmem:[#allocation16_spill] sm:$0xff]  ;;  %2409 = vmatpush.bf16.msra.mxu3 %v6604_v4  ;;  %v6665_v27 = vld [vmem:[%s12131_s1 + $0x388] sm:$0xf0] }
 0x1c4   : > { %v2041_v44 = vpop.f32.mrf.mxu3  ;;  %v2565_v1 = vmax.f32 %v2089_v11, 0.0 }
 0x1c5   : > { %v1992_v52 = vpop.f32.mrf.mxu2  ;;  %v2093_v58 = vpop.f32.mrf.mxu0 }
 0x1c6   : > { %v1993_v53 = vadd.f32 %v1992_v52, %v9463_v19  ;;  %v7829_v19 = vld [vmem:[%s12131_s1 + $0x414] sm:$0xf] }
 0x1c7   : > { %v6740_v2 = vor.u32 %v7829_v19, %v6737_v36 }
 0x1c8   : > { %v2042_v9 = vadd.f32 %v2041_v44, %v1993_v53  ;;  %v9747_v16 = vpop.f32.mrf.mxu1  ;;  %2288 = vmatmul.bf16.gmra.mxu0 %v12222_v5  ;;  %v12226_v5 = vld [vmem:[#allocation22_spill] sm:$0xff] }
 0x1c9   : > { %2239 = vmatmul.bf16.gmra.mxu3 %v12223_v22  ;;  %2506 = vmatpush.bf16.msra.mxu1 %v6740_v2  ;;  %v12227_v22 = vld [vmem:[#allocation20_spill] sm:$0xff] }
 0x1ca   : > { %v2091_v45 = vadd.f32 %v2090_v25, %v2042_v9  ;;  %2190 = vmatmul.bf16.gmra.mxu2 %v12221_v20  ;;  %v6729_v9 = vld [vmem:[%s12131_s1 + $0x408] sm:$0xf0] }
 0x1cb   : > { %2337 = vmatmul.bf16.gmra.mxu1 %v12224_v0  ;;  %v12225_v20 = vld [vmem:[#allocation7_spill] sm:$0xff]  ;;  %v12228_v0 = vld [vmem:[#allocation21_spill] sm:$0xff] }
 0x1cc   : > { %v2567_v3 = vmax.f32 %v2091_v45, 0.0  ;;  %v2044_v8 = vpop.f32.mrf.mxu3 }
 0x1cd   : > { %v1995_v42 = vpop.f32.mrf.mxu2  ;;  %v2095_v47 = vpop.f32.mrf.mxu0 }
 0x1ce   : > { %v1996_v59 = vadd.f32 %v1995_v42, %v9478_v57  ;;  %v9772_v37 = vpack.c.bf16 %v2567_v3, %v2565_v1  ;;  %v7811_v57 = vld [vmem:[%s12131_s1 + $0x384] sm:$0xf] }
 0x1cf   : > { %v6668_v15 = vor.u32 %v7811_v57, %v6665_v27  ;;  %v12229_v57 = vld [vmem:[#allocation8_spill] sm:$0xff] }
 0x1d0   : > { %v2045_v60 = vadd.f32 %v2044_v8, %v1996_v59  ;;  %v9774_v25 = vpop.f32.mrf.mxu1  ;;  %v12231_v27 = vld [vmem:[#allocation24_spill] sm:$0xff] }
 0x1d1   : > { %2458 = vmatpush.bf16.msra.mxu0 %v6668_v15 }
 0x1d2   : > { %v2094_v26 = vadd.f32 %v2093_v58, %v2045_v60  ;;  %v7827_v58 = vld [vmem:[%s12131_s1 + $0x404] sm:$0xf] }
 0x1d4   : > { %v2046_v52 = vpop.f32.mrf.mxu3  ;;  %v2569_v1 = vmax.f32 %v2094_v26, 0.0 }
 0x1d5   : > { %v1997_v11 = vpop.f32.mrf.mxu2  ;;  %v2098_v48 = vpop.f32.mrf.mxu0 }
 0x1d6   : > { %v1998_v10 = vadd.f32 %v1997_v11, %v9509_v30  ;;  %v6732_v30 = vor.u32 %v7827_v58, %v6729_v9 }
 0x1d8   : > { %v2047_v53 = vadd.f32 %v2046_v52, %v1998_v10  ;;  %v9783_v44 = vpop.f32.mrf.mxu1  ;;  %2293 = vmatmul.bf16.gmra.mxu0 %v12226_v5  ;;  %2507 = vmatpush.bf16.msra.mxu1 %v6732_v30  ;;  %v12232_v10 = vld [vmem:[#allocation25_spill] sm:$0xff]  ;;  %v6847_v5 = vld [vmem:[%s12132_s2 + $0x70] sm:$0xf] }
 0x1d9   : > { %2244 = vmatmul.bf16.gmra.mxu3 %v12227_v22  ;;  %v7858_v30 = vld [vmem:[%s12132_s2 + $0x74] sm:$0xf0] }
 0x1da   : > { %v2096_v45 = vadd.f32 %v2095_v47, %v2047_v53  ;;  %2195 = vmatmul.bf16.gmra.mxu2 %v12225_v20  ;;  %v6848_v22 = vor.u32 %v7858_v30, %v6847_v5 }
 0x1db   : > { %2342 = vmatmul.bf16.gmra.mxu1 %v12228_v0  ;;  %v352_v0 = vld [vmem:[%s12137_s7 + $0x8] sm:$0xff] }
 0x1dc   : > { %v2571_v3 = vmax.f32 %v2096_v45, 0.0  ;;  %v2049_v42 = vpop.f32.mrf.mxu3  ;;  %2791 = vmatpush.bf16.msrb.mxu2 %v6848_v22 }
 0x1dd   : > { %v2000_v19 = vpop.f32.mrf.mxu2  ;;  %v2100_v38 = vpop.f32.mrf.mxu0 }
 0x1de   : > { %v2001_v36 = vadd.f32 %v2000_v19, %v9524_v62  ;;  %v9796_v2 = vpack.c.bf16 %v2571_v3, %v2569_v1  ;;  %v12230_v62 = vld [vmem:[#allocation26_spill] sm:$0xff]  ;;  %v7874_v1 = vld [vmem:[%s12132_s2 + $0xf4] sm:$0xf0] }
 0x1e0   : > { %v2050_v61 = vadd.f32 %v2049_v42, %v2001_v36  ;;  %v9798_v31 = vpop.f32.mrf.mxu1 }
 0x1e2   : > { %v2099_v59 = vadd.f32 %v2098_v48, %v2050_v61  ;;  %v9828_v61 = vperm.slane %v352_v0, 0 }
 0x1e4   : > { %v2051_v29 = vpop.f32.mrf.mxu3  ;;  %v2573_v11 = vmax.f32 %v2099_v59, 0.0 }
 0x1e5   : > { %v2002_v8 = vpop.f32.mrf.mxu2  ;;  %v2103_v47 = vpop.f32.mrf.mxu0 }
 0x1e6   : > { %v2003_v7 = vadd.f32 %v2002_v8, %v9537_v12 }
 0x1e8   : > { %v2052_v4 = vadd.f32 %v2051_v29, %v2003_v7  ;;  %v9801_v60 = vpop.f32.mrf.mxu1  ;;  %2298 = vmatmul.bf16.gmra.mxu0 %v12230_v62  ;;  %v12233_v29 = vld [vmem:[#allocation9_spill] sm:$0xff]  ;;  %v7873_v62 = vld [vmem:[%s12132_s2 + $0xf4] sm:$0xf] }
 0x1e9   : > { %2249 = vmatmul.bf16.gmra.mxu3 %v12231_v27  ;;  %v6913_v27 = vld [vmem:[%s12132_s2 + $0xf8] sm:$0xf0] }
 0x1ea   : > { %v2101_v26 = vadd.f32 %v2100_v38, %v2052_v4  ;;  %2200 = vmatmul.bf16.gmra.mxu2 %v12229_v57  ;;  %v7857_v4 = vld [vmem:[%s12132_s2 + $0x74] sm:$0xf] }
 0x1eb   : > { %2347 = vmatmul.bf16.gmra.mxu1 %v12232_v10 }
 0x1ec   : > { %v2575_v15 = vmax.f32 %v2101_v26, 0.0  ;;  %v2054_v12 = vpop.f32.mrf.mxu3  ;;  %v12235_v26 = vld [vmem:[#allocation28_spill] sm:$0xff] }
 0x1ed   : > { %v2005_v52 = vpop.f32.mrf.mxu2  ;;  %v2105_v58 = vpop.f32.mrf.mxu0 }
 0x1ee   : > { %v2006_v48 = vadd.f32 %v2005_v52, %v9564_v51  ;;  %v9808_v53 = vpack.c.bf16 %v2575_v15, %v2573_v11  ;;  %v6911_v51 = vld [vmem:[%s12132_s2 + $0xf0] sm:$0xf]  ;;  %v2118_v11 = vadd.f32 %v9567_v32, %v9828_v61  ;;  %v12236_v52 = vld [vmem:[#allocation29_spill] sm:$0xff]  ;;  %v6839_v32 = vld [vmem:[%s12132_s2 + $0x60] sm:$0xf] }
 0x1ef   : > { %v6912_v3 = vor.u32 %v7874_v1, %v6911_v51 }
 0x1f0   : > { %v2055_v9 = vadd.f32 %v2054_v12, %v2006_v48  ;;  %v9810_v45 = vpop.f32.mrf.mxu1  ;;  %v6916_v48 = vor.u32 %v7873_v62, %v6913_v27  ;;  %v12238_v62 = vld [vmem:[#allocation31_spill] sm:$0xff] }
 0x1f1   : > { %2840 = vmatpush.bf16.msrb.mxu3 %v6912_v3  ;;  %v6903_v3 = vld [vmem:[%s12132_s2 + $0xe0] sm:$0xf] }
 0x1f2   : > { %v2104_v20 = vadd.f32 %v2103_v47, %v2055_v9  ;;  %v12234_v47 = vld [vmem:[#allocation30_spill] sm:$0xff]  ;;  %2938 = vmatpush.bf16.msrb.mxu1 %v6916_v48 }
 0x1f4   : > { %v2056_v42 = vpop.f32.mrf.mxu3  ;;  %v2577_v15 = vmax.f32 %v2104_v20, 0.0  ;;  %v7856_v20 = vld [vmem:[%s12132_s2 + $0x64] sm:$0xf0] }
 0x1f5   : > { %v2007_v19 = vpop.f32.mrf.mxu2  ;;  %v2264_v38 = vpop.f32.mrf.mxu0  ;;  %v6840_v0 = vor.u32 %v7856_v20, %v6839_v32  ;;  %v6831_v20 = vld [vmem:[%s12132_s2 + $0x50] sm:$0xf] }
 0x1f6   : > { %v2008_v36 = vadd.f32 %v2007_v19, %v9582_v21  ;;  %v6849_v21 = vld [vmem:[%s12132_s2 + $0x78] sm:$0xf0]  ;;  %v7872_v19 = vld [vmem:[%s12132_s2 + $0xe4] sm:$0xf0] }
 0x1f7   : > { %v6852_v57 = vor.u32 %v7857_v4, %v6849_v21  ;;  %2792 = vmatpush.bf16.msrb.mxu2 %v6840_v0  ;;  %v7870_v0 = vld [vmem:[%s12132_s2 + $0xd4] sm:$0xf0] }
 0x1f8   : > { %v2057_v59 = vadd.f32 %v2056_v42, %v2008_v36  ;;  %v2313_v8 = vpop.f32.mrf.mxu1  ;;  %2459 = vmatmul.bf16.vlgmr.msra.gmra.mxu0 %v12234_v47  ;;  %v2120_v36 = vadd.f32 %v9594_v39, %v9828_v61  ;;  %v6904_v42 = vor.u32 %v7872_v19, %v6903_v3  ;;  %v7855_v39 = vld [vmem:[%s12132_s2 + $0x64] sm:$0xf]  ;;  %v2125_v19 = vadd.f32 %v9630_v28, %v9828_v61  ;;  %v7853_v28 = vld [vmem:[%s12132_s2 + $0x54] sm:$0xf] }
 0x1f9   : > { %2410 = vmatmul.bf16.vlgmr.msra.gmra.mxu3 %v12235_v26  ;;  %2889 = vmatpush.bf16.msrb.mxu0 %v6852_v57  ;;  %v12237_v57 = vld [vmem:[#allocation10_spill] sm:$0xff] }
 0x1fa   : > { %v2106_v7 = vadd.f32 %v2105_v58, %v2057_v59  ;;  %2361 = vmatmul.bf16.vlgmr.msra.gmra.mxu2 %v12233_v29  ;;  %2841 = vmatpush.bf16.msrb.mxu3 %v6904_v42 }
 0x1fb   : > { %2508 = vmatmul.bf16.vlgmr.msra.gmra.mxu1 %v12236_v52 }
 0x1fc   : > { %v2579_v10 = vmax.f32 %v2106_v7, 0.0  ;;  %v2215_v9 = vpop.f32.mrf.mxu3 }
 0x1fd   : > { %v2166_v12 = vpop.f32.mrf.mxu2  ;;  %v2266_v30 = vpop.f32.mrf.mxu0 }
 0x1fe   : > { %v2167_v58 = vadd.f32 %v2166_v12, %v2118_v11  ;;  %v9848_v5 = vpack.c.bf16 %v2579_v10, %v2577_v15  ;;  %v7871_v11 = vld [vmem:[%s12132_s2 + $0xe4] sm:$0xf]  ;;  %v6905_v15 = vld [vmem:[%s12132_s2 + $0xe8] sm:$0xf0]  ;;  %v12239_v10 = vld [vmem:[#allocation32_spill] sm:$0xff] }
 0x1ff   : > { %v6908_v52 = vor.u32 %v7871_v11, %v6905_v15  ;;  %v6897_v11 = vld [vmem:[%s12132_s2 + $0xd8] sm:$0xf0]  ;;  %v12242_v15 = vld [vmem:[#allocation34_spill] sm:$0xff] }
 0x200   : > { %v2216_v51 = vadd.f32 %v2215_v9, %v2167_v58  ;;  %v2315_v22 = vpop.f32.mrf.mxu1 }
 0x201   : > { %2939 = vmatpush.bf16.msrb.mxu1 %v6908_v52 }
 0x202   : > { %v2265_v1 = vadd.f32 %v2264_v38, %v2216_v51 }
 0x204   : > { %v9864_v38 = vadd.f32 %v2313_v8, %v2265_v1  ;;  %v2217_v29 = vpop.f32.mrf.mxu3  ;;  %v6841_v8 = vld [vmem:[%s12132_s2 + $0x68] sm:$0xf0] }
 0x205   : > { %v2168_v59 = vpop.f32.mrf.mxu2  ;;  %v2269_v47 = vpop.f32.mrf.mxu0  ;;  %v6844_v27 = vor.u32 %v7855_v39, %v6841_v8  ;;  %v12240_v39 = vld [vmem:[#allocation11_spill] sm:$0xff]  ;;  %v12241_v8 = vld [vmem:[#allocation33_spill] sm:$0xff] }
 0x206   : > { %v2169_v7 = vadd.f32 %v2168_v59, %v2120_v36 }
 0x207   : > { %2890 = vmatpush.bf16.msrb.mxu0 %v6844_v27  ;;  %v7869_v27 = vld [vmem:[%s12132_s2 + $0xd4] sm:$0xf] }
 0x208   : > { %v2218_v4 = vadd.f32 %v2217_v29, %v2169_v7  ;;  %v2318_v21 = vpop.f32.mrf.mxu1  ;;  %2464 = vmatmul.bf16.gmra.mxu0 %v9255_v35  ;;  %v2123_v35 = vadd.f32 %v9603_v40, %v9828_v61  ;;  %v7854_v40 = vld [vmem:[%s12132_s2 + $0x54] sm:$0xf0] }
 0x209   : > { %2415 = vmatmul.bf16.gmra.mxu3 %v12238_v62  ;;  %v6832_v3 = vor.u32 %v7854_v40, %v6831_v20  ;;  %v6823_v20 = vld [vmem:[%s12132_s2 + $0x40] sm:$0xf] }
 0x20a   : > { %v2267_v26 = vadd.f32 %v2266_v30, %v2218_v4  ;;  %2366 = vmatmul.bf16.gmra.mxu2 %v12237_v57 }
 0x20b   : > { %2513 = vmatmul.bf16.gmra.mxu1 %v12239_v10  ;;  %2793 = vmatpush.bf16.msrb.mxu2 %v6832_v3  ;;  %v2130_v3 = vadd.f32 %v9666_v24, %v9828_v61  ;;  %v7851_v24 = vld [vmem:[%s12132_s2 + $0x44] sm:$0xf] }
 0x20c   : > { %v9884_v48 = vadd.f32 %v2315_v22, %v2267_v26  ;;  %v2220_v9 = vpop.f32.mrf.mxu3  ;;  %v6895_v22 = vld [vmem:[%s12132_s2 + $0xd0] sm:$0xf] }
 0x20d   : > { %v2171_v12 = vpop.f32.mrf.mxu2  ;;  %v2271_v30 = vpop.f32.mrf.mxu0  ;;  %v6896_v36 = vor.u32 %v7870_v0, %v6895_v22  ;;  %v7868_v22 = vld [vmem:[%s12132_s2 + $0xc4] sm:$0xf0] }
 0x20e   : > { %v2172_v58 = vadd.f32 %v2171_v12, %v2123_v35  ;;  %v6900_v35 = vor.u32 %v7869_v27, %v6897_v11  ;;  %v12245_v27 = vld [vmem:[#allocation36_spill] sm:$0xff] }
 0x20f   : > { %2842 = vmatpush.bf16.msrb.mxu3 %v6896_v36 }
 0x210   : > { %v2221_v51 = vadd.f32 %v2220_v9, %v2172_v58  ;;  %v2320_v1 = vpop.f32.mrf.mxu1  ;;  %2940 = vmatpush.bf16.msrb.mxu1 %v6900_v35 }
 0x212   : > { %v2270_v32 = vadd.f32 %v2269_v47, %v2221_v51 }
 0x214   : > { %v9900_v42 = vadd.f32 %v2318_v21, %v2270_v32  ;;  %v2222_v29 = vpop.f32.mrf.mxu3  ;;  %v6833_v21 = vld [vmem:[%s12132_s2 + $0x58] sm:$0xf0] }
 0x215   : > { %v2173_v59 = vpop.f32.mrf.mxu2  ;;  %v2274_v47 = vpop.f32.mrf.mxu0  ;;  %v6836_v62 = vor.u32 %v7853_v28, %v6833_v21  ;;  %v12244_v28 = vld [vmem:[#allocation35_spill] sm:$0xff] }
 0x216   : > { %v2174_v7 = vadd.f32 %v2173_v59, %v2125_v19 }
 0x217   : > { %2891 = vmatpush.bf16.msrb.mxu0 %v6836_v62  ;;  %v6889_v62 = vld [vmem:[%s12132_s2 + $0xc8] sm:$0xf0] }
 0x218   : > { %v2223_v4 = vadd.f32 %v2222_v29, %v2174_v7  ;;  %v2323_v26 = vpop.f32.mrf.mxu1  ;;  %2469 = vmatmul.bf16.gmra.mxu0 %v9301_v41  ;;  %v2128_v41 = vadd.f32 %v9639_v33, %v9828_v61  ;;  %v7852_v33 = vld [vmem:[%s12132_s2 + $0x44] sm:$0xf0] }
 0x219   : > { %2420 = vmatmul.bf16.gmra.mxu3 %v12241_v8  ;;  %v6824_v40 = vor.u32 %v7852_v33, %v6823_v20  ;;  %v7867_v8 = vld [vmem:[%s12132_s2 + $0xc4] sm:$0xf]  ;;  %v7866_v33 = vld [vmem:[%s12132_s2 + $0xb4] sm:$0xf0] }
 0x21a   : > { %v2272_v57 = vadd.f32 %v2271_v30, %v2223_v4  ;;  %2371 = vmatmul.bf16.gmra.mxu2 %v12240_v39  ;;  %v12243_v39 = vld [vmem:[#allocation12_spill] sm:$0xff]  ;;  %v6892_v11 = vor.u32 %v7867_v8, %v6889_v62 }
 0x21b   : > { %2518 = vmatmul.bf16.gmra.mxu1 %v12242_v15  ;;  %2794 = vmatpush.bf16.msrb.mxu2 %v6824_v40 }
 0x21c   : > { %v9920_v10 = vadd.f32 %v2320_v1, %v2272_v57  ;;  %v2225_v58 = vpop.f32.mrf.mxu3  ;;  %v6887_v1 = vld [vmem:[%s12132_s2 + $0xc0] sm:$0xf]  ;;  %2941 = vmatpush.bf16.msrb.mxu1 %v6892_v11 }
 0x21d   : > { %v2176_v52 = vpop.f32.mrf.mxu2  ;;  %v2276_v9 = vpop.f32.mrf.mxu0  ;;  %v6888_v0 = vor.u32 %v7868_v22, %v6887_v1  ;;  %v2135_v1 = vadd.f32 %v9702_v54, %v9828_v61  ;;  %v7849_v54 = vld [vmem:[%s12132_s2 + $0x34] sm:$0xf] }
 0x21e   : > { %v2177_v12 = vadd.f32 %v2176_v52, %v2128_v41 }
 0x21f   : > { %2843 = vmatpush.bf16.msrb.mxu3 %v6888_v0 }
 0x220   : > { %v2226_v30 = vadd.f32 %v2225_v58, %v2177_v12  ;;  %v2325_v51 = vpop.f32.mrf.mxu1 }
 0x222   : > { %v2275_v32 = vadd.f32 %v2274_v47, %v2226_v30 }
 0x224   : > { %v9936_v19 = vadd.f32 %v2323_v26, %v2275_v32  ;;  %v2227_v7 = vpop.f32.mrf.mxu3  ;;  %v6825_v26 = vld [vmem:[%s12132_s2 + $0x48] sm:$0xf0]  ;;  %v6815_v32 = vld [vmem:[%s12132_s2 + $0x30] sm:$0xf] }
 0x225   : > { %v2178_v36 = vpop.f32.mrf.mxu2  ;;  %v2279_v29 = vpop.f32.mrf.mxu0  ;;  %v6828_v21 = vor.u32 %v7851_v24, %v6825_v26  ;;  %v7865_v26 = vld [vmem:[%s12132_s2 + $0xb4] sm:$0xf] }
 0x226   : > { %v2179_v59 = vadd.f32 %v2178_v36, %v2130_v3 }
 0x227   : > { %2892 = vmatpush.bf16.msrb.mxu0 %v6828_v21  ;;  %v12248_v21 = vld [vmem:[#allocation38_spill] sm:$0xff] }
 0x228   : > { %v2228_v47 = vadd.f32 %v2227_v7, %v2179_v59  ;;  %v2328_v4 = vpop.f32.mrf.mxu1  ;;  %2474 = vmatmul.bf16.gmra.mxu0 %v9347_v6  ;;  %v2133_v6 = vadd.f32 %v9675_v13, %v9828_v61  ;;  %v7850_v13 = vld [vmem:[%s12132_s2 + $0x34] sm:$0xf0] }
 0x229   : > { %2425 = vmatmul.bf16.gmra.mxu3 %v12244_v28  ;;  %v6816_v20 = vor.u32 %v7850_v13, %v6815_v32  ;;  %v6881_v28 = vld [vmem:[%s12132_s2 + $0xb8] sm:$0xf0]  ;;  %v7864_v32 = vld [vmem:[%s12132_s2 + $0xa4] sm:$0xf0]  ;;  %v2140_v13 = vadd.f32 %v9738_v43, %v9828_v61  ;;  %v7847_v43 = vld [vmem:[%s12132_s2 + $0x24] sm:$0xf] }
 0x22a   : > { %v2277_v57 = vadd.f32 %v2276_v9, %v2228_v47  ;;  %2376 = vmatmul.bf16.gmra.mxu2 %v12243_v39  ;;  %v12247_v39 = vld [vmem:[#allocation37_spill] sm:$0xff]  ;;  %v6884_v8 = vor.u32 %v7865_v26, %v6881_v28 }
 0x22b   : > { %2523 = vmatmul.bf16.gmra.mxu1 %v12245_v27  ;;  %2795 = vmatpush.bf16.msrb.mxu2 %v6816_v20 }
 0x22c   : > { %v9956_v41 = vadd.f32 %v2325_v51, %v2277_v57  ;;  %v2230_v52 = vpop.f32.mrf.mxu3  ;;  %v6879_v51 = vld [vmem:[%s12132_s2 + $0xb0] sm:$0xf]  ;;  %v12246_v57 = vld [vmem:[#allocation15_spill] sm:$0xff]  ;;  %2942 = vmatpush.bf16.msrb.mxu1 %v6884_v8 }
 0x22d   : > { %v2181_v15 = vpop.f32.mrf.mxu2  ;;  %v2281_v12 = vpop.f32.mrf.mxu0  ;;  %v6880_v40 = vor.u32 %v7866_v33, %v6879_v51  ;;  %v6799_v8 = vld [vmem:[%s12132_s2 + $0x10] sm:$0xf] }
 0x22e   : > { %v2182_v35 = vadd.f32 %v2181_v15, %v2133_v6 }
 0x22f   : > { %2844 = vmatpush.bf16.msrb.mxu3 %v6880_v40 }
 0x230   : > { %v2231_v58 = vadd.f32 %v2230_v52, %v2182_v35  ;;  %v2330_v9 = vpop.f32.mrf.mxu1 }
 0x232   : > { %v2280_v30 = vadd.f32 %v2279_v29, %v2231_v58  ;;  %v6807_v58 = vld [vmem:[%s12132_s2 + $0x20] sm:$0xf] }
 0x234   : > { %v9972_v22 = vadd.f32 %v2328_v4, %v2280_v30  ;;  %v2232_v36 = vpop.f32.mrf.mxu3  ;;  %v6817_v4 = vld [vmem:[%s12132_s2 + $0x38] sm:$0xf0] }
 0x235   : > { %v2183_v3 = vpop.f32.mrf.mxu2  ;;  %v2284_v59 = vpop.f32.mrf.mxu0  ;;  %v6820_v24 = vor.u32 %v7849_v54, %v6817_v4  ;;  %v6873_v54 = vld [vmem:[%s12132_s2 + $0xa8] sm:$0xf0] }
 0x236   : > { %v2184_v0 = vadd.f32 %v2183_v3, %v2135_v1  ;;  %v12250_v4 = vld [vmem:[#allocation39_spill] sm:$0xff] }
 0x237   : > { %2893 = vmatpush.bf16.msrb.mxu0 %v6820_v24 }
 0x238   : > { %v2233_v7 = vadd.f32 %v2232_v36, %v2184_v0  ;;  %v2333_v29 = vpop.f32.mrf.mxu1  ;;  %2479 = vmatmul.bf16.gmra.mxu0 %v9393_v63  ;;  %v2138_v63 = vadd.f32 %v9711_v56, %v9828_v61  ;;  %v7848_v56 = vld [vmem:[%s12132_s2 + $0x24] sm:$0xf0] }
 0x239   : > { %2430 = vmatmul.bf16.gmra.mxu3 %v12247_v39  ;;  %v6808_v30 = vor.u32 %v7848_v56, %v6807_v58 }
 0x23a   : > { %v2282_v47 = vadd.f32 %v2281_v12, %v2233_v7  ;;  %2381 = vmatmul.bf16.gmra.mxu2 %v12246_v57  ;;  %v12249_v7 = vld [vmem:[#allocation19_spill] sm:$0xff]  ;;  %v7863_v57 = vld [vmem:[%s12132_s2 + $0xa4] sm:$0xf] }
 0x23b   : > { %2528 = vmatmul.bf16.gmra.mxu1 %v12248_v21  ;;  %2796 = vmatpush.bf16.msrb.mxu2 %v6808_v30  ;;  %v6876_v39 = vor.u32 %v7863_v57, %v6873_v54  ;;  %v12252_v57 = vld [vmem:[#allocation42_spill] sm:$0xff]  ;;  %v7861_v54 = vld [vmem:[%s12132_s2 + $0x94] sm:$0xf] }
 0x23c   : > { %v9992_v62 = vadd.f32 %v2330_v9, %v2282_v47  ;;  %v2235_v11 = vpop.f32.mrf.mxu3  ;;  %v6871_v9 = vld [vmem:[%s12132_s2 + $0xa0] sm:$0xf] }
 0x23d   : > { %v2186_v6 = vpop.f32.mrf.mxu2  ;;  %v2286_v15 = vpop.f32.mrf.mxu0  ;;  %v6872_v51 = vor.u32 %v7864_v32, %v6871_v9  ;;  %2943 = vmatpush.bf16.msrb.mxu1 %v6876_v39  ;;  %v2145_v9 = vadd.f32 %v9774_v25, %v9828_v61 }
 0x23e   : > { %v2187_v27 = vadd.f32 %v2186_v6, %v2138_v63  ;;  %v7845_v6 = vld [vmem:[%s12132_s2 + $0x14] sm:$0xf] }
 0x23f   : > { %2845 = vmatpush.bf16.msrb.mxu3 %v6872_v51  ;;  %v7844_v51 = vld [vmem:[%s12132_s2 + $0x4] sm:$0xf0] }
 0x240   : > { %v2236_v35 = vadd.f32 %v2235_v11, %v2187_v27  ;;  %v9994_v52 = vpop.f32.mrf.mxu1 }
 0x242   : > { %v2285_v12 = vadd.f32 %v2284_v59, %v2236_v35  ;;  %v7862_v35 = vld [vmem:[%s12132_s2 + $0x94] sm:$0xf0] }
 0x244   : > { %v10010_v20 = vadd.f32 %v2333_v29, %v2285_v12  ;;  %v2237_v40 = vpop.f32.mrf.mxu3  ;;  %v6809_v29 = vld [vmem:[%s12132_s2 + $0x28] sm:$0xf0]  ;;  %v6801_v12 = vld [vmem:[%s12132_s2 + $0x18] sm:$0xf0] }
 0x245   : > { %v2188_v33 = vpop.f32.mrf.mxu2  ;;  %v2289_v3 = vpop.f32.mrf.mxu0  ;;  %v6812_v47 = vor.u32 %v7847_v43, %v6809_v29  ;;  %v6804_v56 = vor.u32 %v7845_v6, %v6801_v12 }
 0x246   : > { %v2189_v1 = vadd.f32 %v2188_v33, %v2140_v13  ;;  %v6791_v13 = vld [vmem:[%s12132_s2] sm:$0xf]  ;;  %v7843_v33 = vld [vmem:[%s12132_s2 + $0x4] sm:$0xf] }
 0x247   : > { %2894 = vmatpush.bf16.msrb.mxu0 %v6812_v47  ;;  %v12251_v47 = vld [vmem:[#allocation23_spill] sm:$0xff] }
 0x248   : > { %v2238_v0 = vadd.f32 %v2237_v40, %v2189_v1  ;;  %v2338_v36 = vpop.f32.mrf.mxu1  ;;  %2484 = vmatmul.bf16.gmra.mxu0 %v9439_v49  ;;  %v2143_v49 = vadd.f32 %v9747_v16, %v9828_v61  ;;  %v7846_v16 = vld [vmem:[%s12132_s2 + $0x14] sm:$0xf0]  ;;  %v6792_v40 = vor.u32 %v7844_v51, %v6791_v13 }
 0x249   : > { %2435 = vmatmul.bf16.gmra.mxu3 %v9435_v55  ;;  %v6800_v11 = vor.u32 %v7846_v16, %v6799_v8 }
 0x24a   : > { %v10012_v59 = vadd.f32 %v2286_v15, %v2238_v0  ;;  %2386 = vmatmul.bf16.gmra.mxu2 %v12249_v7  ;;  %v6863_v15 = vld [vmem:[%s12132_s2 + $0x90] sm:$0xf] }
 0x24b   : > { %2533 = vmatmul.bf16.gmra.mxu1 %v12250_v4  ;;  %v6864_v58 = vor.u32 %v7862_v35, %v6863_v15  ;;  %2797 = vmatpush.bf16.msrb.mxu2 %v6800_v11  ;;  %v12253_v4 = vld [vmem:[#allocation40_spill] sm:$0xff]  ;;  %v2150_v11 = vadd.f32 %v9798_v31, %v9828_v61  ;;  %v12255_v31 = vld [vmem:[#allocation27_spill] sm:$0xff] }
 0x24c   : > { %v2240_v28 = vpop.f32.mrf.mxu3  ;;  %2895 = vmatpush.bf16.msrb.mxu0 %v6804_v56  ;;  %v7860_v56 = vld [vmem:[%s12132_s2 + $0x84] sm:$0xf0] }
 0x24d   : > { %v2191_v24 = vpop.f32.mrf.mxu2  ;;  %v2291_v55 = vpop.f32.mrf.mxu0  ;;  %2846 = vmatpush.bf16.msrb.mxu3 %v6864_v58 }
 0x24e   : > { %v2192_v26 = vadd.f32 %v2191_v24, %v2143_v49  ;;  %v6865_v49 = vld [vmem:[%s12132_s2 + $0x98] sm:$0xf0]  ;;  %v2148_v24 = vadd.f32 %v9783_v44, %v9828_v61  ;;  %v6855_v44 = vld [vmem:[%s12132_s2 + $0x80] sm:$0xf] }
 0x24f   : > { %2798 = vmatpush.bf16.msrb.mxu2 %v6792_v40  ;;  %v6868_v39 = vor.u32 %v7861_v54, %v6865_v49  ;;  %v7859_v40 = vld [vmem:[%s12132_s2 + $0x84] sm:$0xf] }
 0x250   : > { %v2241_v63 = vadd.f32 %v2240_v28, %v2192_v26  ;;  %v10032_v21 = vpop.f32.mrf.mxu1  ;;  %v12254_v26 = vld [vmem:[#allocation41_spill] sm:$0xff] }
 0x251   : > { %2944 = vmatpush.bf16.msrb.mxu1 %v6868_v39 }
 0x252   : > { %v2290_v27 = vadd.f32 %v2289_v3, %v2241_v63  ;;  %v6793_v3 = vld [vmem:[%s12132_s2 + $0x8] sm:$0xf0] }
 0x254   : > { %v10054_v30 = vadd.f32 %v2338_v36, %v2290_v27  ;;  %v2242_v25 = vpop.f32.mrf.mxu3  ;;  %v6796_v36 = vor.u32 %v7843_v33, %v6793_v3  ;;  %v6857_v3 = vld [vmem:[%s12132_s2 + $0x88] sm:$0xf0] }
 0x255   : > { %v2193_v32 = vpop.f32.mrf.mxu2  ;;  %v2294_v0 = vpop.f32.mrf.mxu0 }
 0x256   : > { %v2194_v1 = vadd.f32 %v2193_v32, %v2145_v9  ;;  %2896 = vmatpush.bf16.msrb.mxu0 %v6796_v36  ;;  %v6856_v32 = vor.u32 %v7860_v56, %v6855_v44 }
 0x258   : > { %v2243_v7 = vadd.f32 %v2242_v25, %v2194_v1  ;;  %v2343_v43 = vpop.f32.mrf.mxu1  ;;  %2489 = vmatmul.bf16.gmra.mxu0 %v12252_v57  ;;  %2847 = vmatpush.bf16.msrb.mxu3 %v6856_v32  ;;  %v2153_v1 = vadd.f32 %v9801_v60, %v9828_v61 }
 0x259   : > { %2440 = vmatmul.bf16.gmra.mxu3 %v12253_v4 }
 0x25a   : > { %v10068_v29 = vadd.f32 %v2291_v55, %v2243_v7  ;;  %2391 = vmatmul.bf16.gmra.mxu2 %v12251_v47  ;;  %v6860_v7 = vor.u32 %v7859_v40, %v6857_v3  ;;  %v7905_v3 = vld [vmem:[%s12133_s3 + $0xf4] sm:$0xf] }
 0x25b   : > { %2538 = vmatmul.bf16.gmra.mxu1 %v12254_v26 }
 0x25c   : > { %v2245_v63 = vpop.f32.mrf.mxu3  ;;  %2945 = vmatpush.bf16.msrb.mxu1 %v6860_v7 }
 0x25d   : > { %v2196_v28 = vpop.f32.mrf.mxu2  ;;  %v2296_v8 = vpop.f32.mrf.mxu0 }
 0x25e   : > { %v2197_v55 = vadd.f32 %v2196_v28, %v2148_v24 }
 0x260   : > { %v2246_v16 = vadd.f32 %v2245_v63, %v2197_v55  ;;  %v10082_v6 = vpop.f32.mrf.mxu1 }
 0x262   : > { %v2295_v27 = vadd.f32 %v2294_v0, %v2246_v16 }
 0x264   : > { %v10086_v15 = vadd.f32 %v2343_v43, %v2295_v27  ;;  %v2247_v58 = vpop.f32.mrf.mxu3 }
 0x265   : > { %v2198_v35 = vpop.f32.mrf.mxu2  ;;  %v2299_v9 = vpop.f32.mrf.mxu0 }
 0x266   : > { %v2199_v12 = vadd.f32 %v2198_v35, %v2150_v11 }
 0x268   : > { %v2248_v13 = vadd.f32 %v2247_v58, %v2199_v12  ;;  %v2348_v51 = vpop.f32.mrf.mxu1  ;;  %2494 = vmatmul.bf16.gmra.mxu0 %v9531_v14  ;;  %v6975_v12 = vld [vmem:[%s12133_s3 + $0x70] sm:$0xf] }
 0x269   : > { %2445 = vmatmul.bf16.gmra.mxu3 %v9527_v50 }
 0x26a   : > { %v10094_v33 = vadd.f32 %v2296_v8, %v2248_v13  ;;  %2396 = vmatmul.bf16.gmra.mxu2 %v12255_v31  ;;  %v7906_v31 = vld [vmem:[%s12133_s3 + $0xf4] sm:$0xf0] }
 0x26b   : > { %2543 = vmatmul.bf16.gmra.mxu1 %v9529_v34  ;;  %v2155_v34 = vadd.f32 %v9810_v45, %v9828_v61 }
 0x26c   : > { %v2250_v36 = vpop.f32.mrf.mxu3 }
 0x26d   : > { %v2201_v25 = vpop.f32.mrf.mxu2  ;;  %v2301_v14 = vpop.f32.mrf.mxu0 }
 0x26e   : > { %v2202_v0 = vadd.f32 %v2201_v25, %v2153_v1  ;;  %v7889_v1 = vld [vmem:[%s12133_s3 + $0x74] sm:$0xf] }
 0x270   : > { %v2251_v43 = vadd.f32 %v2250_v36, %v2202_v0  ;;  %v10108_v50 = vpop.f32.mrf.mxu1  ;;  %v7041_v0 = vld [vmem:[%s12133_s3 + $0xf8] sm:$0xf0] }
 0x272   : > { %v2300_v60 = vadd.f32 %v2299_v9, %v2251_v43 }
 0x274   : > { %v10112_v47 = vadd.f32 %v2348_v51, %v2300_v60  ;;  %v2252_v49 = vpop.f32.mrf.mxu3  ;;  %v7039_v51 = vld [vmem:[%s12133_s3 + $0xf0] sm:$0xf]  ;;  %v7044_v60 = vor.u32 %v7905_v3, %v7041_v0 }
 0x275   : > { %v2203_v57 = vpop.f32.mrf.mxu2  ;;  %v2460_v4 = vpop.f32.mrf.mxu0  ;;  %v7040_v40 = vor.u32 %v7906_v31, %v7039_v51 }
 0x276   : > { %v2204_v54 = vadd.f32 %v2203_v57, %v2155_v34  ;;  %3376 = vmatpush.bf16.msra.mxu1 %v7044_v60 }
 0x277   : > { %3278 = vmatpush.bf16.msra.mxu3 %v7040_v40 }
 0x278   : > { %v2253_v39 = vadd.f32 %v2252_v49, %v2204_v54  ;;  %v2509_v24 = vpop.f32.mrf.mxu1  ;;  %2897 = vmatmul.bf16.vlgmr.msrb.gmra.mxu0 %v9624_v18 }
 0x27a   : > { %v10114_v26 = vadd.f32 %v2301_v14, %v2253_v39  ;;  %2799 = vmatmul.bf16.vlgmr.msrb.gmra.mxu2 %v9624_v18  ;;  %v7890_v18 = vld [vmem:[%s12133_s3 + $0x74] sm:$0xf0] }
 0x27c   : > { %v2411_v63 = vpop.f32.mrf.mxu3 }
 0x27d   : > { %v2362_v28 = vpop.f32.mrf.mxu2  ;;  %v2462_v8 = vpop.f32.mrf.mxu0 }
 0x27e   : > { %v2363_v55 = vadd.f32 %v2362_v28, %v9864_v38  ;;  %v6976_v38 = vor.u32 %v7890_v18, %v6975_v12  ;;  %v7904_v12 = vld [vmem:[%s12133_s3 + $0xe4] sm:$0xf0]  ;;  %v7887_v18 = vld [vmem:[%s12133_s3 + $0x64] sm:$0xf] }
 0x280   : > { %v2412_v45 = vadd.f32 %v2411_v63, %v2363_v55  ;;  %v2511_v61 = vpop.f32.mrf.mxu1  ;;  %3229 = vmatpush.bf16.msra.mxu2 %v6976_v38  ;;  %v7888_v55 = vld [vmem:[%s12133_s3 + $0x64] sm:$0xf0]  ;;  %v7903_v38 = vld [vmem:[%s12133_s3 + $0xe4] sm:$0xf] }
 0x282   : > { %v2461_v16 = vadd.f32 %v2460_v4, %v2412_v45 }
 0x284   : > { %v2413_v35 = vpop.f32.mrf.mxu3  ;;  %v2510_v58 = vadd.f32 %v2509_v24, %v2461_v16 }
 0x285   : > { %v2364_v27 = vpop.f32.mrf.mxu2  ;;  %v2465_v44 = vpop.f32.mrf.mxu0 }
 0x286   : > { %v2365_v11 = vadd.f32 %v2364_v27, %v9884_v48  ;;  %v2550_v48 = vmax.f32 %v2510_v58, 0.0 }
 0x288   : > { %v2414_v56 = vadd.f32 %v2413_v35, %v2365_v11  ;;  %v2514_v9 = vpop.f32.mrf.mxu1  ;;  %2902 = vmatmul.bf16.gmra.mxu0 %v9664_v17  ;;  %v7031_v35 = vld [vmem:[%s12133_s3 + $0xe0] sm:$0xf] }
 0x28a   : > { %v2463_v32 = vadd.f32 %v2462_v8, %v2414_v56  ;;  %2804 = vmatmul.bf16.gmra.mxu2 %v9664_v17  ;;  %v6977_v17 = vld [vmem:[%s12133_s3 + $0x78] sm:$0xf0]  ;;  %v7033_v56 = vld [vmem:[%s12133_s3 + $0xe8] sm:$0xf0] }
 0x28b   : > { %v6980_v43 = vor.u32 %v7889_v1, %v6977_v17  ;;  %v7036_v51 = vor.u32 %v7903_v38, %v7033_v56  ;;  %v7884_v38 = vld [vmem:[%s12133_s3 + $0x44] sm:$0xf0] }
 0x28c   : > { %v2512_v13 = vadd.f32 %v2511_v61, %v2463_v32  ;;  %v2416_v14 = vpop.f32.mrf.mxu3 }
 0x28d   : > { %v2367_v25 = vpop.f32.mrf.mxu2  ;;  %v2467_v34 = vpop.f32.mrf.mxu0  ;;  %3327 = vmatpush.bf16.msra.mxu0 %v6980_v43  ;;  %3377 = vmatpush.bf16.msra.mxu1 %v7036_v51 }
 0x28e   : > { %v2552_v36 = vmax.f32 %v2512_v13, 0.0  ;;  %v2368_v7 = vadd.f32 %v2367_v25, %v9900_v42  ;;  %v6967_v42 = vld [vmem:[%s12133_s3 + $0x60] sm:$0xf] }
 0x28f   : > { %v6968_v45 = vor.u32 %v7888_v55, %v6967_v42  ;;  %v7901_v55 = vld [vmem:[%s12133_s3 + $0xd4] sm:$0xf] }
 0x290   : > { %v2582_v57 = vpack.c.bf16 %v2552_v36, %v2550_v48  ;;  %v2417_v54 = vadd.f32 %v2416_v14, %v2368_v7  ;;  %v2516_v49 = vpop.f32.mrf.mxu1  ;;  %v7886_v7 = vld [vmem:[%s12133_s3 + $0x54] sm:$0xf0] }
 0x291   : > { %3230 = vmatpush.bf16.msra.mxu2 %v6968_v45 }
 0x292   : > { %2848 = vmatmul.bf16.vlgmr.msrb.gmra.mxu3 %v2582_v57  ;;  %2946 = vmatmul.bf16.vlgmr.msrb.gmra.mxu1 %v2582_v57  ;;  %v2466_v4 = vadd.f32 %v2465_v44, %v2417_v54  ;;  %v7032_v44 = vor.u32 %v7904_v12, %v7031_v35 }
 0x294   : > { %v2418_v28 = vpop.f32.mrf.mxu3  ;;  %v2515_v63 = vadd.f32 %v2514_v9, %v2466_v4  ;;  %3279 = vmatpush.bf16.msra.mxu3 %v7032_v44  ;;  %v7023_v4 = vld [vmem:[%s12133_s3 + $0xd0] sm:$0xf] }
 0x295   : > { %v2369_v39 = vpop.f32.mrf.mxu2  ;;  %v2470_v8 = vpop.f32.mrf.mxu0 }
 0x296   : > { %v2370_v24 = vadd.f32 %v2369_v39, %v9920_v10  ;;  %v2554_v10 = vmax.f32 %v2515_v63, 0.0  ;;  %v7902_v39 = vld [vmem:[%s12133_s3 + $0xd4] sm:$0xf0]  ;;  %v7025_v63 = vld [vmem:[%s12133_s3 + $0xd8] sm:$0xf0] }
 0x297   : > { %v7024_v42 = vor.u32 %v7902_v39, %v7023_v4  ;;  %v2336_v4 = vadd.f32 %v9994_v52, %v10012_v59 }
 0x298   : > { %v2419_v61 = vadd.f32 %v2418_v28, %v2370_v24  ;;  %v2519_v16 = vpop.f32.mrf.mxu1  ;;  %2907 = vmatmul.bf16.gmra.mxu0 %v9700_v46  ;;  %v7885_v24 = vld [vmem:[%s12133_s3 + $0x54] sm:$0xf] }
 0x299   : > { %3280 = vmatpush.bf16.msra.mxu3 %v7024_v42  ;;  %v7882_v42 = vld [vmem:[%s12133_s3 + $0x34] sm:$0xf0] }
 0x29a   : > { %v2468_v27 = vadd.f32 %v2467_v34, %v2419_v61  ;;  %2809 = vmatmul.bf16.gmra.mxu2 %v9700_v46  ;;  %v6969_v46 = vld [vmem:[%s12133_s3 + $0x68] sm:$0xf0] }
 0x29b   : > { %v6972_v13 = vor.u32 %v7887_v18, %v6969_v46 }
 0x29c   : > { %v2517_v11 = vadd.f32 %v2516_v49, %v2468_v27  ;;  %v2421_v32 = vpop.f32.mrf.mxu3  ;;  %v7028_v27 = vor.u32 %v7901_v55, %v7025_v63 }
 0x29d   : > { %v2372_v58 = vpop.f32.mrf.mxu2  ;;  %v2472_v31 = vpop.f32.mrf.mxu0  ;;  %3328 = vmatpush.bf16.msra.mxu0 %v6972_v13 }
 0x29e   : > { %v2373_v9 = vadd.f32 %v2372_v58, %v9936_v19  ;;  %v2556_v48 = vmax.f32 %v2517_v11, 0.0  ;;  %v6959_v19 = vld [vmem:[%s12133_s3 + $0x50] sm:$0xf]  ;;  %3378 = vmatpush.bf16.msra.mxu1 %v7028_v27  ;;  %v7898_v27 = vld [vmem:[%s12133_s3 + $0xb4] sm:$0xf0] }
 0x29f   : > { %v6960_v60 = vor.u32 %v7886_v7, %v6959_v19 }
 0x2a0   : > { %v2422_v1 = vadd.f32 %v2421_v32, %v2373_v9  ;;  %v2584_v25 = vpack.c.bf16 %v2556_v48, %v2554_v10  ;;  %v2521_v40 = vpop.f32.mrf.mxu1 }
 0x2a1   : > { %3231 = vmatpush.bf16.msra.mxu2 %v6960_v60 }
 0x2a2   : > { %2853 = vmatmul.bf16.gmra.mxu3 %v2584_v25  ;;  %2951 = vmatmul.bf16.gmra.mxu1 %v2584_v25  ;;  %v2471_v17 = vadd.f32 %v2470_v8, %v2422_v1  ;;  %v7015_v1 = vld [vmem:[%s12133_s3 + $0xc0] sm:$0xf]  ;;  %v7900_v25 = vld [vmem:[%s12133_s3 + $0xc4] sm:$0xf0] }
 0x2a4   : > { %v2423_v36 = vpop.f32.mrf.mxu3  ;;  %v2520_v14 = vadd.f32 %v2519_v16, %v2471_v17 }
 0x2a5   : > { %v2374_v3 = vpop.f32.mrf.mxu2  ;;  %v2475_v43 = vpop.f32.mrf.mxu0 }
 0x2a6   : > { %v2375_v0 = vadd.f32 %v2374_v3, %v9956_v41  ;;  %v2558_v41 = vmax.f32 %v2520_v14, 0.0  ;;  %v7016_v3 = vor.u32 %v7900_v25, %v7015_v1  ;;  %v6935_v1 = vld [vmem:[%s12133_s3 + $0x20] sm:$0xf]  ;;  %v7880_v25 = vld [vmem:[%s12133_s3 + $0x24] sm:$0xf0] }
 0x2a8   : > { %v2424_v34 = vadd.f32 %v2423_v36, %v2375_v0  ;;  %v2524_v57 = vpop.f32.mrf.mxu1  ;;  %2912 = vmatmul.bf16.gmra.mxu0 %v9736_v23  ;;  %v7899_v0 = vld [vmem:[%s12133_s3 + $0xc4] sm:$0xf]  ;;  %v7017_v36 = vld [vmem:[%s12133_s3 + $0xc8] sm:$0xf0]  ;;  %3281 = vmatpush.bf16.msra.mxu3 %v7016_v3  ;;  %v6936_v3 = vor.u32 %v7880_v25, %v6935_v1 }
 0x2a9   : > { %v7020_v60 = vor.u32 %v7899_v0, %v7017_v36  ;;  %v6999_v36 = vld [vmem:[%s12133_s3 + $0xa0] sm:$0xf] }
 0x2aa   : > { %v2473_v54 = vadd.f32 %v2472_v31, %v2424_v34  ;;  %2814 = vmatmul.bf16.gmra.mxu2 %v9736_v23  ;;  %v6961_v23 = vld [vmem:[%s12133_s3 + $0x58] sm:$0xf0] }
 0x2ab   : > { %v6964_v16 = vor.u32 %v7885_v24, %v6961_v23  ;;  %3379 = vmatpush.bf16.msra.mxu1 %v7020_v60 }
 0x2ac   : > { %v2522_v49 = vadd.f32 %v2521_v40, %v2473_v54  ;;  %v2426_v45 = vpop.f32.mrf.mxu3  ;;  %v7883_v40 = vld [vmem:[%s12133_s3 + $0x44] sm:$0xf] }
 0x2ad   : > { %v2377_v28 = vpop.f32.mrf.mxu2  ;;  %v2477_v10 = vpop.f32.mrf.mxu0  ;;  %3329 = vmatpush.bf16.msra.mxu0 %v6964_v16  ;;  %v7007_v16 = vld [vmem:[%s12133_s3 + $0xb0] sm:$0xf] }
 0x2ae   : > { %v2378_v8 = vadd.f32 %v2377_v28, %v9972_v22  ;;  %v2560_v61 = vmax.f32 %v2522_v49, 0.0  ;;  %v6951_v22 = vld [vmem:[%s12133_s3 + $0x40] sm:$0xf]  ;;  %v6943_v28 = vld [vmem:[%s12133_s3 + $0x30] sm:$0xf] }
 0x2af   : > { %v6952_v32 = vor.u32 %v7884_v38, %v6951_v22  ;;  %v6944_v63 = vor.u32 %v7882_v42, %v6943_v28  ;;  %v6927_v42 = vld [vmem:[%s12133_s3 + $0x10] sm:$0xf] }
 0x2b0   : > { %v2427_v11 = vadd.f32 %v2426_v45, %v2378_v8  ;;  %v2586_v35 = vpack.c.bf16 %v2560_v61, %v2558_v41  ;;  %v2526_v12 = vpop.f32.mrf.mxu1 }
 0x2b1   : > { %3232 = vmatpush.bf16.msra.mxu2 %v6952_v32 }
 0x2b2   : > { %2858 = vmatmul.bf16.gmra.mxu3 %v2586_v35  ;;  %2956 = vmatmul.bf16.gmra.mxu1 %v2586_v35  ;;  %v2476_v18 = vadd.f32 %v2475_v43, %v2427_v11  ;;  %v7008_v35 = vor.u32 %v7898_v27, %v7007_v16 }
 0x2b4   : > { %v2428_v46 = vpop.f32.mrf.mxu3  ;;  %v2525_v56 = vadd.f32 %v2524_v57, %v2476_v18  ;;  %v7009_v18 = vld [vmem:[%s12133_s3 + $0xb8] sm:$0xf0]  ;;  %3282 = vmatpush.bf16.msra.mxu3 %v7008_v35  ;;  %v7893_v35 = vld [vmem:[%s12133_s3 + $0x94] sm:$0xf] }
 0x2b5   : > { %v2379_v58 = vpop.f32.mrf.mxu2  ;;  %v2480_v9 = vpop.f32.mrf.mxu0  ;;  %3233 = vmatpush.bf16.msra.mxu2 %v6944_v63 }
 0x2b6   : > { %v2380_v44 = vadd.f32 %v2379_v58, %v9992_v62  ;;  %v2562_v62 = vmax.f32 %v2525_v56, 0.0 }
 0x2b8   : > { %v2429_v48 = vadd.f32 %v2428_v46, %v2380_v44  ;;  %v2529_v13 = vpop.f32.mrf.mxu1  ;;  %2917 = vmatmul.bf16.gmra.mxu0 %v9772_v37 }
 0x2b9   : > { %3234 = vmatpush.bf16.msra.mxu2 %v6936_v3 }
 0x2ba   : > { %v2478_v51 = vadd.f32 %v2477_v10, %v2429_v48  ;;  %2819 = vmatmul.bf16.gmra.mxu2 %v9772_v37  ;;  %v6953_v37 = vld [vmem:[%s12133_s3 + $0x48] sm:$0xf0]  ;;  %v7881_v10 = vld [vmem:[%s12133_s3 + $0x34] sm:$0xf] }
 0x2bb   : > { %v6956_v43 = vor.u32 %v7883_v40, %v6953_v37 }
 0x2bc   : > { %v2527_v31 = vadd.f32 %v2526_v12, %v2478_v51  ;;  %v2431_v7 = vpop.f32.mrf.mxu3  ;;  %v7897_v12 = vld [vmem:[%s12133_s3 + $0xb4] sm:$0xf]  ;;  %v2341_v51 = vadd.f32 %v10032_v21, %v10068_v29 }
 0x2bd   : > { %v2382_v17 = vpop.f32.mrf.mxu2  ;;  %v2482_v34 = vpop.f32.mrf.mxu0  ;;  %3330 = vmatpush.bf16.msra.mxu0 %v6956_v43  ;;  %v7012_v38 = vor.u32 %v7897_v12, %v7009_v18  ;;  %v6993_v12 = vld [vmem:[%s12133_s3 + $0x98] sm:$0xf0] }
 0x2be   : > { %v2383_v19 = vadd.f32 %v2382_v17, %v10010_v20  ;;  %v2564_v14 = vmax.f32 %v2527_v31, 0.0 }
 0x2bf   : > { %3380 = vmatpush.bf16.msra.mxu1 %v7012_v38 }
 0x2c0   : > { %v2432_v57 = vadd.f32 %v2431_v7, %v2383_v19  ;;  %v2588_v54 = vpack.c.bf16 %v2564_v14, %v2562_v62  ;;  %v2531_v41 = vpop.f32.mrf.mxu1  ;;  %v7896_v19 = vld [vmem:[%s12133_s3 + $0xa4] sm:$0xf0]  ;;  %v7879_v7 = vld [vmem:[%s12133_s3 + $0x24] sm:$0xf] }
 0x2c1   : > { %v7000_v60 = vor.u32 %v7896_v19, %v6999_v36 }
 0x2c2   : > { %2863 = vmatmul.bf16.gmra.mxu3 %v2588_v54  ;;  %2961 = vmatmul.bf16.gmra.mxu1 %v2588_v54  ;;  %v2481_v49 = vadd.f32 %v2480_v9, %v2432_v57  ;;  %v7001_v57 = vld [vmem:[%s12133_s3 + $0xa8] sm:$0xf0] }
 0x2c3   : > { %3283 = vmatpush.bf16.msra.mxu3 %v7000_v60  ;;  %v7875_v60 = vld [vmem:[%s12133_s3 + $0x4] sm:$0xf] }
 0x2c4   : > { %v2433_v20 = vpop.f32.mrf.mxu3  ;;  %v2530_v23 = vadd.f32 %v2529_v13, %v2481_v49 }
 0x2c5   : > { %v2384_v39 = vpop.f32.mrf.mxu2  ;;  %v2485_v55 = vpop.f32.mrf.mxu0 }
 0x2c6   : > { %v2385_v24 = vadd.f32 %v2384_v39, %v2336_v4  ;;  %v2566_v52 = vmax.f32 %v2530_v23, 0.0 }
 0x2c8   : > { %v2434_v8 = vadd.f32 %v2433_v20, %v2385_v24  ;;  %v2534_v45 = vpop.f32.mrf.mxu1  ;;  %2922 = vmatmul.bf16.gmra.mxu0 %v9796_v2 }
 0x2ca   : > { %v2483_v61 = vadd.f32 %v2482_v34, %v2434_v8  ;;  %2824 = vmatmul.bf16.gmra.mxu2 %v9796_v2  ;;  %v6945_v2 = vld [vmem:[%s12133_s3 + $0x38] sm:$0xf0]  ;;  %v7895_v34 = vld [vmem:[%s12133_s3 + $0xa4] sm:$0xf] }
 0x2cb   : > { %v6948_v22 = vor.u32 %v7881_v10, %v6945_v2  ;;  %v7004_v39 = vor.u32 %v7895_v34, %v7001_v57 }
 0x2cc   : > { %v2532_v59 = vadd.f32 %v2531_v41, %v2483_v61  ;;  %v2436_v44 = vpop.f32.mrf.mxu3 }
 0x2cd   : > { %v2387_v11 = vpop.f32.mrf.mxu2  ;;  %v2487_v56 = vpop.f32.mrf.mxu0  ;;  %3331 = vmatpush.bf16.msra.mxu0 %v6948_v22  ;;  %3381 = vmatpush.bf16.msra.mxu1 %v7004_v39  ;;  %v7103_v39 = vld [vmem:[%s12134_s4 + $0x70] sm:$0xf] }
 0x2ce   : > { %v2388_v58 = vadd.f32 %v2387_v11, %v10054_v30  ;;  %v2568_v46 = vmax.f32 %v2532_v59, 0.0  ;;  %v7894_v59 = vld [vmem:[%s12133_s3 + $0x94] sm:$0xf0] }
 0x2d0   : > { %v2437_v9 = vadd.f32 %v2436_v44, %v2388_v58  ;;  %v2590_v32 = vpack.c.bf16 %v2568_v46, %v2566_v52  ;;  %v2536_v13 = vpop.f32.mrf.mxu1  ;;  %v6991_v52 = vld [vmem:[%s12133_s3 + $0x90] sm:$0xf]  ;;  %v6996_v44 = vor.u32 %v7893_v35, %v6993_v12  ;;  %v7095_v35 = vld [vmem:[%s12134_s4 + $0x60] sm:$0xf] }
 0x2d1   : > { %v6992_v10 = vor.u32 %v7894_v59, %v6991_v52  ;;  %v7169_v59 = vld [vmem:[%s12134_s4 + $0xf8] sm:$0xf0] }
 0x2d2   : > { %2868 = vmatmul.bf16.gmra.mxu3 %v2590_v32  ;;  %2966 = vmatmul.bf16.gmra.mxu1 %v2590_v32  ;;  %v2486_v48 = vadd.f32 %v2485_v55, %v2437_v9  ;;  %v2346_v55 = vadd.f32 %v10082_v6, %v10094_v33  ;;  %v7877_v6 = vld [vmem:[%s12133_s3 + $0x14] sm:$0xf]  ;;  %v6929_v33 = vld [vmem:[%s12133_s3 + $0x18] sm:$0xf0] }
 0x2d3   : > { %3284 = vmatpush.bf16.msra.mxu3 %v6992_v10  ;;  %v6932_v2 = vor.u32 %v7877_v6, %v6929_v33  ;;  %3382 = vmatpush.bf16.msra.mxu1 %v6996_v44  ;;  %v10388_v44 = vld [vmem:[%s12137_s7] sm:$0xff] }
 0x2d4   : > { %v2438_v30 = vpop.f32.mrf.mxu3  ;;  %v2535_v40 = vadd.f32 %v2534_v45, %v2486_v48 }
 0x2d5   : > { %v2389_v62 = vpop.f32.mrf.mxu2  ;;  %v2490_v17 = vpop.f32.mrf.mxu0 }
 0x2d6   : > { %v2390_v31 = vadd.f32 %v2389_v62, %v2341_v51  ;;  %v2570_v21 = vmax.f32 %v2535_v40, 0.0 }
 0x2d8   : > { %v2439_v37 = vadd.f32 %v2438_v30, %v2390_v31  ;;  %2927 = vmatmul.bf16.gmra.mxu0 %v9808_v53  ;;  %v2539_v14 = vpop.f32.mrf.mxu1  ;;  %v7876_v31 = vld [vmem:[%s12133_s3 + $0x4] sm:$0xf0] }
 0x2da   : > { %v2488_v0 = vadd.f32 %v2487_v56, %v2439_v37  ;;  %2829 = vmatmul.bf16.gmra.mxu2 %v9808_v53  ;;  %v6937_v53 = vld [vmem:[%s12133_s3 + $0x28] sm:$0xf0] }
 0x2db   : > { %v6940_v4 = vor.u32 %v7879_v7, %v6937_v53  ;;  %v6921_v53 = vld [vmem:[%s12133_s3 + $0x8] sm:$0xf0] }
 0x2dc   : > { %v2537_v29 = vadd.f32 %v2536_v13, %v2488_v0  ;;  %v2441_v41 = vpop.f32.mrf.mxu3  ;;  %v6983_v0 = vld [vmem:[%s12133_s3 + $0x80] sm:$0xf]  ;;  %v6924_v57 = vor.u32 %v7875_v60, %v6921_v53  ;;  %v7087_v60 = vld [vmem:[%s12134_s4 + $0x50] sm:$0xf]  ;;  %v7918_v53 = vld [vmem:[%s12134_s4 + $0x54] sm:$0xf0] }
 0x2dd   : > { %v2392_v43 = vpop.f32.mrf.mxu2  ;;  %v2492_v24 = vpop.f32.mrf.mxu0  ;;  %3332 = vmatpush.bf16.msra.mxu0 %v6940_v4 }
 0x2de   : > { %v2393_v54 = vadd.f32 %v2392_v43, %v10086_v15  ;;  %v2572_v49 = vmax.f32 %v2537_v29, 0.0  ;;  %v7878_v15 = vld [vmem:[%s12133_s3 + $0x14] sm:$0xf0] }
 0x2df   : > { %v6928_v23 = vor.u32 %v7878_v15, %v6927_v42  ;;  %v7167_v15 = vld [vmem:[%s12134_s4 + $0xf0] sm:$0xf] }
 0x2e0   : > { %v2592_v20 = vpack.c.bf16 %v2572_v49, %v2570_v21  ;;  %v2442_v28 = vadd.f32 %v2441_v41, %v2393_v54  ;;  %v2541_v16 = vpop.f32.mrf.mxu1  ;;  %v7892_v21 = vld [vmem:[%s12133_s3 + $0x84] sm:$0xf0] }
 0x2e1   : > { %3235 = vmatpush.bf16.msra.mxu2 %v6928_v23  ;;  %3333 = vmatpush.bf16.msra.mxu0 %v6932_v2  ;;  %v6984_v29 = vor.u32 %v7892_v21, %v6983_v0  ;;  %v7938_v23 = vld [vmem:[%s12134_s4 + $0xf4] sm:$0xf0]  ;;  %v7920_v2 = vld [vmem:[%s12134_s4 + $0x64] sm:$0xf0]  ;;  %v7161_v21 = vld [vmem:[%s12134_s4 + $0xe8] sm:$0xf0] }
 0x2e2   : > { %2873 = vmatmul.bf16.gmra.mxu3 %v2592_v20  ;;  %2971 = vmatmul.bf16.gmra.mxu1 %v2592_v20  ;;  %v2491_v8 = vadd.f32 %v2490_v17, %v2442_v28 }
 0x2e3   : > { %3285 = vmatpush.bf16.msra.mxu3 %v6984_v29 }
 0x2e4   : > { %v2443_v61 = vpop.f32.mrf.mxu3  ;;  %v2540_v18 = vadd.f32 %v2539_v14, %v2491_v8  ;;  %v7105_v8 = vld [vmem:[%s12134_s4 + $0x78] sm:$0xf0] }
 0x2e5   : > { %v2394_v63 = vpop.f32.mrf.mxu2  ;;  %v2495_v27 = vpop.f32.mrf.mxu0  ;;  %3334 = vmatpush.bf16.msra.mxu0 %v6924_v57 }
 0x2e6   : > { %v2395_v45 = vadd.f32 %v2394_v63, %v2346_v55  ;;  %v2574_v38 = vmax.f32 %v2540_v18, 0.0  ;;  %v7168_v55 = vor.u32 %v7938_v23, %v7167_v15  ;;  %v7921_v63 = vld [vmem:[%s12134_s4 + $0x74] sm:$0xf] }
 0x2e7   : > { %v7108_v52 = vor.u32 %v7921_v63, %v7105_v8 }
 0x2e8   : > { %v2444_v11 = vadd.f32 %v2443_v61, %v2395_v45  ;;  %2932 = vmatmul.bf16.gmra.mxu0 %v9848_v5  ;;  %v2544_v51 = vpop.f32.mrf.mxu1  ;;  %3700 = vmatpush.bf16.msrb.mxu3 %v7168_v55  ;;  %v7937_v45 = vld [vmem:[%s12134_s4 + $0xf4] sm:$0xf] }
 0x2e9   : > { %3749 = vmatpush.bf16.msrb.mxu0 %v7108_v52  ;;  %v7917_v52 = vld [vmem:[%s12134_s4 + $0x54] sm:$0xf] }
 0x2ea   : > { %v2493_v58 = vadd.f32 %v2492_v24, %v2444_v11  ;;  %2834 = vmatmul.bf16.gmra.mxu2 %v9848_v5  ;;  %v6919_v5 = vld [vmem:[%s12133_s3] sm:$0xf]  ;;  %v7922_v24 = vld [vmem:[%s12134_s4 + $0x74] sm:$0xf0]  ;;  %v10373_v11 = vld [vmem:[%s12137_s7 + $0x8] sm:$0xff] }
 0x2eb   : > { %v6920_v30 = vor.u32 %v7876_v31, %v6919_v5  ;;  %v7104_v28 = vor.u32 %v7922_v24, %v7103_v39  ;;  %v10376_v6 = vperm.slane %v10373_v11, 1  ;;  %v7151_v24 = vld [vmem:[%s12134_s4 + $0xd0] sm:$0xf] }
 0x2ec   : > { %v2542_v46 = vadd.f32 %v2541_v16, %v2493_v58  ;;  %v2446_v9 = vpop.f32.mrf.mxu3  ;;  %v7172_v16 = vor.u32 %v7937_v45, %v7169_v59  ;;  %v7096_v58 = vor.u32 %v7920_v2, %v7095_v35  ;;  %v7089_v59 = vld [vmem:[%s12134_s4 + $0x58] sm:$0xf0] }
 0x2ed   : > { %v2397_v22 = vpop.f32.mrf.mxu2  ;;  %v2497_v48 = vpop.f32.mrf.mxu0  ;;  %3236 = vmatpush.bf16.msra.mxu2 %v6920_v30 }
 0x2ee   : > { %v2398_v56 = vadd.f32 %v2397_v22, %v10112_v47  ;;  %v2576_v32 = vmax.f32 %v2542_v46, 0.0  ;;  %v2351_v47 = vadd.f32 %v10108_v50, %v10114_v26  ;;  %v7891_v50 = vld [vmem:[%s12133_s3 + $0x84] sm:$0xf]  ;;  %v6985_v26 = vld [vmem:[%s12133_s3 + $0x88] sm:$0xf0]  ;;  %v10391_v46 = vperm.slane %v10388_v44, 1 }
 0x2ef   : > { %v6988_v7 = vor.u32 %v7891_v50, %v6985_v26 }
 0x2f0   : > { %v2594_v13 = vpack.c.bf16 %v2576_v32, %v2574_v38  ;;  %v2447_v62 = vadd.f32 %v2446_v9, %v2398_v56  ;;  %v2546_v14 = vpop.f32.mrf.mxu1 }
 0x2f1   : > { %3383 = vmatpush.bf16.msra.mxu1 %v6988_v7  ;;  %3651 = vmatpush.bf16.msrb.mxu2 %v7104_v28 }
 0x2f2   : > { %2878 = vmatmul.bf16.gmra.mxu3 %v2594_v13  ;;  %2976 = vmatmul.bf16.gmra.mxu1 %v2594_v13  ;;  %v2496_v25 = vadd.f32 %v2495_v27, %v2447_v62  ;;  %v7936_v13 = vld [vmem:[%s12134_s4 + $0xe4] sm:$0xf0] }
 0x2f4   : > { %v2448_v17 = vpop.f32.mrf.mxu3  ;;  %v2545_v36 = vadd.f32 %v2544_v51, %v2496_v25  ;;  %v7919_v25 = vld [vmem:[%s12134_s4 + $0x64] sm:$0xf] }
 0x2f5   : > { %v2399_v1 = vpop.f32.mrf.mxu2  ;;  %v2898_v3 = vpop.f32.mrf.mxu0  ;;  %3798 = vmatpush.bf16.msrb.mxu1 %v7172_v16  ;;  %3652 = vmatpush.bf16.msrb.mxu2 %v7096_v58 }
 0x2f6   : > { %v2400_v40 = vadd.f32 %v2399_v1, %v2351_v47  ;;  %v2578_v54 = vmax.f32 %v2545_v36, 0.0  ;;  %v2899_v33 = vadd.f32 %v2898_v3, %v10376_v6 }
 0x2f8   : > { %v2449_v37 = vadd.f32 %v2448_v17, %v2400_v40  ;;  %v7097_v40 = vld [vmem:[%s12134_s4 + $0x68] sm:$0xf0]  ;;  %v7935_v17 = vld [vmem:[%s12134_s4 + $0xe4] sm:$0xf] }
 0x2f9   : > { %v7100_v0 = vor.u32 %v7919_v25, %v7097_v40  ;;  %v7164_v50 = vor.u32 %v7935_v17, %v7161_v21 }
 0x2fa   : > { %v2498_v19 = vadd.f32 %v2497_v48, %v2449_v37  ;;  %v7159_v48 = vld [vmem:[%s12134_s4 + $0xe0] sm:$0xf] }
 0x2fb   : > { %v7160_v51 = vor.u32 %v7936_v13, %v7159_v48  ;;  %3750 = vmatpush.bf16.msrb.mxu0 %v7100_v0  ;;  %3799 = vmatpush.bf16.msrb.mxu1 %v7164_v50  ;;  %v7916_v48 = vld [vmem:[%s12134_s4 + $0x44] sm:$0xf0] }
 0x2fc   : > { %v2547_v43 = vadd.f32 %v2546_v14, %v2498_v19 }
 0x2fd   : > { %v2800_v34 = vpop.f32.mrf.mxu2  ;;  %v2900_v49 = vpop.f32.mrf.mxu0  ;;  %3701 = vmatpush.bf16.msrb.mxu3 %v7160_v51 }
 0x2fe   : > { %v2580_v41 = vmax.f32 %v2547_v43, 0.0  ;;  %v2901_v22 = vadd.f32 %v2900_v49, %v10376_v6  ;;  %v2801_v62 = vadd.f32 %v2800_v34, %v10391_v46 }
 0x300   : > { %v2596_v4 = vpack.c.bf16 %v2580_v41, %v2578_v54  ;;  %v7088_v54 = vor.u32 %v7918_v53, %v7087_v60  ;;  %v7145_v60 = vld [vmem:[%s12134_s4 + $0xc8] sm:$0xf0] }
 0x302   : > { %2883 = vmatmul.bf16.gmra.mxu3 %v2596_v4  ;;  %2981 = vmatmul.bf16.gmra.mxu1 %v2596_v4 }
 0x303   : > { %3653 = vmatpush.bf16.msrb.mxu2 %v7088_v54 }
 0x305   : > { %v2802_v20 = vpop.f32.mrf.mxu2  ;;  %v2903_v42 = vpop.f32.mrf.mxu0 }
 0x306   : > { %v2803_v30 = vadd.f32 %v2802_v20, %v10391_v46  ;;  %v2904_v43 = vadd.f32 %v2903_v42, %v10376_v6  ;;  %v7934_v20 = vld [vmem:[%s12134_s4 + $0xd4] sm:$0xf0] }
 0x307   : > { %v7152_v42 = vor.u32 %v7934_v20, %v7151_v24  ;;  %v7071_v24 = vld [vmem:[%s12134_s4 + $0x30] sm:$0xf]  ;;  %v7914_v20 = vld [vmem:[%s12134_s4 + $0x34] sm:$0xf0] }
 0x309   : > { %3702 = vmatpush.bf16.msrb.mxu3 %v7152_v42 }
 0x30d   : > { %v10365_v61 = vpop.f32.mrf.mxu2  ;;  %v2905_v27 = vpop.f32.mrf.mxu0 }
 0x30e   : > { %v2906_v41 = vadd.f32 %v2905_v27, %v10376_v6  ;;  %v2806_v15 = vadd.f32 %v10365_v61, %v10391_v46  ;;  %v7933_v61 = vld [vmem:[%s12134_s4 + $0xd4] sm:$0xf]  ;;  %v7092_v27 = vor.u32 %v7917_v52, %v7089_v59  ;;  %v7135_v52 = vld [vmem:[%s12134_s4 + $0xb0] sm:$0xf]  ;;  %v7930_v59 = vld [vmem:[%s12134_s4 + $0xb4] sm:$0xf0] }
 0x30f   : > { %v2947_v10 = vpop.f32.mrf.mxu1 }
 0x310   : > { %v2948_v38 = vadd.f32 %v2947_v10, %v2899_v33  ;;  %v7153_v10 = vld [vmem:[%s12134_s4 + $0xd8] sm:$0xf0]  ;;  %3751 = vmatpush.bf16.msrb.mxu0 %v7092_v27 }
 0x311   : > { %v7156_v35 = vor.u32 %v7933_v61, %v7153_v10  ;;  %v7136_v61 = vor.u32 %v7930_v59, %v7135_v52 }
 0x312   : > { %v2988_v5 = vmax.f32 %v2948_v38, 0.0 }
 0x313   : > { %3800 = vmatpush.bf16.msrb.mxu1 %v7156_v35 }
 0x315   : > { %v2807_v12 = vpop.f32.mrf.mxu2  ;;  %v2849_v18 = vpop.f32.mrf.mxu3 }
 0x316   : > { %v10394_v56 = vpop.f32.mrf.mxu0  ;;  %v2850_v47 = vadd.f32 %v2849_v18, %v2801_v62  ;;  %v2808_v63 = vadd.f32 %v2807_v12, %v10391_v46 }
 0x317   : > { %v2949_v9 = vpop.f32.mrf.mxu1 }
 0x318   : > { %v2950_v32 = vadd.f32 %v2949_v9, %v2901_v22  ;;  %v2987_v19 = vmax.f32 %v2850_v47, 0.0  ;;  %v2909_v9 = vadd.f32 %v10394_v56, %v10376_v6  ;;  %v7932_v47 = vld [vmem:[%s12134_s4 + $0xc4] sm:$0xf0] }
 0x31a   : > { %v2990_v31 = vmax.f32 %v2950_v32, 0.0  ;;  %v7079_v32 = vld [vmem:[%s12134_s4 + $0x40] sm:$0xf] }
 0x31b   : > { %v7080_v51 = vor.u32 %v7916_v48, %v7079_v32  ;;  %v7137_v48 = vld [vmem:[%s12134_s4 + $0xb8] sm:$0xf0] }
 0x31c   : > { %v10404_v1 = vpack.c.bf16 %v2990_v31, %v2988_v5 }
 0x31d   : > { %v10415_v3 = vpop.f32.mrf.mxu2  ;;  %v2851_v37 = vpop.f32.mrf.mxu3  ;;  %3654 = vmatpush.bf16.msrb.mxu2 %v7080_v51 }
 0x31e   : > { %v2852_v29 = vadd.f32 %v2851_v37, %v2803_v30  ;;  %3286 = vmatmul.bf16.vlgmr.msra.gmra.mxu3 %v10404_v1  ;;  %3384 = vmatmul.bf16.vlgmr.msra.gmra.mxu1 %v10404_v1  ;;  %v2910_v26 = vpop.f32.mrf.mxu0  ;;  %v7143_v30 = vld [vmem:[%s12134_s4 + $0xc0] sm:$0xf]  ;;  %v2811_v17 = vadd.f32 %v10415_v3, %v10391_v46  ;;  %v7931_v3 = vld [vmem:[%s12134_s4 + $0xc4] sm:$0xf] }
 0x31f   : > { %v2952_v36 = vpop.f32.mrf.mxu1  ;;  %v2911_v62 = vadd.f32 %v2910_v26, %v10376_v6  ;;  %v7144_v40 = vor.u32 %v7932_v47, %v7143_v30  ;;  %v7915_v26 = vld [vmem:[%s12134_s4 + $0x44] sm:$0xf] }
 0x320   : > { %v2989_v7 = vmax.f32 %v2852_v29, 0.0  ;;  %v2953_v49 = vadd.f32 %v2952_v36, %v2904_v43  ;;  %v7081_v36 = vld [vmem:[%s12134_s4 + $0x48] sm:$0xf0] }
 0x321   : > { %3703 = vmatpush.bf16.msrb.mxu3 %v7144_v40  ;;  %v7084_v43 = vor.u32 %v7915_v26, %v7081_v36  ;;  %v7912_v40 = vld [vmem:[%s12134_s4 + $0x24] sm:$0xf0] }
 0x322   : > { %v10422_v14 = vpack.c.bf16 %v2989_v7, %v2987_v19  ;;  %v2992_v23 = vmax.f32 %v2953_v49, 0.0 }
 0x323   : > { %3752 = vmatpush.bf16.msrb.mxu0 %v7084_v43 }
 0x324   : > { %3237 = vmatmul.bf16.vlgmr.msra.gmra.mxu2 %v10422_v14  ;;  %3335 = vmatmul.bf16.vlgmr.msra.gmra.mxu0 %v10422_v14 }
 0x325   : > { %v2812_v34 = vpop.f32.mrf.mxu2  ;;  %v2854_v57 = vpop.f32.mrf.mxu3  ;;  %3704 = vmatpush.bf16.msrb.mxu3 %v7136_v61 }
 0x326   : > { %v10440_v28 = vpop.f32.mrf.mxu0  ;;  %v2855_v8 = vadd.f32 %v2854_v57, %v2806_v15  ;;  %v2813_v21 = vadd.f32 %v2812_v34, %v10391_v46  ;;  %v7148_v34 = vor.u32 %v7931_v3, %v7145_v60  ;;  %v7072_v15 = vor.u32 %v7914_v20, %v7071_v24  ;;  %v7127_v3 = vld [vmem:[%s12134_s4 + $0xa0] sm:$0xf]  ;;  %v7065_v24 = vld [vmem:[%s12134_s4 + $0x28] sm:$0xf0] }
 0x327   : > { %v2954_v4 = vpop.f32.mrf.mxu1 }
 0x328   : > { %v2955_v39 = vadd.f32 %v2954_v4, %v2906_v41  ;;  %v2991_v18 = vmax.f32 %v2855_v8, 0.0  ;;  %3801 = vmatpush.bf16.msrb.mxu1 %v7148_v34  ;;  %3655 = vmatpush.bf16.msrb.mxu2 %v7072_v15  ;;  %v7129_v15 = vld [vmem:[%s12134_s4 + $0xa8] sm:$0xf0] }
 0x32a   : > { %v2994_v55 = vmax.f32 %v2955_v39, 0.0  ;;  %v2914_v39 = vadd.f32 %v10440_v28, %v10376_v6 }
 0x32c   : > { %v10445_v45 = vpack.c.bf16 %v2994_v55, %v2992_v23 }
 0x32d   : > { %v2856_v16 = vpop.f32.mrf.mxu3  ;;  %v10461_v2 = vpop.f32.mrf.mxu2 }
 0x32e   : > { %v2857_v33 = vadd.f32 %v2856_v16, %v2808_v63  ;;  %3291 = vmatmul.bf16.gmra.mxu3 %v10445_v45  ;;  %3389 = vmatmul.bf16.gmra.mxu1 %v10445_v45  ;;  %v2915_v38 = vpop.f32.mrf.mxu0  ;;  %v2816_v16 = vadd.f32 %v10461_v2, %v10391_v46  ;;  %v7929_v2 = vld [vmem:[%s12134_s4 + $0xb4] sm:$0xf] }
 0x32f   : > { %v2957_v12 = vpop.f32.mrf.mxu1  ;;  %v2916_v23 = vadd.f32 %v2915_v38, %v10376_v6  ;;  %v7140_v51 = vor.u32 %v7929_v2, %v7137_v48 }
 0x330   : > { %v2993_v58 = vmax.f32 %v2857_v33, 0.0  ;;  %v2958_v5 = vadd.f32 %v2957_v12, %v2909_v9 }
 0x331   : > { %3802 = vmatpush.bf16.msrb.mxu1 %v7140_v51 }
 0x332   : > { %v10463_v22 = vpack.c.bf16 %v2993_v58, %v2991_v18  ;;  %v2996_v37 = vmax.f32 %v2958_v5, 0.0  ;;  %v7913_v18 = vld [vmem:[%s12134_s4 + $0x34] sm:$0xf]  ;;  %v7073_v58 = vld [vmem:[%s12134_s4 + $0x38] sm:$0xf0] }
 0x333   : > { %v7076_v32 = vor.u32 %v7913_v18, %v7073_v58 }
 0x334   : > { %3242 = vmatmul.bf16.gmra.mxu2 %v10463_v22  ;;  %3340 = vmatmul.bf16.gmra.mxu0 %v10463_v22 }
 0x335   : > { %v2859_v13 = vpop.f32.mrf.mxu3  ;;  %v2817_v25 = vpop.f32.mrf.mxu2  ;;  %3753 = vmatpush.bf16.msrb.mxu0 %v7076_v32  ;;  %v7926_v32 = vld [vmem:[%s12134_s4 + $0x94] sm:$0xf0] }
 0x336   : > { %v2860_v29 = vadd.f32 %v2859_v13, %v2811_v17  ;;  %v2918_v19 = vpop.f32.mrf.mxu0  ;;  %v2818_v33 = vadd.f32 %v2817_v25, %v10391_v46  ;;  %v7063_v25 = vld [vmem:[%s12134_s4 + $0x20] sm:$0xf] }
 0x337   : > { %v2959_v31 = vpop.f32.mrf.mxu1  ;;  %v2919_v47 = vadd.f32 %v2918_v19, %v10376_v6  ;;  %v7928_v19 = vld [vmem:[%s12134_s4 + $0xa4] sm:$0xf0] }
 0x338   : > { %v2960_v56 = vadd.f32 %v2959_v31, %v2911_v62  ;;  %v2995_v54 = vmax.f32 %v2860_v29, 0.0 }
 0x33a   : > { %v2998_v0 = vmax.f32 %v2960_v56, 0.0 }
 0x33c   : > { %v10485_v50 = vpack.c.bf16 %v2998_v0, %v2996_v37  ;;  %v7064_v37 = vor.u32 %v7912_v40, %v7063_v25  ;;  %v7909_v25 = vld [vmem:[%s12134_s4 + $0x14] sm:$0xf]  ;;  %v7057_v40 = vld [vmem:[%s12134_s4 + $0x18] sm:$0xf0] }
 0x33d   : > { %v2861_v7 = vpop.f32.mrf.mxu3  ;;  %v2820_v4 = vpop.f32.mrf.mxu2 }
 0x33e   : > { %v2862_v53 = vadd.f32 %v2861_v7, %v2813_v21  ;;  %3296 = vmatmul.bf16.gmra.mxu3 %v10485_v50  ;;  %3394 = vmatmul.bf16.gmra.mxu1 %v10485_v50  ;;  %v2920_v63 = vpop.f32.mrf.mxu0  ;;  %v7128_v7 = vor.u32 %v7928_v19, %v7127_v3  ;;  %v2821_v43 = vadd.f32 %v2820_v4, %v10391_v46  ;;  %v7927_v4 = vld [vmem:[%s12134_s4 + $0xa4] sm:$0xf] }
 0x33f   : > { %v2962_v57 = vpop.f32.mrf.mxu1  ;;  %v2921_v0 = vadd.f32 %v2920_v63, %v10376_v6  ;;  %3656 = vmatpush.bf16.msrb.mxu2 %v7064_v37 }
 0x340   : > { %v2997_v41 = vmax.f32 %v2862_v53, 0.0  ;;  %v2963_v55 = vadd.f32 %v2962_v57, %v2914_v39  ;;  %3705 = vmatpush.bf16.msrb.mxu3 %v7128_v7  ;;  %v7911_v39 = vld [vmem:[%s12134_s4 + $0x24] sm:$0xf] }
 0x342   : > { %v10501_v49 = vpack.c.bf16 %v2997_v41, %v2995_v54  ;;  %v3000_v27 = vmax.f32 %v2963_v55, 0.0  ;;  %v7132_v55 = vor.u32 %v7927_v4, %v7129_v15  ;;  %v7924_v4 = vld [vmem:[%s12134_s4 + $0x84] sm:$0xf0] }
 0x344   : > { %3247 = vmatmul.bf16.gmra.mxu2 %v10501_v49  ;;  %3345 = vmatmul.bf16.gmra.mxu0 %v10501_v49 }
 0x345   : > { %v2864_v42 = vpop.f32.mrf.mxu3  ;;  %v2822_v38 = vpop.f32.mrf.mxu2  ;;  %3803 = vmatpush.bf16.msrb.mxu1 %v7132_v55 }
 0x346   : > { %v2865_v35 = vadd.f32 %v2864_v42, %v2816_v16  ;;  %v2923_v56 = vpop.f32.mrf.mxu0  ;;  %v2823_v57 = vadd.f32 %v2822_v38, %v10391_v46  ;;  %v7068_v42 = vor.u32 %v7911_v39, %v7065_v24  ;;  %v7055_v16 = vld [vmem:[%s12134_s4 + $0x10] sm:$0xf] }
 0x347   : > { %v2964_v8 = vpop.f32.mrf.mxu1  ;;  %v2924_v61 = vadd.f32 %v2923_v56, %v10376_v6 }
 0x348   : > { %v2965_v28 = vadd.f32 %v2964_v8, %v2916_v23  ;;  %v2999_v5 = vmax.f32 %v2865_v35, 0.0  ;;  %3754 = vmatpush.bf16.msrb.mxu0 %v7068_v42  ;;  %v7049_v42 = vld [vmem:[%s12134_s4 + $0x8] sm:$0xf0] }
 0x34a   : > { %v3002_v10 = vmax.f32 %v2965_v28, 0.0 }
 0x34c   : > { %v10523_v12 = vpack.c.bf16 %v3002_v10, %v3000_v27  ;;  %v7910_v27 = vld [vmem:[%s12134_s4 + $0x14] sm:$0xf0] }
 0x34d   : > { %v2866_v9 = vpop.f32.mrf.mxu3  ;;  %v2825_v29 = vpop.f32.mrf.mxu2  ;;  %v7056_v35 = vor.u32 %v7910_v27, %v7055_v16  ;;  %v7113_v16 = vld [vmem:[%s12134_s4 + $0x88] sm:$0xf0] }
 0x34e   : > { %v2867_v13 = vadd.f32 %v2866_v9, %v2818_v33  ;;  %3301 = vmatmul.bf16.gmra.mxu3 %v10523_v12  ;;  %3399 = vmatmul.bf16.gmra.mxu1 %v10523_v12  ;;  %v2925_v34 = vpop.f32.mrf.mxu0  ;;  %v7119_v9 = vld [vmem:[%s12134_s4 + $0x90] sm:$0xf] }
 0x34f   : > { %v2967_v62 = vpop.f32.mrf.mxu1  ;;  %v2926_v18 = vadd.f32 %v2925_v34, %v10376_v6  ;;  %3657 = vmatpush.bf16.msrb.mxu2 %v7056_v35  ;;  %v7120_v48 = vor.u32 %v7926_v32, %v7119_v9  ;;  %v7908_v34 = vld [vmem:[%s12134_s4 + $0x4] sm:$0xf0] }
 0x350   : > { %v3001_v31 = vmax.f32 %v2867_v13, 0.0  ;;  %v2968_v21 = vadd.f32 %v2967_v62, %v2919_v47  ;;  %v2826_v13 = vadd.f32 %v2825_v29, %v10391_v46 }
 0x351   : > { %3706 = vmatpush.bf16.msrb.mxu3 %v7120_v48 }
 0x352   : > { %v10539_v30 = vpack.c.bf16 %v3001_v31, %v2999_v5  ;;  %v3004_v60 = vmax.f32 %v2968_v21, 0.0  ;;  %v7121_v21 = vld [vmem:[%s12134_s4 + $0x98] sm:$0xf0] }
 0x354   : > { %3252 = vmatmul.bf16.gmra.mxu2 %v10539_v30  ;;  %3350 = vmatmul.bf16.gmra.mxu0 %v10539_v30 }
 0x355   : > { %v2869_v17 = vpop.f32.mrf.mxu3  ;;  %v2827_v52 = vpop.f32.mrf.mxu2 }
 0x356   : > { %v2870_v54 = vadd.f32 %v2869_v17, %v2821_v43  ;;  %v2928_v10 = vpop.f32.mrf.mxu0  ;;  %v2828_v31 = vadd.f32 %v2827_v52, %v10391_v46  ;;  %v7925_v17 = vld [vmem:[%s12134_s4 + $0x94] sm:$0xf] }
 0x357   : > { %v2969_v26 = vpop.f32.mrf.mxu1 }
 0x358   : > { %v2970_v36 = vadd.f32 %v2969_v26, %v2921_v0  ;;  %v3003_v8 = vmax.f32 %v2870_v54, 0.0  ;;  %v7060_v0 = vor.u32 %v7909_v25, %v7057_v40  ;;  %v7124_v26 = vor.u32 %v7925_v17, %v7121_v21  ;;  %v7231_v17 = vld [vmem:[%s12135_s5 + $0x70] sm:$0xf] }
 0x35a   : > { %v3006_v53 = vmax.f32 %v2970_v36, 0.0  ;;  %3755 = vmatpush.bf16.msrb.mxu0 %v7060_v0  ;;  %3804 = vmatpush.bf16.msrb.mxu1 %v7124_v26  ;;  %v7295_v0 = vld [vmem:[%s12135_s5 + $0xf0] sm:$0xf]  ;;  %v7970_v26 = vld [vmem:[%s12135_s5 + $0xf4] sm:$0xf0] }
 0x35c   : > { %v10559_v41 = vpack.c.bf16 %v3006_v53, %v3004_v60  ;;  %v2929_v60 = vadd.f32 %v2928_v10, %v10376_v6  ;;  %v7047_v53 = vld [vmem:[%s12134_s4] sm:$0xf] }
 0x35d   : > { %v2871_v20 = vpop.f32.mrf.mxu3  ;;  %v2830_v5 = vpop.f32.mrf.mxu2  ;;  %v7048_v24 = vor.u32 %v7908_v34, %v7047_v53 }
 0x35e   : > { %v2872_v23 = vadd.f32 %v2871_v20, %v2823_v57  ;;  %3306 = vmatmul.bf16.gmra.mxu3 %v10559_v41  ;;  %3404 = vmatmul.bf16.gmra.mxu1 %v10559_v41  ;;  %v2930_v36 = vpop.f32.mrf.mxu0  ;;  %v7111_v57 = vld [vmem:[%s12134_s4 + $0x80] sm:$0xf]  ;;  %v7907_v20 = vld [vmem:[%s12134_s4 + $0x4] sm:$0xf]  ;;  %v2831_v27 = vadd.f32 %v2830_v5, %v10391_v46 }
 0x35f   : > { %v2972_v63 = vpop.f32.mrf.mxu1  ;;  %v2931_v15 = vadd.f32 %v2930_v36, %v10376_v6  ;;  %v7112_v55 = vor.u32 %v7924_v4, %v7111_v57  ;;  %3658 = vmatpush.bf16.msrb.mxu2 %v7048_v24  ;;  %v7296_v36 = vor.u32 %v7970_v26, %v7295_v0 }
 0x360   : > { %v3005_v28 = vmax.f32 %v2872_v23, 0.0  ;;  %v2973_v58 = vadd.f32 %v2972_v63, %v2924_v61  ;;  %v7052_v63 = vor.u32 %v7907_v20, %v7049_v42  ;;  %v7923_v61 = vld [vmem:[%s12134_s4 + $0x84] sm:$0xf]  ;;  %v7953_v20 = vld [vmem:[%s12135_s5 + $0x74] sm:$0xf] }
 0x361   : > { %3707 = vmatpush.bf16.msrb.mxu3 %v7112_v55  ;;  %v7116_v35 = vor.u32 %v7923_v61, %v7113_v16  ;;  %v7233_v42 = vld [vmem:[%s12135_s5 + $0x78] sm:$0xf0]  ;;  %v7968_v16 = vld [vmem:[%s12135_s5 + $0xe4] sm:$0xf0] }
 0x362   : > { %v10575_v59 = vpack.c.bf16 %v3005_v28, %v3003_v8  ;;  %v3008_v51 = vmax.f32 %v2973_v58, 0.0  ;;  %3756 = vmatpush.bf16.msrb.mxu0 %v7052_v63 }
 0x363   : > { %3805 = vmatpush.bf16.msrb.mxu1 %v7116_v35  ;;  %v7951_v35 = vld [vmem:[%s12135_s5 + $0x64] sm:$0xf] }
 0x364   : > { %3257 = vmatmul.bf16.gmra.mxu2 %v10575_v59  ;;  %3355 = vmatmul.bf16.gmra.mxu0 %v10575_v59 }
 0x365   : > { %v2874_v33 = vpop.f32.mrf.mxu3  ;;  %v2832_v54 = vpop.f32.mrf.mxu2  ;;  %4138 = vmatpush.bf16.msra.mxu3 %v7296_v36 }
 0x366   : > { %v2875_v56 = vadd.f32 %v2874_v33, %v2826_v13  ;;  %v2933_v52 = vpop.f32.mrf.mxu0 }
 0x367   : > { %v2974_v2 = vpop.f32.mrf.mxu1 }
 0x368   : > { %v2975_v38 = vadd.f32 %v2974_v2, %v2926_v18  ;;  %v3007_v19 = vmax.f32 %v2875_v56, 0.0  ;;  %v2833_v18 = vadd.f32 %v2832_v54, %v10391_v46 }
 0x36a   : > { %v3010_v62 = vmax.f32 %v2975_v38, 0.0 }
 0x36c   : > { %v10595_v47 = vpack.c.bf16 %v3010_v62, %v3008_v51 }
 0x36d   : > { %v2876_v37 = vpop.f32.mrf.mxu3  ;;  %v2835_v32 = vpop.f32.mrf.mxu2 }
 0x36e   : > { %v2877_v29 = vadd.f32 %v2876_v37, %v2828_v31  ;;  %3311 = vmatmul.bf16.gmra.mxu3 %v10595_v47  ;;  %3409 = vmatmul.bf16.gmra.mxu1 %v10595_v47  ;;  %v2935_v5 = vpop.f32.mrf.mxu0  ;;  %v2934_v31 = vadd.f32 %v2933_v52, %v10376_v6  ;;  %v7954_v37 = vld [vmem:[%s12135_s5 + $0x74] sm:$0xf0]  ;;  %v7287_v52 = vld [vmem:[%s12135_s5 + $0xe0] sm:$0xf] }
 0x36f   : > { %v2977_v3 = vpop.f32.mrf.mxu1  ;;  %v2936_v25 = vadd.f32 %v2935_v5, %v10376_v6  ;;  %v10720_v5 = vperm.slane %v10388_v44, 2 }
 0x370   : > { %v3009_v7 = vmax.f32 %v2877_v29, 0.0  ;;  %v2978_v23 = vadd.f32 %v2977_v3, %v2929_v60  ;;  %v7232_v29 = vor.u32 %v7954_v37, %v7231_v17  ;;  %v7279_v17 = vld [vmem:[%s12135_s5 + $0xd0] sm:$0xf] }
 0x372   : > { %v10611_v43 = vpack.c.bf16 %v3009_v7, %v3007_v19  ;;  %v3012_v10 = vmax.f32 %v2978_v23, 0.0  ;;  %4089 = vmatpush.bf16.msra.mxu2 %v7232_v29  ;;  %v2836_v19 = vadd.f32 %v2835_v32, %v10391_v46  ;;  %v7297_v23 = vld [vmem:[%s12135_s5 + $0xf8] sm:$0xf0] }
 0x374   : > { %3262 = vmatmul.bf16.gmra.mxu2 %v10611_v43  ;;  %3360 = vmatmul.bf16.gmra.mxu0 %v10611_v43 }
 0x375   : > { %v2879_v39 = vpop.f32.mrf.mxu3  ;;  %v2837_v3 = vpop.f32.mrf.mxu2 }
 0x376   : > { %v2880_v58 = vadd.f32 %v2879_v39, %v2831_v27  ;;  %v2838_v53 = vadd.f32 %v2837_v3, %v10391_v46  ;;  %v7236_v46 = vor.u32 %v7953_v20, %v7233_v42  ;;  %v7288_v27 = vor.u32 %v7968_v16, %v7287_v52  ;;  %v7948_v16 = vld [vmem:[%s12135_s5 + $0x44] sm:$0xf0] }
 0x377   : > { %v2979_v8 = vpop.f32.mrf.mxu1 }
 0x378   : > { %v2980_v28 = vadd.f32 %v2979_v8, %v2931_v15  ;;  %v3011_v13 = vmax.f32 %v2880_v58, 0.0  ;;  %v7969_v15 = vld [vmem:[%s12135_s5 + $0xf4] sm:$0xf]  ;;  %4187 = vmatpush.bf16.msra.mxu0 %v7236_v46  ;;  %v7223_v8 = vld [vmem:[%s12135_s5 + $0x60] sm:$0xf]  ;;  %4139 = vmatpush.bf16.msra.mxu3 %v7288_v27 }
 0x379   : > { %v7300_v63 = vor.u32 %v7969_v15, %v7297_v23  ;;  %v7967_v58 = vld [vmem:[%s12135_s5 + $0xe4] sm:$0xf] }
 0x37a   : > { %v3014_v33 = vmax.f32 %v2980_v28, 0.0  ;;  %v7952_v28 = vld [vmem:[%s12135_s5 + $0x64] sm:$0xf0] }
 0x37b   : > { %4236 = vmatpush.bf16.msra.mxu1 %v7300_v63  ;;  %v7224_v61 = vor.u32 %v7952_v28, %v7223_v8 }
 0x37c   : > { %v10643_v2 = vpack.c.bf16 %v3014_v33, %v3012_v10  ;;  %v10700_v33 = vperm.slane %v10373_v11, 2  ;;  %v7289_v11 = vld [vmem:[%s12135_s5 + $0xe8] sm:$0xf0] }
 0x37d   : > { %v2881_v38 = vpop.f32.mrf.mxu3  ;;  %4090 = vmatpush.bf16.msra.mxu2 %v7224_v61  ;;  %v7207_v61 = vld [vmem:[%s12135_s5 + $0x40] sm:$0xf] }
 0x37e   : > { %v2882_v9 = vadd.f32 %v2881_v38, %v2833_v18  ;;  %3316 = vmatmul.bf16.gmra.mxu3 %v10643_v2  ;;  %3414 = vmatmul.bf16.gmra.mxu1 %v10643_v2  ;;  %v7225_v18 = vld [vmem:[%s12135_s5 + $0x68] sm:$0xf0] }
 0x37f   : > { %v2982_v48 = vpop.f32.mrf.mxu1  ;;  %v7228_v38 = vor.u32 %v7951_v35, %v7225_v18  ;;  %v7271_v35 = vld [vmem:[%s12135_s5 + $0xc0] sm:$0xf] }
 0x380   : > { %v3013_v51 = vmax.f32 %v2882_v9, 0.0  ;;  %v2983_v40 = vadd.f32 %v2982_v48, %v2934_v31  ;;  %v7292_v9 = vor.u32 %v7967_v58, %v7289_v11  ;;  %v7215_v31 = vld [vmem:[%s12135_s5 + $0x50] sm:$0xf] }
 0x381   : > { %4188 = vmatpush.bf16.msra.mxu0 %v7228_v38 }
 0x382   : > { %v10647_v62 = vpack.c.bf16 %v3013_v51, %v3011_v13  ;;  %v3016_v7 = vmax.f32 %v2983_v40, 0.0  ;;  %4237 = vmatpush.bf16.msra.mxu1 %v7292_v9 }
 0x384   : > { %3267 = vmatmul.bf16.gmra.mxu2 %v10647_v62  ;;  %3365 = vmatmul.bf16.gmra.mxu0 %v10647_v62 }
 0x385   : > { %v2884_v56 = vpop.f32.mrf.mxu3 }
 0x386   : > { %v2885_v34 = vadd.f32 %v2884_v56, %v2836_v19  ;;  %v7950_v56 = vld [vmem:[%s12135_s5 + $0x54] sm:$0xf0] }
 0x387   : > { %v2984_v21 = vpop.f32.mrf.mxu1  ;;  %v7216_v40 = vor.u32 %v7950_v56, %v7215_v31  ;;  %v7947_v31 = vld [vmem:[%s12135_s5 + $0x44] sm:$0xf]  ;;  %v7209_v56 = vld [vmem:[%s12135_s5 + $0x48] sm:$0xf0] }
 0x388   : > { %v2985_v6 = vadd.f32 %v2984_v21, %v2936_v25  ;;  %v3015_v24 = vmax.f32 %v2885_v34, 0.0 }
 0x389   : > { %4091 = vmatpush.bf16.msra.mxu2 %v7216_v40  ;;  %v7212_v40 = vor.u32 %v7947_v31, %v7209_v56  ;;  %v7191_v31 = vld [vmem:[%s12135_s5 + $0x20] sm:$0xf]  ;;  %v7944_v56 = vld [vmem:[%s12135_s5 + $0x24] sm:$0xf0] }
 0x38a   : > { %v3018_v60 = vmax.f32 %v2985_v6, 0.0 }
 0x38c   : > { %v10667_v57 = vpack.c.bf16 %v3018_v60, %v3016_v7  ;;  %v7949_v7 = vld [vmem:[%s12135_s5 + $0x54] sm:$0xf]  ;;  %v7217_v60 = vld [vmem:[%s12135_s5 + $0x58] sm:$0xf0] }
 0x38d   : > { %v2886_v54 = vpop.f32.mrf.mxu3  ;;  %v7220_v34 = vor.u32 %v7949_v7, %v7217_v60  ;;  %v7199_v7 = vld [vmem:[%s12135_s5 + $0x30] sm:$0xf]  ;;  %v7946_v60 = vld [vmem:[%s12135_s5 + $0x34] sm:$0xf0] }
 0x38e   : > { %v2887_v39 = vadd.f32 %v2886_v54, %v2838_v53  ;;  %3321 = vmatmul.bf16.gmra.mxu3 %v10667_v57  ;;  %3419 = vmatmul.bf16.gmra.mxu1 %v10667_v57  ;;  %v7965_v54 = vld [vmem:[%s12135_s5 + $0xd4] sm:$0xf] }
 0x38f   : > { %4189 = vmatpush.bf16.msra.mxu0 %v7220_v34 }
 0x390   : > { %v3017_v4 = vmax.f32 %v2887_v39, 0.0  ;;  %v7281_v39 = vld [vmem:[%s12135_s5 + $0xd8] sm:$0xf0] }
 0x392   : > { %v10683_v55 = vpack.c.bf16 %v3017_v4, %v3015_v24  ;;  %v7284_v4 = vor.u32 %v7965_v54, %v7281_v39  ;;  %v7200_v54 = vor.u32 %v7946_v60, %v7199_v7  ;;  %v7263_v39 = vld [vmem:[%s12135_s5 + $0xb0] sm:$0xf]  ;;  %v7943_v7 = vld [vmem:[%s12135_s5 + $0x24] sm:$0xf]  ;;  %v7193_v60 = vld [vmem:[%s12135_s5 + $0x28] sm:$0xf0] }
 0x393   : > { %4190 = vmatpush.bf16.msra.mxu0 %v7212_v40 }
 0x394   : > { %3272 = vmatmul.bf16.gmra.mxu2 %v10683_v55  ;;  %3370 = vmatmul.bf16.gmra.mxu0 %v10683_v55 }
 0x395   : > { %4238 = vmatpush.bf16.msra.mxu1 %v7284_v4 }
 0x39b   : > { %v3385_v10 = vpop.f32.mrf.mxu1 }
 0x39e   : > { %3708 = vmatmul.bf16.vlgmr.msrb.gmra.mxu3 %v10404_v1  ;;  %3806 = vmatmul.bf16.vlgmr.msrb.gmra.mxu1 %v10404_v1 }
 0x3a1   : > { %v3287_v32 = vpop.f32.mrf.mxu3  ;;  %v3336_v1 = vpop.f32.mrf.mxu0 }
 0x3a2   : > { %v3337_v48 = vadd.f32 %v3336_v1, %v10700_v33 }
 0x3a3   : > { %v3387_v13 = vpop.f32.mrf.mxu1 }
 0x3a4   : > { %v3386_v51 = vadd.f32 %v3385_v10, %v3337_v48  ;;  %3659 = vmatmul.bf16.vlgmr.msrb.gmra.mxu2 %v10422_v14  ;;  %3757 = vmatmul.bf16.vlgmr.msrb.gmra.mxu0 %v10422_v14  ;;  %v7966_v14 = vld [vmem:[%s12135_s5 + $0xd4] sm:$0xf0]  ;;  %v7208_v10 = vor.u32 %v7948_v16, %v7207_v61  ;;  %v7945_v61 = vld [vmem:[%s12135_s5 + $0x34] sm:$0xf]  ;;  %v7201_v16 = vld [vmem:[%s12135_s5 + $0x38] sm:$0xf0] }
 0x3a5   : > { %v7280_v37 = vor.u32 %v7966_v14, %v7279_v17  ;;  %v7963_v17 = vld [vmem:[%s12135_s5 + $0xc4] sm:$0xf]  ;;  %v7273_v14 = vld [vmem:[%s12135_s5 + $0xc8] sm:$0xf0] }
 0x3a6   : > { %v3426_v3 = vmax.f32 %v3386_v51, 0.0  ;;  %4092 = vmatpush.bf16.msra.mxu2 %v7208_v10  ;;  %v7204_v10 = vor.u32 %v7945_v61, %v7201_v16  ;;  %v7183_v61 = vld [vmem:[%s12135_s5 + $0x10] sm:$0xf]  ;;  %v7942_v16 = vld [vmem:[%s12135_s5 + $0x14] sm:$0xf0] }
 0x3a7   : > { %v3238_v25 = vpop.f32.mrf.mxu2  ;;  %4140 = vmatpush.bf16.msra.mxu3 %v7280_v37 }
 0x3a8   : > { %v3239_v44 = vadd.f32 %v3238_v25, %v10720_v5  ;;  %4191 = vmatpush.bf16.msra.mxu0 %v7204_v10 }
 0x3a9   : > { %v3289_v0 = vpop.f32.mrf.mxu3  ;;  %v3338_v21 = vpop.f32.mrf.mxu0 }
 0x3aa   : > { %v3288_v29 = vadd.f32 %v3287_v32, %v3239_v44  ;;  %v3339_v26 = vadd.f32 %v3338_v21, %v10700_v33  ;;  %v7276_v44 = vor.u32 %v7963_v17, %v7273_v14  ;;  %4093 = vmatpush.bf16.msra.mxu2 %v7200_v54  ;;  %v7192_v17 = vor.u32 %v7944_v56, %v7191_v31  ;;  %v7255_v14 = vld [vmem:[%s12135_s5 + $0xa0] sm:$0xf]  ;;  %v7941_v31 = vld [vmem:[%s12135_s5 + $0x14] sm:$0xf]  ;;  %v7185_v56 = vld [vmem:[%s12135_s5 + $0x18] sm:$0xf0] }
 0x3ab   : > { %v3390_v6 = vpop.f32.mrf.mxu1  ;;  %v7196_v54 = vor.u32 %v7943_v7, %v7193_v60  ;;  %v7175_v7 = vld [vmem:[%s12135_s5] sm:$0xf]  ;;  %v7940_v60 = vld [vmem:[%s12135_s5 + $0x4] sm:$0xf0] }
 0x3ac   : > { %v3388_v36 = vadd.f32 %v3387_v13, %v3339_v26  ;;  %v3425_v63 = vmax.f32 %v3288_v29, 0.0  ;;  %4239 = vmatpush.bf16.msra.mxu1 %v7276_v44 }
 0x3ad   : > { %4192 = vmatpush.bf16.msra.mxu0 %v7196_v54 }
 0x3ae   : > { %v3428_v19 = vmax.f32 %v3388_v36, 0.0  ;;  %3713 = vmatmul.bf16.gmra.mxu3 %v10445_v45  ;;  %3811 = vmatmul.bf16.gmra.mxu1 %v10445_v45 }
 0x3af   : > { %v3240_v53 = vpop.f32.mrf.mxu2  ;;  %4094 = vmatpush.bf16.msra.mxu2 %v7192_v17  ;;  %v7188_v17 = vor.u32 %v7941_v31, %v7185_v56  ;;  %v7423_v31 = vld [vmem:[%s12136_s6 + $0x170] sm:$0xf]  ;;  %v8034_v56 = vld [vmem:[%s12136_s6 + $0x174] sm:$0xf0] }
 0x3b0   : > { %v10750_v24 = vpack.c.bf16 %v3428_v19, %v3426_v3  ;;  %v3241_v45 = vadd.f32 %v3240_v53, %v10720_v5 }
 0x3b1   : > { %v3292_v20 = vpop.f32.mrf.mxu3  ;;  %v3341_v42 = vpop.f32.mrf.mxu0  ;;  %4193 = vmatpush.bf16.msra.mxu0 %v7188_v17 }
 0x3b2   : > { %v3290_v46 = vadd.f32 %v3289_v0, %v3241_v45  ;;  %v3342_v15 = vadd.f32 %v3341_v42, %v10700_v33 }
 0x3b3   : > { %v3392_v23 = vpop.f32.mrf.mxu1 }
 0x3b4   : > { %v3427_v8 = vmax.f32 %v3290_v46, 0.0  ;;  %v3391_v28 = vadd.f32 %v3390_v6, %v3342_v15  ;;  %3664 = vmatmul.bf16.gmra.mxu2 %v10463_v22  ;;  %3762 = vmatmul.bf16.gmra.mxu0 %v10463_v22  ;;  %v7964_v22 = vld [vmem:[%s12135_s5 + $0xc4] sm:$0xf0] }
 0x3b5   : > { %v7272_v58 = vor.u32 %v7964_v22, %v7271_v35  ;;  %v7961_v35 = vld [vmem:[%s12135_s5 + $0xb4] sm:$0xf]  ;;  %v7265_v22 = vld [vmem:[%s12135_s5 + $0xb8] sm:$0xf0] }
 0x3b6   : > { %v10756_v52 = vpack.c.bf16 %v3427_v8, %v3425_v63  ;;  %v3430_v13 = vmax.f32 %v3391_v28, 0.0 }
 0x3b7   : > { %v3243_v27 = vpop.f32.mrf.mxu2  ;;  %4141 = vmatpush.bf16.msra.mxu3 %v7272_v58 }
 0x3b8   : > { %v3244_v18 = vadd.f32 %v3243_v27, %v10720_v5 }
 0x3b9   : > { %v3294_v38 = vpop.f32.mrf.mxu3  ;;  %v3343_v11 = vpop.f32.mrf.mxu0 }
 0x3ba   : > { %v3293_v9 = vadd.f32 %v3292_v20, %v3244_v18  ;;  %v3344_v32 = vadd.f32 %v3343_v11, %v10700_v33  ;;  %v7268_v18 = vor.u32 %v7961_v35, %v7265_v22  ;;  %v7184_v35 = vor.u32 %v7942_v16, %v7183_v61  ;;  %v7247_v22 = vld [vmem:[%s12135_s5 + $0x90] sm:$0xf] }
 0x3bb   : > { %v3395_v1 = vpop.f32.mrf.mxu1 }
 0x3bc   : > { %v3393_v48 = vadd.f32 %v3392_v23, %v3344_v32  ;;  %v3429_v36 = vmax.f32 %v3293_v9, 0.0  ;;  %4240 = vmatpush.bf16.msra.mxu1 %v7268_v18  ;;  %4095 = vmatpush.bf16.msra.mxu2 %v7184_v35  ;;  %v7939_v35 = vld [vmem:[%s12135_s5 + $0x4] sm:$0xf] }
 0x3be   : > { %v3432_v51 = vmax.f32 %v3393_v48, 0.0  ;;  %3718 = vmatmul.bf16.gmra.mxu3 %v10485_v50  ;;  %3816 = vmatmul.bf16.gmra.mxu1 %v10485_v50 }
 0x3bf   : > { %v3245_v25 = vpop.f32.mrf.mxu2 }
 0x3c0   : > { %v3246_v50 = vadd.f32 %v3245_v25, %v10720_v5  ;;  %v10787_v37 = vpack.c.bf16 %v3432_v51, %v3430_v13 }
 0x3c1   : > { %v3297_v0 = vpop.f32.mrf.mxu3  ;;  %v3346_v21 = vpop.f32.mrf.mxu0 }
 0x3c2   : > { %v3295_v29 = vadd.f32 %v3294_v38, %v3246_v50  ;;  %v3347_v26 = vadd.f32 %v3346_v21, %v10700_v33 }
 0x3c3   : > { %v3397_v6 = vpop.f32.mrf.mxu1 }
 0x3c4   : > { %v3431_v3 = vmax.f32 %v3295_v29, 0.0  ;;  %v3396_v19 = vadd.f32 %v3395_v1, %v3347_v26  ;;  %3669 = vmatmul.bf16.gmra.mxu2 %v10501_v49  ;;  %3767 = vmatmul.bf16.gmra.mxu0 %v10501_v49  ;;  %v7962_v49 = vld [vmem:[%s12135_s5 + $0xb4] sm:$0xf0] }
 0x3c5   : > { %v7264_v4 = vor.u32 %v7962_v49, %v7263_v39  ;;  %v7959_v39 = vld [vmem:[%s12135_s5 + $0xa4] sm:$0xf]  ;;  %v7257_v49 = vld [vmem:[%s12135_s5 + $0xa8] sm:$0xf0] }
 0x3c6   : > { %v10798_v53 = vpack.c.bf16 %v3431_v3, %v3429_v36  ;;  %v3434_v8 = vmax.f32 %v3396_v19, 0.0 }
 0x3c7   : > { %v3248_v34 = vpop.f32.mrf.mxu2  ;;  %4142 = vmatpush.bf16.msra.mxu3 %v7264_v4 }
 0x3c8   : > { %v3249_v45 = vadd.f32 %v3248_v34, %v10720_v5 }
 0x3c9   : > { %v3299_v20 = vpop.f32.mrf.mxu3  ;;  %v3348_v42 = vpop.f32.mrf.mxu0 }
 0x3ca   : > { %v3298_v46 = vadd.f32 %v3297_v0, %v3249_v45  ;;  %v3349_v15 = vadd.f32 %v3348_v42, %v10700_v33  ;;  %v7260_v45 = vor.u32 %v7959_v39, %v7257_v49  ;;  %v7176_v39 = vor.u32 %v7940_v60, %v7175_v7  ;;  %v7239_v49 = vld [vmem:[%s12135_s5 + $0x80] sm:$0xf]  ;;  %v8033_v7 = vld [vmem:[%s12136_s6 + $0x174] sm:$0xf]  ;;  %v7425_v60 = vld [vmem:[%s12136_s6 + $0x178] sm:$0xf0] }
 0x3cb   : > { %v3400_v23 = vpop.f32.mrf.mxu1 }
 0x3cc   : > { %v3398_v63 = vadd.f32 %v3397_v6, %v3349_v15  ;;  %v3433_v48 = vmax.f32 %v3298_v46, 0.0  ;;  %4241 = vmatpush.bf16.msra.mxu1 %v7260_v45  ;;  %4096 = vmatpush.bf16.msra.mxu2 %v7176_v39  ;;  %v7428_v39 = vor.u32 %v8033_v7, %v7425_v60 }
 0x3ce   : > { %v3436_v28 = vmax.f32 %v3398_v63, 0.0  ;;  %3723 = vmatmul.bf16.gmra.mxu3 %v10523_v12  ;;  %3821 = vmatmul.bf16.gmra.mxu1 %v10523_v12 }
 0x3cf   : > { %v3250_v27 = vpop.f32.mrf.mxu2 }
 0x3d0   : > { %v3251_v12 = vadd.f32 %v3250_v27, %v10720_v5  ;;  %v10823_v58 = vpack.c.bf16 %v3436_v28, %v3434_v8 }
 0x3d1   : > { %v3302_v38 = vpop.f32.mrf.mxu3  ;;  %v3351_v11 = vpop.f32.mrf.mxu0 }
 0x3d2   : > { %v3300_v9 = vadd.f32 %v3299_v20, %v3251_v12  ;;  %v3352_v32 = vadd.f32 %v3351_v11, %v10700_v33 }
 0x3d3   : > { %v3402_v1 = vpop.f32.mrf.mxu1 }
 0x3d4   : > { %v3435_v13 = vmax.f32 %v3300_v9, 0.0  ;;  %v3401_v51 = vadd.f32 %v3400_v23, %v3352_v32  ;;  %3674 = vmatmul.bf16.gmra.mxu2 %v10539_v30  ;;  %3772 = vmatmul.bf16.gmra.mxu0 %v10539_v30  ;;  %v7960_v30 = vld [vmem:[%s12135_s5 + $0xa4] sm:$0xf0] }
 0x3d5   : > { %v7256_v44 = vor.u32 %v7960_v30, %v7255_v14  ;;  %v7957_v14 = vld [vmem:[%s12135_s5 + $0x94] sm:$0xf]  ;;  %v7249_v30 = vld [vmem:[%s12135_s5 + $0x98] sm:$0xf0] }
 0x3d6   : > { %v10834_v25 = vpack.c.bf16 %v3435_v13, %v3433_v48  ;;  %v3438_v3 = vmax.f32 %v3401_v51, 0.0 }
 0x3d7   : > { %v3253_v40 = vpop.f32.mrf.mxu2  ;;  %4143 = vmatpush.bf16.msra.mxu3 %v7256_v44 }
 0x3d8   : > { %v3254_v50 = vadd.f32 %v3253_v40, %v10720_v5 }
 0x3d9   : > { %v3304_v0 = vpop.f32.mrf.mxu3  ;;  %v3353_v21 = vpop.f32.mrf.mxu0 }
 0x3da   : > { %v3303_v29 = vadd.f32 %v3302_v38, %v3254_v50  ;;  %v3354_v26 = vadd.f32 %v3353_v21, %v10700_v33  ;;  %v7252_v50 = vor.u32 %v7957_v14, %v7249_v30  ;;  %v7424_v14 = vor.u32 %v8034_v56, %v7423_v31  ;;  %v7487_v30 = vld [vmem:[%s12136_s6 + $0x1f0] sm:$0xf] }
 0x3db   : > { %v3405_v6 = vpop.f32.mrf.mxu1 }
 0x3dc   : > { %v3403_v36 = vadd.f32 %v3402_v1, %v3354_v26  ;;  %v3437_v63 = vmax.f32 %v3303_v29, 0.0  ;;  %4242 = vmatpush.bf16.msra.mxu1 %v7252_v50  ;;  %4737 = vmatpush.bf16.msrb.mxu2 %v7424_v14 }
 0x3de   : > { %v3440_v19 = vmax.f32 %v3403_v36, 0.0  ;;  %3728 = vmatmul.bf16.gmra.mxu3 %v10559_v41  ;;  %3826 = vmatmul.bf16.gmra.mxu1 %v10559_v41 }
 0x3df   : > { %v3255_v34 = vpop.f32.mrf.mxu2 }
 0x3e0   : > { %v3256_v41 = vadd.f32 %v3255_v34, %v10720_v5  ;;  %v10859_v4 = vpack.c.bf16 %v3440_v19, %v3438_v3 }
 0x3e1   : > { %v3307_v20 = vpop.f32.mrf.mxu3  ;;  %v3356_v42 = vpop.f32.mrf.mxu0 }
 0x3e2   : > { %v3305_v46 = vadd.f32 %v3304_v0, %v3256_v41  ;;  %v3357_v15 = vadd.f32 %v3356_v42, %v10700_v33 }
 0x3e3   : > { %v3407_v23 = vpop.f32.mrf.mxu1 }
 0x3e4   : > { %v3439_v8 = vmax.f32 %v3305_v46, 0.0  ;;  %v3406_v28 = vadd.f32 %v3405_v6, %v3357_v15  ;;  %3679 = vmatmul.bf16.gmra.mxu2 %v10575_v59  ;;  %3777 = vmatmul.bf16.gmra.mxu0 %v10575_v59  ;;  %v7958_v59 = vld [vmem:[%s12135_s5 + $0x94] sm:$0xf0]  ;;  %v7955_v46 = vld [vmem:[%s12135_s5 + $0x84] sm:$0xf] }
 0x3e5   : > { %v7248_v18 = vor.u32 %v7958_v59, %v7247_v22  ;;  %v7241_v15 = vld [vmem:[%s12135_s5 + $0x88] sm:$0xf0] }
 0x3e6   : > { %v10870_v27 = vpack.c.bf16 %v3439_v8, %v3437_v63  ;;  %v3442_v13 = vmax.f32 %v3406_v28, 0.0  ;;  %v7244_v8 = vor.u32 %v7955_v46, %v7241_v15  ;;  %v7177_v22 = vld [vmem:[%s12135_s5 + $0x8] sm:$0xf0] }
 0x3e7   : > { %v3258_v10 = vpop.f32.mrf.mxu2  ;;  %4144 = vmatpush.bf16.msra.mxu3 %v7248_v18 }
 0x3e8   : > { %v3259_v12 = vadd.f32 %v3258_v10, %v10720_v5  ;;  %4243 = vmatpush.bf16.msra.mxu1 %v7244_v8 }
 0x3e9   : > { %v3309_v38 = vpop.f32.mrf.mxu3  ;;  %v3358_v11 = vpop.f32.mrf.mxu0 }
 0x3ea   : > { %v3308_v9 = vadd.f32 %v3307_v20, %v3259_v12  ;;  %v3359_v32 = vadd.f32 %v3358_v11, %v10700_v33  ;;  %v7180_v12 = vor.u32 %v7939_v35, %v7177_v22 }
 0x3eb   : > { %v3410_v1 = vpop.f32.mrf.mxu1 }
 0x3ec   : > { %v3408_v48 = vadd.f32 %v3407_v23, %v3359_v32  ;;  %v3441_v36 = vmax.f32 %v3308_v9, 0.0  ;;  %4194 = vmatpush.bf16.msra.mxu0 %v7180_v12 }
 0x3ee   : > { %v3444_v51 = vmax.f32 %v3408_v48, 0.0  ;;  %3733 = vmatmul.bf16.gmra.mxu3 %v10595_v47  ;;  %3831 = vmatmul.bf16.gmra.mxu1 %v10595_v47 }
 0x3ef   : > { %v3260_v40 = vpop.f32.mrf.mxu2 }
 0x3f0   : > { %v3261_v47 = vadd.f32 %v3260_v40, %v10720_v5  ;;  %v10895_v44 = vpack.c.bf16 %v3444_v51, %v3442_v13  ;;  %4835 = vmatpush.bf16.msrb.mxu0 %v7428_v39  ;;  %v8030_v39 = vld [vmem:[%s12136_s6 + $0x154] sm:$0xf0] }
 0x3f1   : > { %v3312_v0 = vpop.f32.mrf.mxu3  ;;  %v3361_v21 = vpop.f32.mrf.mxu0 }
 0x3f2   : > { %v3310_v29 = vadd.f32 %v3309_v38, %v3261_v47  ;;  %v3362_v26 = vadd.f32 %v3361_v21, %v10700_v33 }
 0x3f3   : > { %v3412_v6 = vpop.f32.mrf.mxu1 }
 0x3f4   : > { %v3443_v3 = vmax.f32 %v3310_v29, 0.0  ;;  %v3411_v19 = vadd.f32 %v3410_v1, %v3362_v26  ;;  %3684 = vmatmul.bf16.gmra.mxu2 %v10611_v43  ;;  %3782 = vmatmul.bf16.gmra.mxu0 %v10611_v43  ;;  %v7956_v43 = vld [vmem:[%s12135_s5 + $0x84] sm:$0xf0] }
 0x3f5   : > { %v7240_v45 = vor.u32 %v7956_v43, %v7239_v49  ;;  %v8049_v49 = vld [vmem:[%s12136_s6 + $0x1f4] sm:$0xf]  ;;  %v7489_v43 = vld [vmem:[%s12136_s6 + $0x1f8] sm:$0xf0] }
 0x3f6   : > { %v10906_v34 = vpack.c.bf16 %v3443_v3, %v3441_v36  ;;  %v3446_v16 = vmax.f32 %v3411_v19, 0.0 }
 0x3f7   : > { %v3263_v54 = vpop.f32.mrf.mxu2  ;;  %4145 = vmatpush.bf16.msra.mxu3 %v7240_v45 }
 0x3f8   : > { %v3264_v41 = vadd.f32 %v3263_v54, %v10720_v5 }
 0x3f9   : > { %v3314_v20 = vpop.f32.mrf.mxu3  ;;  %v3363_v42 = vpop.f32.mrf.mxu0 }
 0x3fa   : > { %v3313_v23 = vadd.f32 %v3312_v0, %v3264_v41  ;;  %v3364_v63 = vadd.f32 %v3363_v42, %v10700_v33  ;;  %v7492_v41 = vor.u32 %v8049_v49, %v7489_v43 }
 0x3fb   : > { %v3415_v28 = vpop.f32.mrf.mxu1 }
 0x3fc   : > { %v3413_v61 = vadd.f32 %v3412_v6, %v3364_v63  ;;  %v3445_v48 = vmax.f32 %v3313_v23, 0.0  ;;  %4884 = vmatpush.bf16.msrb.mxu1 %v7492_v41  ;;  %v8046_v41 = vld [vmem:[%s12136_s6 + $0x1d4] sm:$0xf0] }
 0x3fe   : > { %v3448_v10 = vmax.f32 %v3413_v61, 0.0  ;;  %3738 = vmatmul.bf16.gmra.mxu3 %v10643_v2  ;;  %3836 = vmatmul.bf16.gmra.mxu1 %v10643_v2  ;;  %v7415_v61 = vld [vmem:[%s12136_s6 + $0x160] sm:$0xf] }
 0x3ff   : > { %v3265_v59 = vpop.f32.mrf.mxu2 }
 0x400   : > { %v3266_v18 = vadd.f32 %v3265_v59, %v10720_v5  ;;  %v10931_v38 = vpack.c.bf16 %v3448_v10, %v3446_v16  ;;  %v8032_v16 = vld [vmem:[%s12136_s6 + $0x164] sm:$0xf0]  ;;  %v7479_v59 = vld [vmem:[%s12136_s6 + $0x1e0] sm:$0xf] }
 0x401   : > { %v3317_v11 = vpop.f32.mrf.mxu3  ;;  %v3366_v9 = vpop.f32.mrf.mxu0  ;;  %v7416_v22 = vor.u32 %v8032_v16, %v7415_v61 }
 0x402   : > { %v3315_v32 = vadd.f32 %v3314_v20, %v3266_v18  ;;  %v3367_v2 = vadd.f32 %v3366_v9, %v10700_v33 }
 0x403   : > { %v3417_v1 = vpop.f32.mrf.mxu1  ;;  %4738 = vmatpush.bf16.msrb.mxu2 %v7416_v22 }
 0x404   : > { %v3447_v13 = vmax.f32 %v3315_v32, 0.0  ;;  %v3416_v51 = vadd.f32 %v3415_v28, %v3367_v2  ;;  %3689 = vmatmul.bf16.gmra.mxu2 %v10647_v62  ;;  %3787 = vmatmul.bf16.gmra.mxu0 %v10647_v62  ;;  %v8050_v62 = vld [vmem:[%s12136_s6 + $0x1f4] sm:$0xf0] }
 0x405   : > { %v7488_v50 = vor.u32 %v8050_v62, %v7487_v30  ;;  %v8047_v62 = vld [vmem:[%s12136_s6 + $0x1e4] sm:$0xf] }
 0x406   : > { %v10942_v40 = vpack.c.bf16 %v3447_v13, %v3445_v48  ;;  %v3450_v3 = vmax.f32 %v3416_v51, 0.0  ;;  %v10991_v13 = vld [vmem:[%s12137_s7 + $0x8] sm:$0xff] }
 0x407   : > { %v3268_v17 = vpop.f32.mrf.mxu2  ;;  %4786 = vmatpush.bf16.msrb.mxu3 %v7488_v50  ;;  %v10994_v51 = vperm.slane %v10991_v13, 3 }
 0x408   : > { %v3269_v47 = vadd.f32 %v3268_v17, %v10720_v5  ;;  %v7417_v17 = vld [vmem:[%s12136_s6 + $0x168] sm:$0xf0] }
 0x409   : > { %v3319_v0 = vpop.f32.mrf.mxu3  ;;  %v3368_v21 = vpop.f32.mrf.mxu0 }
 0x40a   : > { %v3318_v29 = vadd.f32 %v3317_v11, %v3269_v47  ;;  %v3369_v26 = vadd.f32 %v3368_v21, %v10700_v33  ;;  %v7481_v47 = vld [vmem:[%s12136_s6 + $0x1e8] sm:$0xf0] }
 0x40b   : > { %v3420_v6 = vpop.f32.mrf.mxu1  ;;  %v7484_v50 = vor.u32 %v8047_v62, %v7481_v47 }
 0x40c   : > { %v3418_v36 = vadd.f32 %v3417_v1, %v3369_v26  ;;  %v3449_v63 = vmax.f32 %v3318_v29, 0.0 }
 0x40d   : > { %4885 = vmatpush.bf16.msrb.mxu1 %v7484_v50 }
 0x40e   : > { %v3452_v19 = vmax.f32 %v3418_v36, 0.0  ;;  %3743 = vmatmul.bf16.gmra.mxu3 %v10667_v57  ;;  %3841 = vmatmul.bf16.gmra.mxu1 %v10667_v57 }
 0x40f   : > { %v3270_v54 = vpop.f32.mrf.mxu2 }
 0x410   : > { %v3271_v57 = vadd.f32 %v3270_v54, %v10720_v5  ;;  %v10967_v45 = vpack.c.bf16 %v3452_v19, %v3450_v3  ;;  %v7407_v54 = vld [vmem:[%s12136_s6 + $0x150] sm:$0xf] }
 0x411   : > { %v3322_v20 = vpop.f32.mrf.mxu3  ;;  %v3371_v42 = vpop.f32.mrf.mxu0  ;;  %v7408_v43 = vor.u32 %v8030_v39, %v7407_v54 }
 0x412   : > { %v3320_v46 = vadd.f32 %v3319_v0, %v3271_v57  ;;  %v3372_v15 = vadd.f32 %v3371_v42, %v10700_v33  ;;  %v7471_v57 = vld [vmem:[%s12136_s6 + $0x1d0] sm:$0xf] }
 0x413   : > { %v3422_v23 = vpop.f32.mrf.mxu1  ;;  %v7472_v42 = vor.u32 %v8046_v41, %v7471_v57  ;;  %4739 = vmatpush.bf16.msrb.mxu2 %v7408_v43 }
 0x414   : > { %v3451_v8 = vmax.f32 %v3320_v46, 0.0  ;;  %v3421_v28 = vadd.f32 %v3420_v6, %v3372_v15  ;;  %3694 = vmatmul.bf16.gmra.mxu2 %v10683_v55  ;;  %3792 = vmatmul.bf16.gmra.mxu0 %v10683_v55  ;;  %v8048_v55 = vld [vmem:[%s12136_s6 + $0x1e4] sm:$0xf0] }
 0x415   : > { %v7480_v18 = vor.u32 %v8048_v55, %v7479_v59 }
 0x416   : > { %v10978_v10 = vpack.c.bf16 %v3451_v8, %v3449_v63  ;;  %v3454_v31 = vmax.f32 %v3421_v28, 0.0 }
 0x417   : > { %v3273_v35 = vpop.f32.mrf.mxu2  ;;  %4787 = vmatpush.bf16.msrb.mxu3 %v7480_v18  ;;  %v7409_v18 = vld [vmem:[%s12136_s6 + $0x158] sm:$0xf0] }
 0x418   : > { %v3274_v12 = vadd.f32 %v3273_v35, %v10720_v5 }
 0x419   : > { %v3324_v11 = vpop.f32.mrf.mxu3  ;;  %v3373_v9 = vpop.f32.mrf.mxu0 }
 0x41a   : > { %v3323_v32 = vadd.f32 %v3322_v20, %v3274_v12  ;;  %v3374_v2 = vadd.f32 %v3373_v9, %v10700_v33  ;;  %v8031_v33 = vld [vmem:[%s12136_s6 + $0x164] sm:$0xf]  ;;  %v8029_v12 = vld [vmem:[%s12136_s6 + $0x154] sm:$0xf] }
 0x41b   : > { %v3807_v1 = vpop.f32.mrf.mxu1  ;;  %v7420_v30 = vor.u32 %v8031_v33, %v7417_v17  ;;  %4788 = vmatpush.bf16.msrb.mxu3 %v7472_v42  ;;  %v7412_v9 = vor.u32 %v8029_v12, %v7409_v18 }
 0x41c   : > { %v3423_v48 = vadd.f32 %v3422_v23, %v3374_v2  ;;  %v3453_v3 = vmax.f32 %v3323_v32, 0.0  ;;  %v11040_v23 = vperm.slane %v10991_v13, 6  ;;  %v8045_v32 = vld [vmem:[%s12136_s6 + $0x1d4] sm:$0xf] }
 0x41d   : > { %4836 = vmatpush.bf16.msrb.mxu0 %v7420_v30 }
 0x41e   : > { %v3456_v56 = vmax.f32 %v3423_v48, 0.0  ;;  %4146 = vmatmul.bf16.vlgmr.msra.gmra.mxu3 %v10750_v24  ;;  %4244 = vmatmul.bf16.vlgmr.msra.gmra.mxu1 %v10750_v24 }
 0x41f   : > { %v3275_v14 = vpop.f32.mrf.mxu2 }
 0x420   : > { %v3276_v24 = vadd.f32 %v3275_v14, %v10720_v5  ;;  %v11011_v0 = vpack.c.bf16 %v3456_v56, %v3454_v31  ;;  %v11019_v5 = vld [vmem:[%s12137_s7] sm:$0xff] }
 0x421   : > { %v3709_v21 = vpop.f32.mrf.mxu3  ;;  %v3758_v29 = vpop.f32.mrf.mxu0  ;;  %v11022_v7 = vperm.slane %v11019_v5, 3  ;;  %v11044_v61 = vperm.slane %v11019_v5, 6  ;;  %4837 = vmatpush.bf16.msrb.mxu0 %v7412_v9 }
 0x422   : > { %v3325_v26 = vadd.f32 %v3324_v11, %v3276_v24  ;;  %v3759_v6 = vadd.f32 %v3758_v29, %v10994_v51  ;;  %v8028_v29 = vld [vmem:[%s12136_s6 + $0x144] sm:$0xf0] }
 0x423   : > { %v3809_v36 = vpop.f32.mrf.mxu1 }
 0x424   : > { %v3455_v19 = vmax.f32 %v3325_v26, 0.0  ;;  %4097 = vmatmul.bf16.vlgmr.msra.gmra.mxu2 %v10756_v52  ;;  %4195 = vmatmul.bf16.vlgmr.msra.gmra.mxu0 %v10756_v52  ;;  %v3808_v60 = vadd.f32 %v3807_v1, %v3759_v6 }
 0x426   : > { %v11030_v49 = vpack.c.bf16 %v3455_v19, %v3453_v3  ;;  %v3848_v63 = vmax.f32 %v3808_v60, 0.0 }
 0x427   : > { %v3660_v52 = vpop.f32.mrf.mxu2 }
 0x428   : > { %v3661_v20 = vadd.f32 %v3660_v52, %v11022_v7  ;;  %v4288_v55 = vmul.f32 %v11040_v23, %v3848_v63  ;;  %v8027_v63 = vld [vmem:[%s12136_s6 + $0x144] sm:$0xf] }
 0x429   : > { %v3711_v46 = vpop.f32.mrf.mxu3  ;;  %v3760_v15 = vpop.f32.mrf.mxu0 }
 0x42a   : > { %v3710_v8 = vadd.f32 %v3709_v21, %v3661_v20  ;;  %v3761_v28 = vadd.f32 %v3760_v15, %v10994_v51  ;;  %v7399_v21 = vld [vmem:[%s12136_s6 + $0x140] sm:$0xf] }
 0x42b   : > { %v3812_v16 = vpop.f32.mrf.mxu1  ;;  %v7400_v6 = vor.u32 %v8028_v29, %v7399_v21 }
 0x42c   : > { %v3847_v35 = vmax.f32 %v3710_v8, 0.0  ;;  %v3810_v22 = vadd.f32 %v3809_v36, %v3761_v28  ;;  %v7463_v36 = vld [vmem:[%s12136_s6 + $0x1c0] sm:$0xf]  ;;  %v7401_v8 = vld [vmem:[%s12136_s6 + $0x148] sm:$0xf0] }
 0x42d   : > { %4740 = vmatpush.bf16.msrb.mxu2 %v7400_v6 }
 0x42e   : > { %4151 = vmatmul.bf16.gmra.mxu3 %v10787_v37  ;;  %4249 = vmatmul.bf16.gmra.mxu1 %v10787_v37  ;;  %v4287_v59 = vmul.f32 %v11044_v61, %v3847_v35  ;;  %v7473_v37 = vld [vmem:[%s12136_s6 + $0x1d8] sm:$0xf0]  ;;  %v3850_v33 = vmax.f32 %v3810_v22, 0.0  ;;  %v8043_v35 = vld [vmem:[%s12136_s6 + $0x1c4] sm:$0xf] }
 0x42f   : > { %v3662_v11 = vpop.f32.mrf.mxu2  ;;  %v7476_v48 = vor.u32 %v8045_v32, %v7473_v37 }
 0x430   : > { %v3663_v2 = vadd.f32 %v3662_v11, %v11022_v7  ;;  %v4319_v1 = vadd.f32 %v4288_v55, %v4287_v59  ;;  %v4290_v50 = vmul.f32 %v11040_v23, %v3850_v33  ;;  %v8026_v33 = vld [vmem:[%s12136_s6 + $0x134] sm:$0xf0] }
 0x431   : > { %v3714_v31 = vpop.f32.mrf.mxu3  ;;  %v3763_v56 = vpop.f32.mrf.mxu0  ;;  %4886 = vmatpush.bf16.msrb.mxu1 %v7476_v48 }
 0x432   : > { %v3712_v17 = vadd.f32 %v3711_v46, %v3663_v2  ;;  %v3764_v14 = vadd.f32 %v3763_v56, %v10994_v51  ;;  %4320 = vadd.xlane.f32.xlu0 %v4319_v1  ;;  %v7391_v56 = vld [vmem:[%s12136_s6 + $0x130] sm:$0xf] }
 0x433   : > { %v3814_v30 = vpop.f32.mrf.mxu1 }
 0x434   : > { %v3849_v62 = vmax.f32 %v3712_v17, 0.0  ;;  %4102 = vmatmul.bf16.gmra.mxu2 %v10798_v53  ;;  %4200 = vmatmul.bf16.gmra.mxu0 %v10798_v53  ;;  %v3813_v47 = vadd.f32 %v3812_v16, %v3764_v14  ;;  %v8044_v53 = vld [vmem:[%s12136_s6 + $0x1c4] sm:$0xf0]  ;;  %v7404_v16 = vor.u32 %v8027_v63, %v7401_v8  ;;  %v7392_v14 = vor.u32 %v8026_v33, %v7391_v56 }
 0x435   : > { %v7464_v60 = vor.u32 %v8044_v53, %v7463_v36 }
 0x436   : > { %v4289_v24 = vmul.f32 %v11044_v61, %v3849_v62  ;;  %v3852_v52 = vmax.f32 %v3813_v47, 0.0  ;;  %4838 = vmatpush.bf16.msrb.mxu0 %v7404_v16  ;;  %4741 = vmatpush.bf16.msrb.mxu2 %v7392_v14 }
 0x437   : > { %v3665_v26 = vpop.f32.mrf.mxu2  ;;  %4789 = vmatpush.bf16.msrb.mxu3 %v7464_v60 }
 0x438   : > { %v3666_v3 = vadd.f32 %v3665_v26, %v11022_v7  ;;  %v4322_v19 = vadd.f32 %v4290_v50, %v4289_v24  ;;  %v4292_v15 = vmul.f32 %v11040_v23, %v3852_v52 }
 0x439   : > { %v3716_v54 = vpop.f32.mrf.mxu3  ;;  %v3765_v39 = vpop.f32.mrf.mxu0 }
 0x43a   : > { %v3715_v43 = vadd.f32 %v3714_v31, %v3666_v3  ;;  %v3766_v57 = vadd.f32 %v3765_v39, %v10994_v51  ;;  %4323 = vadd.xlane.f32.xlu0 %v4322_v19  ;;  %v7393_v39 = vld [vmem:[%s12136_s6 + $0x138] sm:$0xf0] }
 0x43b   : > { %v3817_v41 = vpop.f32.mrf.mxu1 }
 0x43c   : > { %v3851_v20 = vmax.f32 %v3715_v43, 0.0  ;;  %v3815_v42 = vadd.f32 %v3814_v30, %v3766_v57  ;;  %v7455_v30 = vld [vmem:[%s12136_s6 + $0x1b0] sm:$0xf]  ;;  %v8041_v57 = vld [vmem:[%s12136_s6 + $0x1b4] sm:$0xf] }
 0x43e   : > { %4156 = vmatmul.bf16.gmra.mxu3 %v10823_v58  ;;  %4254 = vmatmul.bf16.gmra.mxu1 %v10823_v58  ;;  %v4291_v46 = vmul.f32 %v11044_v61, %v3851_v20  ;;  %v7465_v58 = vld [vmem:[%s12136_s6 + $0x1c8] sm:$0xf0]  ;;  %v3854_v11 = vmax.f32 %v3815_v42, 0.0 }
 0x43f   : > { %v3667_v28 = vpop.f32.mrf.mxu2  ;;  %v7468_v55 = vor.u32 %v8043_v35, %v7465_v58 }
 0x440   : > { %v3668_v22 = vadd.f32 %v3667_v28, %v11022_v7  ;;  %v4325_v59 = vadd.f32 %v4292_v15, %v4291_v46  ;;  %v4294_v31 = vmul.f32 %v11040_v23, %v3854_v11 }
 0x441   : > { %v3719_v12 = vpop.f32.mrf.mxu3  ;;  %v3768_v18 = vpop.f32.mrf.mxu0  ;;  %4887 = vmatpush.bf16.msrb.mxu1 %v7468_v55  ;;  %v7383_v55 = vld [vmem:[%s12136_s6 + $0x120] sm:$0xf] }
 0x442   : > { %v3717_v9 = vadd.f32 %v3716_v54, %v3668_v22  ;;  %v3769_v32 = vadd.f32 %v3768_v18, %v10994_v51  ;;  %4326 = vadd.xlane.f32.xlu1 %v4325_v59  ;;  %v8025_v54 = vld [vmem:[%s12136_s6 + $0x134] sm:$0xf] }
 0x443   : > { %v3819_v37 = vpop.f32.mrf.mxu1  ;;  %v7396_v43 = vor.u32 %v8025_v54, %v7393_v39 }
 0x444   : > { %v3853_v2 = vmax.f32 %v3717_v9, 0.0  ;;  %4107 = vmatmul.bf16.gmra.mxu2 %v10834_v25  ;;  %4205 = vmatmul.bf16.gmra.mxu0 %v10834_v25  ;;  %v3818_v1 = vadd.f32 %v3817_v41, %v3769_v32  ;;  %v8042_v25 = vld [vmem:[%s12136_s6 + $0x1b4] sm:$0xf0]  ;;  %v7447_v9 = vld [vmem:[%s12136_s6 + $0x1a0] sm:$0xf] }
 0x445   : > { %v7456_v24 = vor.u32 %v8042_v25, %v7455_v30  ;;  %4839 = vmatpush.bf16.msrb.mxu0 %v7396_v43 }
 0x446   : > { %v4293_v48 = vmul.f32 %v11044_v61, %v3853_v2  ;;  %v3856_v29 = vmax.f32 %v3818_v1, 0.0 }
 0x447   : > { %v3670_v17 = vpop.f32.mrf.mxu2  ;;  %4790 = vmatpush.bf16.msrb.mxu3 %v7456_v24  ;;  %v7385_v24 = vld [vmem:[%s12136_s6 + $0x128] sm:$0xf0] }
 0x448   : > { %v3671_v62 = vadd.f32 %v3670_v17, %v11022_v7  ;;  %v4328_v47 = vadd.f32 %v4294_v31, %v4293_v48  ;;  %v4296_v60 = vmul.f32 %v11040_v23, %v3856_v29  ;;  %v8039_v29 = vld [vmem:[%s12136_s6 + $0x1a4] sm:$0xf] }
 0x449   : > { %v3721_v50 = vpop.f32.mrf.mxu3  ;;  %v3770_v21 = vpop.f32.mrf.mxu0 }
 0x44a   : > { %v3720_v26 = vadd.f32 %v3719_v12, %v3671_v62  ;;  %v3771_v6 = vadd.f32 %v3770_v21, %v10994_v51  ;;  %4329 = vadd.xlane.f32.xlu1 %v4328_v47  ;;  %v8024_v12 = vld [vmem:[%s12136_s6 + $0x124] sm:$0xf0]  ;;  %v8023_v47 = vld [vmem:[%s12136_s6 + $0x124] sm:$0xf] }
 0x44b   : > { %v3822_v36 = vpop.f32.mrf.mxu1  ;;  %v7384_v11 = vor.u32 %v8024_v12, %v7383_v55  ;;  %v7388_v21 = vor.u32 %v8023_v47, %v7385_v24 }
 0x44c   : > { %v3855_v53 = vmax.f32 %v3720_v26, 0.0  ;;  %v3820_v3 = vadd.f32 %v3819_v37, %v3771_v6 }
 0x44d   : > { %4742 = vmatpush.bf16.msrb.mxu2 %v7384_v11  ;;  %4840 = vmatpush.bf16.msrb.mxu0 %v7388_v21 }
 0x44e   : > { %4161 = vmatmul.bf16.gmra.mxu3 %v10859_v4  ;;  %4259 = vmatmul.bf16.gmra.mxu1 %v10859_v4  ;;  %v4295_v19 = vmul.f32 %v11044_v61, %v3855_v53  ;;  %v7457_v4 = vld [vmem:[%s12136_s6 + $0x1b8] sm:$0xf0]  ;;  %v3858_v63 = vmax.f32 %v3820_v3, 0.0 }
 0x44f   : > { %v3672_v52 = vpop.f32.mrf.mxu2  ;;  %v7460_v42 = vor.u32 %v8041_v57, %v7457_v4 }
 0x450   : > { %v3673_v41 = vadd.f32 %v3672_v52, %v11022_v7  ;;  %v4331_v20 = vadd.f32 %v4296_v60, %v4295_v19  ;;  %v4298_v59 = vmul.f32 %v11040_v23, %v3858_v63 }
 0x451   : > { %v3724_v46 = vpop.f32.mrf.mxu3  ;;  %v3773_v15 = vpop.f32.mrf.mxu0  ;;  %4888 = vmatpush.bf16.msrb.mxu1 %v7460_v42 }
 0x452   : > { %v3722_v8 = vadd.f32 %v3721_v50, %v3673_v41  ;;  %v3774_v28 = vadd.f32 %v3773_v15, %v10994_v51  ;;  %4332 = vadd.xlane.f32.xlu2 %v4331_v20  ;;  %v7375_v41 = vld [vmem:[%s12136_s6 + $0x110] sm:$0xf]  ;;  %v8022_v20 = vld [vmem:[%s12136_s6 + $0x114] sm:$0xf0] }
 0x453   : > { %v3824_v16 = vpop.f32.mrf.mxu1  ;;  %v7439_v15 = vld [vmem:[%s12136_s6 + $0x190] sm:$0xf] }
 0x454   : > { %v3857_v35 = vmax.f32 %v3722_v8, 0.0  ;;  %4112 = vmatmul.bf16.gmra.mxu2 %v10870_v27  ;;  %4210 = vmatmul.bf16.gmra.mxu0 %v10870_v27  ;;  %v3823_v58 = vadd.f32 %v3822_v36, %v3774_v28  ;;  %v8040_v27 = vld [vmem:[%s12136_s6 + $0x1a4] sm:$0xf0] }
 0x455   : > { %v7448_v2 = vor.u32 %v8040_v27, %v7447_v9  ;;  %v8021_v27 = vld [vmem:[%s12136_s6 + $0x114] sm:$0xf] }
 0x456   : > { %v4297_v22 = vmul.f32 %v11044_v61, %v3857_v35  ;;  %v3860_v31 = vmax.f32 %v3823_v58, 0.0 }
 0x457   : > { %v3675_v18 = vpop.f32.mrf.mxu2  ;;  %4791 = vmatpush.bf16.msrb.mxu3 %v7448_v2 }
 0x458   : > { %v3676_v32 = vadd.f32 %v3675_v18, %v11022_v7  ;;  %v4334_v37 = vadd.f32 %v4298_v59, %v4297_v22  ;;  %v4300_v62 = vmul.f32 %v11040_v23, %v3860_v31 }
 0x459   : > { %v3726_v1 = vpop.f32.mrf.mxu3  ;;  %v3775_v48 = vpop.f32.mrf.mxu0 }
 0x45a   : > { %v3725_v56 = vadd.f32 %v3724_v46, %v3676_v32  ;;  %v3776_v33 = vadd.f32 %v3775_v48, %v10994_v51  ;;  %4335 = vadd.xlane.f32.xlu2 %v4334_v37  ;;  %v7376_v46 = vor.u32 %v8022_v20, %v7375_v41  ;;  %v7377_v32 = vld [vmem:[%s12136_s6 + $0x118] sm:$0xf0] }
 0x45b   : > { %v3827_v17 = vpop.f32.mrf.mxu1  ;;  %v7380_v2 = vor.u32 %v8021_v27, %v7377_v32  ;;  %v7551_v27 = vld [vmem:[%s12136_s6 + $0x70] sm:$0xf]  ;;  %v8002_v32 = vld [vmem:[%s12136_s6 + $0x74] sm:$0xf0] }
 0x45c   : > { %v3859_v14 = vmax.f32 %v3725_v56, 0.0  ;;  %v3825_v30 = vadd.f32 %v3824_v16, %v3776_v33  ;;  %4743 = vmatpush.bf16.msrb.mxu2 %v7376_v46 }
 0x45d   : > { %4841 = vmatpush.bf16.msrb.mxu0 %v7380_v2 }
 0x45e   : > { %4166 = vmatmul.bf16.gmra.mxu3 %v10895_v44  ;;  %4264 = vmatmul.bf16.gmra.mxu1 %v10895_v44  ;;  %v4299_v25 = vmul.f32 %v11044_v61, %v3859_v14  ;;  %v7449_v44 = vld [vmem:[%s12136_s6 + $0x1a8] sm:$0xf0]  ;;  %v3862_v19 = vmax.f32 %v3825_v30, 0.0 }
 0x45f   : > { %v3677_v50 = vpop.f32.mrf.mxu2  ;;  %v7452_v36 = vor.u32 %v8039_v29, %v7449_v44  ;;  %v7367_v29 = vld [vmem:[%s12136_s6 + $0x100] sm:$0xf]  ;;  %v8020_v44 = vld [vmem:[%s12136_s6 + $0x104] sm:$0xf0] }
 0x460   : > { %v3678_v26 = vadd.f32 %v3677_v50, %v11022_v7  ;;  %v4337_v6 = vadd.f32 %v4300_v62, %v4299_v25  ;;  %v4302_v4 = vmul.f32 %v11040_v23, %v3862_v19 }
 0x461   : > { %v3729_v53 = vpop.f32.mrf.mxu3  ;;  %v3778_v3 = vpop.f32.mrf.mxu0  ;;  %4889 = vmatpush.bf16.msrb.mxu1 %v7452_v36  ;;  %v7431_v36 = vld [vmem:[%s12136_s6 + $0x180] sm:$0xf] }
 0x462   : > { %v3727_v60 = vadd.f32 %v3726_v1, %v3678_v26  ;;  %v3779_v54 = vadd.f32 %v3778_v3, %v10994_v51  ;;  %4338 = vadd.xlane.f32.xlu0 %v4337_v6  ;;  %v8037_v1 = vld [vmem:[%s12136_s6 + $0x194] sm:$0xf]  ;;  %v7368_v6 = vor.u32 %v8020_v44, %v7367_v29  ;;  %v7553_v29 = vld [vmem:[%s12136_s6 + $0x78] sm:$0xf0] }
 0x463   : > { %v3829_v39 = vpop.f32.mrf.mxu1 }
 0x464   : > { %v3861_v52 = vmax.f32 %v3727_v60, 0.0  ;;  %4117 = vmatmul.bf16.gmra.mxu2 %v10906_v34  ;;  %4215 = vmatmul.bf16.gmra.mxu0 %v10906_v34  ;;  %v3828_v43 = vadd.f32 %v3827_v17, %v3779_v54  ;;  %v8038_v34 = vld [vmem:[%s12136_s6 + $0x194] sm:$0xf0] }
 0x465   : > { %v7440_v28 = vor.u32 %v8038_v34, %v7439_v15  ;;  %4744 = vmatpush.bf16.msrb.mxu2 %v7368_v6 }
 0x466   : > { %v4301_v57 = vmul.f32 %v11044_v61, %v3861_v52  ;;  %v3864_v58 = vmax.f32 %v3828_v43, 0.0  ;;  %v7433_v52 = vld [vmem:[%s12136_s6 + $0x188] sm:$0xf0] }
 0x467   : > { %v3680_v42 = vpop.f32.mrf.mxu2  ;;  %4792 = vmatpush.bf16.msrb.mxu3 %v7440_v28 }
 0x468   : > { %v3681_v63 = vadd.f32 %v3680_v42, %v11022_v7  ;;  %v4340_v8 = vadd.f32 %v4302_v4, %v4301_v57  ;;  %v4304_v9 = vmul.f32 %v11040_v23, %v3864_v58 }
 0x469   : > { %v3731_v16 = vpop.f32.mrf.mxu3  ;;  %v3780_v35 = vpop.f32.mrf.mxu0 }
 0x46a   : > { %v3730_v22 = vadd.f32 %v3729_v53, %v3681_v63  ;;  %v3781_v59 = vadd.f32 %v3780_v35, %v10994_v51  ;;  %4341 = vadd.xlane.f32.xlu1 %v4340_v8  ;;  %v8019_v63 = vld [vmem:[%s12136_s6 + $0x104] sm:$0xf]  ;;  %v7369_v8 = vld [vmem:[%s12136_s6 + $0x108] sm:$0xf0] }
 0x46b   : > { %v3832_v55 = vpop.f32.mrf.mxu1 }
 0x46c   : > { %v3863_v12 = vmax.f32 %v3730_v22, 0.0  ;;  %v3830_v18 = vadd.f32 %v3829_v39, %v3781_v59  ;;  %v8035_v39 = vld [vmem:[%s12136_s6 + $0x184] sm:$0xf] }
 0x46d   : > { %v7436_v41 = vor.u32 %v8035_v39, %v7433_v52 }
 0x46e   : > { %4171 = vmatmul.bf16.gmra.mxu3 %v10931_v38  ;;  %4269 = vmatmul.bf16.gmra.mxu1 %v10931_v38  ;;  %v4303_v11 = vmul.f32 %v11044_v61, %v3863_v12  ;;  %v7441_v38 = vld [vmem:[%s12136_s6 + $0x198] sm:$0xf0]  ;;  %v3866_v14 = vmax.f32 %v3830_v18, 0.0 }
 0x46f   : > { %v3682_v37 = vpop.f32.mrf.mxu2  ;;  %v7444_v56 = vor.u32 %v8037_v1, %v7441_v38 }
 0x470   : > { %v3683_v48 = vadd.f32 %v3682_v37, %v11022_v7  ;;  %v4343_v31 = vadd.f32 %v4304_v9, %v4303_v11  ;;  %v4306_v21 = vmul.f32 %v11040_v23, %v3866_v14  ;;  %v7552_v37 = vor.u32 %v8002_v32, %v7551_v27  ;;  %v7303_v27 = vld [vmem:[%s8471_s26 + $0x18] sm:$0xf] }
 0x471   : > { %v3734_v33 = vpop.f32.mrf.mxu3  ;;  %v3783_v17 = vpop.f32.mrf.mxu0  ;;  %4890 = vmatpush.bf16.msrb.mxu1 %v7444_v56 }
 0x472   : > { %v3732_v30 = vadd.f32 %v3731_v16, %v3683_v48  ;;  %v3784_v25 = vadd.f32 %v3783_v17, %v10994_v51  ;;  %4344 = vadd.xlane.f32.xlu2 %v4343_v31  ;;  %v7372_v16 = vor.u32 %v8019_v63, %v7369_v8  ;;  %5093 = vmatpush.bf16.msra.mxu2 %v7552_v37  ;;  %v8018_v31 = vld [vmem:[%s12136_s6 + $0xf4] sm:$0xf0]  ;;  %v7971_v8 = vld [vmem:[%s8471_s26 + $0x1c] sm:$0xf] }
 0x473   : > { %v3834_v62 = vpop.f32.mrf.mxu1 }
 0x474   : > { %v3865_v47 = vmax.f32 %v3732_v30, 0.0  ;;  %4122 = vmatmul.bf16.gmra.mxu2 %v10942_v40  ;;  %4220 = vmatmul.bf16.gmra.mxu0 %v10942_v40  ;;  %v3833_v24 = vadd.f32 %v3832_v55, %v3784_v25  ;;  %v8036_v40 = vld [vmem:[%s12136_s6 + $0x184] sm:$0xf0] }
 0x475   : > { %v7432_v19 = vor.u32 %v8036_v40, %v7431_v36  ;;  %4891 = vmatpush.bf16.msrb.mxu1 %v7436_v41  ;;  %4842 = vmatpush.bf16.msrb.mxu0 %v7372_v16  ;;  %v8017_v40 = vld [vmem:[%s12136_s6 + $0xf4] sm:$0xf]  ;;  %v7607_v16 = vld [vmem:[%s12136_s6 + $0xe0] sm:$0xf] }
 0x476   : > { %v4305_v50 = vmul.f32 %v11044_v61, %v3865_v47  ;;  %v3868_v43 = vmax.f32 %v3833_v24, 0.0 }
 0x477   : > { %v3685_v26 = vpop.f32.mrf.mxu2  ;;  %4793 = vmatpush.bf16.msrb.mxu3 %v7432_v19 }
 0x478   : > { %v3686_v53 = vadd.f32 %v3685_v26, %v11022_v7  ;;  %v4346_v3 = vadd.f32 %v4306_v21, %v4305_v50  ;;  %v4308_v34 = vmul.f32 %v11040_v23, %v3868_v43  ;;  %v8001_v21 = vld [vmem:[%s12136_s6 + $0x74] sm:$0xf] }
 0x479   : > { %v3736_v60 = vpop.f32.mrf.mxu3  ;;  %v3785_v54 = vpop.f32.mrf.mxu0  ;;  %v7556_v36 = vor.u32 %v8001_v21, %v7553_v29 }
 0x47a   : > { %v3735_v57 = vadd.f32 %v3734_v33, %v3686_v53  ;;  %v3786_v4 = vadd.f32 %v3785_v54, %v10994_v51  ;;  %4347 = vadd.xlane.f32.xlu0 %v4346_v3 }
 0x47b   : > { %v3837_v20 = vpop.f32.mrf.mxu1  ;;  %5191 = vmatpush.bf16.msra.mxu0 %v7556_v36 }
 0x47c   : > { %v3867_v42 = vmax.f32 %v3735_v57, 0.0  ;;  %v3835_v46 = vadd.f32 %v3834_v62, %v3786_v4 }
 0x47e   : > { %4176 = vmatmul.bf16.gmra.mxu3 %v10967_v45  ;;  %4274 = vmatmul.bf16.gmra.mxu1 %v10967_v45  ;;  %v4307_v15 = vmul.f32 %v11044_v61, %v3867_v42  ;;  %v3870_v45 = vmax.f32 %v3835_v46, 0.0  ;;  %v8000_v42 = vld [vmem:[%s12136_s6 + $0x64] sm:$0xf0] }
 0x47f   : > { %v3687_v28 = vpop.f32.mrf.mxu2 }
 0x480   : > { %v3688_v35 = vadd.f32 %v3687_v28, %v11022_v7  ;;  %v4349_v58 = vadd.f32 %v4308_v34, %v4307_v15  ;;  %v4310_v1 = vmul.f32 %v11040_v23, %v3870_v45  ;;  %v7305_v28 = vld [vmem:[%s8471_s26 + $0x3c] sm:$0xf0] }
 0x481   : > { %v3739_v22 = vpop.f32.mrf.mxu3  ;;  %v3788_v59 = vpop.f32.mrf.mxu0 }
 0x482   : > { %v3737_v55 = vadd.f32 %v3736_v60, %v3688_v35  ;;  %v3789_v12 = vadd.f32 %v3788_v59, %v10994_v51  ;;  %4350 = vadd.xlane.f32.xlu1 %v4349_v58  ;;  %v8016_v35 = vld [vmem:[%s12136_s6 + $0xe4] sm:$0xf0] }
 0x483   : > { %v3839_v18 = vpop.f32.mrf.mxu1  ;;  %v7608_v45 = vor.u32 %v8016_v35, %v7607_v16  ;;  %v8013_v16 = vld [vmem:[%s12136_s6 + $0xd4] sm:$0xf] }
 0x484   : > { %v3869_v11 = vmax.f32 %v3737_v55, 0.0  ;;  %v3838_v9 = vadd.f32 %v3837_v20, %v3789_v12  ;;  %4127 = vmatmul.bf16.gmra.mxu2 %v10978_v10  ;;  %4225 = vmatmul.bf16.gmra.mxu0 %v10978_v10  ;;  %v7615_v10 = vld [vmem:[%s12136_s6 + $0xf0] sm:$0xf]  ;;  %v7543_v20 = vld [vmem:[%s12136_s6 + $0x60] sm:$0xf] }
 0x485   : > { %v7616_v14 = vor.u32 %v8018_v31, %v7615_v10  ;;  %v7544_v46 = vor.u32 %v8000_v42, %v7543_v20  ;;  %v7609_v10 = vld [vmem:[%s12136_s6 + $0xe8] sm:$0xf0]  ;;  %v11321_v31 = vperm.slane %v10991_v13, 4 }
 0x486   : > { %v4309_v2 = vmul.f32 %v11044_v61, %v3869_v11  ;;  %v3872_v30 = vmax.f32 %v3838_v9, 0.0  ;;  %v7308_v11 = vor.u32 %v7971_v8, %v7305_v28  ;;  %v7997_v28 = vld [vmem:[%s12136_s6 + $0x54] sm:$0xf] }
 0x487   : > { %v3690_v38 = vpop.f32.mrf.mxu2  ;;  %5142 = vmatpush.bf16.msra.mxu3 %v7616_v14  ;;  %5094 = vmatpush.bf16.msra.mxu2 %v7544_v46 }
 0x488   : > { %v3691_v48 = vadd.f32 %v3690_v38, %v11022_v7  ;;  %v11261_v56 = vadd.f32 %v4310_v1, %v4309_v2  ;;  %v4312_v26 = vmul.f32 %v11040_v23, %v3872_v30  ;;  %v7999_v2 = vld [vmem:[%s12136_s6 + $0x64] sm:$0xf]  ;;  %v7545_v1 = vld [vmem:[%s12136_s6 + $0x68] sm:$0xf0]  ;;  %v7972_v38 = vld [vmem:[%s8471_s26 + $0x38] sm:$0xf0] }
 0x489   : > { %v3741_v33 = vpop.f32.mrf.mxu3  ;;  %v3790_v17 = vpop.f32.mrf.mxu0 }
 0x48a   : > { %v3740_v25 = vadd.f32 %v3739_v22, %v3691_v48  ;;  %v3791_v62 = vadd.f32 %v3790_v17, %v10994_v51  ;;  %v7548_v48 = vor.u32 %v7999_v2, %v7545_v1 }
 0x48b   : > { %v3842_v47 = vpop.f32.mrf.mxu1  ;;  %5143 = vmatpush.bf16.msra.mxu3 %v7608_v45 }
 0x48c   : > { %v3871_v24 = vmax.f32 %v3740_v25, 0.0  ;;  %v3840_v50 = vadd.f32 %v3839_v18, %v3791_v62  ;;  %5192 = vmatpush.bf16.msra.mxu0 %v7548_v48  ;;  %v7304_v62 = vor.u32 %v7972_v38, %v7303_v27 }
 0x48e   : > { %4181 = vmatmul.bf16.gmra.mxu3 %v11011_v0  ;;  %4279 = vmatmul.bf16.gmra.mxu1 %v11011_v0  ;;  %v4311_v44 = vmul.f32 %v11044_v61, %v3871_v24  ;;  %v7617_v0 = vld [vmem:[%s12136_s6 + $0xf8] sm:$0xf0]  ;;  %v3874_v39 = vmax.f32 %v3840_v50, 0.0 }
 0x48f   : > { %v3692_v6 = vpop.f32.mrf.mxu2  ;;  %v7620_v3 = vor.u32 %v8017_v40, %v7617_v0  ;;  %v7535_v40 = vld [vmem:[%s12136_s6 + $0x50] sm:$0xf]  ;;  %v7998_v0 = vld [vmem:[%s12136_s6 + $0x54] sm:$0xf0] }
 0x490   : > { %v3693_v53 = vadd.f32 %v3692_v6, %v11022_v7  ;;  %v11281_v19 = vadd.f32 %v4312_v26, %v4311_v44  ;;  %v4314_v34 = vmul.f32 %v11040_v23, %v3874_v39  ;;  %v11331_v44 = vperm.slane %v11019_v5, 7 }
 0x491   : > { %v3744_v60 = vpop.f32.mrf.mxu3  ;;  %v3793_v54 = vpop.f32.mrf.mxu0  ;;  %5240 = vmatpush.bf16.msra.mxu1 %v7620_v3  ;;  %v7536_v3 = vor.u32 %v7998_v0, %v7535_v40 }
 0x492   : > { %v3742_v52 = vadd.f32 %v3741_v33, %v3693_v53  ;;  %v3794_v43 = vadd.f32 %v3793_v54, %v10994_v51 }
 0x493   : > { %v3844_v57 = vpop.f32.mrf.mxu1  ;;  %5095 = vmatpush.bf16.msra.mxu2 %v7536_v3 }
 0x494   : > { %v3873_v4 = vmax.f32 %v3742_v52, 0.0  ;;  %v3843_v41 = vadd.f32 %v3842_v47, %v3794_v43  ;;  %4132 = vmatmul.bf16.gmra.mxu2 %v11030_v49  ;;  %4230 = vmatmul.bf16.gmra.mxu0 %v11030_v49  ;;  %v7973_v52 = vld [vmem:[%s8471_s26 + $0x64] sm:$0xf]  ;;  %v7313_v43 = vld [vmem:[%s8471_s26 + $0x84] sm:$0xf0] }
 0x496   : > { %v4313_v15 = vmul.f32 %v11044_v61, %v3873_v4  ;;  %v3876_v55 = vmax.f32 %v3843_v41, 0.0  ;;  %v7599_v4 = vld [vmem:[%s12136_s6 + $0xd0] sm:$0xf]  ;;  %v8014_v41 = vld [vmem:[%s12136_s6 + $0xd4] sm:$0xf0] }
 0x497   : > { %v3695_v63 = vpop.f32.mrf.mxu2  ;;  %v7600_v42 = vor.u32 %v8014_v41, %v7599_v4  ;;  %v7593_v41 = vld [vmem:[%s12136_s6 + $0xc8] sm:$0xf0] }
 0x498   : > { %v3696_v49 = vadd.f32 %v3695_v63, %v11022_v7  ;;  %v11303_v58 = vadd.f32 %v4314_v34, %v4313_v15  ;;  %v4316_v14 = vmul.f32 %v11040_v23, %v3876_v55  ;;  %v7316_v34 = vor.u32 %v7973_v52, %v7313_v43  ;;  %v7601_v55 = vld [vmem:[%s12136_s6 + $0xd8] sm:$0xf0]  ;;  %v7319_v43 = vld [vmem:[%s8471_s26 + $0xa8] sm:$0xf] }
 0x499   : > { %v3746_v22 = vpop.f32.mrf.mxu3  ;;  %v3795_v59 = vpop.f32.mrf.mxu0  ;;  %5144 = vmatpush.bf16.msra.mxu3 %v7600_v42 }
 0x49a   : > { %v3745_v12 = vadd.f32 %v3744_v60, %v3696_v49  ;;  %v3796_v18 = vadd.f32 %v3795_v59, %v10994_v51  ;;  %v8015_v51 = vld [vmem:[%s12136_s6 + $0xe4] sm:$0xf]  ;;  %v7537_v49 = vld [vmem:[%s12136_s6 + $0x58] sm:$0xf0] }
 0x49b   : > { %v4245_v9 = vpop.f32.mrf.mxu1  ;;  %v7612_v33 = vor.u32 %v8015_v51, %v7609_v10  ;;  %v7974_v59 = vld [vmem:[%s8471_s26 + $0x80] sm:$0xf0]  ;;  %v7540_v45 = vor.u32 %v7997_v28, %v7537_v49 }
 0x49c   : > { %v3875_v32 = vmax.f32 %v3745_v12, 0.0  ;;  %v3845_v37 = vadd.f32 %v3844_v57, %v3796_v18 }
 0x49d   : > { %5241 = vmatpush.bf16.msra.mxu1 %v7612_v33  ;;  %5193 = vmatpush.bf16.msra.mxu0 %v7540_v45  ;;  %v7527_v33 = vld [vmem:[%s12136_s6 + $0x40] sm:$0xf] }
 0x49e   : > { %4794 = vmatmul.bf16.vlgmr.msrb.gmra.mxu3 %v7308_v11  ;;  %4892 = vmatmul.bf16.vlgmr.msrb.gmra.mxu1 %v7308_v11  ;;  %v4315_v17 = vmul.f32 %v11044_v61, %v3875_v32  ;;  %v3878_v21 = vmax.f32 %v3845_v37, 0.0  ;;  %v7604_v11 = vor.u32 %v8013_v16, %v7601_v55 }
 0x49f   : > { %v3697_v30 = vpop.f32.mrf.mxu2 }
 0x4a0   : > { %v3698_v25 = vadd.f32 %v3697_v30, %v11022_v7  ;;  %v11326_v47 = vadd.f32 %v4316_v14, %v4315_v17  ;;  %v11334_v7 = vperm.slane %v11019_v5, 4  ;;  %v4318_v54 = vmul.f32 %v11040_v23, %v3878_v21  ;;  %v7996_v17 = vld [vmem:[%s12136_s6 + $0x44] sm:$0xf0] }
 0x4a1   : > { %v4147_v24 = vpop.f32.mrf.mxu3  ;;  %v4196_v50 = vpop.f32.mrf.mxu0  ;;  %5242 = vmatpush.bf16.msra.mxu1 %v7604_v11  ;;  %v7528_v30 = vor.u32 %v7996_v17, %v7527_v33 }
 0x4a2   : > { %v3747_v29 = vadd.f32 %v3746_v22, %v3698_v25  ;;  %v4197_v13 = vadd.f32 %v4196_v50, %v11321_v31  ;;  %v7311_v22 = vld [vmem:[%s8471_s26 + $0x60] sm:$0xf]  ;;  %v7321_v50 = vld [vmem:[%s8471_s26 + $0xcc] sm:$0xf0] }
 0x4a3   : > { %v4247_v26 = vpop.f32.mrf.mxu1  ;;  %v7312_v32 = vor.u32 %v7974_v59, %v7311_v22  ;;  %5096 = vmatpush.bf16.msra.mxu2 %v7528_v30  ;;  %v7519_v22 = vld [vmem:[%s12136_s6 + $0x30] sm:$0xf]  ;;  %v7994_v59 = vld [vmem:[%s12136_s6 + $0x34] sm:$0xf0] }
 0x4a4   : > { %v3877_v6 = vmax.f32 %v3747_v29, 0.0  ;;  %v4246_v36 = vadd.f32 %v4245_v9, %v4197_v13  ;;  %4745 = vmatmul.bf16.vlgmr.msrb.gmra.mxu2 %v7304_v62  ;;  %4843 = vmatmul.bf16.vlgmr.msrb.gmra.mxu0 %v7304_v62  ;;  %v7591_v29 = vld [vmem:[%s12136_s6 + $0xc0] sm:$0xf]  ;;  %v8012_v13 = vld [vmem:[%s12136_s6 + $0xc4] sm:$0xf0] }
 0x4a5   : > { %v4321_v53 = vpop.xlane.xlu0 %4320 }
 0x4a6   : > { %v4368_v5 = vadd.f32 %v11331_v44, %v4321_v53  ;;  %v4317_v60 = vmul.f32 %v11044_v61, %v3877_v6 }
 0x4a7   : > { %v4098_v39 = vpop.f32.mrf.mxu2 }
 0x4a8   : > { %4385 = vst.msk [vmem:[%s11345_s23] sm:$0xff] %vm4384_vm0, %v4368_v5  ;;  %v4099_v57 = vadd.f32 %v4098_v39, %v11334_v7  ;;  %v11361_v61 = vadd.f32 %v4318_v54, %v4317_v60  ;;  %v7995_v60 = vld [vmem:[%s12136_s6 + $0x44] sm:$0xf]  ;;  %v7529_v54 = vld [vmem:[%s12136_s6 + $0x48] sm:$0xf0] }
 0x4a9   : > { %v4149_v23 = vpop.f32.mrf.mxu3  ;;  %v4198_v20 = vpop.f32.mrf.mxu0  ;;  %v8011_v39 = vld [vmem:[%s12136_s6 + $0xc4] sm:$0xf]  ;;  %v7532_v4 = vor.u32 %v7995_v60, %v7529_v54 }
 0x4aa   : > { %v4148_v46 = vadd.f32 %v4147_v24, %v4099_v57  ;;  %v4199_v15 = vadd.f32 %v4198_v20, %v11321_v31  ;;  %v7975_v24 = vld [vmem:[%s8471_s26 + $0xac] sm:$0xf]  ;;  %v7596_v20 = vor.u32 %v8011_v39, %v7593_v41  ;;  %v7992_v41 = vld [vmem:[%s12136_s6 + $0x24] sm:$0xf0] }
 0x4ab   : > { %v4250_v63 = vpop.f32.mrf.mxu1  ;;  %v7324_v53 = vor.u32 %v7975_v24, %v7321_v50  ;;  %v7976_v57 = vld [vmem:[%s8471_s26 + $0xc8] sm:$0xf0]  ;;  %5194 = vmatpush.bf16.msra.mxu0 %v7532_v4  ;;  %v7521_v24 = vld [vmem:[%s12136_s6 + $0x38] sm:$0xf0]  ;;  %v8009_v50 = vld [vmem:[%s12136_s6 + $0xb4] sm:$0xf] }
 0x4ac   : > { %v4248_v8 = vadd.f32 %v4247_v26, %v4199_v15  ;;  %5243 = vmatpush.bf16.msra.mxu1 %v7596_v20  ;;  %v7511_v4 = vld [vmem:[%s12136_s6 + $0x20] sm:$0xf] }
 0x4ad   : > { %v4324_v35 = vpop.xlane.xlu0 %4323 }
 0x4ae   : > { %v11378_v12 = vpack.c.bf16 %v4248_v8, %v4246_v36  ;;  %v4369_v18 = vadd.f32 %v11331_v44, %v4324_v35  ;;  %4799 = vmatmul.bf16.gmra.mxu3 %v7316_v34  ;;  %4897 = vmatmul.bf16.gmra.mxu1 %v7316_v34  ;;  %v7592_v36 = vor.u32 %v8012_v13, %v7591_v29  ;;  %v7327_v29 = vld [vmem:[%s8471_s26 + $0xf0] sm:$0xf]  ;;  %v7978_v13 = vld [vmem:[%s8471_s26 + $0x110] sm:$0xf0] }
 0x4af   : > { %v4100_v9 = vpop.f32.mrf.mxu2  ;;  %v7320_v34 = vor.u32 %v7976_v57, %v7319_v43 }
 0x4b0   : > { %4386 = vst.msk [vmem:[%s11345_s23 + $0x8] sm:$0xff] %vm4384_vm0, %v4369_v18  ;;  %v4101_v27 = vadd.f32 %v4100_v9, %v11334_v7  ;;  %5145 = vmatpush.bf16.msra.mxu3 %v7592_v36  ;;  %v7520_v18 = vor.u32 %v7994_v59, %v7519_v22 }
 0x4b1   : > { %v4152_v37 = vpop.f32.mrf.mxu3  ;;  %v4201_v2 = vpop.f32.mrf.mxu0 }
 0x4b2   : > { %v4150_v1 = vadd.f32 %v4149_v23, %v4101_v27  ;;  %v4202_v38 = vadd.f32 %v4201_v2, %v11321_v31  ;;  %v7977_v27 = vld [vmem:[%s8471_s26 + $0xf4] sm:$0xf]  ;;  %5097 = vmatpush.bf16.msra.mxu2 %v7520_v18  ;;  %v7583_v2 = vld [vmem:[%s12136_s6 + $0xb0] sm:$0xf] }
 0x4b3   : > { %v4252_v48 = vpop.f32.mrf.mxu1 }
 0x4b4   : > { %v11385_v51 = vpack.c.bf16 %v4150_v1, %v4148_v46  ;;  %v4251_v10 = vadd.f32 %v4250_v63, %v4202_v38  ;;  %4750 = vmatmul.bf16.gmra.mxu2 %v7312_v32  ;;  %4848 = vmatmul.bf16.gmra.mxu0 %v7312_v32  ;;  %v7329_v32 = vld [vmem:[%s8471_s26 + $0x114] sm:$0xf0] }
 0x4b5   : > { %v4327_v14 = vpop.xlane.xlu1 %4326  ;;  %v8010_v1 = vld [vmem:[%s12136_s6 + $0xb4] sm:$0xf0] }
 0x4b6   : > { %v4370_v25 = vadd.f32 %v11331_v44, %v4327_v14  ;;  %v7332_v14 = vor.u32 %v7977_v27, %v7329_v32  ;;  %v7991_v32 = vld [vmem:[%s12136_s6 + $0x24] sm:$0xf] }
 0x4b7   : > { %v4103_v62 = vpop.f32.mrf.mxu2 }
 0x4b8   : > { %4387 = vst.msk [vmem:[%s11345_s23 + $0x10] sm:$0xff] %vm4384_vm0, %v4370_v25  ;;  %v4104_v21 = vadd.f32 %v4103_v62, %v11334_v7  ;;  %v7993_v62 = vld [vmem:[%s12136_s6 + $0x34] sm:$0xf] }
 0x4b9   : > { %v4154_v26 = vpop.f32.mrf.mxu3  ;;  %v4203_v6 = vpop.f32.mrf.mxu0 }
 0x4ba   : > { %v4153_v40 = vadd.f32 %v4152_v37, %v4104_v21  ;;  %v4204_v0 = vadd.f32 %v4203_v6, %v11321_v31  ;;  %v7585_v6 = vld [vmem:[%s12136_s6 + $0xb8] sm:$0xf0] }
 0x4bb   : > { %v4255_v3 = vpop.f32.mrf.mxu1 }
 0x4bc   : > { %v4253_v5 = vadd.f32 %v4252_v48, %v4204_v0 }
 0x4bd   : > { %v4330_v52 = vpop.xlane.xlu1 %4329 }
 0x4be   : > { %v4371_v23 = vadd.f32 %v11331_v44, %v4330_v52  ;;  %4804 = vmatmul.bf16.gmra.mxu3 %v7324_v53  ;;  %4902 = vmatmul.bf16.gmra.mxu1 %v7324_v53  ;;  %v11421_v46 = vpack.c.bf16 %v4253_v5, %v4251_v10  ;;  %v7584_v10 = vor.u32 %v8010_v1, %v7583_v2  ;;  %v8007_v2 = vld [vmem:[%s12136_s6 + $0xa4] sm:$0xf] }
 0x4bf   : > { %v4105_v42 = vpop.f32.mrf.mxu2  ;;  %v7328_v5 = vor.u32 %v7978_v13, %v7327_v29 }
 0x4c0   : > { %4388 = vst.msk [vmem:[%s11345_s23 + $0x18] sm:$0xff] %vm4384_vm0, %v4371_v23  ;;  %v4106_v15 = vadd.f32 %v4105_v42, %v11334_v7  ;;  %5146 = vmatpush.bf16.msra.mxu3 %v7584_v10  ;;  %v7512_v42 = vor.u32 %v7992_v41, %v7511_v4  ;;  %v7345_v4 = vld [vmem:[%s8471_s26 + $0x1a4] sm:$0xf0] }
 0x4c1   : > { %v4157_v63 = vpop.f32.mrf.mxu3  ;;  %v4206_v8 = vpop.f32.mrf.mxu0 }
 0x4c2   : > { %v4155_v28 = vadd.f32 %v4154_v26, %v4106_v15  ;;  %v4207_v49 = vadd.f32 %v4206_v8, %v11321_v31  ;;  %v7524_v26 = vor.u32 %v7993_v62, %v7521_v24  ;;  %v7337_v8 = vld [vmem:[%s8471_s26 + $0x15c] sm:$0xf0]  ;;  %5098 = vmatpush.bf16.msra.mxu2 %v7512_v42 }
 0x4c3   : > { %v4257_v16 = vpop.f32.mrf.mxu1 }
 0x4c4   : > { %v4256_v35 = vadd.f32 %v4255_v3, %v4207_v49  ;;  %4755 = vmatmul.bf16.gmra.mxu2 %v7320_v34  ;;  %4853 = vmatmul.bf16.gmra.mxu0 %v7320_v34  ;;  %v11433_v45 = vpack.c.bf16 %v4155_v28, %v4153_v40  ;;  %v7588_v40 = vor.u32 %v8009_v50, %v7585_v6  ;;  %v7575_v49 = vld [vmem:[%s12136_s6 + $0xa0] sm:$0xf] }
 0x4c5   : > { %v4333_v55 = vpop.xlane.xlu2 %4332  ;;  %5195 = vmatpush.bf16.msra.mxu0 %v7524_v26 }
 0x4c6   : > { %v4372_v11 = vadd.f32 %v11331_v44, %v4333_v55  ;;  %5244 = vmatpush.bf16.msra.mxu1 %v7588_v40  ;;  %v7990_v40 = vld [vmem:[%s12136_s6 + $0x14] sm:$0xf0] }
 0x4c7   : > { %v4108_v9 = vpop.f32.mrf.mxu2 }
 0x4c8   : > { %4389 = vst.msk [vmem:[%s11345_s23 + $0x20] sm:$0xff] %vm4384_vm0, %v4372_v11  ;;  %v4109_v37 = vadd.f32 %v4108_v9, %v11334_v7 }
 0x4c9   : > { %v4159_v38 = vpop.f32.mrf.mxu3  ;;  %v4208_v48 = vpop.f32.mrf.mxu0 }
 0x4ca   : > { %v4158_v33 = vadd.f32 %v4157_v63, %v4109_v37  ;;  %v4209_v17 = vadd.f32 %v4208_v48, %v11321_v31  ;;  %v7979_v63 = vld [vmem:[%s8471_s26 + $0x13c] sm:$0xf]  ;;  %v7513_v37 = vld [vmem:[%s12136_s6 + $0x28] sm:$0xf0] }
 0x4cb   : > { %v4260_v30 = vpop.f32.mrf.mxu1  ;;  %v7340_v11 = vor.u32 %v7979_v63, %v7337_v8  ;;  %v7980_v48 = vld [vmem:[%s8471_s26 + $0x158] sm:$0xf0]  ;;  %v7516_v10 = vor.u32 %v7991_v32, %v7513_v37 }
 0x4cc   : > { %v4258_v25 = vadd.f32 %v4257_v16, %v4209_v17  ;;  %v8008_v16 = vld [vmem:[%s12136_s6 + $0xa4] sm:$0xf0] }
 0x4cd   : > { %v4336_v21 = vpop.xlane.xlu2 %4335  ;;  %v7576_v59 = vor.u32 %v8008_v16, %v7575_v49  ;;  %5196 = vmatpush.bf16.msra.mxu0 %v7516_v10  ;;  %v7989_v49 = vld [vmem:[%s12136_s6 + $0x14] sm:$0xf]  ;;  %v7505_v16 = vld [vmem:[%s12136_s6 + $0x18] sm:$0xf0] }
 0x4ce   : > { %v4373_v36 = vadd.f32 %v11331_v44, %v4336_v21  ;;  %4809 = vmatmul.bf16.gmra.mxu3 %v7332_v14  ;;  %4907 = vmatmul.bf16.gmra.mxu1 %v7332_v14  ;;  %v11463_v53 = vpack.c.bf16 %v4258_v25, %v4256_v35 }
 0x4cf   : > { %v4110_v0 = vpop.f32.mrf.mxu2  ;;  %5147 = vmatpush.bf16.msra.mxu3 %v7576_v59  ;;  %v7343_v59 = vld [vmem:[%s8471_s26 + $0x180] sm:$0xf] }
 0x4d0   : > { %4390 = vst.msk [vmem:[%s11345_s23 + $0x28] sm:$0xff] %vm4384_vm0, %v4373_v36  ;;  %v4111_v3 = vadd.f32 %v4110_v0, %v11334_v7  ;;  %v7503_v36 = vld [vmem:[%s12136_s6 + $0x10] sm:$0xf] }
 0x4d1   : > { %v4162_v60 = vpop.f32.mrf.mxu3  ;;  %v4211_v54 = vpop.f32.mrf.mxu0  ;;  %v7567_v0 = vld [vmem:[%s12136_s6 + $0x90] sm:$0xf] }
 0x4d2   : > { %v4160_v39 = vadd.f32 %v4159_v38, %v4111_v3  ;;  %v4212_v52 = vadd.f32 %v4211_v54, %v11321_v31  ;;  %v7335_v38 = vld [vmem:[%s8471_s26 + $0x138] sm:$0xf] }
 0x4d3   : > { %v4262_v43 = vpop.f32.mrf.mxu1  ;;  %v7336_v24 = vor.u32 %v7980_v48, %v7335_v38  ;;  %v8006_v54 = vld [vmem:[%s12136_s6 + $0x94] sm:$0xf0] }
 0x4d4   : > { %v4261_v57 = vadd.f32 %v4260_v30, %v4212_v52  ;;  %4760 = vmatmul.bf16.gmra.mxu2 %v7328_v5  ;;  %4858 = vmatmul.bf16.gmra.mxu0 %v7328_v5  ;;  %v11475_v23 = vpack.c.bf16 %v4160_v39, %v4158_v33  ;;  %v7577_v33 = vld [vmem:[%s12136_s6 + $0xa8] sm:$0xf0]  ;;  %v7568_v52 = vor.u32 %v8006_v54, %v7567_v0  ;;  %v7353_v0 = vld [vmem:[%s8471_s26 + $0x1ec] sm:$0xf0] }
 0x4d5   : > { %v4339_v20 = vpop.xlane.xlu0 %4338  ;;  %v7580_v14 = vor.u32 %v8007_v2, %v7577_v33 }
 0x4d6   : > { %v4374_v15 = vadd.f32 %v11331_v44, %v4339_v20  ;;  %5148 = vmatpush.bf16.msra.mxu3 %v7568_v52  ;;  %v7561_v52 = vld [vmem:[%s12136_s6 + $0x88] sm:$0xf0] }
 0x4d7   : > { %v4113_v34 = vpop.f32.mrf.mxu2  ;;  %5245 = vmatpush.bf16.msra.mxu1 %v7580_v14 }
 0x4d8   : > { %4391 = vst.msk [vmem:[%s11345_s23 + $0x30] sm:$0xff] %vm4384_vm0, %v4374_v15  ;;  %v4114_v28 = vadd.f32 %v4113_v34, %v11334_v7 }
 0x4d9   : > { %v4164_v35 = vpop.f32.mrf.mxu3  ;;  %v4213_v22 = vpop.f32.mrf.mxu0 }
 0x4da   : > { %v4163_v55 = vadd.f32 %v4162_v60, %v4114_v28  ;;  %v4214_v18 = vadd.f32 %v4213_v22, %v11321_v31  ;;  %v7504_v60 = vor.u32 %v7990_v40, %v7503_v36  ;;  %v7983_v40 = vld [vmem:[%s8471_s26 + $0x1cc] sm:$0xf] }
 0x4db   : > { %v4265_v9 = vpop.f32.mrf.mxu1 }
 0x4dc   : > { %v4263_v27 = vadd.f32 %v4262_v43, %v4214_v18  ;;  %5099 = vmatpush.bf16.msra.mxu2 %v7504_v60  ;;  %v7508_v18 = vor.u32 %v7989_v49, %v7505_v16 }
 0x4dd   : > { %v4342_v1 = vpop.xlane.xlu1 %4341 }
 0x4de   : > { %v4375_v17 = vadd.f32 %v11331_v44, %v4342_v1  ;;  %4814 = vmatmul.bf16.gmra.mxu3 %v7340_v11  ;;  %4912 = vmatmul.bf16.gmra.mxu1 %v7340_v11  ;;  %v11505_v25 = vpack.c.bf16 %v4263_v27, %v4261_v57  ;;  %v7981_v57 = vld [vmem:[%s8471_s26 + $0x184] sm:$0xf]  ;;  %v7569_v11 = vld [vmem:[%s12136_s6 + $0x98] sm:$0xf0] }
 0x4df   : > { %v4115_v30 = vpop.f32.mrf.mxu2  ;;  %v7348_v63 = vor.u32 %v7981_v57, %v7345_v4  ;;  %5197 = vmatpush.bf16.msra.mxu0 %v7508_v18  ;;  %v7356_v4 = vor.u32 %v7983_v40, %v7353_v0 }
 0x4e0   : > { %4392 = vst.msk [vmem:[%s11345_s23 + $0x38] sm:$0xff] %vm4384_vm0, %v4375_v17  ;;  %v4116_v62 = vadd.f32 %v4115_v30, %v11334_v7  ;;  %v7495_v30 = vld [vmem:[%s12136_s6] sm:$0xf] }
 0x4e1   : > { %v4167_v50 = vpop.f32.mrf.mxu3  ;;  %v4216_v21 = vpop.f32.mrf.mxu0 }
 0x4e2   : > { %v4165_v29 = vadd.f32 %v4164_v35, %v4116_v62  ;;  %v4217_v13 = vadd.f32 %v4216_v21, %v11321_v31  ;;  %v8005_v35 = vld [vmem:[%s12136_s6 + $0x94] sm:$0xf]  ;;  %v7988_v62 = vld [vmem:[%s12136_s6 + $0x4] sm:$0xf0] }
 0x4e3   : > { %v4267_v26 = vpop.f32.mrf.mxu1  ;;  %v7572_v27 = vor.u32 %v8005_v35, %v7569_v11 }
 0x4e4   : > { %v4266_v6 = vadd.f32 %v4265_v9, %v4217_v13  ;;  %4765 = vmatmul.bf16.gmra.mxu2 %v7336_v24  ;;  %4863 = vmatmul.bf16.gmra.mxu0 %v7336_v24  ;;  %v11520_v3 = vpack.c.bf16 %v4165_v29, %v4163_v55  ;;  %v7982_v55 = vld [vmem:[%s8471_s26 + $0x1a0] sm:$0xf0]  ;;  %v7559_v24 = vld [vmem:[%s12136_s6 + $0x80] sm:$0xf]  ;;  %v7496_v29 = vor.u32 %v7988_v62, %v7495_v30  ;;  %v8004_v13 = vld [vmem:[%s12136_s6 + $0x84] sm:$0xf0] }
 0x4e5   : > { %v4345_v5 = vpop.xlane.xlu2 %4344  ;;  %v7344_v1 = vor.u32 %v7982_v55, %v7343_v59  ;;  %5246 = vmatpush.bf16.msra.mxu1 %v7572_v27 }
 0x4e6   : > { %v4376_v39 = vadd.f32 %v11331_v44, %v4345_v5  ;;  %5100 = vmatpush.bf16.msra.mxu2 %v7496_v29  ;;  %v7986_v29 = vld [vmem:[%s8471_s26 + $0x230] sm:$0xf0] }
 0x4e7   : > { %v4118_v43 = vpop.f32.mrf.mxu2 }
 0x4e8   : > { %4393 = vst.msk [vmem:[%s11345_s23 + $0x40] sm:$0xff] %vm4384_vm0, %v4376_v39  ;;  %v4119_v41 = vadd.f32 %v4118_v43, %v11334_v7  ;;  %v8003_v39 = vld [vmem:[%s12136_s6 + $0x84] sm:$0xf] }
 0x4e9   : > { %v4169_v20 = vpop.f32.mrf.mxu3  ;;  %v4218_v42 = vpop.f32.mrf.mxu0 }
 0x4ea   : > { %v4168_v15 = vadd.f32 %v4167_v50, %v4119_v41  ;;  %v4219_v34 = vadd.f32 %v4218_v42, %v11321_v31  ;;  %v7564_v41 = vor.u32 %v8003_v39, %v7561_v52 }
 0x4eb   : > { %v4270_v8 = vpop.f32.mrf.mxu1 }
 0x4ec   : > { %v4268_v28 = vadd.f32 %v4267_v26, %v4219_v34  ;;  %v7497_v34 = vld [vmem:[%s12136_s6 + $0x8] sm:$0xf0]  ;;  %5247 = vmatpush.bf16.msra.mxu1 %v7564_v41 }
 0x4ed   : > { %v4348_v22 = vpop.xlane.xlu0 %4347 }
 0x4ee   : > { %v4377_v9 = vadd.f32 %v11331_v44, %v4348_v22  ;;  %4819 = vmatmul.bf16.gmra.mxu3 %v7348_v63  ;;  %4917 = vmatmul.bf16.gmra.mxu1 %v7348_v63  ;;  %v11547_v37 = vpack.c.bf16 %v4268_v28, %v4266_v6  ;;  %v7560_v6 = vor.u32 %v8004_v13, %v7559_v24  ;;  %v7351_v63 = vld [vmem:[%s8471_s26 + $0x1c8] sm:$0xf] }
 0x4ef   : > { %v4120_v32 = vpop.f32.mrf.mxu2 }
 0x4f0   : > { %4394 = vst.msk [vmem:[%s11345_s23 + $0x48] sm:$0xff] %vm4384_vm0, %v4377_v9  ;;  %v4121_v2 = vadd.f32 %v4120_v32, %v11334_v7  ;;  %5149 = vmatpush.bf16.msra.mxu3 %v7560_v6 }
 0x4f1   : > { %v4172_v38 = vpop.f32.mrf.mxu3  ;;  %v4221_v48 = vpop.f32.mrf.mxu0 }
 0x4f2   : > { %v4170_v10 = vadd.f32 %v4169_v20, %v4121_v2  ;;  %v4222_v33 = vadd.f32 %v4221_v48, %v11321_v31 }
 0x4f3   : > { %v4272_v17 = vpop.f32.mrf.mxu1 }
 0x4f4   : > { %v4271_v14 = vadd.f32 %v4270_v8, %v4222_v33  ;;  %4770 = vmatmul.bf16.gmra.mxu2 %v7344_v1  ;;  %4868 = vmatmul.bf16.gmra.mxu0 %v7344_v1  ;;  %v11562_v50 = vpack.c.bf16 %v4170_v10, %v4168_v15  ;;  %v7987_v15 = vld [vmem:[%s12136_s6 + $0x4] sm:$0xf]  ;;  %v7984_v8 = vld [vmem:[%s8471_s26 + $0x1e8] sm:$0xf0]  ;;  %v7985_v1 = vld [vmem:[%s8471_s26 + $0x214] sm:$0xf] }
 0x4f5   : > { %v4351_v21 = vpop.xlane.xlu1 %4350  ;;  %v7500_v28 = vor.u32 %v7987_v15, %v7497_v34  ;;  %v7352_v22 = vor.u32 %v7984_v8, %v7351_v63 }
 0x4f6   : > { %v4378_v26 = vadd.f32 %v11331_v44, %v4351_v21  ;;  %v7359_v21 = vld [vmem:[%s8471_s26 + $0x210] sm:$0xf] }
 0x4f7   : > { %v4123_v36 = vpop.f32.mrf.mxu2  ;;  %5198 = vmatpush.bf16.msra.mxu0 %v7500_v28 }
 0x4f8   : > { %4395 = vst.msk [vmem:[%s11345_s23 + $0x50] sm:$0xff] %vm4384_vm0, %v4378_v26  ;;  %v4124_v5 = vadd.f32 %v4123_v36, %v11334_v7  ;;  %v7360_v36 = vor.u32 %v7986_v29, %v7359_v21 }
 0x4f9   : > { %v4174_v60 = vpop.f32.mrf.mxu3  ;;  %v4223_v54 = vpop.f32.mrf.mxu0 }
 0x4fa   : > { %v4173_v43 = vadd.f32 %v4172_v38, %v4124_v5  ;;  %v4224_v57 = vadd.f32 %v4223_v54, %v11321_v31  ;;  %v7361_v38 = vld [vmem:[%s8471_s26 + $0x234] sm:$0xf0]  ;;  %s8229_s26 = scalar_lea.hbm %s8228_s0, 256 }
 0x4fb   : > { %v4275_v20 = vpop.f32.mrf.mxu1  ;;  %v7364_v30 = vor.u32 %v7985_v1, %v7361_v38  ;;  %p8230_p11 = scmp.ne.s32.totalorder %s8228_s0, %s8229_s26  ;;  %p8235_p1 = scmp.lt.s32.totalorder %s8233_s29, %s8229_s26 }
 0x4fc   : > { %v4273_v42 = vadd.f32 %v4272_v17, %v4224_v57 }
 0x4fd   : > { %p8231_p12 = pnand %p8230_p11, %p8367_p5  ;;  %p8236_p2 = por %p8235_p1, %p8234_p0 }
 0x4fe   : > { %4824 = vmatmul.bf16.gmra.mxu3 %v7356_v4  ;;  %4922 = vmatmul.bf16.gmra.mxu1 %v7356_v4  ;;  %v11588_v49 = vpack.c.bf16 %v4273_v42, %v4271_v14 }
 0x4ff   : > { %v4125_v16 = vpop.f32.mrf.mxu2  ;;  %p8232_p13 = pneg %p8231_p12 }
 0x500   : > { %v4126_v35 = vadd.f32 %v4125_v16, %v11334_v7 }
 0x501   : > { %v4177_v59 = vpop.f32.mrf.mxu3  ;;  %v4226_v55 = vpop.f32.mrf.mxu0  ;;  %p8237_p3 = pnand %p8236_p2, %p8232_p13 }
 0x502   : > { %v4175_v18 = vadd.f32 %v4174_v60, %v4126_v35  ;;  %v4227_v11 = vadd.f32 %v4226_v55, %v11321_v31 }
 0x503   : > { %v4277_v9 = vpop.f32.mrf.mxu1 }
 0x504   : > { %v4276_v27 = vadd.f32 %v4275_v20, %v4227_v11  ;;  %4775 = vmatmul.bf16.gmra.mxu2 %v7352_v22  ;;  %4873 = vmatmul.bf16.gmra.mxu0 %v7352_v22  ;;  %v11592_v32 = vpack.c.bf16 %v4175_v18, %v4173_v43 }
 0x507   : > { %v4128_v2 = vpop.f32.mrf.mxu2 }
 0x508   : > { %v4129_v48 = vadd.f32 %v4128_v2, %v11334_v7 }
 0x509   : > { %v4179_v10 = vpop.f32.mrf.mxu3  ;;  %v4228_v33 = vpop.f32.mrf.mxu0 }
 0x50a   : > { %v4178_v17 = vadd.f32 %v4177_v59, %v4129_v48  ;;  %v4229_v14 = vadd.f32 %v4228_v33, %v11321_v31 }
 0x50b   : > { %v4280_v62 = vpop.f32.mrf.mxu1 }
 0x50c   : > { %v4278_v24 = vadd.f32 %v4277_v9, %v4229_v14 }
 0x50e   : > { %4829 = vmatmul.bf16.gmra.mxu3 %v7364_v30  ;;  %4927 = vmatmul.bf16.gmra.mxu1 %v7364_v30  ;;  %v11600_v13 = vpack.c.bf16 %v4278_v24, %v4276_v27 }
 0x50f   : > { %v4130_v26 = vpop.f32.mrf.mxu2 }
 0x510   : > { %v4131_v6 = vadd.f32 %v4130_v26, %v11334_v7 }
 0x511   : > { %v4182_v40 = vpop.f32.mrf.mxu3  ;;  %v4231_v0 = vpop.f32.mrf.mxu0 }
 0x512   : > { %v4180_v5 = vadd.f32 %v4179_v10, %v4131_v6  ;;  %v4232_v60 = vadd.f32 %v4231_v0, %v11321_v31 }
 0x513   : > { %v4282_v54 = vpop.f32.mrf.mxu1 }
 0x514   : > { %v4281_v39 = vadd.f32 %v4280_v62, %v4232_v60  ;;  %4780 = vmatmul.bf16.gmra.mxu2 %v7360_v36  ;;  %4878 = vmatmul.bf16.gmra.mxu0 %v7360_v36  ;;  %v11604_v52 = vpack.c.bf16 %v4180_v5, %v4178_v17 }
 0x517   : > { %v4133_v43 = vpop.f32.mrf.mxu2 }
 0x518   : > { %v4134_v57 = vadd.f32 %v4133_v43, %v11334_v7 }
 0x519   : > { %v4184_v4 = vpop.f32.mrf.mxu3  ;;  %v4233_v41 = vpop.f32.mrf.mxu0 }
 0x51a   : > { %v4183_v20 = vadd.f32 %v4182_v40, %v4134_v57  ;;  %v4234_v42 = vadd.f32 %v4233_v41, %v11321_v31 }
 0x51b   : > { %v4893_v15 = vpop.f32.mrf.mxu1 }
 0x51c   : > { %v4283_v34 = vadd.f32 %v4282_v54, %v4234_v42 }
 0x51e   : > { %5150 = vmatmul.bf16.vlgmr.msra.gmra.mxu3 %v11378_v12  ;;  %5248 = vmatmul.bf16.vlgmr.msra.gmra.mxu1 %v11378_v12  ;;  %v11610_v63 = vpack.c.bf16 %v4283_v34, %v4281_v39 }
 0x51f   : > { %v4135_v8 = vpop.f32.mrf.mxu2 }
 0x520   : > { %v4136_v28 = vadd.f32 %v4135_v8, %v11334_v7 }
 0x521   : > { %v4795_v16 = vpop.f32.mrf.mxu3  ;;  %v4844_v35 = vpop.f32.mrf.mxu0 }
 0x522   : > { %v4185_v22 = vadd.f32 %v4184_v4, %v4136_v28  ;;  %v11613_v59 = vadd.f32 %v4893_v15, %v4844_v35 }
 0x523   : > { %v4895_v55 = vpop.f32.mrf.mxu1 }
 0x524   : > { %5101 = vmatmul.bf16.vlgmr.msra.gmra.mxu2 %v11385_v51  ;;  %5199 = vmatmul.bf16.vlgmr.msra.gmra.mxu0 %v11385_v51  ;;  %v11617_v31 = vpack.c.bf16 %v4185_v22, %v4183_v20 }
 0x527   : > { %v4746_v18 = vpop.f32.mrf.mxu2 }
 0x528   : > { %v11619_v11 = vadd.f32 %v4795_v16, %v4746_v18 }
 0x529   : > { %v4797_v12 = vpop.f32.mrf.mxu3  ;;  %v4846_v9 = vpop.f32.mrf.mxu0 }
 0x52a   : > { %v11621_v27 = vadd.f32 %v4895_v55, %v4846_v9 }
 0x52b   : > { %v4898_v7 = vpop.f32.mrf.mxu1 }
 0x52e   : > { %5155 = vmatmul.bf16.gmra.mxu3 %v11421_v46  ;;  %5253 = vmatmul.bf16.gmra.mxu1 %v11421_v46 }
 0x52f   : > { %v4748_v2 = vpop.f32.mrf.mxu2 }
 0x530   : > { %v11625_v1 = vadd.f32 %v4797_v12, %v4748_v2 }
 0x531   : > { %v4800_v38 = vpop.f32.mrf.mxu3  ;;  %v4849_v48 = vpop.f32.mrf.mxu0 }
 0x532   : > { %v11627_v51 = vadd.f32 %v4898_v7, %v4849_v48 }
 0x533   : > { %v4900_v10 = vpop.f32.mrf.mxu1 }
 0x534   : > { %5106 = vmatmul.bf16.gmra.mxu2 %v11433_v45  ;;  %5204 = vmatmul.bf16.gmra.mxu0 %v11433_v45 }
 0x537   : > { %v4751_v33 = vpop.f32.mrf.mxu2 }
 0x538   : > { %v11631_v17 = vadd.f32 %v4800_v38, %v4751_v33 }
 0x539   : > { %v4802_v14 = vpop.f32.mrf.mxu3  ;;  %v4851_v30 = vpop.f32.mrf.mxu0 }
 0x53a   : > { %v11633_v62 = vadd.f32 %v4900_v10, %v4851_v30 }
 0x53b   : > { %v4903_v46 = vpop.f32.mrf.mxu1 }
 0x53e   : > { %5160 = vmatmul.bf16.gmra.mxu3 %v11463_v53  ;;  %5258 = vmatmul.bf16.gmra.mxu1 %v11463_v53 }
 0x53f   : > { %v4753_v24 = vpop.f32.mrf.mxu2 }
 0x540   : > { %v11637_v21 = vadd.f32 %v4802_v14, %v4753_v24 }
 0x541   : > { %v4805_v29 = vpop.f32.mrf.mxu3  ;;  %v4854_v26 = vpop.f32.mrf.mxu0 }
 0x542   : > { %v11639_v6 = vadd.f32 %v4903_v46, %v4854_v26 }
 0x543   : > { %v4905_v45 = vpop.f32.mrf.mxu1 }
 0x544   : > { %5111 = vmatmul.bf16.gmra.mxu2 %v11475_v23  ;;  %5209 = vmatmul.bf16.gmra.mxu0 %v11475_v23 }
 0x547   : > { %v4756_v36 = vpop.f32.mrf.mxu2 }
 0x548   : > { %v11643_v40 = vadd.f32 %v4805_v29, %v4756_v36 }
 0x549   : > { %v4807_v0 = vpop.f32.mrf.mxu3  ;;  %v4856_v5 = vpop.f32.mrf.mxu0 }
 0x54a   : > { %v11645_v60 = vadd.f32 %v4905_v45, %v4856_v5 }
 0x54b   : > { %v4908_v53 = vpop.f32.mrf.mxu1 }
 0x54e   : > { %5165 = vmatmul.bf16.gmra.mxu3 %v11505_v25  ;;  %5263 = vmatmul.bf16.gmra.mxu1 %v11505_v25 }
 0x54f   : > { %v4758_v54 = vpop.f32.mrf.mxu2 }
 0x550   : > { %v11649_v39 = vadd.f32 %v4807_v0, %v4758_v54 }
 0x551   : > { %v4810_v43 = vpop.f32.mrf.mxu3  ;;  %v4859_v57 = vpop.f32.mrf.mxu0 }
 0x552   : > { %v11651_v4 = vadd.f32 %v4908_v53, %v4859_v57 }
 0x553   : > { %v4910_v23 = vpop.f32.mrf.mxu1 }
 0x554   : > { %5116 = vmatmul.bf16.gmra.mxu2 %v11520_v3  ;;  %5214 = vmatmul.bf16.gmra.mxu0 %v11520_v3 }
 0x557   : > { %v4761_v41 = vpop.f32.mrf.mxu2 }
 0x558   : > { %v11655_v20 = vadd.f32 %v4810_v43, %v4761_v41 }
 0x559   : > { %v4812_v42 = vpop.f32.mrf.mxu3  ;;  %v4861_v15 = vpop.f32.mrf.mxu0 }
 0x55a   : > { %v11657_v34 = vadd.f32 %v4910_v23, %v4861_v15 }
 0x55b   : > { %v4913_v25 = vpop.f32.mrf.mxu1 }
 0x55e   : > { %5170 = vmatmul.bf16.gmra.mxu3 %v11547_v37  ;;  %5268 = vmatmul.bf16.gmra.mxu1 %v11547_v37 }
 0x55f   : > { %v4763_v8 = vpop.f32.mrf.mxu2 }
 0x560   : > { %v11661_v28 = vadd.f32 %v4812_v42, %v4763_v8 }
 0x561   : > { %v4815_v16 = vpop.f32.mrf.mxu3  ;;  %v4864_v35 = vpop.f32.mrf.mxu0 }
 0x562   : > { %v11663_v22 = vadd.f32 %v4913_v25, %v4864_v35 }
 0x563   : > { %v4915_v3 = vpop.f32.mrf.mxu1 }
 0x564   : > { %5121 = vmatmul.bf16.gmra.mxu2 %v11562_v50  ;;  %5219 = vmatmul.bf16.gmra.mxu0 %v11562_v50 }
 0x567   : > { %v4766_v55 = vpop.f32.mrf.mxu2 }
 0x568   : > { %v11667_v18 = vadd.f32 %v4815_v16, %v4766_v55 }
 0x569   : > { %v4817_v12 = vpop.f32.mrf.mxu3  ;;  %v4866_v9 = vpop.f32.mrf.mxu0 }
 0x56a   : > { %v11669_v7 = vadd.f32 %v4915_v3, %v4866_v9 }
 0x56b   : > { %v4918_v37 = vpop.f32.mrf.mxu1 }
 0x56e   : > { %5175 = vmatmul.bf16.gmra.mxu3 %v11588_v49  ;;  %5273 = vmatmul.bf16.gmra.mxu1 %v11588_v49 }
 0x56f   : > { %v4768_v2 = vpop.f32.mrf.mxu2 }
 0x570   : > { %v11673_v38 = vadd.f32 %v4817_v12, %v4768_v2 }
 0x571   : > { %v4820_v48 = vpop.f32.mrf.mxu3  ;;  %v4869_v10 = vpop.f32.mrf.mxu0 }
 0x572   : > { %v11675_v33 = vadd.f32 %v4918_v37, %v4869_v10 }
 0x573   : > { %v4920_v50 = vpop.f32.mrf.mxu1 }
 0x574   : > { %5126 = vmatmul.bf16.gmra.mxu2 %v11592_v32  ;;  %5224 = vmatmul.bf16.gmra.mxu0 %v11592_v32 }
 0x577   : > { %v4771_v14 = vpop.f32.mrf.mxu2 }
 0x578   : > { %v11679_v30 = vadd.f32 %v4820_v48, %v4771_v14 }
 0x579   : > { %v4822_v46 = vpop.f32.mrf.mxu3  ;;  %v4871_v24 = vpop.f32.mrf.mxu0 }
 0x57a   : > { %v11681_v29 = vadd.f32 %v4920_v50, %v4871_v24  ;;  %v8211_v24 = vld [vmem:[%s12137_s7] sm:$0xff] }
 0x57b   : > { %v4923_v49 = vpop.f32.mrf.mxu1 }
 0x57e   : > { %5180 = vmatmul.bf16.gmra.mxu3 %v11600_v13  ;;  %5278 = vmatmul.bf16.gmra.mxu1 %v11600_v13 }
 0x57f   : > { %v4773_v26 = vpop.f32.mrf.mxu2 }
 0x580   : > { %v11685_v45 = vadd.f32 %v4822_v46, %v4773_v26  ;;  %v8212_v26 = vld [vmem:[%s12137_s7 + $0x8] sm:$0xff] }
 0x581   : > { %v4825_v36 = vpop.f32.mrf.mxu3  ;;  %v4874_v0 = vpop.f32.mrf.mxu0 }
 0x582   : > { %v11687_v5 = vadd.f32 %v4923_v49, %v4874_v0  ;;  %v11714_v49 = vperm.slane %v8211_v24, 5 }
 0x583   : > { %v4925_v32 = vpop.f32.mrf.mxu1 }
 0x584   : > { %5131 = vmatmul.bf16.gmra.mxu2 %v11604_v52  ;;  %5229 = vmatmul.bf16.gmra.mxu0 %v11604_v52 }
 0x587   : > { %v4776_v53 = vpop.f32.mrf.mxu2 }
 0x588   : > { %v11691_v54 = vadd.f32 %v4825_v36, %v4776_v53  ;;  %v11719_v36 = vperm.slane %v8212_v26, 5 }
 0x589   : > { %v4827_v43 = vpop.f32.mrf.mxu3  ;;  %v4876_v57 = vpop.f32.mrf.mxu0 }
 0x58a   : > { %v11693_v23 = vadd.f32 %v4925_v32, %v4876_v57 }
 0x58b   : > { %v4928_v13 = vpop.f32.mrf.mxu1 }
 0x58e   : > { %5185 = vmatmul.bf16.gmra.mxu3 %v11610_v63  ;;  %5283 = vmatmul.bf16.gmra.mxu1 %v11610_v63 }
 0x58f   : > { %v4778_v41 = vpop.f32.mrf.mxu2 }
 0x590   : > { %v11697_v42 = vadd.f32 %v4827_v43, %v4778_v41 }
 0x591   : > { %v4830_v15 = vpop.f32.mrf.mxu3  ;;  %v4879_v25 = vpop.f32.mrf.mxu0 }
 0x592   : > { %v11699_v8 = vadd.f32 %v4928_v13, %v4879_v25 }
 0x593   : > { %v4930_v52 = vpop.f32.mrf.mxu1 }
 0x594   : > { %5136 = vmatmul.bf16.gmra.mxu2 %v11617_v31  ;;  %5234 = vmatmul.bf16.gmra.mxu0 %v11617_v31 }
 0x597   : > { %v4781_v16 = vpop.f32.mrf.mxu2 }
 0x598   : > { %v11703_v35 = vadd.f32 %v4830_v15, %v4781_v16 }
 0x599   : > { %v4832_v3 = vpop.f32.mrf.mxu3  ;;  %v4881_v55 = vpop.f32.mrf.mxu0 }
 0x59a   : > { %v11705_v12 = vadd.f32 %v4930_v52, %v4881_v55 }
 0x59b   : > { %v5249_v63 = vpop.f32.mrf.mxu1 }
 0x59f   : > { %v4783_v9 = vpop.f32.mrf.mxu2 }
 0x5a0   : > { %v11707_v37 = vadd.f32 %v4832_v3, %v4783_v9 }
 0x5a1   : > { %v5151_v2 = vpop.f32.mrf.mxu3  ;;  %v5200_v48 = vpop.f32.mrf.mxu0 }
 0x5a2   : > { %v5201_v50 = vadd.f32 %v5200_v48, %v11613_v59 }
 0x5a3   : > { %v5251_v10 = vpop.f32.mrf.mxu1 }
 0x5a4   : > { %v5250_v46 = vadd.f32 %v5249_v63, %v5201_v50 }
 0x5a6   : > { %v11726_v57 = vadd.f32 %v11719_v36, %v5250_v46 }
 0x5a7   : > { %v5102_v14 = vpop.f32.mrf.mxu2 }
 0x5a8   : > { %v5103_v31 = vadd.f32 %v5102_v14, %v11619_v11 }
 0x5a9   : > { %v5153_v0 = vpop.f32.mrf.mxu3  ;;  %v5202_v32 = vpop.f32.mrf.mxu0 }
 0x5aa   : > { %v5152_v53 = vadd.f32 %v5151_v2, %v5103_v31  ;;  %v5203_v43 = vadd.f32 %v5202_v32, %v11621_v27 }
 0x5ab   : > { %v5254_v59 = vpop.f32.mrf.mxu1 }
 0x5ac   : > { %v11723_v11 = vadd.f32 %v11714_v49, %v5152_v53  ;;  %v5252_v15 = vadd.f32 %v5251_v10, %v5203_v43 }
 0x5ae   : > { %v5323_v13 = vmax.f32 %v11723_v11, %v11726_v57  ;;  %v11736_v9 = vadd.f32 %v11719_v36, %v5252_v15 }
 0x5af   : > { %v5104_v41 = vpop.f32.mrf.mxu2 }
 0x5b0   : > { %v5105_v25 = vadd.f32 %v5104_v41, %v11625_v1  ;;  %5324 = vmax.xlane.f32.xlu2 %v5323_v13 }
 0x5b1   : > { %v5156_v52 = vpop.f32.mrf.mxu3  ;;  %v5205_v16 = vpop.f32.mrf.mxu0 }
 0x5b2   : > { %v5154_v3 = vadd.f32 %v5153_v0, %v5105_v25  ;;  %v5206_v27 = vadd.f32 %v5205_v16, %v11627_v51 }
 0x5b3   : > { %v5256_v55 = vpop.f32.mrf.mxu1 }
 0x5b4   : > { %v11733_v63 = vadd.f32 %v11714_v49, %v5154_v3  ;;  %v5255_v10 = vadd.f32 %v5254_v59, %v5206_v27 }
 0x5b6   : > { %v5326_v2 = vmax.f32 %v11733_v63, %v11736_v9  ;;  %v11746_v26 = vadd.f32 %v11719_v36, %v5255_v10 }
 0x5b7   : > { %v5107_v48 = vpop.f32.mrf.mxu2 }
 0x5b8   : > { %v5108_v1 = vadd.f32 %v5107_v48, %v11631_v17  ;;  %5327 = vmax.xlane.f32.xlu0 %v5326_v2 }
 0x5b9   : > { %v5158_v50 = vpop.f32.mrf.mxu3  ;;  %v5207_v14 = vpop.f32.mrf.mxu0 }
 0x5ba   : > { %v5157_v46 = vadd.f32 %v5156_v52, %v5108_v1  ;;  %v5208_v51 = vadd.f32 %v5207_v14, %v11633_v62 }
 0x5bb   : > { %v5259_v31 = vpop.f32.mrf.mxu1 }
 0x5bc   : > { %v11743_v24 = vadd.f32 %v11714_v49, %v5157_v46  ;;  %v5257_v53 = vadd.f32 %v5256_v55, %v5208_v51 }
 0x5be   : > { %v5329_v0 = vmax.f32 %v11743_v24, %v11746_v26  ;;  %v11756_v25 = vadd.f32 %v11719_v36, %v5257_v53 }
 0x5bf   : > { %v5109_v32 = vpop.f32.mrf.mxu2 }
 0x5c0   : > { %v5110_v17 = vadd.f32 %v5109_v32, %v11637_v21  ;;  %5330 = vmax.xlane.f32.xlu1 %v5329_v0 }
 0x5c1   : > { %v5161_v59 = vpop.f32.mrf.mxu3  ;;  %v5210_v43 = vpop.f32.mrf.mxu0 }
 0x5c2   : > { %v5159_v13 = vadd.f32 %v5158_v50, %v5110_v17  ;;  %v5211_v62 = vadd.f32 %v5210_v43, %v11639_v6 }
 0x5c3   : > { %v5261_v41 = vpop.f32.mrf.mxu1 }
 0x5c4   : > { %v11753_v15 = vadd.f32 %v11714_v49, %v5159_v13  ;;  %v5260_v3 = vadd.f32 %v5259_v31, %v5211_v62 }
 0x5c6   : > { %v5332_v52 = vmax.f32 %v11753_v15, %v11756_v25  ;;  %v11766_v1 = vadd.f32 %v11719_v36, %v5260_v3 }
 0x5c7   : > { %v5112_v16 = vpop.f32.mrf.mxu2 }
 0x5c8   : > { %v5113_v21 = vadd.f32 %v5112_v16, %v11643_v40  ;;  %5333 = vmax.xlane.f32.xlu2 %v5332_v52 }
 0x5c9   : > { %v5163_v55 = vpop.f32.mrf.mxu3  ;;  %v5212_v27 = vpop.f32.mrf.mxu0 }
 0x5ca   : > { %v5162_v2 = vadd.f32 %v5161_v59, %v5113_v21  ;;  %v5213_v6 = vadd.f32 %v5212_v27, %v11645_v60 }
 0x5cb   : > { %v5264_v48 = vpop.f32.mrf.mxu1 }
 0x5cc   : > { %v11763_v10 = vadd.f32 %v11714_v49, %v5162_v2  ;;  %v5262_v46 = vadd.f32 %v5261_v41, %v5213_v6 }
 0x5ce   : > { %v5335_v50 = vmax.f32 %v11763_v10, %v11766_v1  ;;  %v11776_v17 = vadd.f32 %v11719_v36, %v5262_v46 }
 0x5cf   : > { %v5114_v14 = vpop.f32.mrf.mxu2 }
 0x5d0   : > { %v5115_v40 = vadd.f32 %v5114_v14, %v11649_v39  ;;  %5336 = vmax.xlane.f32.xlu0 %v5335_v50 }
 0x5d1   : > { %v5166_v31 = vpop.f32.mrf.mxu3  ;;  %v5215_v51 = vpop.f32.mrf.mxu0 }
 0x5d2   : > { %v5164_v0 = vadd.f32 %v5163_v55, %v5115_v40  ;;  %v5216_v60 = vadd.f32 %v5215_v51, %v11651_v4 }
 0x5d3   : > { %v5266_v32 = vpop.f32.mrf.mxu1 }
 0x5d4   : > { %v11773_v53 = vadd.f32 %v11714_v49, %v5164_v0  ;;  %v5265_v13 = vadd.f32 %v5264_v48, %v5216_v60 }
 0x5d6   : > { %v5338_v59 = vmax.f32 %v11773_v53, %v11776_v17  ;;  %v11786_v21 = vadd.f32 %v11719_v36, %v5265_v13 }
 0x5d7   : > { %v5117_v43 = vpop.f32.mrf.mxu2 }
 0x5d8   : > { %v5118_v39 = vadd.f32 %v5117_v43, %v11655_v20  ;;  %5339 = vmax.xlane.f32.xlu1 %v5338_v59 }
 0x5d9   : > { %v5168_v41 = vpop.f32.mrf.mxu3  ;;  %v5217_v62 = vpop.f32.mrf.mxu0 }
 0x5da   : > { %v5167_v52 = vadd.f32 %v5166_v31, %v5118_v39  ;;  %v5218_v4 = vadd.f32 %v5217_v62, %v11657_v34 }
 0x5db   : > { %v5269_v16 = vpop.f32.mrf.mxu1 }
 0x5dc   : > { %v11783_v3 = vadd.f32 %v11714_v49, %v5167_v52  ;;  %v5267_v2 = vadd.f32 %v5266_v32, %v5218_v4 }
 0x5de   : > { %v5341_v55 = vmax.f32 %v11783_v3, %v11786_v21  ;;  %v11796_v40 = vadd.f32 %v11719_v36, %v5267_v2 }
 0x5df   : > { %v5119_v27 = vpop.f32.mrf.mxu2 }
 0x5e0   : > { %v5120_v20 = vadd.f32 %v5119_v27, %v11661_v28  ;;  %5342 = vmax.xlane.f32.xlu2 %v5341_v55 }
 0x5e1   : > { %v5171_v48 = vpop.f32.mrf.mxu3  ;;  %v5220_v6 = vpop.f32.mrf.mxu0 }
 0x5e2   : > { %v5169_v50 = vadd.f32 %v5168_v41, %v5120_v20  ;;  %v5221_v34 = vadd.f32 %v5220_v6, %v11663_v22 }
 0x5e3   : > { %v5271_v14 = vpop.f32.mrf.mxu1 }
 0x5e4   : > { %v11793_v46 = vadd.f32 %v11714_v49, %v5169_v50  ;;  %v5270_v0 = vadd.f32 %v5269_v16, %v5221_v34 }
 0x5e6   : > { %v5344_v31 = vmax.f32 %v11793_v46, %v11796_v40  ;;  %v11806_v13 = vadd.f32 %v11719_v36, %v5270_v0 }
 0x5e7   : > { %v5122_v51 = vpop.f32.mrf.mxu2 }
 0x5e8   : > { %v5123_v28 = vadd.f32 %v5122_v51, %v11667_v18  ;;  %5345 = vmax.xlane.f32.xlu0 %v5344_v31 }
 0x5e9   : > { %v5173_v32 = vpop.f32.mrf.mxu3  ;;  %v5222_v60 = vpop.f32.mrf.mxu0 }
 0x5ea   : > { %v5172_v59 = vadd.f32 %v5171_v48, %v5123_v28  ;;  %v5223_v43 = vadd.f32 %v5222_v60, %v11669_v7 }
 0x5eb   : > { %v5274_v39 = vpop.f32.mrf.mxu1 }
 0x5ec   : > { %v11803_v22 = vadd.f32 %v11714_v49, %v5172_v59  ;;  %v5272_v52 = vadd.f32 %v5271_v14, %v5223_v43 }
 0x5ee   : > { %v5347_v41 = vmax.f32 %v11803_v22, %v11806_v13  ;;  %v11816_v2 = vadd.f32 %v11719_v36, %v5272_v52 }
 0x5ef   : > { %v5124_v62 = vpop.f32.mrf.mxu2 }
 0x5f0   : > { %v5125_v18 = vadd.f32 %v5124_v62, %v11673_v38  ;;  %5348 = vmax.xlane.f32.xlu1 %v5347_v41 }
 0x5f1   : > { %v5176_v16 = vpop.f32.mrf.mxu3  ;;  %v5225_v4 = vpop.f32.mrf.mxu0 }
 0x5f2   : > { %v5174_v55 = vadd.f32 %v5173_v32, %v5125_v18  ;;  %v5226_v7 = vadd.f32 %v5225_v4, %v11675_v33 }
 0x5f3   : > { %v5276_v48 = vpop.f32.mrf.mxu1 }
 0x5f4   : > { %v11813_v27 = vadd.f32 %v11714_v49, %v5174_v55  ;;  %v5275_v50 = vadd.f32 %v5274_v39, %v5226_v7 }
 0x5f6   : > { %v5350_v20 = vmax.f32 %v11813_v27, %v11816_v2  ;;  %v11826_v0 = vadd.f32 %v11719_v36, %v5275_v50 }
 0x5f7   : > { %v5127_v6 = vpop.f32.mrf.mxu2 }
 0x5f8   : > { %v5128_v38 = vadd.f32 %v5127_v6, %v11679_v30  ;;  %5351 = vmax.xlane.f32.xlu2 %v5350_v20 }
 0x5f9   : > { %v5178_v14 = vpop.f32.mrf.mxu3  ;;  %v5227_v34 = vpop.f32.mrf.mxu0 }
 0x5fa   : > { %v5177_v31 = vadd.f32 %v5176_v16, %v5128_v38  ;;  %v5228_v33 = vadd.f32 %v5227_v34, %v11681_v29 }
 0x5fb   : > { %v5279_v30 = vpop.f32.mrf.mxu1 }
 0x5fc   : > { %v11823_v51 = vadd.f32 %v11714_v49, %v5177_v31  ;;  %v5277_v60 = vadd.f32 %v5276_v48, %v5228_v33 }
 0x5fe   : > { %v5353_v28 = vmax.f32 %v11823_v51, %v11826_v0  ;;  %v11836_v52 = vadd.f32 %v11719_v36, %v5277_v60 }
 0x5ff   : > { %v5129_v32 = vpop.f32.mrf.mxu2 }
 0x600   : > { %v5130_v59 = vadd.f32 %v5129_v32, %v11685_v45  ;;  %5354 = vmax.xlane.f32.xlu0 %v5353_v28 }
 0x601   : > { %v5230_v43 = vpop.f32.mrf.mxu0  ;;  %v5181_v41 = vpop.f32.mrf.mxu3 }
 0x602   : > { %v5179_v39 = vadd.f32 %v5178_v14, %v5130_v59  ;;  %v5231_v29 = vadd.f32 %v5230_v43, %v11687_v5 }
 0x603   : > { %v5281_v20 = vpop.f32.mrf.mxu1 }
 0x604   : > { %v11833_v62 = vadd.f32 %v11714_v49, %v5179_v39  ;;  %v5280_v4 = vadd.f32 %v5279_v30, %v5231_v29 }
 0x606   : > { %v5356_v18 = vmax.f32 %v11833_v62, %v11836_v52  ;;  %v11846_v6 = vadd.f32 %v11719_v36, %v5280_v4 }
 0x607   : > { %v5132_v16 = vpop.f32.mrf.mxu2 }
 0x608   : > { %v5133_v45 = vadd.f32 %v5132_v16, %v11691_v54  ;;  %5357 = vmax.xlane.f32.xlu1 %v5356_v18 }
 0x609   : > { %v5232_v55 = vpop.f32.mrf.mxu0  ;;  %v5183_v50 = vpop.f32.mrf.mxu3 }
 0x60a   : > { %v5182_v7 = vadd.f32 %v5181_v41, %v5133_v45  ;;  %v5233_v48 = vadd.f32 %v5232_v55, %v11693_v23 }
 0x60b   : > { %v5284_v60 = vpop.f32.mrf.mxu1 }
 0x60c   : > { %v11843_v5 = vadd.f32 %v11714_v49, %v5182_v7  ;;  %v5282_v34 = vadd.f32 %v5281_v20, %v5233_v48 }
 0x60e   : > { %v5359_v38 = vmax.f32 %v11843_v5, %v11846_v6  ;;  %v11856_v32 = vadd.f32 %v11719_v36, %v5282_v34 }
 0x60f   : > { %v5134_v14 = vpop.f32.mrf.mxu2 }
 0x610   : > { %v5135_v54 = vadd.f32 %v5134_v14, %v11697_v42  ;;  %5360 = vmax.xlane.f32.xlu2 %v5359_v38 }
 0x611   : > { %v5235_v31 = vpop.f32.mrf.mxu0  ;;  %v5186_v30 = vpop.f32.mrf.mxu3 }
 0x612   : > { %v5184_v33 = vadd.f32 %v5183_v50, %v5135_v54  ;;  %v5236_v28 = vadd.f32 %v5235_v31, %v11699_v8 }
 0x613   : > { %v5286_v45 = vpop.f32.mrf.mxu1 }
 0x614   : > { %v11853_v23 = vadd.f32 %v11714_v49, %v5184_v33  ;;  %v5285_v39 = vadd.f32 %v5284_v60, %v5236_v28 }
 0x616   : > { %v5362_v59 = vmax.f32 %v11853_v23, %v11856_v32  ;;  %v11866_v16 = vadd.f32 %v11719_v36, %v5285_v39 }
 0x617   : > { %v5137_v43 = vpop.f32.mrf.mxu2 }
 0x618   : > { %v5138_v42 = vadd.f32 %v5137_v43, %v11703_v35  ;;  %5363 = vmax.xlane.f32.xlu0 %v5362_v59 }
 0x619   : > { %v5237_v41 = vpop.f32.mrf.mxu0  ;;  %v5188_v35 = vpop.f32.mrf.mxu3 }
 0x61a   : > { %v5187_v29 = vadd.f32 %v5186_v30, %v5138_v42  ;;  %v5238_v8 = vadd.f32 %v5237_v41, %v11705_v12 }
 0x61c   : > { %v11863_v18 = vadd.f32 %v11714_v49, %v5187_v29  ;;  %v5287_v7 = vadd.f32 %v5286_v45, %v5238_v8 }
 0x61e   : > { %v5365_v4 = vmax.f32 %v11863_v18, %v11866_v16  ;;  %v11878_v34 = vadd.f32 %v11719_v36, %v5287_v7 }
 0x61f   : > { %v5139_v55 = vpop.f32.mrf.mxu2 }
 0x620   : > { %v5140_v20 = vadd.f32 %v5139_v55, %v11707_v37  ;;  %5366 = vmax.xlane.f32.xlu1 %v5365_v4  ;;  %4353 = vadd.xlane.f32.xlu0 %v11261_v56 }
 0x622   : > { %v5189_v48 = vadd.f32 %v5188_v35, %v5140_v20 }
 0x623   : > { %v5325_v12 = vpop.xlane.xlu2 %5324 }
 0x624   : > { %v5371_v50 = vsub.f32 %v11723_v11, %v5325_v12  ;;  %v5372_v38 = vsub.f32 %v11726_v57, %v5325_v12  ;;  %v11875_v14 = vadd.f32 %v11714_v49, %v5189_v48 }
 0x626   : > { %v5403_v54 = vmul.f32 1.442695, %v5371_v50  ;;  %v5405_v31 = vmul.f32 1.442695, %v5372_v38  ;;  %v5368_v37 = vmax.f32 %v11875_v14, %v11878_v34 }
 0x628   : > { %8111 = vpow2.f32 %v5403_v54  ;;  %5369 = vmax.xlane.f32.xlu2 %v5368_v37 }
 0x629   : > { %8113 = vpow2.f32 %v5405_v31 }
 0x62b   : > { %v5328_v56 = vpop.xlane.xlu0 %5327 }
 0x62c   : > { %v5373_v33 = vsub.f32 %v11733_v63, %v5328_v56  ;;  %v5374_v11 = vsub.f32 %v11736_v9, %v5328_v56 }
 0x62e   : > { %v11884_v57 = vpop.eup %8111  ;;  %v5407_v49 = vmul.f32 1.442695, %v5373_v33  ;;  %v5409_v28 = vmul.f32 1.442695, %v5374_v11 }
 0x62f   : > { %v11886_v60 = vpop.eup %8113 }
 0x630   : > { %8115 = vpow2.f32 %v5407_v49  ;;  %v5467_v36 = vadd.f32 %v11886_v60, %v11884_v57 }
 0x631   : > { %8117 = vpow2.f32 %v5409_v28 }
 0x632   : > { %5468 = vadd.xlane.f32.xlu1 %v5467_v36 }
 0x633   : > { %v5331_v59 = vpop.xlane.xlu1 %5330 }
 0x634   : > { %v5375_v30 = vsub.f32 %v11743_v24, %v5331_v59  ;;  %v5376_v43 = vsub.f32 %v11746_v26, %v5331_v59 }
 0x636   : > { %v11892_v63 = vpop.eup %8115  ;;  %v5411_v9 = vmul.f32 1.442695, %v5375_v30  ;;  %v5413_v39 = vmul.f32 1.442695, %v5376_v43 }
 0x637   : > { %v11894_v42 = vpop.eup %8117 }
 0x638   : > { %8119 = vpow2.f32 %v5411_v9  ;;  %v5470_v41 = vadd.f32 %v11894_v42, %v11892_v63 }
 0x639   : > { %8121 = vpow2.f32 %v5413_v39 }
 0x63a   : > { %5471 = vadd.xlane.f32.xlu2 %v5470_v41 }
 0x63b   : > { %v5334_v29 = vpop.xlane.xlu2 %5333 }
 0x63c   : > { %v5377_v8 = vsub.f32 %v11753_v15, %v5334_v29  ;;  %v5378_v4 = vsub.f32 %v11756_v25, %v5334_v29 }
 0x63e   : > { %v11900_v24 = vpop.eup %8119  ;;  %v5415_v26 = vmul.f32 1.442695, %v5377_v8  ;;  %v5417_v45 = vmul.f32 1.442695, %v5378_v4 }
 0x63f   : > { %v11902_v55 = vpop.eup %8121 }
 0x640   : > { %8123 = vpow2.f32 %v5415_v26  ;;  %v5473_v7 = vadd.f32 %v11902_v55, %v11900_v24 }
 0x641   : > { %8125 = vpow2.f32 %v5417_v45 }
 0x642   : > { %5474 = vadd.xlane.f32.xlu0 %v5473_v7 }
 0x643   : > { %v5337_v20 = vpop.xlane.xlu0 %5336 }
 0x644   : > { %v5379_v35 = vsub.f32 %v11763_v10, %v5337_v20  ;;  %v5380_v48 = vsub.f32 %v11766_v1, %v5337_v20 }
 0x646   : > { %v11908_v15 = vpop.eup %8123  ;;  %v5419_v25 = vmul.f32 1.442695, %v5379_v35  ;;  %v5421_v12 = vmul.f32 1.442695, %v5380_v48 }
 0x647   : > { %v11910_v50 = vpop.eup %8125 }
 0x648   : > { %8127 = vpow2.f32 %v5419_v25  ;;  %v5476_v38 = vadd.f32 %v11910_v50, %v11908_v15 }
 0x649   : > { %8129 = vpow2.f32 %v5421_v12 }
 0x64a   : > { %5477 = vadd.xlane.f32.xlu1 %v5476_v38 }
 0x64b   : > { %v5340_v54 = vpop.xlane.xlu1 %5339 }
 0x64c   : > { %v5381_v31 = vsub.f32 %v11773_v53, %v5340_v54  ;;  %v5382_v37 = vsub.f32 %v11776_v17, %v5340_v54 }
 0x64e   : > { %v11916_v10 = vpop.eup %8127  ;;  %v5423_v1 = vmul.f32 1.442695, %v5381_v31  ;;  %v5425_v56 = vmul.f32 1.442695, %v5382_v37 }
 0x64f   : > { %v11918_v33 = vpop.eup %8129 }
 0x650   : > { %8131 = vpow2.f32 %v5423_v1  ;;  %v5479_v11 = vadd.f32 %v11918_v33, %v11916_v10 }
 0x651   : > { %8133 = vpow2.f32 %v5425_v56 }
 0x652   : > { %5480 = vadd.xlane.f32.xlu2 %v5479_v11 }
 0x653   : > { %v5343_v49 = vpop.xlane.xlu2 %5342 }
 0x654   : > { %v5383_v28 = vsub.f32 %v11783_v3, %v5343_v49  ;;  %v5384_v36 = vsub.f32 %v11786_v21, %v5343_v49 }
 0x656   : > { %v11924_v53 = vpop.eup %8131  ;;  %v5427_v17 = vmul.f32 1.442695, %v5383_v28  ;;  %v5429_v59 = vmul.f32 1.442695, %v5384_v36 }
 0x657   : > { %v11926_v30 = vpop.eup %8133 }
 0x658   : > { %8135 = vpow2.f32 %v5427_v17  ;;  %v5482_v43 = vadd.f32 %v11926_v30, %v11924_v53 }
 0x659   : > { %8137 = vpow2.f32 %v5429_v59 }
 0x65a   : > { %5483 = vadd.xlane.f32.xlu0 %v5482_v43 }
 0x65b   : > { %v5346_v9 = vpop.xlane.xlu0 %5345 }
 0x65c   : > { %v5385_v39 = vsub.f32 %v11793_v46, %v5346_v9  ;;  %v5386_v41 = vsub.f32 %v11796_v40, %v5346_v9 }
 0x65e   : > { %v11932_v3 = vpop.eup %8135  ;;  %v5431_v21 = vmul.f32 1.442695, %v5385_v39  ;;  %v5433_v29 = vmul.f32 1.442695, %v5386_v41 }
 0x65f   : > { %v11934_v8 = vpop.eup %8137 }
 0x660   : > { %8139 = vpow2.f32 %v5431_v21  ;;  %v5485_v4 = vadd.f32 %v11934_v8, %v11932_v3 }
 0x661   : > { %8141 = vpow2.f32 %v5433_v29 }
 0x662   : > { %5486 = vadd.xlane.f32.xlu1 %v5485_v4 }
 0x663   : > { %v5349_v26 = vpop.xlane.xlu1 %5348 }
 0x664   : > { %v5387_v45 = vsub.f32 %v11803_v22, %v5349_v26  ;;  %v5388_v7 = vsub.f32 %v11806_v13, %v5349_v26 }
 0x666   : > { %v11940_v46 = vpop.eup %8139  ;;  %v5435_v40 = vmul.f32 1.442695, %v5387_v45  ;;  %v5437_v20 = vmul.f32 1.442695, %v5388_v7 }
 0x667   : > { %v11942_v35 = vpop.eup %8141 }
 0x668   : > { %8143 = vpow2.f32 %v5435_v40  ;;  %v5488_v48 = vadd.f32 %v11942_v35, %v11940_v46 }
 0x669   : > { %8145 = vpow2.f32 %v5437_v20 }
 0x66a   : > { %5489 = vadd.xlane.f32.xlu2 %v5488_v48 }
 0x66b   : > { %v5352_v25 = vpop.xlane.xlu2 %5351 }
 0x66c   : > { %v5389_v12 = vsub.f32 %v11813_v27, %v5352_v25  ;;  %v5390_v38 = vsub.f32 %v11816_v2, %v5352_v25 }
 0x66e   : > { %v11948_v22 = vpop.eup %8143  ;;  %v5439_v13 = vmul.f32 1.442695, %v5389_v12  ;;  %v5441_v54 = vmul.f32 1.442695, %v5390_v38 }
 0x66f   : > { %v11950_v31 = vpop.eup %8145 }
 0x670   : > { %8147 = vpow2.f32 %v5439_v13  ;;  %v5491_v37 = vadd.f32 %v11950_v31, %v11948_v22 }
 0x671   : > { %8149 = vpow2.f32 %v5441_v54 }
 0x672   : > { %5492 = vadd.xlane.f32.xlu0 %v5491_v37 }
 0x673   : > { %v5355_v1 = vpop.xlane.xlu0 %5354 }
 0x674   : > { %v5391_v56 = vsub.f32 %v11823_v51, %v5355_v1  ;;  %v5392_v11 = vsub.f32 %v11826_v0, %v5355_v1 }
 0x676   : > { %v11956_v27 = vpop.eup %8147  ;;  %v5443_v2 = vmul.f32 1.442695, %v5391_v56  ;;  %v5445_v49 = vmul.f32 1.442695, %v5392_v11 }
 0x677   : > { %v11958_v28 = vpop.eup %8149 }
 0x678   : > { %8151 = vpow2.f32 %v5443_v2  ;;  %v5494_v36 = vadd.f32 %v11958_v28, %v11956_v27 }
 0x679   : > { %8153 = vpow2.f32 %v5445_v49 }
 0x67a   : > { %5495 = vadd.xlane.f32.xlu1 %v5494_v36 }
 0x67b   : > { %v5358_v17 = vpop.xlane.xlu1 %5357 }
 0x67c   : > { %v5393_v59 = vsub.f32 %v11833_v62, %v5358_v17  ;;  %v5394_v43 = vsub.f32 %v11836_v52, %v5358_v17 }
 0x67e   : > { %v11964_v51 = vpop.eup %8151  ;;  %v5447_v0 = vmul.f32 1.442695, %v5393_v59  ;;  %v5449_v9 = vmul.f32 1.442695, %v5394_v43 }
 0x67f   : > { %v11966_v39 = vpop.eup %8153 }
 0x680   : > { %8155 = vpow2.f32 %v5447_v0  ;;  %v5497_v41 = vadd.f32 %v11966_v39, %v11964_v51 }
 0x681   : > { %8157 = vpow2.f32 %v5449_v9 }
 0x682   : > { %5498 = vadd.xlane.f32.xlu2 %v5497_v41 }
 0x683   : > { %v5361_v21 = vpop.xlane.xlu2 %5360 }
 0x684   : > { %v5395_v29 = vsub.f32 %v11843_v5, %v5361_v21  ;;  %v5396_v4 = vsub.f32 %v11846_v6, %v5361_v21 }
 0x686   : > { %v11972_v62 = vpop.eup %8155  ;;  %v5451_v52 = vmul.f32 1.442695, %v5395_v29  ;;  %v5453_v26 = vmul.f32 1.442695, %v5396_v4 }
 0x687   : > { %v11974_v45 = vpop.eup %8157 }
 0x688   : > { %8159 = vpow2.f32 %v5451_v52  ;;  %v5500_v7 = vadd.f32 %v11974_v45, %v11972_v62 }
 0x689   : > { %8161 = vpow2.f32 %v5453_v26 }
 0x68a   : > { %5501 = vadd.xlane.f32.xlu0 %v5500_v7 }
 0x68b   : > { %v5364_v40 = vpop.xlane.xlu0 %5363 }
 0x68c   : > { %v5397_v20 = vsub.f32 %v11853_v23, %v5364_v40  ;;  %v5398_v48 = vsub.f32 %v11856_v32, %v5364_v40 }
 0x68e   : > { %v11980_v5 = vpop.eup %8159  ;;  %v5455_v6 = vmul.f32 1.442695, %v5397_v20  ;;  %v5457_v25 = vmul.f32 1.442695, %v5398_v48 }
 0x68f   : > { %v11982_v12 = vpop.eup %8161 }
 0x690   : > { %8163 = vpow2.f32 %v5455_v6  ;;  %v5503_v38 = vadd.f32 %v11982_v12, %v11980_v5 }
 0x691   : > { %8165 = vpow2.f32 %v5457_v25 }
 0x692   : > { %5504 = vadd.xlane.f32.xlu1 %v5503_v38 }
 0x693   : > { %v5367_v13 = vpop.xlane.xlu1 %5366  ;;  %v4354_v54 = vpop.xlane.xlu0 %4353 }
 0x694   : > { %v5399_v37 = vsub.f32 %v11863_v18, %v5367_v13  ;;  %v5400_v23 = vsub.f32 %v11866_v16, %v5367_v13  ;;  %v4379_v32 = vadd.f32 %v11331_v44, %v4354_v54 }
 0x696   : > { %v11989_v1 = vpop.eup %8163  ;;  %v5459_v56 = vmul.f32 1.442695, %v5399_v37  ;;  %v5461_v11 = vmul.f32 1.442695, %v5400_v23  ;;  %4396 = vst.msk [vmem:[%s11345_s23 + $0x58] sm:$0xff] %vm4384_vm0, %v4379_v32 }
 0x697   : > { %v11993_v2 = vpop.eup %8165 }
 0x698   : > { %8167 = vpow2.f32 %v5459_v56  ;;  %v5506_v49 = vadd.f32 %v11993_v2, %v11989_v1 }
 0x699   : > { %8169 = vpow2.f32 %v5461_v11 }
 0x69a   : > { %5507 = vadd.xlane.f32.xlu2 %v5506_v49 }
 0x69b   : > { %v5370_v36 = vpop.xlane.xlu2 %5369 }
 0x69c   : > { %v5401_v18 = vsub.f32 %v11875_v14, %v5370_v36  ;;  %v5402_v16 = vsub.f32 %v11878_v34, %v5370_v36 }
 0x69e   : > { %v11999_v17 = vpop.eup %8167  ;;  %v5463_v59 = vmul.f32 1.442695, %v5401_v18  ;;  %v5465_v43 = vmul.f32 1.442695, %v5402_v16 }
 0x69f   : > { %v12001_v0 = vpop.eup %8169 }
 0x6a0   : > { %8171 = vpow2.f32 %v5463_v59  ;;  %v5509_v9 = vadd.f32 %v12001_v0, %v11999_v17 }
 0x6a1   : > { %8173 = vpow2.f32 %v5465_v43 }
 0x6a2   : > { %5510 = vadd.xlane.f32.xlu0 %v5509_v9  ;;  %4356 = vadd.xlane.f32.xlu2 %v11281_v19 }
 0x6a5   : > { %v5469_v41 = vpop.xlane.xlu1 %5468 }
 0x6a6   : > { %v12006_v21 = vpop.eup %8171  ;;  %8175 = vrcp.f32 %v5469_v41  ;;  %v5526_v26 = vand.u32 2147483648, %v5469_v41  ;;  %v5524_v40 = vand.u32 2147483647, %v5469_v41  ;;  %vm5520_vm2 = vweird.f32 %v5469_v41 }
 0x6a7   : > { %v12008_v14 = vpop.eup %8173 }
 0x6a8   : > { %v5512_v34 = vadd.f32 %v12008_v14, %v12006_v21  ;;  %vm5525_vm4 = vcmp.eq.f32.partialorder %v5524_v40, 8.507059e+37 }
 0x6aa   : > { %4359 = vadd.xlane.f32.xlu0 %v11303_v58  ;;  %4365 = vadd.xlane.f32.xlu2 %v11361_v61  ;;  %v5527_v61 = vor.u32 1.1754944e-38, %v5526_v26 }
 0x6ab   : > { %5513 = vadd.xlane.f32.xlu1 %v5512_v34 }
 0x6ac   : > { %v8176_v29 = vpop.eup %8175 }
 0x6ad   : > { %v5516_v4 = vmul.f32 %v8176_v29, %v5469_v41  ;;  %v5472_v52 = vpop.xlane.xlu2 %5471  ;;  %vm5521_vm1 = vweird.f32 %v8176_v29 }
 0x6ae   : > { %8177 = vrcp.f32 %v5472_v52  ;;  %vm5522_vm3 = vmor %vm5520_vm2, %vm5521_vm1  ;;  %v5542_v23 = vand.u32 2147483648, %v5472_v52  ;;  %v5540_v32 = vand.u32 2147483647, %v5472_v52  ;;  %vm5536_vm6 = vweird.f32 %v5472_v52 }
 0x6af   : > { %v5517_v19 = vsub.f32 1.0, %v5516_v4 }
 0x6b0   : > { %vm5541_vm8 = vcmp.eq.f32.partialorder %v5540_v32, 8.507059e+37 }
 0x6b1   : > { %v5518_v7 = vmul.f32 %v8176_v29, %v5517_v19 }
 0x6b3   : > { %v5519_v20 = vadd.f32 %v8176_v29, %v5518_v7  ;;  %4362 = vadd.xlane.f32.xlu1 %v11326_v47 }
 0x6b4   : > { %v8178_v58 = vpop.eup %8177 }
 0x6b5   : > { %v5523_v48 = vsel %vm5522_vm3, %v8176_v29, %v5519_v20  ;;  %v5532_v6 = vmul.f32 %v8178_v58, %v5472_v52  ;;  %v5475_v25 = vpop.xlane.xlu0 %5474  ;;  %vm5537_vm5 = vweird.f32 %v8178_v58 }
 0x6b6   : > { %v5528_v38 = vsel %vm5525_vm4, %v5527_v61, %v5523_v48  ;;  %8179 = vrcp.f32 %v5475_v25  ;;  %vm5538_vm7 = vmor %vm5536_vm6, %vm5537_vm5  ;;  %v5558_v9 = vand.u32 2147483648, %v5475_v25  ;;  %v5556_v34 = vand.u32 2147483647, %v5475_v25 }
 0x6b7   : > { %v5529_v13 = vmul.f32 %v11884_v57, %v5528_v38  ;;  %v5530_v54 = vmul.f32 %v11886_v60, %v5528_v38  ;;  %v5533_v37 = vsub.f32 1.0, %v5532_v6  ;;  %v5543_v57 = vor.u32 1.1754944e-38, %v5542_v23 }
 0x6b8   : > { %vm5552_vm10 = vweird.f32 %v5475_v25  ;;  %v5559_v52 = vor.u32 1.1754944e-38, %v5558_v9  ;;  %vm5557_vm12 = vcmp.eq.f32.partialorder %v5556_v34, 8.507059e+37 }
 0x6b9   : > { %5771 = vst [vmem:[%s12020_s24] sm:$0xff] %v5529_v13  ;;  %v5534_v47 = vmul.f32 %v8178_v58, %v5533_v37 }
 0x6ba   : > { %5772 = vst [vmem:[%s12020_s24 + $0x8] sm:$0xff] %v5530_v54 }
 0x6bb   : > { %v5535_v56 = vadd.f32 %v8178_v58, %v5534_v47 }
 0x6bc   : > { %v8180_v11 = vpop.eup %8179 }
 0x6bd   : > { %v5539_v49 = vsel %vm5538_vm7, %v8178_v58, %v5535_v56  ;;  %v5548_v60 = vmul.f32 %v8180_v11, %v5475_v25  ;;  %v5478_v36 = vpop.xlane.xlu1 %5477  ;;  %vm5553_vm9 = vweird.f32 %v8180_v11 }
 0x6be   : > { %v5544_v18 = vsel %vm5541_vm8, %v5543_v57, %v5539_v49  ;;  %8181 = vrcp.f32 %v5478_v36  ;;  %vm5554_vm11 = vmor %vm5552_vm10, %vm5553_vm9  ;;  %v5574_v58 = vand.u32 2147483648, %v5478_v36  ;;  %v5572_v48 = vand.u32 2147483647, %v5478_v36 }
 0x6bf   : > { %v5545_v16 = vmul.f32 %v11892_v63, %v5544_v18  ;;  %v5546_v59 = vmul.f32 %v11894_v42, %v5544_v18  ;;  %v5549_v43 = vsub.f32 1.0, %v5548_v60  ;;  %vm5568_vm14 = vweird.f32 %v5478_v36 }
 0x6c0   : > { %v5575_v38 = vor.u32 1.1754944e-38, %v5574_v58  ;;  %vm5573_vm1 = vcmp.eq.f32.partialorder %v5572_v48, 8.507059e+37 }
 0x6c1   : > { %5773 = vst [vmem:[%s12020_s24 + $0x10] sm:$0xff] %v5545_v16  ;;  %v5550_v41 = vmul.f32 %v8180_v11, %v5549_v43 }
 0x6c2   : > { %5774 = vst [vmem:[%s12020_s24 + $0x18] sm:$0xff] %v5546_v59 }
 0x6c3   : > { %v5551_v29 = vadd.f32 %v8180_v11, %v5550_v41 }
 0x6c4   : > { %v8182_v4 = vpop.eup %8181 }
 0x6c5   : > { %v5555_v19 = vsel %vm5554_vm11, %v8180_v11, %v5551_v29  ;;  %v5564_v26 = vmul.f32 %v8182_v4, %v5478_v36  ;;  %v5481_v63 = vpop.xlane.xlu2 %5480  ;;  %vm5569_vm13 = vweird.f32 %v8182_v4 }
 0x6c6   : > { %v5560_v7 = vsel %vm5557_vm12, %v5559_v52, %v5555_v19  ;;  %8183 = vrcp.f32 %v5481_v63  ;;  %vm5570_vm15 = vmor %vm5568_vm14, %vm5569_vm13  ;;  %v5590_v32 = vand.u32 2147483648, %v5481_v63  ;;  %v5588_v11 = vand.u32 2147483647, %v5481_v63 }
 0x6c7   : > { %v5561_v42 = vmul.f32 %v11900_v24, %v5560_v7  ;;  %v5562_v40 = vmul.f32 %v11902_v55, %v5560_v7  ;;  %v5565_v20 = vsub.f32 1.0, %v5564_v26  ;;  %vm5584_vm3 = vweird.f32 %v5481_v63 }
 0x6c8   : > { %v5591_v60 = vor.u32 1.1754944e-38, %v5590_v32  ;;  %vm5589_vm5 = vcmp.eq.f32.partialorder %v5588_v11, 8.507059e+37 }
 0x6c9   : > { %5775 = vst [vmem:[%s12020_s24 + $0x20] sm:$0xff] %v5561_v42  ;;  %v5566_v61 = vmul.f32 %v8182_v4, %v5565_v20 }
 0x6ca   : > { %5776 = vst [vmem:[%s12020_s24 + $0x28] sm:$0xff] %v5562_v40 }
 0x6cb   : > { %v5567_v6 = vadd.f32 %v8182_v4, %v5566_v61 }
 0x6cc   : > { %v8184_v25 = vpop.eup %8183 }
 0x6cd   : > { %v5571_v13 = vsel %vm5570_vm15, %v8182_v4, %v5567_v6  ;;  %v5580_v54 = vmul.f32 %v8184_v25, %v5481_v63  ;;  %v5484_v24 = vpop.xlane.xlu0 %5483  ;;  %vm5585_vm2 = vweird.f32 %v8184_v25 }
 0x6ce   : > { %v5576_v37 = vsel %vm5573_vm1, %v5575_v38, %v5571_v13  ;;  %8185 = vrcp.f32 %v5484_v24  ;;  %vm5586_vm4 = vmor %vm5584_vm3, %vm5585_vm2  ;;  %v5606_v9 = vand.u32 2147483648, %v5484_v24  ;;  %v5604_v34 = vand.u32 2147483647, %v5484_v24 }
 0x6cf   : > { %v5577_v55 = vmul.f32 %v11908_v15, %v5576_v37  ;;  %v5578_v23 = vmul.f32 %v11910_v50, %v5576_v37  ;;  %v5581_v47 = vsub.f32 1.0, %v5580_v54  ;;  %vm5600_vm7 = vweird.f32 %v5484_v24 }
 0x6d0   : > { %v5607_v52 = vor.u32 1.1754944e-38, %v5606_v9  ;;  %vm5605_vm9 = vcmp.eq.f32.partialorder %v5604_v34, 8.507059e+37 }
 0x6d1   : > { %5777 = vst [vmem:[%s12020_s24 + $0x30] sm:$0xff] %v5577_v55  ;;  %v5582_v56 = vmul.f32 %v8184_v25, %v5581_v47 }
 0x6d2   : > { %5778 = vst [vmem:[%s12020_s24 + $0x38] sm:$0xff] %v5578_v23 }
 0x6d3   : > { %v5583_v57 = vadd.f32 %v8184_v25, %v5582_v56 }
 0x6d4   : > { %v8186_v49 = vpop.eup %8185 }
 0x6d5   : > { %v5587_v36 = vsel %vm5586_vm4, %v8184_v25, %v5583_v57  ;;  %v5596_v18 = vmul.f32 %v8186_v49, %v5484_v24  ;;  %v5487_v15 = vpop.xlane.xlu1 %5486  ;;  %vm5601_vm6 = vweird.f32 %v8186_v49 }
 0x6d6   : > { %v5592_v16 = vsel %vm5589_vm5, %v5591_v60, %v5587_v36  ;;  %8187 = vrcp.f32 %v5487_v15  ;;  %vm5602_vm8 = vmor %vm5600_vm7, %vm5601_vm6  ;;  %v5622_v40 = vand.u32 2147483648, %v5487_v15  ;;  %v5620_v58 = vand.u32 2147483647, %v5487_v15 }
 0x6d7   : > { %v5593_v50 = vmul.f32 %v11916_v10, %v5592_v16  ;;  %v5594_v59 = vmul.f32 %v11918_v33, %v5592_v16  ;;  %v5597_v43 = vsub.f32 1.0, %v5596_v18  ;;  %vm5616_vm11 = vweird.f32 %v5487_v15 }
 0x6d8   : > { %v5623_v6 = vor.u32 1.1754944e-38, %v5622_v40  ;;  %vm5621_vm13 = vcmp.eq.f32.partialorder %v5620_v58, 8.507059e+37 }
 0x6d9   : > { %5779 = vst [vmem:[%s12020_s24 + $0x40] sm:$0xff] %v5593_v50  ;;  %v5598_v41 = vmul.f32 %v8186_v49, %v5597_v43 }
 0x6da   : > { %5780 = vst [vmem:[%s12020_s24 + $0x48] sm:$0xff] %v5594_v59 }
 0x6db   : > { %v5599_v29 = vadd.f32 %v8186_v49, %v5598_v41 }
 0x6dc   : > { %v8188_v4 = vpop.eup %8187 }
 0x6dd   : > { %v5603_v19 = vsel %vm5602_vm8, %v8186_v49, %v5599_v29  ;;  %v5612_v26 = vmul.f32 %v8188_v4, %v5487_v15  ;;  %v5490_v10 = vpop.xlane.xlu2 %5489  ;;  %vm5617_vm10 = vweird.f32 %v8188_v4 }
 0x6de   : > { %v5608_v63 = vsel %vm5605_vm9, %v5607_v52, %v5603_v19  ;;  %8189 = vrcp.f32 %v5490_v10  ;;  %vm5618_vm12 = vmor %vm5616_vm11, %vm5617_vm10  ;;  %v5638_v37 = vand.u32 2147483648, %v5490_v10  ;;  %v5636_v23 = vand.u32 2147483647, %v5490_v10 }
 0x6df   : > { %v5609_v33 = vmul.f32 %v11924_v53, %v5608_v63  ;;  %v5610_v7 = vmul.f32 %v11926_v30, %v5608_v63  ;;  %v5613_v42 = vsub.f32 1.0, %v5612_v26  ;;  %vm5632_vm15 = vweird.f32 %v5490_v10 }
 0x6e0   : > { %v5639_v56 = vor.u32 1.1754944e-38, %v5638_v37  ;;  %vm5637_vm2 = vcmp.eq.f32.partialorder %v5636_v23, 8.507059e+37 }
 0x6e1   : > { %5781 = vst [vmem:[%s12020_s24 + $0x50] sm:$0xff] %v5609_v33  ;;  %v5614_v20 = vmul.f32 %v8188_v4, %v5613_v42 }
 0x6e2   : > { %5782 = vst [vmem:[%s12020_s24 + $0x58] sm:$0xff] %v5610_v7 }
 0x6e3   : > { %v5615_v61 = vadd.f32 %v8188_v4, %v5614_v20 }
 0x6e4   : > { %v8190_v48 = vpop.eup %8189 }
 0x6e5   : > { %v5619_v25 = vsel %vm5618_vm12, %v8188_v4, %v5615_v61  ;;  %v5628_v38 = vmul.f32 %v8190_v48, %v5490_v10  ;;  %v5493_v53 = vpop.xlane.xlu0 %5492  ;;  %vm5633_vm14 = vweird.f32 %v8190_v48 }
 0x6e6   : > { %v5624_v13 = vsel %vm5621_vm13, %v5623_v6, %v5619_v25  ;;  %8191 = vrcp.f32 %v5493_v53  ;;  %vm5634_vm1 = vmor %vm5632_vm15, %vm5633_vm14  ;;  %v5654_v18 = vand.u32 2147483648, %v5493_v53  ;;  %v5652_v16 = vand.u32 2147483647, %v5493_v53 }
 0x6e7   : > { %v5625_v30 = vmul.f32 %v11932_v3, %v5624_v13  ;;  %v5626_v54 = vmul.f32 %v11934_v8, %v5624_v13  ;;  %v5629_v24 = vsub.f32 1.0, %v5628_v38  ;;  %vm5648_vm4 = vweird.f32 %v5493_v53 }
 0x6e8   : > { %v5655_v43 = vor.u32 1.1754944e-38, %v5654_v18  ;;  %vm5653_vm6 = vcmp.eq.f32.partialorder %v5652_v16, 8.507059e+37 }
 0x6e9   : > { %5783 = vst [vmem:[%s12020_s24 + $0x60] sm:$0xff] %v5625_v30  ;;  %v5630_v55 = vmul.f32 %v8190_v48, %v5629_v24 }
 0x6ea   : > { %5784 = vst [vmem:[%s12020_s24 + $0x68] sm:$0xff] %v5626_v54 }
 0x6eb   : > { %v5631_v47 = vadd.f32 %v8190_v48, %v5630_v55 }
 0x6ec   : > { %v8192_v32 = vpop.eup %8191 }
 0x6ed   : > { %v5635_v11 = vsel %vm5634_vm1, %v8190_v48, %v5631_v47  ;;  %v5644_v57 = vmul.f32 %v8192_v32, %v5493_v53  ;;  %v5496_v3 = vpop.xlane.xlu1 %5495  ;;  %vm5649_vm3 = vweird.f32 %v8192_v32 }
 0x6ee   : > { %v5640_v49 = vsel %vm5637_vm2, %v5639_v56, %v5635_v11  ;;  %8193 = vrcp.f32 %v5496_v3  ;;  %vm5650_vm5 = vmor %vm5648_vm4, %vm5649_vm3  ;;  %v5670_v52 = vand.u32 2147483648, %v5496_v3  ;;  %v5668_v26 = vand.u32 2147483647, %v5496_v3 }
 0x6ef   : > { %v5641_v8 = vmul.f32 %v11940_v46, %v5640_v49  ;;  %v5642_v60 = vmul.f32 %v11942_v35, %v5640_v49  ;;  %v5645_v36 = vsub.f32 1.0, %v5644_v57  ;;  %vm5664_vm8 = vweird.f32 %v5496_v3 }
 0x6f0   : > { %v5671_v33 = vor.u32 1.1754944e-38, %v5670_v52  ;;  %vm5669_vm10 = vcmp.eq.f32.partialorder %v5668_v26, 8.507059e+37 }
 0x6f1   : > { %5785 = vst [vmem:[%s12020_s24 + $0x70] sm:$0xff] %v5641_v8  ;;  %v5646_v15 = vmul.f32 %v8192_v32, %v5645_v36 }
 0x6f2   : > { %5786 = vst [vmem:[%s12020_s24 + $0x78] sm:$0xff] %v5642_v60 }
 0x6f3   : > { %v5647_v50 = vadd.f32 %v8192_v32, %v5646_v15 }
 0x6f4   : > { %v8194_v59 = vpop.eup %8193 }
 0x6f5   : > { %v5651_v9 = vsel %vm5650_vm5, %v8192_v32, %v5647_v50  ;;  %v5660_v41 = vmul.f32 %v8194_v59, %v5496_v3  ;;  %v5499_v46 = vpop.xlane.xlu2 %5498  ;;  %vm5665_vm7 = vweird.f32 %v8194_v59 }
 0x6f6   : > { %v5656_v34 = vsel %vm5653_vm6, %v5655_v43, %v5651_v9  ;;  %8195 = vrcp.f32 %v5499_v46  ;;  %vm5666_vm9 = vmor %vm5664_vm8, %vm5665_vm7  ;;  %v5686_v61 = vand.u32 2147483648, %v5499_v46  ;;  %v5684_v6 = vand.u32 2147483647, %v5499_v46 }
 0x6f7   : > { %v5657_v35 = vmul.f32 %v11948_v22, %v5656_v34  ;;  %v5658_v29 = vmul.f32 %v11950_v31, %v5656_v34  ;;  %v5661_v4 = vsub.f32 1.0, %v5660_v41  ;;  %vm5680_vm12 = vweird.f32 %v5499_v46 }
 0x6f8   : > { %v5687_v53 = vor.u32 1.1754944e-38, %v5686_v61  ;;  %vm5685_vm14 = vcmp.eq.f32.partialorder %v5684_v6, 8.507059e+37 }
 0x6f9   : > { %5787 = vst [vmem:[%s12020_s24 + $0x80] sm:$0xff] %v5657_v35  ;;  %v5662_v19 = vmul.f32 %v8194_v59, %v5661_v4 }
 0x6fa   : > { %5788 = vst [vmem:[%s12020_s24 + $0x88] sm:$0xff] %v5658_v29 }
 0x6fb   : > { %v5663_v10 = vadd.f32 %v8194_v59, %v5662_v19 }
 0x6fc   : > { %v8196_v63 = vpop.eup %8195 }
 0x6fd   : > { %v5667_v7 = vsel %vm5666_vm9, %v8194_v59, %v5663_v10  ;;  %v5676_v42 = vmul.f32 %v8196_v63, %v5499_v46  ;;  %v5502_v22 = vpop.xlane.xlu0 %5501  ;;  %vm5681_vm11 = vweird.f32 %v8196_v63 }
 0x6fe   : > { %v5672_v40 = vsel %vm5669_vm10, %v5671_v33, %v5667_v7  ;;  %8197 = vrcp.f32 %v5502_v22  ;;  %vm5682_vm13 = vmor %vm5680_vm12, %vm5681_vm11  ;;  %v5702_v55 = vand.u32 2147483648, %v5502_v22  ;;  %v5700_v47 = vand.u32 2147483647, %v5502_v22 }
 0x6ff   : > { %v5673_v31 = vmul.f32 %v11956_v27, %v5672_v40  ;;  %v5674_v20 = vmul.f32 %v11958_v28, %v5672_v40  ;;  %v5677_v58 = vsub.f32 1.0, %v5676_v42  ;;  %vm5696_vm1 = vweird.f32 %v5502_v22 }
 0x700   : > { %v5703_v11 = vor.u32 1.1754944e-38, %v5702_v55  ;;  %vm5701_vm3 = vcmp.eq.f32.partialorder %v5700_v47, 8.507059e+37 }
 0x701   : > { %5789 = vst [vmem:[%s12020_s24 + $0x90] sm:$0xff] %v5673_v31  ;;  %v5678_v48 = vmul.f32 %v8196_v63, %v5677_v58 }
 0x702   : > { %5790 = vst [vmem:[%s12020_s24 + $0x98] sm:$0xff] %v5674_v20 }
 0x703   : > { %v5679_v25 = vadd.f32 %v8196_v63, %v5678_v48 }
 0x704   : > { %v8198_v38 = vpop.eup %8197 }
 0x705   : > { %v5683_v13 = vsel %vm5682_vm13, %v8196_v63, %v5679_v25  ;;  %v5692_v30 = vmul.f32 %v8198_v38, %v5502_v22  ;;  %v5505_v27 = vpop.xlane.xlu1 %5504  ;;  %vm5697_vm15 = vweird.f32 %v8198_v38 }
 0x706   : > { %v5688_v54 = vsel %vm5685_vm14, %v5687_v53, %v5683_v13  ;;  %8199 = vrcp.f32 %v5505_v27  ;;  %vm5698_vm2 = vmor %vm5696_vm1, %vm5697_vm15  ;;  %v5718_v36 = vand.u32 2147483648, %v5505_v27  ;;  %v5716_v15 = vand.u32 2147483647, %v5505_v27 }
 0x707   : > { %v5689_v28 = vmul.f32 %v11964_v51, %v5688_v54  ;;  %v5690_v24 = vmul.f32 %v11966_v39, %v5688_v54  ;;  %v5693_v37 = vsub.f32 1.0, %v5692_v30  ;;  %vm5712_vm5 = vweird.f32 %v5505_v27 }
 0x708   : > { %v5719_v59 = vor.u32 1.1754944e-38, %v5718_v36  ;;  %vm5717_vm7 = vcmp.eq.f32.partialorder %v5716_v15, 8.507059e+37 }
 0x709   : > { %5791 = vst [vmem:[%s12020_s24 + $0xa0] sm:$0xff] %v5689_v28  ;;  %v5694_v23 = vmul.f32 %v8198_v38, %v5693_v37 }
 0x70a   : > { %5792 = vst [vmem:[%s12020_s24 + $0xa8] sm:$0xff] %v5690_v24 }
 0x70b   : > { %v5695_v32 = vadd.f32 %v8198_v38, %v5694_v23 }
 0x70c   : > { %v8200_v56 = vpop.eup %8199 }
 0x70d   : > { %v5699_v57 = vsel %vm5698_vm2, %v8198_v38, %v5695_v32  ;;  %v5708_v3 = vmul.f32 %v8200_v56, %v5505_v27  ;;  %v5508_v51 = vpop.xlane.xlu2 %5507  ;;  %vm5713_vm4 = vweird.f32 %v8200_v56 }
 0x70e   : > { %v5704_v49 = vsel %vm5701_vm3, %v5703_v11, %v5699_v57  ;;  %8201 = vrcp.f32 %v5508_v51  ;;  %vm5714_vm6 = vmor %vm5712_vm5, %vm5713_vm4  ;;  %v5734_v29 = vand.u32 2147483648, %v5508_v51  ;;  %v5732_v19 = vand.u32 2147483647, %v5508_v51 }
 0x70f   : > { %v5705_v39 = vmul.f32 %v11972_v62, %v5704_v49  ;;  %v5706_v8 = vmul.f32 %v11974_v45, %v5704_v49  ;;  %v5709_v60 = vsub.f32 1.0, %v5708_v3  ;;  %vm5728_vm9 = vweird.f32 %v5508_v51 }
 0x710   : > { %v5735_v63 = vor.u32 1.1754944e-38, %v5734_v29  ;;  %vm5733_vm11 = vcmp.eq.f32.partialorder %v5732_v19, 8.507059e+37 }
 0x711   : > { %5793 = vst [vmem:[%s12020_s24 + $0xb0] sm:$0xff] %v5705_v39  ;;  %v5710_v18 = vmul.f32 %v8200_v56, %v5709_v60 }
 0x712   : > { %5794 = vst [vmem:[%s12020_s24 + $0xb8] sm:$0xff] %v5706_v8 }
 0x713   : > { %v5711_v16 = vadd.f32 %v8200_v56, %v5710_v18 }
 0x714   : > { %v8202_v50 = vpop.eup %8201 }
 0x715   : > { %v5715_v43 = vsel %vm5714_vm6, %v8200_v56, %v5711_v16  ;;  %v5724_v9 = vmul.f32 %v8202_v50, %v5508_v51  ;;  %v5511_v62 = vpop.xlane.xlu0 %5510  ;;  %v4357_v45 = vpop.xlane.xlu2 %4356  ;;  %vm5729_vm8 = vweird.f32 %v8202_v50 }
 0x716   : > { %v5720_v41 = vsel %vm5717_vm7, %v5719_v59, %v5715_v43  ;;  %8203 = vrcp.f32 %v5511_v62  ;;  %v4380_v4 = vadd.f32 %v11331_v44, %v4357_v45  ;;  %vm5730_vm10 = vmor %vm5728_vm9, %vm5729_vm8  ;;  %v5750_v48 = vand.u32 2147483648, %v5511_v62 }
 0x717   : > { %v5721_v46 = vmul.f32 %v11980_v5, %v5720_v41  ;;  %v5722_v34 = vmul.f32 %v11982_v12, %v5720_v41  ;;  %v5725_v35 = vsub.f32 1.0, %v5724_v9  ;;  %v5748_v25 = vand.u32 2147483647, %v5511_v62 }
 0x718   : > { %4397 = vst.msk [vmem:[%s11345_s23 + $0x60] sm:$0xff] %vm4384_vm0, %v4380_v4  ;;  %vm5744_vm13 = vweird.f32 %v5511_v62 }
 0x719   : > { %5795 = vst [vmem:[%s12020_s24 + $0xc0] sm:$0xff] %v5721_v46  ;;  %v5726_v52 = vmul.f32 %v8202_v50, %v5725_v35  ;;  %vm5749_vm15 = vcmp.eq.f32.partialorder %v5748_v25, 8.507059e+37 }
 0x71a   : > { %5796 = vst [vmem:[%s12020_s24 + $0xc8] sm:$0xff] %v5722_v34 }
 0x71b   : > { %v5727_v26 = vadd.f32 %v8202_v50, %v5726_v52 }
 0x71c   : > { %v8204_v10 = vpop.eup %8203 }
 0x71d   : > { %v5731_v5 = vsel %vm5730_vm10, %v8202_v50, %v5727_v26  ;;  %v5740_v12 = vmul.f32 %v8204_v10, %v5511_v62  ;;  %v4360_v33 = vpop.xlane.xlu0 %4359  ;;  %v4366_v7 = vpop.xlane.xlu2 %4365  ;;  %vm5745_vm12 = vweird.f32 %v8204_v10 }
 0x71e   : > { %v5736_v42 = vsel %vm5733_vm11, %v5735_v63, %v5731_v5  ;;  %v4381_v22 = vadd.f32 %v11331_v44, %v4360_v33  ;;  %v5514_v40 = vpop.xlane.xlu1 %5513  ;;  %v4383_v31 = vadd.f32 %v11331_v44, %v4366_v7  ;;  %vm5746_vm14 = vmor %vm5744_vm13, %vm5745_vm12 }
 0x71f   : > { %v5737_v20 = vmul.f32 %v11989_v1, %v5736_v42  ;;  %v5738_v58 = vmul.f32 %v11993_v2, %v5736_v42  ;;  %v5741_v61 = vsub.f32 1.0, %v5740_v12  ;;  %8205 = vrcp.f32 %v5514_v40 }
 0x720   : > { %4398 = vst.msk [vmem:[%s11345_s23 + $0x68] sm:$0xff] %vm4384_vm0, %v4381_v22  ;;  %v5751_v1 = vor.u32 1.1754944e-38, %v5750_v48  ;;  %v5766_v55 = vand.u32 2147483648, %v5514_v40  ;;  %v5764_v47 = vand.u32 2147483647, %v5514_v40  ;;  %vm5760_vm2 = vweird.f32 %v5514_v40 }
 0x721   : > { %5797 = vst [vmem:[%s12020_s24 + $0xd0] sm:$0xff] %v5737_v20  ;;  %v5742_v6 = vmul.f32 %v8204_v10, %v5741_v61 }
 0x722   : > { %5798 = vst [vmem:[%s12020_s24 + $0xd8] sm:$0xff] %v5738_v58  ;;  %vm5765_vm4 = vcmp.eq.f32.partialorder %v5764_v47, 8.507059e+37 }
 0x723   : > { %v5743_v38 = vadd.f32 %v8204_v10, %v5742_v6  ;;  %4400 = vst.msk [vmem:[%s11345_s23 + $0x78] sm:$0xff] %vm4384_vm0, %v4383_v31 }
 0x725   : > { %v8206_v2 = vpop.eup %8205  ;;  %v5747_v53 = vsel %vm5746_vm14, %v8204_v10, %v5743_v38 }
 0x726   : > { %v5752_v13 = vsel %vm5749_vm15, %v5751_v1, %v5747_v53  ;;  %v5756_v30 = vmul.f32 %v8206_v2, %v5514_v40  ;;  %v4363_v27 = vpop.xlane.xlu1 %4362  ;;  %vm5761_vm1 = vweird.f32 %v8206_v2 }
 0x727   : > { %v5753_v54 = vmul.f32 %v11999_v17, %v5752_v13  ;;  %v5754_v28 = vmul.f32 %v12001_v0, %v5752_v13  ;;  %v4382_v24 = vadd.f32 %v11331_v44, %v4363_v27  ;;  %vm5762_vm3 = vmor %vm5760_vm2, %vm5761_vm1  ;;  %v5767_v44 = vor.u32 1.1754944e-38, %v5766_v55 }
 0x728   : > { %v5757_v37 = vsub.f32 1.0, %v5756_v30 }
 0x729   : > { %5799 = vst [vmem:[%s12020_s24 + $0xe0] sm:$0xff] %v5753_v54 }
 0x72a   : > { %5800 = vst [vmem:[%s12020_s24 + $0xe8] sm:$0xff] %v5754_v28  ;;  %v5758_v23 = vmul.f32 %v8206_v2, %v5757_v37 }
 0x72b   : > { %4399 = vst.msk [vmem:[%s11345_s23 + $0x70] sm:$0xff] %vm4384_vm0, %v4382_v24  ;;  %s5804_s23 = scalar_lea.sflag [#allocation3], %s327_s21 }
 0x72c   : > { %v5759_v17 = vadd.f32 %v8206_v2, %v5758_v23 }
 0x72e   : > { %v5763_v0 = vsel %vm5762_vm3, %v8206_v2, %v5759_v17 }
 0x72f   : > { %v5768_v32 = vsel %vm5765_vm4, %v5767_v44, %v5763_v0 }
 0x730   : > { %v5769_v56 = vmul.f32 %v12006_v21, %v5768_v32  ;;  %v5770_v11 = vmul.f32 %v12008_v14, %v5768_v32 }
 0x732   : > { %5801 = vst [vmem:[%s12020_s24 + $0xf0] sm:$0xff] %v5769_v56 }
 0x733   : > { %5802 = vst [vmem:[%s12020_s24 + $0xf8] sm:$0xff] %v5770_v11 }
 0x734   : > { %8240 = shalt.err (!%p8237_p3)
}
 0x735   : > { %s8277_s21 = smov 256   ;;  %s8278_s24 = smov 16  }
 0x736   : > { %8070 = dma.vmem_to_hbm [thread:$0]  (%p8367_p5), %s5823_s13, 4096, %s5825_s16, %s5804_s23, %s8277_s21, %s8277_s21, %s8278_s24  }
 0x737 PF: > { %p8076_p4 = scmp.ge.s32.totalorder %s8275_s12, 2  ;;  %s5843_s27 = sand.u32 1, %s8263_s30  }
 0x738   : > { %s5844_s28 = scalar_lea.sflag [#allocation3], %s5843_s27 }
 0x739   : > { %p8073_p7 = pnand %p8076_p4, %p8371_p6 }
 0x73b   : > { %p8074_p8 = pneg %p8073_p7 }
 0x73d   : > { %8258 = dma.done.wait (%p8074_p8), %s5844_s28, 4096  }
 0x73e   : > { %8260 = vsyncadd (%p8074_p8), %s5844_s28, 4294963200  ;;  %s12256_s14 = sld [smem:[#allocation5_spill]]  ;;  %p20_p9 = scmp.ge.s32.totalorder %s8354_s15, 4  }
 0x73f   : > { %s12257_s30 = smov %s8267_s10  ;;  %s12258_s10 = smov %s8271_s11 }
 0x740   : > { %s12260_s12 = smov %s8354_s15  ;;  %22 = sbr.rel (!%p20_p9) target bundleno = 5 (0x5), region = 99 }
 0x744   : > { %s12259_s11 = smov %s12256_s14 }
 0x745   :  { %5858 = vsyncpa [#allocation3], 1 }
 0x746   :  { %5860 = vsyncpa [#allocation3 + $0x1], 1 }

</bundles_post_ra>
